<compile_context>
chip_gen: v7x
topology: tpu7x:2x2x1
jax: 0.10.0
libtpu: 0.0.40
codegen_flags: <defaults>
</compile_context>

<pallas_src>
import numpy as np
import jax
import jax.numpy as jnp
from jax import lax
from jax.experimental import pallas as pl
from jax.experimental.pallas import tpu as pltpu

_BIG = 1e9          # squared distance assigned to padded candidate rows

_TM = 512           # query tile   (lane axis of the d2^T block)
_TN = 1024          # candidate tile (sublane axis of the d2^T block)
_Q_ALIGN = 1024     # query padding granularity = lcm(_TM, 8*128)

_OFFS6 = [(1, 0, 0), (-1, 0, 0), (0, 1, 0), (0, -1, 0), (0, 0, 1), (0, 0, -1)]
_OFFS26 = [(dx, dy, dz)
           for dx in (-1, 0, 1) for dy in (-1, 0, 1) for dz in (-1, 0, 1)
           if (dx, dy, dz) != (0, 0, 0)]


# ---------------------------------------------------------------------------
# Kernel 1: pruned brute-force EDT.
# grid = (query blocks, candidate blocks); candidate axis is the reduction.
# Per step: two (tn,5)x(5,tm) MXU matmuls give d2^T directly; elementwise
# running min in VMEM scratch (first step writes directly, no init fill).
# Cross-sublane min + sqrt + fg/bg override only at the last candidate step,
# written as lane-dense (1, tm) blocks.
# ---------------------------------------------------------------------------
def _edt_kernel(q_ref, ppos_ref, pneg_ref, qtype_ref,
                posd_ref, negd_ref, pos_acc, neg_acc):
    j = pl.program_id(1)

    q = q_ref[...]                                     # (tm, 5)
    # d2^T = P @ Q^T : (tn, tm); candidates on sublanes, queries on lanes.
    d2_pos = lax.dot_general(ppos_ref[...], q, (((1,), (1,)), ((), ())),
                             preferred_element_type=jnp.float32)
    d2_neg = lax.dot_general(pneg_ref[...], q, (((1,), (1,)), ((), ())),
                             preferred_element_type=jnp.float32)

    @pl.when(j == 0)
    def _first():
        pos_acc[...] = d2_pos                          # no init fill / no RMW
        neg_acc[...] = d2_neg

    @pl.when(j > 0)
    def _accum():
        pos_acc[...] = jnp.minimum(pos_acc[...], d2_pos)   # elementwise (VPU)
        neg_acc[...] = jnp.minimum(neg_acc[...], d2_neg)

    @pl.when(j == pl.num_programs(1) - 1)
    def _finish():
        qt = qtype_ref[...]                            # (1, tm): 1 fg, 0 bg, -1 pad
        posd = jnp.sqrt(jnp.maximum(
            jnp.min(pos_acc[...], axis=0, keepdims=True), 0.0))
        negd = jnp.sqrt(jnp.maximum(
            jnp.min(neg_acc[...], axis=0, keepdims=True), 0.0))
        posd_ref[...] = jnp.where(qt > 0.5, posd, 0.0)            # bg / pad -> 0
        negd_ref[...] = jnp.where(jnp.abs(qt) > 0.5, 0.0, negd)   # fg / pad -> 0


# ---------------------------------------------------------------------------
# Kernel 2: normalization + boundary zeroing.  Sublane-dense (rb, 128) tiles,
# min/max scalars passed via SMEM (pmin, 1/(pmax-pmin), nmin, 1/(nmax-nmin)).
# ---------------------------------------------------------------------------
def _finalize_kernel(stats_ref, pos_ref, neg_ref, bnd_ref, out_ref):
    pmin = stats_ref[0]
    pinv = stats_ref[1]
    nmin = stats_ref[2]
    ninv = stats_ref[3]
    sdf = (neg_ref[...] - nmin) * ninv - (pos_ref[...] - pmin) * pinv
    out_ref[...] = jnp.where(bnd_ref[...] > 0.5, 0.0, sdf)


# ---------------------------------------------------------------------------
# Host-side helpers (boundary / candidate extraction; data-dependent shapes).
# ---------------------------------------------------------------------------
def _shift_bool(a, off):
    """Shift a boolean volume by `off` with False fill (no wrap-around)."""
    out = np.zeros_like(a)
    src, dst = [], []
    for ax, d in enumerate(off):
        size = a.shape[ax]
        if d == 0:
            src.append(slice(None)); dst.append(slice(None))
        elif d > 0:
            src.append(slice(0, size - d)); dst.append(slice(d, size))
        else:
            src.append(slice(-d, size)); dst.append(slice(0, size + d))
    out[tuple(dst)] = a[tuple(src)]
    return out


def _has_neighbor(a, offsets):
    """Voxels with at least one True in-array neighbor at the given offsets
    (offset set must be symmetric, which _OFFS6 / _OFFS26 are)."""
    out = np.zeros_like(a)
    for off in offsets:
        out |= _shift_bool(a, off)
    return out


def _candidate_matrix(xyz, m_pad, center):
    """Rows [-2cx, -2cy, -2cz, 1, |c|^2] (centered); padding rows yield d2=_BIG."""
    m = xyz.shape[0]
    p = np.zeros((m_pad, 5), np.float32)
    p[:, 4] = _BIG
    if m:
        c = xyz.astype(np.float64) - center
        p[:m, 0:3] = -2.0 * c
        p[:m, 3] = 1.0
        p[:m, 4] = (c * c).sum(1)
    return p


# ---------------------------------------------------------------------------
# Per-volume SDF
# ---------------------------------------------------------------------------
def _sdf_volume(mask_np, tm=_TM, tn=_TN):
    X, Y, Z = mask_np.shape
    n = X * Y * Z
    n_pad = int(pl.cdiv(n, _Q_ALIGN)) * _Q_ALIGN
    center = (np.array([X, Y, Z], np.float64) - 1.0) / 2.0

    # queries: all voxels, augmented to [c, |c|^2, 1] with centered coords
    xs, ys, zs = np.meshgrid(np.arange(X), np.arange(Y), np.arange(Z),
                             indexing="ij")
    coords = np.stack([xs, ys, zs], -1).reshape(n, 3).astype(np.float64) - center
    q = np.zeros((n_pad, 5), np.float32)
    q[:n, 0:3] = coords
    q[:n, 3] = (coords * coords).sum(1)
    q[:n, 4] = 1.0

    mask_flat = mask_np.reshape(n)
    qtype = np.full((1, n_pad), -1.0, np.float32)      # -1 = padded query
    qtype[0, :n] = mask_flat.astype(np.float32)        #  1 = fg, 0 = bg

    # candidate pruning: only boundary voxels can be the nearest neighbor
    fg = mask_np
    bg = ~mask_np
    outer_bg = bg & _has_neighbor(fg, _OFFS26)         # candidates for posdis
    inner_fg = fg & _has_neighbor(bg, _OFFS26)         # candidates for negdis
    bnd = fg & _has_neighbor(bg, _OFFS6)               # skimage 'inner' boundary

    pos_xyz = np.argwhere(outer_bg)
    neg_xyz = np.argwhere(inner_fg)
    m_pad = int(pl.cdiv(max(pos_xyz.shape[0], neg_xyz.shape[0], 1), tn)) * tn
    p_pos = _candidate_matrix(pos_xyz, m_pad, center)
    p_neg = _candidate_matrix(neg_xyz, m_pad, center)

    # ---- EDT kernel ----
    grid = (n_pad // tm, m_pad // tn)
    posd, negd = pl.pallas_call(
        _edt_kernel,
        out_shape=(jax.ShapeDtypeStruct((n_pad // tm, 1, tm), jnp.float32),
                   jax.ShapeDtypeStruct((n_pad // tm, 1, tm), jnp.float32)),
        grid_spec=pltpu.PrefetchScalarGridSpec(
            num_scalar_prefetch=0,
            grid=grid,
            in_specs=[
                pl.BlockSpec((tm, 5), lambda i, j: (i, 0)),   # query rows
                pl.BlockSpec((tn, 5), lambda i, j: (j, 0)),   # pos candidates
                pl.BlockSpec((tn, 5), lambda i, j: (j, 0)),   # neg candidates
                pl.BlockSpec((1, tm), lambda i, j: (0, i)),   # query type row
            ],
            out_specs=[
                pl.BlockSpec((None, 1, tm), lambda i, j: (i, 0, 0)),
                pl.BlockSpec((None, 1, tm), lambda i, j: (i, 0, 0)),
            ],
            scratch_shapes=[pltpu.VMEM((tn, tm), jnp.float32),
                            pltpu.VMEM((tn, tm), jnp.float32)],
        ),
        compiler_params=pltpu.CompilerParams(
            dimension_semantics=("parallel", "arbitrary"),
            vmem_limit_bytes=32 * 1024 * 1024),
    )(jnp.asarray(q), jnp.asarray(p_pos), jnp.asarray(p_neg), jnp.asarray(qtype))

    # ---- global min/max: 4 tiny reductions over the valid slice ----
    pflat = posd.reshape(-1)
    nflat = negd.reshape(-1)
    pv = pflat[:n]
    nv = nflat[:n]
    pmin = jnp.min(pv)
    pmax = jnp.max(pv)
    nmin = jnp.min(nv)
    nmax = jnp.max(nv)
    stats = jnp.stack([pmin, 1.0 / (pmax - pmin),
                       nmin, 1.0 / (nmax - nmin)]).astype(jnp.float32)

    # ---- finalize: normalize + zero boundary, (rows, 128) sublane-dense ----
    rows = n_pad // 128            # multiple of 8 by construction of _Q_ALIGN
    rb = 8
    while rows % (rb * 2) == 0 and rb * 2 <= 512:
        rb *= 2

    bnd_flat = np.zeros((n_pad,), np.float32)
    bnd_flat[:n] = bnd.reshape(n).astype(np.float32)

    sdf2d = pl.pallas_call(
        _finalize_kernel,
        out_shape=jax.ShapeDtypeStruct((rows, 128), jnp.float32),
        grid=(rows // rb,),
        in_specs=[
            pl.BlockSpec(memory_space=pltpu.MemorySpace.SMEM),  # stats (4,)
            pl.BlockSpec((rb, 128), lambda r: (r, 0)),
            pl.BlockSpec((rb, 128), lambda r: (r, 0)),
            pl.BlockSpec((rb, 128), lambda r: (r, 0)),
        ],
        out_specs=pl.BlockSpec((rb, 128), lambda r: (r, 0)),
        compiler_params=pltpu.CompilerParams(
            dimension_semantics=("parallel",)),
    )(stats,
      pflat.reshape(rows, 128),
      nflat.reshape(rows, 128),
      jnp.asarray(bnd_flat.reshape(rows, 128)))

    return sdf2d.reshape(-1)[:n].reshape(X, Y, Z)


def compute_sdf(img_gt, out_shape):
    """Pallas equivalent of the PyTorch/Numpy compute_sdf.forward.
    img_gt: (B, X, Y, Z) binary mask; out_shape: (B, C, X, Y, Z)."""
    B = int(out_shape[0])
    img_np = np.asarray(img_gt)
    vols = []
    for b in range(B):
        posmask = img_np[b].astype(np.uint8).astype(bool)
        if posmask.any():
            vols.append(_sdf_volume(posmask))
        else:
            vols.append(jnp.zeros(posmask.shape, jnp.float32))
    sdf_b = jnp.stack(vols, axis=0)                       # (B, X, Y, Z)
    # same sdf for every channel c (normalized_sdf[b][c] = sdf)
    return jnp.broadcast_to(sdf_b[:, None], tuple(out_shape)).astype(jnp.float32)


# ---------------------------------------------------------------------------
# Pure-numpy reference (full brute-force EDT, inner boundary) for verification.
# ---------------------------------------------------------------------------
def ref_compute_sdf(img_gt_np, out_shape):
    B, C = out_shape[0], out_shape[1]
    res = np.zeros(out_shape, dtype=np.float64)
    for b in range(B):
        posmask = img_gt_np[b].astype(bool)
        if not posmask.any():
            continue
        X, Y, Z = posmask.shape
        coords = np.stack(np.meshgrid(np.arange(X), np.arange(Y), np.arange(Z),
                                      indexing="ij"), -1).reshape(-1, 3).astype(np.float64)
        flat = posmask.reshape(-1)
        d2 = ((coords[:, None, :] - coords[None, :, :]) ** 2).sum(-1)
        posdis = np.sqrt(d2[:, ~flat].min(axis=1)).reshape(X, Y, Z)
        negdis = np.sqrt(d2[:, flat].min(axis=1)).reshape(X, Y, Z)
        bnd = np.zeros_like(posmask)
        bg = ~posmask
        for ax in range(3):
            for sh in (1, -1):
                rolled = np.roll(bg, sh, axis=ax)
                sl = [slice(None)] * 3
                sl[ax] = slice(0, 1) if sh == 1 else slice(-1, None)
                rolled[tuple(sl)] = False
                bnd |= rolled
        bnd &= posmask
        sdf = ((negdis - negdis.min()) / (negdis.max() - negdis.min())
               - (posdis - posdis.min()) / (posdis.max() - posdis.min()))
        sdf[bnd] = 0.0
        for c in range(C):
            res[b, c] = sdf
    return res


if __name__ == "__main__":
    key = jax.random.PRNGKey(0)
    B, C, X, Y, Z = 2, 2, 8, 8, 8
    img_gt = (jax.random.uniform(key, (B, X, Y, Z)) < 0.3).astype(jnp.float32)
    out_shape = (B, C, X, Y, Z)

    out = compute_sdf(img_gt, out_shape)
    out = jax.block_until_ready(out)

    ref = ref_compute_sdf(np.asarray(img_gt), out_shape)
    np.testing.assert_allclose(np.asarray(out), ref, atol=1e-4)
    print("KERNEL_OK")
</pallas_src>

<mosaic_0001>
module attributes {stable_mosaic.version = 11 : i64} {
  func.func @_edt_kernel(%arg0: i32, %arg1: i32, %arg2: memref<512x5xf32, #tpu.memory_space<vmem>>, %arg3: memref<1024x5xf32, #tpu.memory_space<vmem>>, %arg4: memref<1024x5xf32, #tpu.memory_space<vmem>>, %arg5: memref<1x512xf32, #tpu.memory_space<vmem>>, %arg6: memref<1x1x512xf32, #tpu.memory_space<vmem>>, %arg7: memref<1x1x512xf32, #tpu.memory_space<vmem>>, %arg8: memref<1024x512xf32, #tpu.memory_space<vmem>>, %arg9: memref<1024x512xf32, #tpu.memory_space<vmem>>) attributes {dimension_semantics = [#tpu.dimension_semantics<parallel>, #tpu.dimension_semantics<arbitrary>], iteration_bounds = array<i64: 2, 1>, scalar_prefetch = 0 : i64, scratch_operands = 2 : i64, tpu.core_type = #tpu.core_type<tc>, window_params = [{transform_indices = @transform_0, window_bounds = array<i64: 512, 5>}, {transform_indices = @transform_1, window_bounds = array<i64: 1024, 5>}, {transform_indices = @transform_2, window_bounds = array<i64: 1024, 5>}, {transform_indices = @transform_3, window_bounds = array<i64: 1, 512>}, {transform_indices = @transform_4, window_bounds = array<i64: 1, 1, 512>}, {transform_indices = @transform_5, window_bounds = array<i64: 1, 1, 512>}]} {
    %c0 = arith.constant 0 : index
    %c0_0 = arith.constant 0 : index
    %0 = vector.load %arg2[%c0, %c0_0] : memref<512x5xf32, #tpu.memory_space<vmem>>, vector<512x5xf32>
    %c0_1 = arith.constant 0 : index
    %c0_2 = arith.constant 0 : index
    %1 = vector.load %arg3[%c0_1, %c0_2] : memref<1024x5xf32, #tpu.memory_space<vmem>>, vector<1024x5xf32>
    %cst = arith.constant dense<0.000000e+00> : vector<1024x512xf32>
    %2 = tpu.matmul %1, %0, %cst {dimension_numbers = #tpu.dot_dimension_numbers<[1], [1], [0], [0], [0, 0, 1, 0], [], []>} : vector<1024x5xf32>, vector<512x5xf32>, vector<1024x512xf32> -> vector<1024x512xf32>
    %c0_3 = arith.constant 0 : index
    %c0_4 = arith.constant 0 : index
    %3 = vector.load %arg4[%c0_3, %c0_4] : memref<1024x5xf32, #tpu.memory_space<vmem>>, vector<1024x5xf32>
    %cst_5 = arith.constant dense<0.000000e+00> : vector<1024x512xf32>
    %4 = tpu.matmul %3, %0, %cst_5 {dimension_numbers = #tpu.dot_dimension_numbers<[1], [1], [0], [0], [0, 0, 1, 0], [], []>} : vector<1024x5xf32>, vector<512x5xf32>, vector<1024x512xf32> -> vector<1024x512xf32>
    %c0_i32 = arith.constant 0 : i32
    %5 = arith.cmpi eq, %arg1, %c0_i32 : i32
    %6 = arith.extui %5 : i1 to i32
    %c0_i32_6 = arith.constant 0 : i32
    %7 = arith.cmpi ne, %6, %c0_i32_6 : i32
    scf.if %7 {
      %c0_11 = arith.constant 0 : index
      %c0_12 = arith.constant 0 : index
      %14 = vector.load %arg8[%c0_11, %c0_12] : memref<1024x512xf32, #tpu.memory_space<vmem>>, vector<1024x512xf32>
      tpu.vector_store %arg8[%c0_11, %c0_12], %2 {strides = array<i32>} : memref<1024x512xf32, #tpu.memory_space<vmem>>, vector<1024x512xf32>,
      %c0_13 = arith.constant 0 : index
      %c0_14 = arith.constant 0 : index
      %15 = vector.load %arg9[%c0_13, %c0_14] : memref<1024x512xf32, #tpu.memory_space<vmem>>, vector<1024x512xf32>
      tpu.vector_store %arg9[%c0_13, %c0_14], %4 {strides = array<i32>} : memref<1024x512xf32, #tpu.memory_space<vmem>>, vector<1024x512xf32>,
    } else {
    }
    %c0_i32_7 = arith.constant 0 : i32
    %8 = arith.cmpi sgt, %arg1, %c0_i32_7 : i32
    %9 = arith.extui %8 : i1 to i32
    %c0_i32_8 = arith.constant 0 : i32
    %10 = arith.cmpi ne, %9, %c0_i32_8 : i32
    scf.if %10 {
      %c0_11 = arith.constant 0 : index
      %c0_12 = arith.constant 0 : index
      %14 = vector.load %arg8[%c0_11, %c0_12] : memref<1024x512xf32, #tpu.memory_space<vmem>>, vector<1024x512xf32>
      %15 = arith.minimumf %14, %2 : vector<1024x512xf32>
      %c0_13 = arith.constant 0 : index
      %c0_14 = arith.constant 0 : index
      %16 = vector.load %arg8[%c0_13, %c0_14] : memref<1024x512xf32, #tpu.memory_space<vmem>>, vector<1024x512xf32>
      tpu.vector_store %arg8[%c0_13, %c0_14], %15 {strides = array<i32>} : memref<1024x512xf32, #tpu.memory_space<vmem>>, vector<1024x512xf32>,
      %c0_15 = arith.constant 0 : index
      %c0_16 = arith.constant 0 : index
      %17 = vector.load %arg9[%c0_15, %c0_16] : memref<1024x512xf32, #tpu.memory_space<vmem>>, vector<1024x512xf32>
      %18 = arith.minimumf %17, %4 : vector<1024x512xf32>
      %c0_17 = arith.constant 0 : index
      %c0_18 = arith.constant 0 : index
      %19 = vector.load %arg9[%c0_17, %c0_18] : memref<1024x512xf32, #tpu.memory_space<vmem>>, vector<1024x512xf32>
      tpu.vector_store %arg9[%c0_17, %c0_18], %18 {strides = array<i32>} : memref<1024x512xf32, #tpu.memory_space<vmem>>, vector<1024x512xf32>,
    } else {
    }
    %c0_i32_9 = arith.constant 0 : i32
    %11 = arith.cmpi eq, %arg1, %c0_i32_9 : i32
    %12 = arith.extui %11 : i1 to i32
    %c0_i32_10 = arith.constant 0 : i32
    %13 = arith.cmpi ne, %12, %c0_i32_10 : i32
    scf.if %13 {
      %c0_11 = arith.constant 0 : index
      %c0_12 = arith.constant 0 : index
      %14 = vector.load %arg5[%c0_11, %c0_12] : memref<1x512xf32, #tpu.memory_space<vmem>>, vector<1x512xf32>
      %c0_13 = arith.constant 0 : index
      %c0_14 = arith.constant 0 : index
      %15 = vector.load %arg8[%c0_13, %c0_14] : memref<1024x512xf32, #tpu.memory_space<vmem>>, vector<1024x512xf32>
      %cst_15 = arith.constant dense<0x7F800000> : vector<512xf32>
      %16 = vector.multi_reduction <minimumf>, %15, %cst_15 [0] : vector<1024x512xf32> to vector<512xf32>
      %17 = vector.shape_cast %16 : vector<512xf32> to vector<1x512xf32>
      %cst_16 = arith.constant 0.000000e+00 : f32
      %18 = vector.broadcast %cst_16 : f32 to vector<1x512xf32>
      %19 = arith.maximumf %17, %18 : vector<1x512xf32>
      %20 = math.sqrt %19 : vector<1x512xf32>
      %c0_17 = arith.constant 0 : index
      %c0_18 = arith.constant 0 : index
      %21 = vector.load %arg9[%c0_17, %c0_18] : memref<1024x512xf32, #tpu.memory_space<vmem>>, vector<1024x512xf32>
      %cst_19 = arith.constant dense<0x7F800000> : vector<512xf32>
      %22 = vector.multi_reduction <minimumf>, %21, %cst_19 [0] : vector<1024x512xf32> to vector<512xf32>
      %23 = vector.shape_cast %22 : vector<512xf32> to vector<1x512xf32>
      %cst_20 = arith.constant 0.000000e+00 : f32
      %24 = vector.broadcast %cst_20 : f32 to vector<1x512xf32>
      %25 = arith.maximumf %23, %24 : vector<1x512xf32>
      %26 = math.sqrt %25 : vector<1x512xf32>
      %cst_21 = arith.constant 5.000000e-01 : f32
      %27 = vector.broadcast %cst_21 : f32 to vector<1x512xf32>
      %28 = arith.cmpf ogt, %14, %27 : vector<1x512xf32>
      %cst_22 = arith.constant 0.000000e+00 : f32
      %29 = vector.broadcast %cst_22 : f32 to vector<1x512xf32>
      %30 = arith.select %28, %20, %29 : vector<1x512xi1>, vector<1x512xf32>
      %c0_23 = arith.constant 0 : index
      %c0_24 = arith.constant 0 : index
      %c0_25 = arith.constant 0 : index
      %31 = vector.load %arg6[%c0_23, %c0_24, %c0_25] : memref<1x1x512xf32, #tpu.memory_space<vmem>>, vector<1x1x512xf32>
      %32 = vector.shape_cast %31 : vector<1x1x512xf32> to vector<1x512xf32>
      %33 = vector.shape_cast %30 : vector<1x512xf32> to vector<1x1x512xf32>
      tpu.vector_store %arg6[%c0_23, %c0_24, %c0_25], %33 {strides = array<i32>} : memref<1x1x512xf32, #tpu.memory_space<vmem>>, vector<1x1x512xf32>,
      %34 = math.absf %14 : vector<1x512xf32>
      %cst_26 = arith.constant 5.000000e-01 : f32
      %35 = vector.broadcast %cst_26 : f32 to vector<1x512xf32>
      %36 = arith.cmpf ogt, %34, %35 : vector<1x512xf32>
      %cst_27 = arith.constant 0.000000e+00 : f32
      %37 = vector.broadcast %cst_27 : f32 to vector<1x512xf32>
      %38 = arith.select %36, %37, %26 : vector<1x512xi1>, vector<1x512xf32>
      %c0_28 = arith.constant 0 : index
      %c0_29 = arith.constant 0 : index
      %c0_30 = arith.constant 0 : index
      %39 = vector.load %arg7[%c0_28, %c0_29, %c0_30] : memref<1x1x512xf32, #tpu.memory_space<vmem>>, vector<1x1x512xf32>
      %40 = vector.shape_cast %39 : vector<1x1x512xf32> to vector<1x512xf32>
      %41 = vector.shape_cast %38 : vector<1x512xf32> to vector<1x1x512xf32>
      tpu.vector_store %arg7[%c0_28, %c0_29, %c0_30], %41 {strides = array<i32>} : memref<1x1x512xf32, #tpu.memory_space<vmem>>, vector<1x1x512xf32>,
    } else {
    }
    return
  }
  func.func @transform_0(%arg0: i32, %arg1: i32) -> (i32, i32) {
    %c0_i32 = arith.constant 0 : i32
    %c0_i32_0 = arith.constant 0 : i32
    return %arg0, %c0_i32 : i32, i32
  }
  func.func @transform_1(%arg0: i32, %arg1: i32) -> (i32, i32) {
    %c0_i32 = arith.constant 0 : i32
    %c0_i32_0 = arith.constant 0 : i32
    return %arg1, %c0_i32 : i32, i32
  }
  func.func @transform_2(%arg0: i32, %arg1: i32) -> (i32, i32) {
    %c0_i32 = arith.constant 0 : i32
    %c0_i32_0 = arith.constant 0 : i32
    return %arg1, %c0_i32 : i32, i32
  }
  func.func @transform_3(%arg0: i32, %arg1: i32) -> (i32, i32) {
    %c0_i32 = arith.constant 0 : i32
    %c0_i32_0 = arith.constant 0 : i32
    return %c0_i32, %arg0 : i32, i32
  }
  func.func @transform_4(%arg0: i32, %arg1: i32) -> (i32, i32, i32) {
    %c0_i32 = arith.constant 0 : i32
    %c0_i32_0 = arith.constant 0 : i32
    %c0_i32_1 = arith.constant 0 : i32
    return %arg0, %c0_i32, %c0_i32_0 : i32, i32, i32
  }
  func.func @transform_5(%arg0: i32, %arg1: i32) -> (i32, i32, i32) {
    %c0_i32 = arith.constant 0 : i32
    %c0_i32_0 = arith.constant 0 : i32
    %c0_i32_1 = arith.constant 0 : i32
    return %arg0, %c0_i32, %c0_i32_0 : i32, i32, i32
  }
}

</mosaic_0001>

<bundles_post_ra>
// kernel: tpu_custom_call.1
= control target key start
LH: loop header
LB: loop body
LE: loop exit
PB: predicated region body
PF: predicated region fallthrough
CT: control target
= control target key end

     0   :  { %11 = vsyncpa [#allocation5], 0  ;;  %s16014_s0 = inlined_call_operand.vmem [shape: f32[1024,5], index: 0, kind: input, shape index: {}]   ;;  %s16015_s1 = inlined_call_operand.vmem [shape: f32[1024,5], index: 1, kind: input, shape index: {}]   ;;  %s16016_s2 = inlined_call_operand.vmem [shape: f32[1024,5], index: 2, kind: input, shape index: {}]   ;;  %s16017_s3 = inlined_call_operand.vmem [shape: f32[1,1024], index: 3, kind: input, shape index: {}]   ;;  %s16018_s4 = inlined_call_operand.hbm [shape: f32[2,1,512], index: 4, kind: output, shape index: {0}]   ;;  %s16019_s5 = inlined_call_operand.hbm [shape: f32[2,1,512], index: 5, kind: output, shape index: {1}]  }
   0x1   :  { %13 = vsyncpa [#allocation5 + $0x1], 0 }
   0x2   :  { %14 = vsyncpa [#allocation7], 0 }
   0x3   :  { %16 = vsyncpa [#allocation7 + $0x1], 0  ;;  %s13654_s18 = smov 0   ;;  %s13656_s19 = smov 0  }
   0x4   :  { %s13658_s20 = smov 0   ;;  %s13660_s21 = smov 0  }
   0x5   :  { %s13662_s22 = smov 0   ;;  %s13664_s23 = smov 0  }
   0x6 LB: > { %s11425_s24 = sadd.s32 4294967295, %s13619_s23   ;;  %s11426_s25 = sadd.s32 4294967294, %s13619_s23   ;;  %s13619_s23 = sphi %s13664_s23, %s22_s23   ;;  %s13615_s22 = sphi %s13662_s22, %s16031_s22   ;;  %s13611_s21 = sphi %s13660_s21, %s16030_s21   ;;  %s13607_s20 = sphi %s13658_s20, %s16029_s20   ;;  %s13603_s19 = sphi %s13656_s19, %s16028_s19   ;;  %s13599_s18 = sphi %s13654_s18, %s16027_s18  }
   0x7   : > { %s34_s26 = sadd.s32 1, %s13615_s22  ;;  %s145_s27 = sadd.s32 1, %s13607_s20 }
   0x8   : > { %p36_p0 = scmp.ge.s32.totalorder %s34_s26, 2  ;;  %p155_p1 = scmp.ne.s32.totalorder %s13607_s20, %s13603_s19 }
   0x9   : > { %p156_p2 = scmp.eq.s32.totalorder %s11425_s24, 1  ;;  %p161_p3 = scmp.ne.s32.totalorder %s13603_s19, %s13599_s18 }
   0xa   : > { %s16033_s26 = smov (%p36_p0, %s34_s26), 0  ;;  %p162_p5 = scmp.eq.s32.totalorder %s11426_s25, 1 }
   0xb   : > { %p13694_p4 = por %p156_p2, %p155_p1  ;;  %s142_s29 = ssub.s32 %s13615_s22, %s16033_s26 }
   0xc   : > { %p11431_p6 = scmp.ge.s32.totalorder %s13619_s23, 1  ;;  %p143_p7 = scmp.eq.s32.totalorder %s142_s29, 0 }
   0xd   : > { %p13701_p8 = por %p162_p5, %p161_p3  ;;  %p241_p9 = scmp.lt.s32.totalorder %s13619_s23, 3 }
   0xe   : > { %s13707_s6 = scalar_select %p143_p7, %s13607_s20, %s145_s27  }
   0xf   : > { %p242_p10 = pnand %p11431_p6, %p241_p9 }
  0x10   : > { %s13710_s7 = sshll.u32 (!%p242_p10), %s13611_s21, 6  ;;  %vm503_vm0 = vcmask (!%p242_p10), 39936   ;;  %v13715_v0 = vld [vmem:[%s16015_s1] sm:$0xff] (!%p242_p10)  ;;  %v393_v1 = vld [vmem:[%s16015_s1 + $0x90] sm:$0xff] (!%p242_p10)  ;;  %s15443_s29 = sand.u32 (!%p242_p10), 1, %s13603_s19  }
  0x11   : > { %245 = sbr.rel (%p242_p10) target bundleno = 1385 (0x569), region = 36  ;;  %p289_p11 = scmp.lt.s32.totalorder (!%p242_p10), %s13710_s7, 127  ;;  %12119 = vmatprep.mubr.msk.f32.mxu0 (!%p242_p10), %vm503_vm0, %v13715_v0  ;;  %12407 = vmatprep.mubr.msk.f32.mxu1 (!%p242_p10), %vm503_vm0, %v13715_v0  ;;  %vm13730_vm1 = vmpackc.low (!%p242_p10), %vm503_vm0, %vm503_vm0 }
  0x12   : > { %s15926_s8 = scalar_lea.hbm (!%p242_p10), %s16018_s4, %s13710_s7 }
  0x18   : > { %s290_s10 = scalar_select %p289_p11, %s13710_s7, 127 }
  0x1a   : > { %s11435_s11 = sshll.u32 %s290_s10, 3  ;;  %s11432_s10 = sshll.u32 %s15443_s29, 2 }
  0x1b   : > { %s13726_s14 = scalar_lea.vmem %s16014_s0, %s11435_s11  ;;  %s11436_s11 = sshll.u32 %s13611_s21, 2 }
  0x1c   : > { %v327_v2 = vld [vmem:[%s13726_s14 + $0x80] sm:$0xff]  ;;  %v328_v3 = vld [vmem:[%s13726_s14 + $0x88] sm:$0xff]  ;;  %v329_v13 = vld [vmem:[%s13726_s14 + $0x90] sm:$0xff]  ;;  %p15386_p12 = scmp.lt.s32.totalorder %s11436_s11, 7  ;;  %s15473_s13 = scalar_lea.vmem [#allocation4], %s11432_s10 }
  0x1d   : > { %v359_v4 = vld [vmem:[%s13726_s14 + $0x180] sm:$0xff]  ;;  %v13737_v5 = vpack.c.bf16 %v328_v3, %v327_v2  ;;  %v360_v6 = vld [vmem:[%s13726_s14 + $0x188] sm:$0xff]  ;;  %v330_v15 = vld [vmem:[%s13726_s14 + $0x98] sm:$0xff]  ;;  %s11273_s9 = sshll.u32 %s15473_s13, 4  ;;  %s15929_s9 = int_to_ptr.vmem [resolvable:$true] %s11273_s9 }
  0x1e   : > { %v311_v7 = vld [vmem:[%s13726_s14] sm:$0xff]  ;;  %v312_v8 = vld [vmem:[%s13726_s14 + $0x8] sm:$0xff]  ;;  %v13742_v9 = vpack.c.bf16 %v360_v6, %v359_v4  ;;  %v361_v16 = vld [vmem:[%s13726_s14 + $0x190] sm:$0xff]  ;;  %v13763_v18 = vpack.c.bf16 %v330_v15, %v329_v13  ;;  %s16035_s11 = smov (!%p15386_p12, %s11436_s11), 7  ;;  %s13509_s12 = scalar_lea.vmem %s15929_s9, 64 }
  0x1f   : > { %v13744_v10 = vpack.c.bf16 %v312_v8, %v311_v7  ;;  %v343_v11 = vld [vmem:[%s13726_s14 + $0x100] sm:$0xff]  ;;  %v344_v12 = vld [vmem:[%s13726_s14 + $0x108] sm:$0xff]  ;;  %13241 = vmatprep.subr.msk.bf16.mxu0 %vm13730_vm1, %v13737_v5  ;;  %v362_v17 = vld [vmem:[%s13726_s14 + $0x198] sm:$0xff]  ;;  %s15439_s27 = scalar_lea.vmem %s16017_s3, %s16035_s11  ;;  %s11254_s11 = scalar_lea.sflag [#allocation5], %s15443_s29 }
  0x20   : > { %v13752_v14 = vpack.c.bf16 %v344_v12, %v343_v11  ;;  %13289 = vmatprep.subr.msk.bf16.mxu1 %vm13730_vm1, %v13742_v9  ;;  %v13765_v19 = vpack.c.bf16 %v362_v17, %v361_v16  ;;  %v313_v20 = vld [vmem:[%s13726_s14 + $0x10] sm:$0xff]  ;;  %v314_v21 = vld [vmem:[%s13726_s14 + $0x18] sm:$0xff]  ;;  %v331_v24 = vld [vmem:[%s13726_s14 + $0xa0] sm:$0xff]  ;;  %p13510_p13 = scmp.ne.s32.totalorder %s15929_s9, %s13509_s12 }
  0x21   : > { %13244 = vmatpush3.bf16.xpose.msk.msra.mxu0 %vm13730_vm1, %v13744_v10  ;;  %v345_v22 = vld [vmem:[%s13726_s14 + $0x110] sm:$0xff]  ;;  %v346_v23 = vld [vmem:[%s13726_s14 + $0x118] sm:$0xff]  ;;  %v332_v25 = vld [vmem:[%s13726_s14 + $0xa8] sm:$0xff]  ;;  %v13784_v28 = vpack.c.bf16 %v314_v21, %v313_v20 }
  0x22   : > { %13292 = vmatpush3.bf16.xpose.msk.msra.mxu1 %vm13730_vm1, %v13752_v14  ;;  %13247 = vmatprep.subr.msk.bf16.mxu0 %vm13730_vm1, %v13763_v18  ;;  %v363_v26 = vld [vmem:[%s13726_s14 + $0x1a0] sm:$0xff]  ;;  %v364_v27 = vld [vmem:[%s13726_s14 + $0x1a8] sm:$0xff]  ;;  %v13786_v29 = vpack.c.bf16 %v346_v23, %v345_v22  ;;  %v13788_v30 = vpack.c.bf16 %v332_v25, %v331_v24  ;;  %v333_v36 = vld [vmem:[%s13726_s14 + $0xb0] sm:$0xff]  ;;  %p13511_p0 = pnand %p13510_p13, %p13694_p4 }
  0x23   : > { %13295 = vmatprep.subr.msk.bf16.mxu1 %vm13730_vm1, %v13765_v19  ;;  %v13790_v31 = vpack.c.bf16 %v364_v27, %v363_v26  ;;  %v315_v32 = vld [vmem:[%s13726_s14 + $0x20] sm:$0xff]  ;;  %v316_v33 = vld [vmem:[%s13726_s14 + $0x28] sm:$0xff]  ;;  %v334_v37 = vld [vmem:[%s13726_s14 + $0xb8] sm:$0xff] }
  0x24   : > { %v347_v34 = vld [vmem:[%s13726_s14 + $0x120] sm:$0xff]  ;;  %v348_v35 = vld [vmem:[%s13726_s14 + $0x128] sm:$0xff]  ;;  %v365_v38 = vld [vmem:[%s13726_s14 + $0x1b0] sm:$0xff]  ;;  %v13812_v40 = vpack.c.bf16 %v316_v33, %v315_v32  ;;  %v13816_v42 = vpack.c.bf16 %v334_v37, %v333_v36  ;;  %p13512_p1 = pneg %p13511_p0 }
  0x25   : > { %v366_v39 = vld [vmem:[%s13726_s14 + $0x1b8] sm:$0xff]  ;;  %v13814_v41 = vpack.c.bf16 %v348_v35, %v347_v34  ;;  %v317_v44 = vld [vmem:[%s13726_s14 + $0x30] sm:$0xff]  ;;  %v335_v48 = vld [vmem:[%s13726_s14 + $0xc0] sm:$0xff] }
  0x26   : > { %v13818_v43 = vpack.c.bf16 %v366_v39, %v365_v38  ;;  %v318_v45 = vld [vmem:[%s13726_s14 + $0x38] sm:$0xff]  ;;  %v349_v46 = vld [vmem:[%s13726_s14 + $0x130] sm:$0xff]  ;;  %v336_v49 = vld [vmem:[%s13726_s14 + $0xc8] sm:$0xff] }
  0x27   : > { %v350_v47 = vld [vmem:[%s13726_s14 + $0x138] sm:$0xff]  ;;  %v367_v50 = vld [vmem:[%s13726_s14 + $0x1c0] sm:$0xff]  ;;  %v368_v51 = vld [vmem:[%s13726_s14 + $0x1c8] sm:$0xff]  ;;  %v13840_v52 = vpack.c.bf16 %v318_v45, %v317_v44  ;;  %v13844_v54 = vpack.c.bf16 %v336_v49, %v335_v48 }
  0x28   : > { %v13842_v53 = vpack.c.bf16 %v350_v47, %v349_v46  ;;  %v13846_v55 = vpack.c.bf16 %v368_v51, %v367_v50  ;;  %v319_v56 = vld [vmem:[%s13726_s14 + $0x40] sm:$0xff]  ;;  %v320_v57 = vld [vmem:[%s13726_s14 + $0x48] sm:$0xff]  ;;  %v337_v60 = vld [vmem:[%s13726_s14 + $0xd0] sm:$0xff] }
  0x29   : > { %13250 = vmatpush3.bf16.xpose.msk.msra.mxu0 %vm13730_vm1, %v13784_v28  ;;  %v351_v58 = vld [vmem:[%s13726_s14 + $0x140] sm:$0xff]  ;;  %v352_v59 = vld [vmem:[%s13726_s14 + $0x148] sm:$0xff]  ;;  %v338_v61 = vld [vmem:[%s13726_s14 + $0xd8] sm:$0xff]  ;;  %v13868_v2 = vpack.c.bf16 %v320_v57, %v319_v56 }
  0x2a   : > { %13298 = vmatpush3.bf16.xpose.msk.msra.mxu1 %vm13730_vm1, %v13786_v29  ;;  %13253 = vmatprep.subr.msk.bf16.mxu0 %vm13730_vm1, %v13788_v30  ;;  %v369_v62 = vld [vmem:[%s13726_s14 + $0x1d0] sm:$0xff]  ;;  %v370_v63 = vld [vmem:[%s13726_s14 + $0x1d8] sm:$0xff]  ;;  %v13870_v3 = vpack.c.bf16 %v352_v59, %v351_v58  ;;  %v13872_v4 = vpack.c.bf16 %v338_v61, %v337_v60  ;;  %v339_v13 = vld [vmem:[%s13726_s14 + $0xe0] sm:$0xff] }
  0x2b   : > { %13301 = vmatprep.subr.msk.bf16.mxu1 %vm13730_vm1, %v13790_v31  ;;  %v13874_v6 = vpack.c.bf16 %v370_v63, %v369_v62  ;;  %v321_v7 = vld [vmem:[%s13726_s14 + $0x50] sm:$0xff]  ;;  %v322_v8 = vld [vmem:[%s13726_s14 + $0x58] sm:$0xff]  ;;  %v340_v15 = vld [vmem:[%s13726_s14 + $0xe8] sm:$0xff] }
  0x2c   : > { %v353_v11 = vld [vmem:[%s13726_s14 + $0x150] sm:$0xff]  ;;  %v354_v12 = vld [vmem:[%s13726_s14 + $0x158] sm:$0xff]  ;;  %v371_v16 = vld [vmem:[%s13726_s14 + $0x1e0] sm:$0xff]  ;;  %v13896_v20 = vpack.c.bf16 %v322_v8, %v321_v7  ;;  %v13900_v22 = vpack.c.bf16 %v340_v15, %v339_v13 }
  0x2d   : > { %v372_v17 = vld [vmem:[%s13726_s14 + $0x1e8] sm:$0xff]  ;;  %v13898_v21 = vpack.c.bf16 %v354_v12, %v353_v11  ;;  %v323_v24 = vld [vmem:[%s13726_s14 + $0x60] sm:$0xff]  ;;  %v341_v32 = vld [vmem:[%s13726_s14 + $0xf0] sm:$0xff] }
  0x2e   : > { %v13902_v23 = vpack.c.bf16 %v372_v17, %v371_v16  ;;  %v324_v25 = vld [vmem:[%s13726_s14 + $0x68] sm:$0xff]  ;;  %v355_v26 = vld [vmem:[%s13726_s14 + $0x160] sm:$0xff]  ;;  %v342_v33 = vld [vmem:[%s13726_s14 + $0xf8] sm:$0xff] }
  0x2f   : > { %v356_v27 = vld [vmem:[%s13726_s14 + $0x168] sm:$0xff]  ;;  %v373_v34 = vld [vmem:[%s13726_s14 + $0x1f0] sm:$0xff]  ;;  %v374_v35 = vld [vmem:[%s13726_s14 + $0x1f8] sm:$0xff]  ;;  %v13924_v36 = vpack.c.bf16 %v324_v25, %v323_v24  ;;  %v13928_v38 = vpack.c.bf16 %v342_v33, %v341_v32 }
  0x30   : > { %v13926_v37 = vpack.c.bf16 %v356_v27, %v355_v26  ;;  %v13930_v39 = vpack.c.bf16 %v374_v35, %v373_v34  ;;  %v325_v44 = vld [vmem:[%s13726_s14 + $0x70] sm:$0xff]  ;;  %v326_v45 = vld [vmem:[%s13726_s14 + $0x78] sm:$0xff]  ;;  %v376_v50 = vld [vmem:[%s16015_s1 + $0x8] sm:$0xff] }
  0x31   : > { %13256 = vmatpush3.bf16.xpose.msk.msra.mxu0 %vm13730_vm1, %v13812_v40  ;;  %v357_v46 = vld [vmem:[%s13726_s14 + $0x170] sm:$0xff]  ;;  %v358_v47 = vld [vmem:[%s13726_s14 + $0x178] sm:$0xff]  ;;  %v13948_v48 = vpack.c.bf16 %v326_v45, %v325_v44  ;;  %v392_v51 = vld [vmem:[%s16015_s1 + $0x88] sm:$0xff]  ;;  %s13622_s14 = smov [#allocation4]  }
  0x32   : > { %13304 = vmatpush3.bf16.xpose.msk.msra.mxu1 %vm13730_vm1, %v13814_v41  ;;  %13259 = vmatprep.subr.msk.bf16.mxu0 %vm13730_vm1, %v13816_v42  ;;  %v13950_v49 = vpack.c.bf16 %v358_v47, %v357_v46  ;;  %v398_v56 = vld [vmem:[%s16015_s1 + $0xb8] sm:$0xff]  ;;  %v399_v57 = vld [vmem:[%s16015_s1 + $0xc0] sm:$0xff]  ;;  %v400_v58 = vld [vmem:[%s16015_s1 + $0xc8] sm:$0xff]  ;;  %s13513_s15 = sshll.u32 %s13622_s14, 4  ;;  %s13514_s15 = int_to_ptr.vmem [resolvable:$false] %s13513_s15 }
  0x33   : > { %13307 = vmatprep.subr.msk.bf16.mxu1 %vm13730_vm1, %v13818_v43  ;;  %v401_v59 = vld [vmem:[%s16015_s1 + $0xd0] sm:$0xff]  ;;  %v402_v60 = vld [vmem:[%s16015_s1 + $0xd8] sm:$0xff]  ;;  %v403_v61 = vld [vmem:[%s16015_s1 + $0xe0] sm:$0xff]  ;;  %s13515_s16 = scalar_lea.vmem %s13514_s15, 128  ;;  %p13516_p2 = scmp.lt.s32.totalorder %s15929_s9, %s13514_s15 }
  0x34   : > { %v404_v62 = vld [vmem:[%s16015_s1 + $0xe8] sm:$0xff]  ;;  %v405_v63 = vld [vmem:[%s16015_s1 + $0xf0] sm:$0xff]  ;;  %v410_v7 = vld [vmem:[%s16015_s1 + $0x118] sm:$0xff]  ;;  %p13517_p3 = scmp.lt.s32.totalorder %s13515_s16, %s13509_s12 }
  0x35   : > { %v411_v8 = vld [vmem:[%s16015_s1 + $0x120] sm:$0xff]  ;;  %v412_v11 = vld [vmem:[%s16015_s1 + $0x128] sm:$0xff]  ;;  %v413_v12 = vld [vmem:[%s16015_s1 + $0x130] sm:$0xff] }
  0x36   : > { %v414_v13 = vld [vmem:[%s16015_s1 + $0x138] sm:$0xff]  ;;  %v415_v15 = vld [vmem:[%s16015_s1 + $0x140] sm:$0xff]  ;;  %v416_v16 = vld [vmem:[%s16015_s1 + $0x148] sm:$0xff]  ;;  %p13518_p5 = por %p13517_p3, %p13516_p2 }
  0x37   : > { %v417_v17 = vld [vmem:[%s16015_s1 + $0x150] sm:$0xff]  ;;  %v422_v24 = vld [vmem:[%s16015_s1 + $0x178] sm:$0xff]  ;;  %v423_v25 = vld [vmem:[%s16015_s1 + $0x180] sm:$0xff] }
  0x38   : > { %v424_v26 = vld [vmem:[%s16015_s1 + $0x188] sm:$0xff]  ;;  %v425_v27 = vld [vmem:[%s16015_s1 + $0x190] sm:$0xff]  ;;  %v426_v32 = vld [vmem:[%s16015_s1 + $0x198] sm:$0xff]  ;;  %p13519_p6 = pnand %p13518_p5, %p13512_p1 }
  0x39   : > { %13262 = vmatpush3.bf16.xpose.msk.msra.mxu0 %vm13730_vm1, %v13840_v52  ;;  %v427_v33 = vld [vmem:[%s16015_s1 + $0x1a0] sm:$0xff]  ;;  %v428_v34 = vld [vmem:[%s16015_s1 + $0x1a8] sm:$0xff]  ;;  %v429_v35 = vld [vmem:[%s16015_s1 + $0x1b0] sm:$0xff] }
  0x3a   : > { %13310 = vmatpush3.bf16.xpose.msk.msra.mxu1 %vm13730_vm1, %v13842_v53  ;;  %13265 = vmatprep.subr.msk.bf16.mxu0 %vm13730_vm1, %v13844_v54  ;;  %v430_v44 = vld [vmem:[%s16015_s1 + $0x1b8] sm:$0xff] }
  0x3b   : > { %13313 = vmatprep.subr.msk.bf16.mxu1 %vm13730_vm1, %v13846_v55 }
  0x41   : > { %13268 = vmatpush3.bf16.xpose.msk.msra.mxu0 %vm13730_vm1, %v13868_v2 }
  0x42   : > { %13316 = vmatpush3.bf16.xpose.msk.msra.mxu1 %vm13730_vm1, %v13870_v3  ;;  %13271 = vmatprep.subr.msk.bf16.mxu0 %vm13730_vm1, %v13872_v4 }
  0x43   : > { %13319 = vmatprep.subr.msk.bf16.mxu1 %vm13730_vm1, %v13874_v6 }
  0x49   : > { %13274 = vmatpush3.bf16.xpose.msk.msra.mxu0 %vm13730_vm1, %v13896_v20 }
  0x4a   : > { %13322 = vmatpush3.bf16.xpose.msk.msra.mxu1 %vm13730_vm1, %v13898_v21  ;;  %13277 = vmatprep.subr.msk.bf16.mxu0 %vm13730_vm1, %v13900_v22 }
  0x4b   : > { %13325 = vmatprep.subr.msk.bf16.mxu1 %vm13730_vm1, %v13902_v23 }
  0x51   : > { %13280 = vmatpush3.bf16.xpose.msk.msra.mxu0 %vm13730_vm1, %v13924_v36 }
  0x52   : > { %13328 = vmatpush3.bf16.xpose.msk.msra.mxu1 %vm13730_vm1, %v13926_v37  ;;  %13283 = vmatprep.subr.msk.bf16.mxu0 %vm13730_vm1, %v13928_v38 }
  0x53   : > { %13331 = vmatprep.subr.msk.bf16.mxu1 %vm13730_vm1, %v13930_v39 }
  0x59   : > { %13286 = vmatpush3.bf16.xpose.msk.msra.mxu0 %vm13730_vm1, %v13948_v48 }
  0x5a   : > { %13334 = vmatpush3.bf16.xpose.msk.msra.mxu1 %vm13730_vm1, %v13950_v49  ;;  %13337 = vmatprep.subr.msk.bf16.mxu0 %vm13730_vm1, %v13737_v5  ;;  %v377_v5 = vld [vmem:[%s16015_s1 + $0x10] sm:$0xff] }
  0x5b   : > { %13385 = vmatprep.subr.msk.bf16.mxu1 %vm13730_vm1, %v13742_v9  ;;  %v379_v9 = vld [vmem:[%s16015_s1 + $0x20] sm:$0xff] }
  0x60   : > { %12120 = vmatmul.mubr.msk.f32.vlgmr.msra.gmra.mrb[0].mxu0 %vm503_vm0, %v13715_v0 }
  0x61   : > { %12408 = vmatmul.mubr.msk.f32.vlgmr.msra.gmra.mrb[0].mxu1 %vm503_vm0, %v13715_v0  ;;  %13340 = vmatpush3.bf16.xpose.msk.msra.mxu0 %vm13730_vm1, %v13744_v10  ;;  %v378_v0 = vld [vmem:[%s16015_s1 + $0x18] sm:$0xff]  ;;  %v380_v10 = vld [vmem:[%s16015_s1 + $0x28] sm:$0xff] }
  0x62   : > { %13388 = vmatpush3.bf16.xpose.msk.msra.mxu1 %vm13730_vm1, %v13752_v14  ;;  %12121 = vmatprep.mubr.msk.f32.mxu0 %vm503_vm0, %v376_v50  ;;  %v381_v14 = vld [vmem:[%s16015_s1 + $0x30] sm:$0xff] }
  0x63   : > { %12409 = vmatprep.mubr.msk.f32.mxu1 %vm503_vm0, %v376_v50  ;;  %13343 = vmatprep.subr.msk.bf16.mxu0 %vm13730_vm1, %v13763_v18  ;;  %v382_v18 = vld [vmem:[%s16015_s1 + $0x38] sm:$0xff] }
  0x64   : > { %12122 = vmatmul.mubr.msk.f32.gmra.mrb[2].mxu0 %vm503_vm0, %v376_v50  ;;  %13391 = vmatprep.subr.msk.bf16.mxu1 %vm13730_vm1, %v13765_v19  ;;  %v383_v19 = vld [vmem:[%s16015_s1 + $0x40] sm:$0xff] }
  0x65   : > { %12410 = vmatmul.mubr.msk.f32.gmra.mrb[2].mxu1 %vm503_vm0, %v376_v50  ;;  %12123 = vmatprep.mubr.msk.f32.mxu0 %vm503_vm0, %v377_v5 }
  0x66   : > { %12411 = vmatprep.mubr.msk.f32.mxu1 %vm503_vm0, %v377_v5 }
  0x68   : > { %12124 = vmatmul.mubr.msk.f32.gmra.mrb[4].mxu0 %vm503_vm0, %v377_v5 }
  0x69   : > { %12412 = vmatmul.mubr.msk.f32.gmra.mrb[4].mxu1 %vm503_vm0, %v377_v5  ;;  %12125 = vmatprep.mubr.msk.f32.mxu0 %vm503_vm0, %v378_v0 }
  0x6a   : > { %12413 = vmatprep.mubr.msk.f32.mxu1 %vm503_vm0, %v378_v0  ;;  %13346 = vmatpush3.bf16.xpose.msk.msra.mxu0 %vm13730_vm1, %v13784_v28  ;;  %v384_v28 = vld [vmem:[%s16015_s1 + $0x48] sm:$0xff] }
  0x6b   : > { %13394 = vmatpush3.bf16.xpose.msk.msra.mxu1 %vm13730_vm1, %v13786_v29  ;;  %13349 = vmatprep.subr.msk.bf16.mxu0 %vm13730_vm1, %v13788_v30  ;;  %v385_v29 = vld [vmem:[%s16015_s1 + $0x50] sm:$0xff]  ;;  %v386_v30 = vld [vmem:[%s16015_s1 + $0x58] sm:$0xff] }
  0x6c   : > { %12126 = vmatmul.mubr.msk.f32.gmra.mrb[6].mxu0 %vm503_vm0, %v378_v0  ;;  %13397 = vmatprep.subr.msk.bf16.mxu1 %vm13730_vm1, %v13790_v31  ;;  %v387_v31 = vld [vmem:[%s16015_s1 + $0x60] sm:$0xff] }
  0x6d   : > { %12414 = vmatmul.mubr.msk.f32.gmra.mrb[6].mxu1 %vm503_vm0, %v378_v0  ;;  %12127 = vmatprep.mubr.msk.f32.mxu0 %vm503_vm0, %v379_v9 }
  0x6e   : > { %12415 = vmatprep.mubr.msk.f32.mxu1 %vm503_vm0, %v379_v9 }
  0x70   : > { %12128 = vmatmul.mubr.msk.f32.gmra.mrb[8].mxu0 %vm503_vm0, %v379_v9 }
  0x71   : > { %12416 = vmatmul.mubr.msk.f32.gmra.mrb[8].mxu1 %vm503_vm0, %v379_v9  ;;  %12129 = vmatprep.mubr.msk.f32.mxu0 %vm503_vm0, %v380_v10  ;;  %v431_v9 = vld [vmem:[%s16015_s1 + $0x1c0] sm:$0xff] }
  0x72   : > { %12417 = vmatprep.mubr.msk.f32.mxu1 %vm503_vm0, %v380_v10  ;;  %13352 = vmatpush3.bf16.xpose.msk.msra.mxu0 %vm13730_vm1, %v13812_v40  ;;  %v388_v40 = vld [vmem:[%s16015_s1 + $0x68] sm:$0xff] }
  0x73   : > { %13400 = vmatpush3.bf16.xpose.msk.msra.mxu1 %vm13730_vm1, %v13814_v41  ;;  %13355 = vmatprep.subr.msk.bf16.mxu0 %vm13730_vm1, %v13816_v42  ;;  %v389_v41 = vld [vmem:[%s16015_s1 + $0x70] sm:$0xff]  ;;  %v390_v42 = vld [vmem:[%s16015_s1 + $0x78] sm:$0xff] }
  0x74   : > { %12130 = vmatmul.mubr.msk.f32.gmra.mrb[10].mxu0 %vm503_vm0, %v380_v10  ;;  %13403 = vmatprep.subr.msk.bf16.mxu1 %vm13730_vm1, %v13818_v43  ;;  %v391_v43 = vld [vmem:[%s16015_s1 + $0x80] sm:$0xff] }
  0x75   : > { %12418 = vmatmul.mubr.msk.f32.gmra.mrb[10].mxu1 %vm503_vm0, %v380_v10  ;;  %12131 = vmatprep.mubr.msk.f32.mxu0 %vm503_vm0, %v381_v14 }
  0x76   : > { %12419 = vmatprep.mubr.msk.f32.mxu1 %vm503_vm0, %v381_v14 }
  0x78   : > { %12132 = vmatmul.mubr.msk.f32.gmra.mrb[12].mxu0 %vm503_vm0, %v381_v14 }
  0x79   : > { %12420 = vmatmul.mubr.msk.f32.gmra.mrb[12].mxu1 %vm503_vm0, %v381_v14  ;;  %12133 = vmatprep.mubr.msk.f32.mxu0 %vm503_vm0, %v382_v18 }
  0x7a   : > { %12421 = vmatprep.mubr.msk.f32.mxu1 %vm503_vm0, %v382_v18  ;;  %13358 = vmatpush3.bf16.xpose.msk.msra.mxu0 %vm13730_vm1, %v13840_v52  ;;  %v394_v52 = vld [vmem:[%s16015_s1 + $0x98] sm:$0xff] }
  0x7b   : > { %13406 = vmatpush3.bf16.xpose.msk.msra.mxu1 %vm13730_vm1, %v13842_v53  ;;  %13361 = vmatprep.subr.msk.bf16.mxu0 %vm13730_vm1, %v13844_v54  ;;  %v395_v53 = vld [vmem:[%s16015_s1 + $0xa0] sm:$0xff]  ;;  %v396_v54 = vld [vmem:[%s16015_s1 + $0xa8] sm:$0xff] }
  0x7c   : > { %12134 = vmatmul.mubr.msk.f32.gmra.mrb[14].mxu0 %vm503_vm0, %v382_v18  ;;  %13409 = vmatprep.subr.msk.bf16.mxu1 %vm13730_vm1, %v13846_v55  ;;  %v397_v55 = vld [vmem:[%s16015_s1 + $0xb0] sm:$0xff] }
  0x7d   : > { %12422 = vmatmul.mubr.msk.f32.gmra.mrb[14].mxu1 %vm503_vm0, %v382_v18  ;;  %12135 = vmatprep.mubr.msk.f32.mxu0 %vm503_vm0, %v383_v19 }
  0x7e   : > { %12423 = vmatprep.mubr.msk.f32.mxu1 %vm503_vm0, %v383_v19 }
  0x80   : > { %12136 = vmatmul.mubr.msk.f32.gmra.mrb[16].mxu0 %vm503_vm0, %v383_v19 }
  0x81   : > { %12424 = vmatmul.mubr.msk.f32.gmra.mrb[16].mxu1 %vm503_vm0, %v383_v19  ;;  %12137 = vmatprep.mubr.msk.f32.mxu0 %vm503_vm0, %v384_v28 }
  0x82   : > { %12425 = vmatprep.mubr.msk.f32.mxu1 %vm503_vm0, %v384_v28  ;;  %13364 = vmatpush3.bf16.xpose.msk.msra.mxu0 %vm13730_vm1, %v13868_v2  ;;  %v406_v2 = vld [vmem:[%s16015_s1 + $0xf8] sm:$0xff] }
  0x83   : > { %13412 = vmatpush3.bf16.xpose.msk.msra.mxu1 %vm13730_vm1, %v13870_v3  ;;  %13367 = vmatprep.subr.msk.bf16.mxu0 %vm13730_vm1, %v13872_v4  ;;  %v407_v3 = vld [vmem:[%s16015_s1 + $0x100] sm:$0xff]  ;;  %v408_v4 = vld [vmem:[%s16015_s1 + $0x108] sm:$0xff] }
  0x84   : > { %12138 = vmatmul.mubr.msk.f32.gmra.mrb[18].mxu0 %vm503_vm0, %v384_v28  ;;  %13415 = vmatprep.subr.msk.bf16.mxu1 %vm13730_vm1, %v13874_v6  ;;  %v409_v6 = vld [vmem:[%s16015_s1 + $0x110] sm:$0xff] }
  0x85   : > { %12426 = vmatmul.mubr.msk.f32.gmra.mrb[18].mxu1 %vm503_vm0, %v384_v28  ;;  %12139 = vmatprep.mubr.msk.f32.mxu0 %vm503_vm0, %v385_v29 }
  0x86   : > { %12427 = vmatprep.mubr.msk.f32.mxu1 %vm503_vm0, %v385_v29 }
  0x88   : > { %12140 = vmatmul.mubr.msk.f32.gmra.mrb[20].mxu0 %vm503_vm0, %v385_v29 }
  0x89   : > { %12428 = vmatmul.mubr.msk.f32.gmra.mrb[20].mxu1 %vm503_vm0, %v385_v29  ;;  %12141 = vmatprep.mubr.msk.f32.mxu0 %vm503_vm0, %v386_v30 }
  0x8a   : > { %12429 = vmatprep.mubr.msk.f32.mxu1 %vm503_vm0, %v386_v30  ;;  %13370 = vmatpush3.bf16.xpose.msk.msra.mxu0 %vm13730_vm1, %v13896_v20  ;;  %v418_v20 = vld [vmem:[%s16015_s1 + $0x158] sm:$0xff] }
  0x8b   : > { %13418 = vmatpush3.bf16.xpose.msk.msra.mxu1 %vm13730_vm1, %v13898_v21  ;;  %13373 = vmatprep.subr.msk.bf16.mxu0 %vm13730_vm1, %v13900_v22  ;;  %v419_v21 = vld [vmem:[%s16015_s1 + $0x160] sm:$0xff]  ;;  %v420_v22 = vld [vmem:[%s16015_s1 + $0x168] sm:$0xff] }
  0x8c   : > { %12142 = vmatmul.mubr.msk.f32.gmra.mrb[22].mxu0 %vm503_vm0, %v386_v30  ;;  %13421 = vmatprep.subr.msk.bf16.mxu1 %vm13730_vm1, %v13902_v23  ;;  %v421_v23 = vld [vmem:[%s16015_s1 + $0x170] sm:$0xff] }
  0x8d   : > { %12430 = vmatmul.mubr.msk.f32.gmra.mrb[22].mxu1 %vm503_vm0, %v386_v30  ;;  %12143 = vmatprep.mubr.msk.f32.mxu0 %vm503_vm0, %v387_v31 }
  0x8e   : > { %12431 = vmatprep.mubr.msk.f32.mxu1 %vm503_vm0, %v387_v31 }
  0x90   : > { %12144 = vmatmul.mubr.msk.f32.gmra.mrb[24].mxu0 %vm503_vm0, %v387_v31 }
  0x91   : > { %12432 = vmatmul.mubr.msk.f32.gmra.mrb[24].mxu1 %vm503_vm0, %v387_v31  ;;  %12145 = vmatprep.mubr.msk.f32.mxu0 %vm503_vm0, %v388_v40 }
  0x92   : > { %12433 = vmatprep.mubr.msk.f32.mxu1 %vm503_vm0, %v388_v40  ;;  %13376 = vmatpush3.bf16.xpose.msk.msra.mxu0 %vm13730_vm1, %v13924_v36 }
  0x93   : > { %13424 = vmatpush3.bf16.xpose.msk.msra.mxu1 %vm13730_vm1, %v13926_v37  ;;  %13379 = vmatprep.subr.msk.bf16.mxu0 %vm13730_vm1, %v13928_v38 }
  0x94   : > { %12146 = vmatmul.mubr.msk.f32.gmra.mrb[26].mxu0 %vm503_vm0, %v388_v40  ;;  %13427 = vmatprep.subr.msk.bf16.mxu1 %vm13730_vm1, %v13930_v39 }
  0x95   : > { %12434 = vmatmul.mubr.msk.f32.gmra.mrb[26].mxu1 %vm503_vm0, %v388_v40  ;;  %12147 = vmatprep.mubr.msk.f32.mxu0 %vm503_vm0, %v389_v41  ;;  %v432_v40 = vld [vmem:[%s16015_s1 + $0x1c8] sm:$0xff] }
  0x96   : > { %12435 = vmatprep.mubr.msk.f32.mxu1 %vm503_vm0, %v389_v41 }
  0x98   : > { %12148 = vmatmul.mubr.msk.f32.gmra.mrb[28].mxu0 %vm503_vm0, %v389_v41 }
  0x99   : > { %12436 = vmatmul.mubr.msk.f32.gmra.mrb[28].mxu1 %vm503_vm0, %v389_v41  ;;  %12149 = vmatprep.mubr.msk.f32.mxu0 %vm503_vm0, %v390_v42 }
  0x9a   : > { %12437 = vmatprep.mubr.msk.f32.mxu1 %vm503_vm0, %v390_v42  ;;  %13382 = vmatpush3.bf16.xpose.msk.msra.mxu0 %vm13730_vm1, %v13948_v48 }
  0x9b   : > { %13430 = vmatpush3.bf16.xpose.msk.msra.mxu1 %vm13730_vm1, %v13950_v49 }
  0x9c   : > { %12150 = vmatmul.mubr.msk.f32.gmra.mrb[30].mxu0 %vm503_vm0, %v390_v42 }
  0x9d   : > { %12438 = vmatmul.mubr.msk.f32.gmra.mrb[30].mxu1 %vm503_vm0, %v390_v42  ;;  %12151 = vmatprep.mubr.msk.f32.mxu0 %vm503_vm0, %v391_v43 }
  0x9e   : > { %12439 = vmatprep.mubr.msk.f32.mxu1 %vm503_vm0, %v391_v43 }
  0xa0   : > { %12152 = vmatmul.mubr.msk.f32.gmra.mrb[32].mxu0 %vm503_vm0, %v391_v43 }
  0xa1   : > { %12440 = vmatmul.mubr.msk.f32.gmra.mrb[32].mxu1 %vm503_vm0, %v391_v43  ;;  %12153 = vmatprep.mubr.msk.f32.mxu0 %vm503_vm0, %v392_v51 }
  0xa2   : > { %12441 = vmatprep.mubr.msk.f32.mxu1 %vm503_vm0, %v392_v51 }
  0xa4   : > { %12154 = vmatmul.mubr.msk.f32.gmra.mrb[34].mxu0 %vm503_vm0, %v392_v51 }
  0xa5   : > { %12442 = vmatmul.mubr.msk.f32.gmra.mrb[34].mxu1 %vm503_vm0, %v392_v51  ;;  %12155 = vmatprep.mubr.msk.f32.mxu0 %vm503_vm0, %v393_v1 }
  0xa6   : > { %12443 = vmatprep.mubr.msk.f32.mxu1 %vm503_vm0, %v393_v1 }
  0xa8   : > { %12156 = vmatmul.mubr.msk.f32.gmra.mrb[36].mxu0 %vm503_vm0, %v393_v1 }
  0xa9   : > { %12444 = vmatmul.mubr.msk.f32.gmra.mrb[36].mxu1 %vm503_vm0, %v393_v1  ;;  %12157 = vmatprep.mubr.msk.f32.mxu0 %vm503_vm0, %v394_v52 }
  0xaa   : > { %12445 = vmatprep.mubr.msk.f32.mxu1 %vm503_vm0, %v394_v52 }
  0xac   : > { %12158 = vmatmul.mubr.msk.f32.gmra.mrb[38].mxu0 %vm503_vm0, %v394_v52 }
  0xad   : > { %12446 = vmatmul.mubr.msk.f32.gmra.mrb[38].mxu1 %vm503_vm0, %v394_v52  ;;  %12159 = vmatprep.mubr.msk.f32.mxu0 %vm503_vm0, %v395_v53 }
  0xae   : > { %12447 = vmatprep.mubr.msk.f32.mxu1 %vm503_vm0, %v395_v53 }
  0xb0   : > { %12160 = vmatmul.mubr.msk.f32.gmra.mrb[40].mxu0 %vm503_vm0, %v395_v53 }
  0xb1   : > { %12448 = vmatmul.mubr.msk.f32.gmra.mrb[40].mxu1 %vm503_vm0, %v395_v53  ;;  %12161 = vmatprep.mubr.msk.f32.mxu0 %vm503_vm0, %v396_v54 }
  0xb2   : > { %12449 = vmatprep.mubr.msk.f32.mxu1 %vm503_vm0, %v396_v54 }
  0xb4   : > { %12162 = vmatmul.mubr.msk.f32.gmra.mrb[42].mxu0 %vm503_vm0, %v396_v54 }
  0xb5   : > { %12450 = vmatmul.mubr.msk.f32.gmra.mrb[42].mxu1 %vm503_vm0, %v396_v54  ;;  %12163 = vmatprep.mubr.msk.f32.mxu0 %vm503_vm0, %v397_v55 }
  0xb6   : > { %12451 = vmatprep.mubr.msk.f32.mxu1 %vm503_vm0, %v397_v55 }
  0xb8   : > { %12164 = vmatmul.mubr.msk.f32.gmra.mrb[44].mxu0 %vm503_vm0, %v397_v55 }
  0xb9   : > { %12452 = vmatmul.mubr.msk.f32.gmra.mrb[44].mxu1 %vm503_vm0, %v397_v55  ;;  %12165 = vmatprep.mubr.msk.f32.mxu0 %vm503_vm0, %v398_v56  ;;  %v433_v55 = vld [vmem:[%s16015_s1 + $0x1d0] sm:$0xff] }
  0xba   : > { %12453 = vmatprep.mubr.msk.f32.mxu1 %vm503_vm0, %v398_v56 }
  0xbc   : > { %12166 = vmatmul.mubr.msk.f32.gmra.mrb[46].mxu0 %vm503_vm0, %v398_v56 }
  0xbd   : > { %12454 = vmatmul.mubr.msk.f32.gmra.mrb[46].mxu1 %vm503_vm0, %v398_v56  ;;  %12167 = vmatprep.mubr.msk.f32.mxu0 %vm503_vm0, %v399_v57 }
  0xbe   : > { %12455 = vmatprep.mubr.msk.f32.mxu1 %vm503_vm0, %v399_v57 }
  0xc0   : > { %12168 = vmatmul.mubr.msk.f32.gmra.mrb[48].mxu0 %vm503_vm0, %v399_v57 }
  0xc1   : > { %12456 = vmatmul.mubr.msk.f32.gmra.mrb[48].mxu1 %vm503_vm0, %v399_v57  ;;  %12169 = vmatprep.mubr.msk.f32.mxu0 %vm503_vm0, %v400_v58 }
  0xc2   : > { %12457 = vmatprep.mubr.msk.f32.mxu1 %vm503_vm0, %v400_v58 }
  0xc4   : > { %12170 = vmatmul.mubr.msk.f32.gmra.mrb[50].mxu0 %vm503_vm0, %v400_v58 }
  0xc5   : > { %12458 = vmatmul.mubr.msk.f32.gmra.mrb[50].mxu1 %vm503_vm0, %v400_v58  ;;  %12171 = vmatprep.mubr.msk.f32.mxu0 %vm503_vm0, %v401_v59 }
  0xc6   : > { %12459 = vmatprep.mubr.msk.f32.mxu1 %vm503_vm0, %v401_v59 }
  0xc8   : > { %12172 = vmatmul.mubr.msk.f32.gmra.mrb[52].mxu0 %vm503_vm0, %v401_v59 }
  0xc9   : > { %12460 = vmatmul.mubr.msk.f32.gmra.mrb[52].mxu1 %vm503_vm0, %v401_v59  ;;  %12173 = vmatprep.mubr.msk.f32.mxu0 %vm503_vm0, %v402_v60 }
  0xca   : > { %12461 = vmatprep.mubr.msk.f32.mxu1 %vm503_vm0, %v402_v60 }
  0xcc   : > { %12174 = vmatmul.mubr.msk.f32.gmra.mrb[54].mxu0 %vm503_vm0, %v402_v60 }
  0xcd   : > { %12462 = vmatmul.mubr.msk.f32.gmra.mrb[54].mxu1 %vm503_vm0, %v402_v60  ;;  %12175 = vmatprep.mubr.msk.f32.mxu0 %vm503_vm0, %v403_v61 }
  0xce   : > { %12463 = vmatprep.mubr.msk.f32.mxu1 %vm503_vm0, %v403_v61 }
  0xd0   : > { %12176 = vmatmul.mubr.msk.f32.gmra.mrb[56].mxu0 %vm503_vm0, %v403_v61 }
  0xd1   : > { %12464 = vmatmul.mubr.msk.f32.gmra.mrb[56].mxu1 %vm503_vm0, %v403_v61  ;;  %12177 = vmatprep.mubr.msk.f32.mxu0 %vm503_vm0, %v404_v62 }
  0xd2   : > { %12465 = vmatprep.mubr.msk.f32.mxu1 %vm503_vm0, %v404_v62 }
  0xd4   : > { %12178 = vmatmul.mubr.msk.f32.gmra.mrb[58].mxu0 %vm503_vm0, %v404_v62 }
  0xd5   : > { %12466 = vmatmul.mubr.msk.f32.gmra.mrb[58].mxu1 %vm503_vm0, %v404_v62  ;;  %12179 = vmatprep.mubr.msk.f32.mxu0 %vm503_vm0, %v405_v63 }
  0xd6   : > { %12467 = vmatprep.mubr.msk.f32.mxu1 %vm503_vm0, %v405_v63 }
  0xd8   : > { %12180 = vmatmul.mubr.msk.f32.gmra.mrb[60].mxu0 %vm503_vm0, %v405_v63 }
  0xd9   : > { %12468 = vmatmul.mubr.msk.f32.gmra.mrb[60].mxu1 %vm503_vm0, %v405_v63  ;;  %12181 = vmatprep.mubr.msk.f32.mxu0 %vm503_vm0, %v406_v2 }
  0xda   : > { %12469 = vmatprep.mubr.msk.f32.mxu1 %vm503_vm0, %v406_v2 }
  0xdc   : > { %12182 = vmatmul.mubr.msk.f32.gmra.mrb[62].mxu0 %vm503_vm0, %v406_v2 }
  0xdd   : > { %12470 = vmatmul.mubr.msk.f32.gmra.mrb[62].mxu1 %vm503_vm0, %v406_v2  ;;  %12183 = vmatprep.mubr.msk.f32.mxu0 %vm503_vm0, %v407_v3  ;;  %v434_v2 = vld [vmem:[%s16015_s1 + $0x1d8] sm:$0xff] }
  0xde   : > { %12471 = vmatprep.mubr.msk.f32.mxu1 %vm503_vm0, %v407_v3 }
  0xe0   : > { %12184 = vmatmul.mubr.msk.f32.gmra.mrb[64].mxu0 %vm503_vm0, %v407_v3 }
  0xe1   : > { %12472 = vmatmul.mubr.msk.f32.gmra.mrb[64].mxu1 %vm503_vm0, %v407_v3  ;;  %12185 = vmatprep.mubr.msk.f32.mxu0 %vm503_vm0, %v408_v4 }
  0xe2   : > { %12473 = vmatprep.mubr.msk.f32.mxu1 %vm503_vm0, %v408_v4 }
  0xe4   : > { %12186 = vmatmul.mubr.msk.f32.gmra.mrb[66].mxu0 %vm503_vm0, %v408_v4 }
  0xe5   : > { %12474 = vmatmul.mubr.msk.f32.gmra.mrb[66].mxu1 %vm503_vm0, %v408_v4  ;;  %12187 = vmatprep.mubr.msk.f32.mxu0 %vm503_vm0, %v409_v6 }
  0xe6   : > { %12475 = vmatprep.mubr.msk.f32.mxu1 %vm503_vm0, %v409_v6 }
  0xe8   : > { %12188 = vmatmul.mubr.msk.f32.gmra.mrb[68].mxu0 %vm503_vm0, %v409_v6 }
  0xe9   : > { %12476 = vmatmul.mubr.msk.f32.gmra.mrb[68].mxu1 %vm503_vm0, %v409_v6  ;;  %12189 = vmatprep.mubr.msk.f32.mxu0 %vm503_vm0, %v410_v7 }
  0xea   : > { %12477 = vmatprep.mubr.msk.f32.mxu1 %vm503_vm0, %v410_v7 }
  0xec   : > { %12190 = vmatmul.mubr.msk.f32.gmra.mrb[70].mxu0 %vm503_vm0, %v410_v7 }
  0xed   : > { %12478 = vmatmul.mubr.msk.f32.gmra.mrb[70].mxu1 %vm503_vm0, %v410_v7  ;;  %12191 = vmatprep.mubr.msk.f32.mxu0 %vm503_vm0, %v411_v8 }
  0xee   : > { %12479 = vmatprep.mubr.msk.f32.mxu1 %vm503_vm0, %v411_v8 }
  0xf0   : > { %12192 = vmatmul.mubr.msk.f32.gmra.mrb[72].mxu0 %vm503_vm0, %v411_v8 }
  0xf1   : > { %12480 = vmatmul.mubr.msk.f32.gmra.mrb[72].mxu1 %vm503_vm0, %v411_v8  ;;  %12193 = vmatprep.mubr.msk.f32.mxu0 %vm503_vm0, %v412_v11 }
  0xf2   : > { %12481 = vmatprep.mubr.msk.f32.mxu1 %vm503_vm0, %v412_v11 }
  0xf4   : > { %12194 = vmatmul.mubr.msk.f32.gmra.mrb[74].mxu0 %vm503_vm0, %v412_v11 }
  0xf5   : > { %12482 = vmatmul.mubr.msk.f32.gmra.mrb[74].mxu1 %vm503_vm0, %v412_v11  ;;  %12195 = vmatprep.mubr.msk.f32.mxu0 %vm503_vm0, %v413_v12 }
  0xf6   : > { %12483 = vmatprep.mubr.msk.f32.mxu1 %vm503_vm0, %v413_v12 }
  0xf8   : > { %12196 = vmatmul.mubr.msk.f32.gmra.mrb[76].mxu0 %vm503_vm0, %v413_v12 }
  0xf9   : > { %12484 = vmatmul.mubr.msk.f32.gmra.mrb[76].mxu1 %vm503_vm0, %v413_v12  ;;  %12197 = vmatprep.mubr.msk.f32.mxu0 %vm503_vm0, %v414_v13 }
  0xfa   : > { %12485 = vmatprep.mubr.msk.f32.mxu1 %vm503_vm0, %v414_v13 }
  0xfc   : > { %12198 = vmatmul.mubr.msk.f32.gmra.mrb[78].mxu0 %vm503_vm0, %v414_v13 }
  0xfd   : > { %12486 = vmatmul.mubr.msk.f32.gmra.mrb[78].mxu1 %vm503_vm0, %v414_v13  ;;  %12199 = vmatprep.mubr.msk.f32.mxu0 %vm503_vm0, %v415_v15 }
  0xfe   : > { %12487 = vmatprep.mubr.msk.f32.mxu1 %vm503_vm0, %v415_v15 }
 0x100   : > { %12200 = vmatmul.mubr.msk.f32.gmra.mrb[80].mxu0 %vm503_vm0, %v415_v15 }
 0x101   : > { %12488 = vmatmul.mubr.msk.f32.gmra.mrb[80].mxu1 %vm503_vm0, %v415_v15  ;;  %12201 = vmatprep.mubr.msk.f32.mxu0 %vm503_vm0, %v416_v16  ;;  %v435_v15 = vld [vmem:[%s16015_s1 + $0x1e0] sm:$0xff] }
 0x102   : > { %12489 = vmatprep.mubr.msk.f32.mxu1 %vm503_vm0, %v416_v16 }
 0x104   : > { %12202 = vmatmul.mubr.msk.f32.gmra.mrb[82].mxu0 %vm503_vm0, %v416_v16 }
 0x105   : > { %12490 = vmatmul.mubr.msk.f32.gmra.mrb[82].mxu1 %vm503_vm0, %v416_v16  ;;  %12203 = vmatprep.mubr.msk.f32.mxu0 %vm503_vm0, %v417_v17 }
 0x106   : > { %12491 = vmatprep.mubr.msk.f32.mxu1 %vm503_vm0, %v417_v17 }
 0x108   : > { %12204 = vmatmul.mubr.msk.f32.gmra.mrb[84].mxu0 %vm503_vm0, %v417_v17 }
 0x109   : > { %12492 = vmatmul.mubr.msk.f32.gmra.mrb[84].mxu1 %vm503_vm0, %v417_v17  ;;  %12205 = vmatprep.mubr.msk.f32.mxu0 %vm503_vm0, %v418_v20 }
 0x10a   : > { %12493 = vmatprep.mubr.msk.f32.mxu1 %vm503_vm0, %v418_v20 }
 0x10c   : > { %12206 = vmatmul.mubr.msk.f32.gmra.mrb[86].mxu0 %vm503_vm0, %v418_v20 }
 0x10d   : > { %12494 = vmatmul.mubr.msk.f32.gmra.mrb[86].mxu1 %vm503_vm0, %v418_v20  ;;  %12207 = vmatprep.mubr.msk.f32.mxu0 %vm503_vm0, %v419_v21 }
 0x10e   : > { %12495 = vmatprep.mubr.msk.f32.mxu1 %vm503_vm0, %v419_v21 }
 0x110   : > { %12208 = vmatmul.mubr.msk.f32.gmra.mrb[88].mxu0 %vm503_vm0, %v419_v21 }
 0x111   : > { %12496 = vmatmul.mubr.msk.f32.gmra.mrb[88].mxu1 %vm503_vm0, %v419_v21  ;;  %12209 = vmatprep.mubr.msk.f32.mxu0 %vm503_vm0, %v420_v22 }
 0x112   : > { %12497 = vmatprep.mubr.msk.f32.mxu1 %vm503_vm0, %v420_v22 }
 0x114   : > { %12210 = vmatmul.mubr.msk.f32.gmra.mrb[90].mxu0 %vm503_vm0, %v420_v22 }
 0x115   : > { %12498 = vmatmul.mubr.msk.f32.gmra.mrb[90].mxu1 %vm503_vm0, %v420_v22  ;;  %12211 = vmatprep.mubr.msk.f32.mxu0 %vm503_vm0, %v421_v23 }
 0x116   : > { %12499 = vmatprep.mubr.msk.f32.mxu1 %vm503_vm0, %v421_v23 }
 0x118   : > { %12212 = vmatmul.mubr.msk.f32.gmra.mrb[92].mxu0 %vm503_vm0, %v421_v23 }
 0x119   : > { %12500 = vmatmul.mubr.msk.f32.gmra.mrb[92].mxu1 %vm503_vm0, %v421_v23  ;;  %12213 = vmatprep.mubr.msk.f32.mxu0 %vm503_vm0, %v422_v24 }
 0x11a   : > { %12501 = vmatprep.mubr.msk.f32.mxu1 %vm503_vm0, %v422_v24 }
 0x11c   : > { %12214 = vmatmul.mubr.msk.f32.gmra.mrb[94].mxu0 %vm503_vm0, %v422_v24 }
 0x11d   : > { %12502 = vmatmul.mubr.msk.f32.gmra.mrb[94].mxu1 %vm503_vm0, %v422_v24  ;;  %12215 = vmatprep.mubr.msk.f32.mxu0 %vm503_vm0, %v423_v25 }
 0x11e   : > { %12503 = vmatprep.mubr.msk.f32.mxu1 %vm503_vm0, %v423_v25 }
 0x120   : > { %12216 = vmatmul.mubr.msk.f32.gmra.mrb[96].mxu0 %vm503_vm0, %v423_v25 }
 0x121   : > { %12504 = vmatmul.mubr.msk.f32.gmra.mrb[96].mxu1 %vm503_vm0, %v423_v25  ;;  %12217 = vmatprep.mubr.msk.f32.mxu0 %vm503_vm0, %v424_v26 }
 0x122   : > { %12505 = vmatprep.mubr.msk.f32.mxu1 %vm503_vm0, %v424_v26 }
 0x124   : > { %12218 = vmatmul.mubr.msk.f32.gmra.mrb[98].mxu0 %vm503_vm0, %v424_v26 }
 0x125   : > { %12506 = vmatmul.mubr.msk.f32.gmra.mrb[98].mxu1 %vm503_vm0, %v424_v26  ;;  %12219 = vmatprep.mubr.msk.f32.mxu0 %vm503_vm0, %v425_v27  ;;  %v436_v26 = vld [vmem:[%s16015_s1 + $0x1e8] sm:$0xff] }
 0x126   : > { %12507 = vmatprep.mubr.msk.f32.mxu1 %vm503_vm0, %v425_v27 }
 0x128   : > { %12220 = vmatmul.mubr.msk.f32.gmra.mrb[100].mxu0 %vm503_vm0, %v425_v27 }
 0x129   : > { %12508 = vmatmul.mubr.msk.f32.gmra.mrb[100].mxu1 %vm503_vm0, %v425_v27  ;;  %12221 = vmatprep.mubr.msk.f32.mxu0 %vm503_vm0, %v426_v32 }
 0x12a   : > { %12509 = vmatprep.mubr.msk.f32.mxu1 %vm503_vm0, %v426_v32 }
 0x12c   : > { %12222 = vmatmul.mubr.msk.f32.gmra.mrb[102].mxu0 %vm503_vm0, %v426_v32 }
 0x12d   : > { %12510 = vmatmul.mubr.msk.f32.gmra.mrb[102].mxu1 %vm503_vm0, %v426_v32  ;;  %12223 = vmatprep.mubr.msk.f32.mxu0 %vm503_vm0, %v427_v33 }
 0x12e   : > { %12511 = vmatprep.mubr.msk.f32.mxu1 %vm503_vm0, %v427_v33 }
 0x130   : > { %12224 = vmatmul.mubr.msk.f32.gmra.mrb[104].mxu0 %vm503_vm0, %v427_v33 }
 0x131   : > { %12512 = vmatmul.mubr.msk.f32.gmra.mrb[104].mxu1 %vm503_vm0, %v427_v33  ;;  %12225 = vmatprep.mubr.msk.f32.mxu0 %vm503_vm0, %v428_v34 }
 0x132   : > { %12513 = vmatprep.mubr.msk.f32.mxu1 %vm503_vm0, %v428_v34 }
 0x133   : > { %v1146_v36 = vpop.f32.mrb[0].mxu0 }
 0x134   : > { %v1979_v37 = vpop.f32.mrb[0].mxu1  ;;  %v1148_v38 = vpop.f32.mrb[1].mxu0  ;;  %12226 = vmatmul.mubr.msk.f32.gmra.mrb[106].mxu0 %vm503_vm0, %v428_v34 }
 0x135   : > { %v1981_v39 = vpop.f32.mrb[1].mxu1  ;;  %12514 = vmatmul.mubr.msk.f32.gmra.mrb[106].mxu1 %vm503_vm0, %v428_v34  ;;  %12227 = vmatprep.mubr.msk.f32.mxu0 %vm503_vm0, %v429_v35 }
 0x136   : > { %12515 = vmatprep.mubr.msk.f32.mxu1 %vm503_vm0, %v429_v35 }
 0x137   : > { %v1152_v45 = vpop.f32.mrb[2].mxu0 }
 0x138   : > { %v9544_v46 = vmin.f32 %v1146_v36, %v1152_v45  ;;  %v1985_v47 = vpop.f32.mrb[2].mxu1  ;;  %v1154_v48 = vpop.f32.mrb[3].mxu0  ;;  %12228 = vmatmul.mubr.msk.f32.gmra.mrb[108].mxu0 %vm503_vm0, %v429_v35 }
 0x139   : > { %v9810_v49 = vmin.f32 %v1979_v37, %v1985_v47  ;;  %v9677_v50 = vmin.f32 %v1148_v38, %v1154_v48  ;;  %v1987_v5 = vpop.f32.mrb[3].mxu1  ;;  %12516 = vmatmul.mubr.msk.f32.gmra.mrb[108].mxu1 %vm503_vm0, %v429_v35  ;;  %12229 = vmatprep.mubr.msk.f32.mxu0 %vm503_vm0, %v430_v44 }
 0x13a   : > { %v9943_v0 = vmin.f32 %v1981_v39, %v1987_v5  ;;  %12517 = vmatprep.mubr.msk.f32.mxu1 %vm503_vm0, %v430_v44  ;;  %v437_v39 = vld [vmem:[%s16015_s1 + $0x1f0] sm:$0xff] }
 0x13b   : > { %v1158_v10 = vpop.f32.mrb[4].mxu0 }
 0x13c   : > { %v9545_v14 = vmin.f32 %v9544_v46, %v1158_v10  ;;  %v1991_v18 = vpop.f32.mrb[4].mxu1  ;;  %v1160_v19 = vpop.f32.mrb[5].mxu0  ;;  %12230 = vmatmul.mubr.msk.f32.gmra.mrb[110].mxu0 %vm503_vm0, %v430_v44 }
 0x13d   : > { %v9811_v28 = vmin.f32 %v9810_v49, %v1991_v18  ;;  %v9678_v29 = vmin.f32 %v9677_v50, %v1160_v19  ;;  %v1993_v30 = vpop.f32.mrb[5].mxu1  ;;  %12518 = vmatmul.mubr.msk.f32.gmra.mrb[110].mxu1 %vm503_vm0, %v430_v44  ;;  %12231 = vmatprep.mubr.msk.f32.mxu0 %vm503_vm0, %v431_v9 }
 0x13e   : > { %v9944_v31 = vmin.f32 %v9943_v0, %v1993_v30  ;;  %12519 = vmatprep.mubr.msk.f32.mxu1 %vm503_vm0, %v431_v9  ;;  %v438_v0 = vld [vmem:[%s16015_s1 + $0x1f8] sm:$0xff] }
 0x13f   : > { %v1164_v41 = vpop.f32.mrb[6].mxu0 }
 0x140   : > { %v9546_v42 = vmin.f32 %v9545_v14, %v1164_v41  ;;  %v1997_v43 = vpop.f32.mrb[6].mxu1  ;;  %v1166_v51 = vpop.f32.mrb[7].mxu0  ;;  %12232 = vmatmul.mubr.msk.f32.gmra.mrb[112].mxu0 %vm503_vm0, %v431_v9 }
 0x141   : > { %v9812_v1 = vmin.f32 %v9811_v28, %v1997_v43  ;;  %v9679_v52 = vmin.f32 %v9678_v29, %v1166_v51  ;;  %v1999_v53 = vpop.f32.mrb[7].mxu1  ;;  %12520 = vmatmul.mubr.msk.f32.gmra.mrb[112].mxu1 %vm503_vm0, %v431_v9  ;;  %12233 = vmatprep.mubr.msk.f32.mxu0 %vm503_vm0, %v432_v40 }
 0x142   : > { %v9945_v54 = vmin.f32 %v9944_v31, %v1999_v53  ;;  %12521 = vmatprep.mubr.msk.f32.mxu1 %vm503_vm0, %v432_v40  ;;  %v439_v31 = vld [vmem:[%s16015_s1 + $0x200] sm:$0xff] }
 0x143   : > { %v1170_v56 = vpop.f32.mrb[8].mxu0 }
 0x144   : > { %v9547_v57 = vmin.f32 %v9546_v42, %v1170_v56  ;;  %v2003_v58 = vpop.f32.mrb[8].mxu1  ;;  %v1172_v59 = vpop.f32.mrb[9].mxu0  ;;  %12234 = vmatmul.mubr.msk.f32.gmra.mrb[114].mxu0 %vm503_vm0, %v432_v40 }
 0x145   : > { %v9813_v60 = vmin.f32 %v9812_v1, %v2003_v58  ;;  %v9680_v61 = vmin.f32 %v9679_v52, %v1172_v59  ;;  %v2005_v62 = vpop.f32.mrb[9].mxu1  ;;  %12522 = vmatmul.mubr.msk.f32.gmra.mrb[114].mxu1 %vm503_vm0, %v432_v40  ;;  %12235 = vmatprep.mubr.msk.f32.mxu0 %vm503_vm0, %v433_v55 }
 0x146   : > { %v9946_v63 = vmin.f32 %v9945_v54, %v2005_v62  ;;  %12523 = vmatprep.mubr.msk.f32.mxu1 %vm503_vm0, %v433_v55  ;;  %v440_v54 = vld [vmem:[%s16015_s1 + $0x208] sm:$0xff] }
 0x147   : > { %v1176_v3 = vpop.f32.mrb[10].mxu0 }
 0x148   : > { %v9548_v4 = vmin.f32 %v9547_v57, %v1176_v3  ;;  %v2009_v6 = vpop.f32.mrb[10].mxu1  ;;  %v1178_v7 = vpop.f32.mrb[11].mxu0  ;;  %12236 = vmatmul.mubr.msk.f32.gmra.mrb[116].mxu0 %vm503_vm0, %v433_v55 }
 0x149   : > { %v9814_v8 = vmin.f32 %v9813_v60, %v2009_v6  ;;  %v9681_v11 = vmin.f32 %v9680_v61, %v1178_v7  ;;  %v2011_v12 = vpop.f32.mrb[11].mxu1  ;;  %12524 = vmatmul.mubr.msk.f32.gmra.mrb[116].mxu1 %vm503_vm0, %v433_v55  ;;  %12237 = vmatprep.mubr.msk.f32.mxu0 %vm503_vm0, %v434_v2 }
 0x14a   : > { %v9947_v13 = vmin.f32 %v9946_v63, %v2011_v12  ;;  %12525 = vmatprep.mubr.msk.f32.mxu1 %vm503_vm0, %v434_v2  ;;  %v441_v63 = vld [vmem:[%s16015_s1 + $0x210] sm:$0xff] }
 0x14b   : > { %v1182_v16 = vpop.f32.mrb[12].mxu0 }
 0x14c   : > { %v9549_v17 = vmin.f32 %v9548_v4, %v1182_v16  ;;  %v2015_v20 = vpop.f32.mrb[12].mxu1  ;;  %v1184_v21 = vpop.f32.mrb[13].mxu0  ;;  %12238 = vmatmul.mubr.msk.f32.gmra.mrb[118].mxu0 %vm503_vm0, %v434_v2 }
 0x14d   : > { %v9815_v22 = vmin.f32 %v9814_v8, %v2015_v20  ;;  %v9682_v23 = vmin.f32 %v9681_v11, %v1184_v21  ;;  %v2017_v24 = vpop.f32.mrb[13].mxu1  ;;  %12526 = vmatmul.mubr.msk.f32.gmra.mrb[118].mxu1 %vm503_vm0, %v434_v2  ;;  %12239 = vmatprep.mubr.msk.f32.mxu0 %vm503_vm0, %v435_v15 }
 0x14e   : > { %v9948_v25 = vmin.f32 %v9947_v13, %v2017_v24  ;;  %12527 = vmatprep.mubr.msk.f32.mxu1 %vm503_vm0, %v435_v15  ;;  %v442_v13 = vld [vmem:[%s16015_s1 + $0x218] sm:$0xff] }
 0x14f   : > { %v1188_v27 = vpop.f32.mrb[14].mxu0 }
 0x150   : > { %v9550_v32 = vmin.f32 %v9549_v17, %v1188_v27  ;;  %v2021_v33 = vpop.f32.mrb[14].mxu1  ;;  %v1190_v34 = vpop.f32.mrb[15].mxu0  ;;  %12240 = vmatmul.mubr.msk.f32.gmra.mrb[120].mxu0 %vm503_vm0, %v435_v15 }
 0x151   : > { %v9816_v35 = vmin.f32 %v9815_v22, %v2021_v33  ;;  %v9683_v36 = vmin.f32 %v9682_v23, %v1190_v34  ;;  %v2023_v37 = vpop.f32.mrb[15].mxu1  ;;  %12528 = vmatmul.mubr.msk.f32.gmra.mrb[120].mxu1 %vm503_vm0, %v435_v15  ;;  %12241 = vmatprep.mubr.msk.f32.mxu0 %vm503_vm0, %v436_v26 }
 0x152   : > { %v9949_v38 = vmin.f32 %v9948_v25, %v2023_v37  ;;  %12529 = vmatprep.mubr.msk.f32.mxu1 %vm503_vm0, %v436_v26  ;;  %v443_v25 = vld [vmem:[%s16015_s1 + $0x220] sm:$0xff] }
 0x153   : > { %v1194_v44 = vpop.f32.mrb[16].mxu0 }
 0x154   : > { %v9551_v45 = vmin.f32 %v9550_v32, %v1194_v44  ;;  %v2027_v46 = vpop.f32.mrb[16].mxu1  ;;  %v1196_v47 = vpop.f32.mrb[17].mxu0  ;;  %12242 = vmatmul.mubr.msk.f32.gmra.mrb[122].mxu0 %vm503_vm0, %v436_v26 }
 0x155   : > { %v9817_v48 = vmin.f32 %v9816_v35, %v2027_v46  ;;  %v9684_v49 = vmin.f32 %v9683_v36, %v1196_v47  ;;  %v2029_v50 = vpop.f32.mrb[17].mxu1  ;;  %12530 = vmatmul.mubr.msk.f32.gmra.mrb[122].mxu1 %vm503_vm0, %v436_v26  ;;  %12243 = vmatprep.mubr.msk.f32.mxu0 %vm503_vm0, %v437_v39 }
 0x156   : > { %v9950_v5 = vmin.f32 %v9949_v38, %v2029_v50  ;;  %12531 = vmatprep.mubr.msk.f32.mxu1 %vm503_vm0, %v437_v39  ;;  %v444_v38 = vld [vmem:[%s16015_s1 + $0x228] sm:$0xff] }
 0x157   : > { %v1200_v9 = vpop.f32.mrb[18].mxu0 }
 0x158   : > { %v9552_v10 = vmin.f32 %v9551_v45, %v1200_v9  ;;  %v2033_v14 = vpop.f32.mrb[18].mxu1  ;;  %v1202_v18 = vpop.f32.mrb[19].mxu0  ;;  %12244 = vmatmul.mubr.msk.f32.gmra.mrb[124].mxu0 %vm503_vm0, %v437_v39 }
 0x159   : > { %v9818_v19 = vmin.f32 %v9817_v48, %v2033_v14  ;;  %v9685_v28 = vmin.f32 %v9684_v49, %v1202_v18  ;;  %v2035_v29 = vpop.f32.mrb[19].mxu1  ;;  %12532 = vmatmul.mubr.msk.f32.gmra.mrb[124].mxu1 %vm503_vm0, %v437_v39  ;;  %12245 = vmatprep.mubr.msk.f32.mxu0 %vm503_vm0, %v438_v0 }
 0x15a   : > { %v9951_v30 = vmin.f32 %v9950_v5, %v2035_v29  ;;  %12533 = vmatprep.mubr.msk.f32.mxu1 %vm503_vm0, %v438_v0  ;;  %v445_v5 = vld [vmem:[%s16015_s1 + $0x230] sm:$0xff] }
 0x15b   : > { %v1206_v40 = vpop.f32.mrb[20].mxu0 }
 0x15c   : > { %v9553_v41 = vmin.f32 %v9552_v10, %v1206_v40  ;;  %v2039_v42 = vpop.f32.mrb[20].mxu1  ;;  %v1208_v43 = vpop.f32.mrb[21].mxu0  ;;  %12246 = vmatmul.mubr.msk.f32.gmra.mrb[126].mxu0 %vm503_vm0, %v438_v0 }
 0x15d   : > { %v9819_v51 = vmin.f32 %v9818_v19, %v2039_v42  ;;  %v9686_v1 = vmin.f32 %v9685_v28, %v1208_v43  ;;  %v2041_v52 = vpop.f32.mrb[21].mxu1  ;;  %12534 = vmatmul.mubr.msk.f32.gmra.mrb[126].mxu1 %vm503_vm0, %v438_v0  ;;  %12247 = vmatprep.mubr.msk.f32.mxu0 %vm503_vm0, %v439_v31 }
 0x15e   : > { %v9952_v53 = vmin.f32 %v9951_v30, %v2041_v52  ;;  %12535 = vmatprep.mubr.msk.f32.mxu1 %vm503_vm0, %v439_v31  ;;  %v446_v30 = vld [vmem:[%s16015_s1 + $0x238] sm:$0xff] }
 0x15f   : > { %v1212_v55 = vpop.f32.mrb[22].mxu0 }
 0x160   : > { %v9554_v56 = vmin.f32 %v9553_v41, %v1212_v55  ;;  %v2045_v57 = vpop.f32.mrb[22].mxu1  ;;  %v1214_v58 = vpop.f32.mrb[23].mxu0  ;;  %12248 = vmatmul.mubr.msk.f32.gmra.mrb[128].mxu0 %vm503_vm0, %v439_v31 }
 0x161   : > { %v9820_v59 = vmin.f32 %v9819_v51, %v2045_v57  ;;  %v9687_v60 = vmin.f32 %v9686_v1, %v1214_v58  ;;  %v2047_v61 = vpop.f32.mrb[23].mxu1  ;;  %12536 = vmatmul.mubr.msk.f32.gmra.mrb[128].mxu1 %vm503_vm0, %v439_v31  ;;  %12249 = vmatprep.mubr.msk.f32.mxu0 %vm503_vm0, %v440_v54 }
 0x162   : > { %v9953_v62 = vmin.f32 %v9952_v53, %v2047_v61  ;;  %12537 = vmatprep.mubr.msk.f32.mxu1 %vm503_vm0, %v440_v54  ;;  %v447_v53 = vld [vmem:[%s16015_s1 + $0x240] sm:$0xff] }
 0x163   : > { %v1218_v2 = vpop.f32.mrb[24].mxu0 }
 0x164   : > { %v9555_v3 = vmin.f32 %v9554_v56, %v1218_v2  ;;  %v2051_v4 = vpop.f32.mrb[24].mxu1  ;;  %v1220_v6 = vpop.f32.mrb[25].mxu0  ;;  %12250 = vmatmul.mubr.msk.f32.gmra.mrb[130].mxu0 %vm503_vm0, %v440_v54 }
 0x165   : > { %v9821_v7 = vmin.f32 %v9820_v59, %v2051_v4  ;;  %v9688_v8 = vmin.f32 %v9687_v60, %v1220_v6  ;;  %v2053_v11 = vpop.f32.mrb[25].mxu1  ;;  %12538 = vmatmul.mubr.msk.f32.gmra.mrb[130].mxu1 %vm503_vm0, %v440_v54  ;;  %12251 = vmatprep.mubr.msk.f32.mxu0 %vm503_vm0, %v441_v63 }
 0x166   : > { %v9954_v12 = vmin.f32 %v9953_v62, %v2053_v11  ;;  %12539 = vmatprep.mubr.msk.f32.mxu1 %vm503_vm0, %v441_v63  ;;  %v448_v62 = vld [vmem:[%s16015_s1 + $0x248] sm:$0xff] }
 0x167   : > { %v1224_v15 = vpop.f32.mrb[26].mxu0 }
 0x168   : > { %v9556_v16 = vmin.f32 %v9555_v3, %v1224_v15  ;;  %v2057_v17 = vpop.f32.mrb[26].mxu1  ;;  %v1226_v20 = vpop.f32.mrb[27].mxu0  ;;  %12252 = vmatmul.mubr.msk.f32.gmra.mrb[132].mxu0 %vm503_vm0, %v441_v63 }
 0x169   : > { %v9822_v21 = vmin.f32 %v9821_v7, %v2057_v17  ;;  %v9689_v22 = vmin.f32 %v9688_v8, %v1226_v20  ;;  %v2059_v23 = vpop.f32.mrb[27].mxu1  ;;  %12540 = vmatmul.mubr.msk.f32.gmra.mrb[132].mxu1 %vm503_vm0, %v441_v63  ;;  %12253 = vmatprep.mubr.msk.f32.mxu0 %vm503_vm0, %v442_v13 }
 0x16a   : > { %v9955_v24 = vmin.f32 %v9954_v12, %v2059_v23  ;;  %12541 = vmatprep.mubr.msk.f32.mxu1 %vm503_vm0, %v442_v13  ;;  %v449_v12 = vld [vmem:[%s16015_s1 + $0x250] sm:$0xff] }
 0x16b   : > { %v1230_v26 = vpop.f32.mrb[28].mxu0 }
 0x16c   : > { %v9557_v27 = vmin.f32 %v9556_v16, %v1230_v26  ;;  %v2063_v32 = vpop.f32.mrb[28].mxu1  ;;  %v1232_v33 = vpop.f32.mrb[29].mxu0  ;;  %12254 = vmatmul.mubr.msk.f32.gmra.mrb[134].mxu0 %vm503_vm0, %v442_v13 }
 0x16d   : > { %v9823_v34 = vmin.f32 %v9822_v21, %v2063_v32  ;;  %v9690_v35 = vmin.f32 %v9689_v22, %v1232_v33  ;;  %v2065_v36 = vpop.f32.mrb[29].mxu1  ;;  %12542 = vmatmul.mubr.msk.f32.gmra.mrb[134].mxu1 %vm503_vm0, %v442_v13  ;;  %12255 = vmatprep.mubr.msk.f32.mxu0 %vm503_vm0, %v443_v25 }
 0x16e   : > { %v9956_v37 = vmin.f32 %v9955_v24, %v2065_v36  ;;  %12543 = vmatprep.mubr.msk.f32.mxu1 %vm503_vm0, %v443_v25  ;;  %v450_v24 = vld [vmem:[%s16015_s1 + $0x258] sm:$0xff] }
 0x16f   : > { %v1236_v39 = vpop.f32.mrb[30].mxu0 }
 0x170   : > { %v9558_v44 = vmin.f32 %v9557_v27, %v1236_v39  ;;  %v2069_v45 = vpop.f32.mrb[30].mxu1  ;;  %v1238_v46 = vpop.f32.mrb[31].mxu0  ;;  %12256 = vmatmul.mubr.msk.f32.gmra.mrb[136].mxu0 %vm503_vm0, %v443_v25 }
 0x171   : > { %v9824_v47 = vmin.f32 %v9823_v34, %v2069_v45  ;;  %v9691_v48 = vmin.f32 %v9690_v35, %v1238_v46  ;;  %v2071_v49 = vpop.f32.mrb[31].mxu1  ;;  %12544 = vmatmul.mubr.msk.f32.gmra.mrb[136].mxu1 %vm503_vm0, %v443_v25  ;;  %12257 = vmatprep.mubr.msk.f32.mxu0 %vm503_vm0, %v444_v38 }
 0x172   : > { %v9957_v50 = vmin.f32 %v9956_v37, %v2071_v49  ;;  %12545 = vmatprep.mubr.msk.f32.mxu1 %vm503_vm0, %v444_v38  ;;  %v451_v37 = vld [vmem:[%s16015_s1 + $0x260] sm:$0xff] }
 0x173   : > { %v1242_v0 = vpop.f32.mrb[32].mxu0 }
 0x174   : > { %v9559_v9 = vmin.f32 %v9558_v44, %v1242_v0  ;;  %v2075_v10 = vpop.f32.mrb[32].mxu1  ;;  %v1244_v14 = vpop.f32.mrb[33].mxu0  ;;  %12258 = vmatmul.mubr.msk.f32.gmra.mrb[138].mxu0 %vm503_vm0, %v444_v38 }
 0x175   : > { %v9825_v18 = vmin.f32 %v9824_v47, %v2075_v10  ;;  %v9692_v19 = vmin.f32 %v9691_v48, %v1244_v14  ;;  %v2077_v28 = vpop.f32.mrb[33].mxu1  ;;  %12546 = vmatmul.mubr.msk.f32.gmra.mrb[138].mxu1 %vm503_vm0, %v444_v38  ;;  %12259 = vmatprep.mubr.msk.f32.mxu0 %vm503_vm0, %v445_v5 }
 0x176   : > { %v9958_v29 = vmin.f32 %v9957_v50, %v2077_v28  ;;  %12547 = vmatprep.mubr.msk.f32.mxu1 %vm503_vm0, %v445_v5  ;;  %v452_v50 = vld [vmem:[%s16015_s1 + $0x268] sm:$0xff] }
 0x177   : > { %v1248_v31 = vpop.f32.mrb[34].mxu0 }
 0x178   : > { %v9560_v40 = vmin.f32 %v9559_v9, %v1248_v31  ;;  %v2081_v41 = vpop.f32.mrb[34].mxu1  ;;  %v1250_v42 = vpop.f32.mrb[35].mxu0  ;;  %12260 = vmatmul.mubr.msk.f32.gmra.mrb[140].mxu0 %vm503_vm0, %v445_v5 }
 0x179   : > { %v9826_v43 = vmin.f32 %v9825_v18, %v2081_v41  ;;  %v9693_v51 = vmin.f32 %v9692_v19, %v1250_v42  ;;  %v2083_v1 = vpop.f32.mrb[35].mxu1  ;;  %12548 = vmatmul.mubr.msk.f32.gmra.mrb[140].mxu1 %vm503_vm0, %v445_v5  ;;  %12261 = vmatprep.mubr.msk.f32.mxu0 %vm503_vm0, %v446_v30 }
 0x17a   : > { %v9959_v52 = vmin.f32 %v9958_v29, %v2083_v1  ;;  %12549 = vmatprep.mubr.msk.f32.mxu1 %vm503_vm0, %v446_v30  ;;  %v453_v29 = vld [vmem:[%s16015_s1 + $0x270] sm:$0xff] }
 0x17b   : > { %v1254_v54 = vpop.f32.mrb[36].mxu0 }
 0x17c   : > { %v9561_v55 = vmin.f32 %v9560_v40, %v1254_v54  ;;  %v2087_v56 = vpop.f32.mrb[36].mxu1  ;;  %v1256_v57 = vpop.f32.mrb[37].mxu0  ;;  %12262 = vmatmul.mubr.msk.f32.gmra.mrb[142].mxu0 %vm503_vm0, %v446_v30 }
 0x17d   : > { %v9827_v58 = vmin.f32 %v9826_v43, %v2087_v56  ;;  %v9694_v59 = vmin.f32 %v9693_v51, %v1256_v57  ;;  %v2089_v60 = vpop.f32.mrb[37].mxu1  ;;  %12550 = vmatmul.mubr.msk.f32.gmra.mrb[142].mxu1 %vm503_vm0, %v446_v30  ;;  %12263 = vmatprep.mubr.msk.f32.mxu0 %vm503_vm0, %v447_v53 }
 0x17e   : > { %v9960_v61 = vmin.f32 %v9959_v52, %v2089_v60  ;;  %12551 = vmatprep.mubr.msk.f32.mxu1 %vm503_vm0, %v447_v53  ;;  %v454_v52 = vld [vmem:[%s16015_s1 + $0x278] sm:$0xff] }
 0x17f   : > { %v1260_v63 = vpop.f32.mrb[38].mxu0 }
 0x180   : > { %v9562_v2 = vmin.f32 %v9561_v55, %v1260_v63  ;;  %v2093_v3 = vpop.f32.mrb[38].mxu1  ;;  %v1262_v4 = vpop.f32.mrb[39].mxu0  ;;  %12264 = vmatmul.mubr.msk.f32.gmra.mrb[144].mxu0 %vm503_vm0, %v447_v53 }
 0x181   : > { %v9828_v6 = vmin.f32 %v9827_v58, %v2093_v3  ;;  %v9695_v7 = vmin.f32 %v9694_v59, %v1262_v4  ;;  %v2095_v8 = vpop.f32.mrb[39].mxu1  ;;  %12552 = vmatmul.mubr.msk.f32.gmra.mrb[144].mxu1 %vm503_vm0, %v447_v53  ;;  %12265 = vmatprep.mubr.msk.f32.mxu0 %vm503_vm0, %v448_v62 }
 0x182   : > { %v9961_v11 = vmin.f32 %v9960_v61, %v2095_v8  ;;  %12553 = vmatprep.mubr.msk.f32.mxu1 %vm503_vm0, %v448_v62  ;;  %v455_v61 = vld [vmem:[%s16015_s1 + $0x280] sm:$0xff] }
 0x183   : > { %v1266_v13 = vpop.f32.mrb[40].mxu0 }
 0x184   : > { %v9563_v15 = vmin.f32 %v9562_v2, %v1266_v13  ;;  %v2099_v16 = vpop.f32.mrb[40].mxu1  ;;  %v1268_v17 = vpop.f32.mrb[41].mxu0  ;;  %12266 = vmatmul.mubr.msk.f32.gmra.mrb[146].mxu0 %vm503_vm0, %v448_v62 }
 0x185   : > { %v9829_v20 = vmin.f32 %v9828_v6, %v2099_v16  ;;  %v9696_v21 = vmin.f32 %v9695_v7, %v1268_v17  ;;  %v2101_v22 = vpop.f32.mrb[41].mxu1  ;;  %12554 = vmatmul.mubr.msk.f32.gmra.mrb[146].mxu1 %vm503_vm0, %v448_v62  ;;  %12267 = vmatprep.mubr.msk.f32.mxu0 %vm503_vm0, %v449_v12 }
 0x186   : > { %v9962_v23 = vmin.f32 %v9961_v11, %v2101_v22  ;;  %12555 = vmatprep.mubr.msk.f32.mxu1 %vm503_vm0, %v449_v12  ;;  %v456_v11 = vld [vmem:[%s16015_s1 + $0x288] sm:$0xff] }
 0x187   : > { %v1272_v25 = vpop.f32.mrb[42].mxu0 }
 0x188   : > { %v9564_v26 = vmin.f32 %v9563_v15, %v1272_v25  ;;  %v2105_v27 = vpop.f32.mrb[42].mxu1  ;;  %v1274_v32 = vpop.f32.mrb[43].mxu0  ;;  %12268 = vmatmul.mubr.msk.f32.gmra.mrb[148].mxu0 %vm503_vm0, %v449_v12 }
 0x189   : > { %v9830_v33 = vmin.f32 %v9829_v20, %v2105_v27  ;;  %v9697_v34 = vmin.f32 %v9696_v21, %v1274_v32  ;;  %v2107_v35 = vpop.f32.mrb[43].mxu1  ;;  %12556 = vmatmul.mubr.msk.f32.gmra.mrb[148].mxu1 %vm503_vm0, %v449_v12  ;;  %12269 = vmatprep.mubr.msk.f32.mxu0 %vm503_vm0, %v450_v24 }
 0x18a   : > { %v9963_v36 = vmin.f32 %v9962_v23, %v2107_v35  ;;  %12557 = vmatprep.mubr.msk.f32.mxu1 %vm503_vm0, %v450_v24  ;;  %v457_v23 = vld [vmem:[%s16015_s1 + $0x290] sm:$0xff] }
 0x18b   : > { %v1278_v38 = vpop.f32.mrb[44].mxu0 }
 0x18c   : > { %v9565_v39 = vmin.f32 %v9564_v26, %v1278_v38  ;;  %v2111_v44 = vpop.f32.mrb[44].mxu1  ;;  %v1280_v45 = vpop.f32.mrb[45].mxu0  ;;  %12270 = vmatmul.mubr.msk.f32.gmra.mrb[150].mxu0 %vm503_vm0, %v450_v24 }
 0x18d   : > { %v9831_v46 = vmin.f32 %v9830_v33, %v2111_v44  ;;  %v9698_v47 = vmin.f32 %v9697_v34, %v1280_v45  ;;  %v2113_v48 = vpop.f32.mrb[45].mxu1  ;;  %12558 = vmatmul.mubr.msk.f32.gmra.mrb[150].mxu1 %vm503_vm0, %v450_v24  ;;  %12271 = vmatprep.mubr.msk.f32.mxu0 %vm503_vm0, %v451_v37 }
 0x18e   : > { %v9964_v49 = vmin.f32 %v9963_v36, %v2113_v48  ;;  %12559 = vmatprep.mubr.msk.f32.mxu1 %vm503_vm0, %v451_v37  ;;  %v458_v36 = vld [vmem:[%s16015_s1 + $0x298] sm:$0xff] }
 0x18f   : > { %v1284_v5 = vpop.f32.mrb[46].mxu0 }
 0x190   : > { %v9566_v0 = vmin.f32 %v9565_v39, %v1284_v5  ;;  %v2117_v9 = vpop.f32.mrb[46].mxu1  ;;  %v1286_v10 = vpop.f32.mrb[47].mxu0  ;;  %12272 = vmatmul.mubr.msk.f32.gmra.mrb[152].mxu0 %vm503_vm0, %v451_v37 }
 0x191   : > { %v9832_v14 = vmin.f32 %v9831_v46, %v2117_v9  ;;  %v9699_v18 = vmin.f32 %v9698_v47, %v1286_v10  ;;  %v2119_v19 = vpop.f32.mrb[47].mxu1  ;;  %12560 = vmatmul.mubr.msk.f32.gmra.mrb[152].mxu1 %vm503_vm0, %v451_v37  ;;  %12273 = vmatprep.mubr.msk.f32.mxu0 %vm503_vm0, %v452_v50 }
 0x192   : > { %v9965_v28 = vmin.f32 %v9964_v49, %v2119_v19  ;;  %12561 = vmatprep.mubr.msk.f32.mxu1 %vm503_vm0, %v452_v50  ;;  %v459_v49 = vld [vmem:[%s16015_s1 + $0x2a0] sm:$0xff] }
 0x193   : > { %v1290_v30 = vpop.f32.mrb[48].mxu0 }
 0x194   : > { %v9567_v31 = vmin.f32 %v9566_v0, %v1290_v30  ;;  %v2123_v40 = vpop.f32.mrb[48].mxu1  ;;  %v1292_v41 = vpop.f32.mrb[49].mxu0  ;;  %12274 = vmatmul.mubr.msk.f32.gmra.mrb[154].mxu0 %vm503_vm0, %v452_v50 }
 0x195   : > { %v9833_v42 = vmin.f32 %v9832_v14, %v2123_v40  ;;  %v9700_v43 = vmin.f32 %v9699_v18, %v1292_v41  ;;  %v2125_v51 = vpop.f32.mrb[49].mxu1  ;;  %12562 = vmatmul.mubr.msk.f32.gmra.mrb[154].mxu1 %vm503_vm0, %v452_v50  ;;  %12275 = vmatprep.mubr.msk.f32.mxu0 %vm503_vm0, %v453_v29 }
 0x196   : > { %v9966_v1 = vmin.f32 %v9965_v28, %v2125_v51  ;;  %12563 = vmatprep.mubr.msk.f32.mxu1 %vm503_vm0, %v453_v29  ;;  %v460_v28 = vld [vmem:[%s16015_s1 + $0x2a8] sm:$0xff] }
 0x197   : > { %v1296_v53 = vpop.f32.mrb[50].mxu0 }
 0x198   : > { %v9568_v54 = vmin.f32 %v9567_v31, %v1296_v53  ;;  %v2129_v55 = vpop.f32.mrb[50].mxu1  ;;  %v1298_v56 = vpop.f32.mrb[51].mxu0  ;;  %12276 = vmatmul.mubr.msk.f32.gmra.mrb[156].mxu0 %vm503_vm0, %v453_v29 }
 0x199   : > { %v9834_v57 = vmin.f32 %v9833_v42, %v2129_v55  ;;  %v9701_v58 = vmin.f32 %v9700_v43, %v1298_v56  ;;  %v2131_v59 = vpop.f32.mrb[51].mxu1  ;;  %12564 = vmatmul.mubr.msk.f32.gmra.mrb[156].mxu1 %vm503_vm0, %v453_v29  ;;  %12277 = vmatprep.mubr.msk.f32.mxu0 %vm503_vm0, %v454_v52 }
 0x19a   : > { %v9967_v60 = vmin.f32 %v9966_v1, %v2131_v59  ;;  %12565 = vmatprep.mubr.msk.f32.mxu1 %vm503_vm0, %v454_v52  ;;  %v461_v1 = vld [vmem:[%s16015_s1 + $0x2b0] sm:$0xff] }
 0x19b   : > { %v1302_v62 = vpop.f32.mrb[52].mxu0 }
 0x19c   : > { %v9569_v63 = vmin.f32 %v9568_v54, %v1302_v62  ;;  %v2135_v2 = vpop.f32.mrb[52].mxu1  ;;  %v1304_v3 = vpop.f32.mrb[53].mxu0  ;;  %12278 = vmatmul.mubr.msk.f32.gmra.mrb[158].mxu0 %vm503_vm0, %v454_v52 }
 0x19d   : > { %v9835_v4 = vmin.f32 %v9834_v57, %v2135_v2  ;;  %v9702_v6 = vmin.f32 %v9701_v58, %v1304_v3  ;;  %v2137_v7 = vpop.f32.mrb[53].mxu1  ;;  %12566 = vmatmul.mubr.msk.f32.gmra.mrb[158].mxu1 %vm503_vm0, %v454_v52  ;;  %12279 = vmatprep.mubr.msk.f32.mxu0 %vm503_vm0, %v455_v61 }
 0x19e   : > { %v9968_v8 = vmin.f32 %v9967_v60, %v2137_v7  ;;  %12567 = vmatprep.mubr.msk.f32.mxu1 %vm503_vm0, %v455_v61  ;;  %v462_v60 = vld [vmem:[%s16015_s1 + $0x2b8] sm:$0xff] }
 0x19f   : > { %v1308_v12 = vpop.f32.mrb[54].mxu0 }
 0x1a0   : > { %v9570_v13 = vmin.f32 %v9569_v63, %v1308_v12  ;;  %v2141_v15 = vpop.f32.mrb[54].mxu1  ;;  %v1310_v16 = vpop.f32.mrb[55].mxu0  ;;  %12280 = vmatmul.mubr.msk.f32.gmra.mrb[160].mxu0 %vm503_vm0, %v455_v61 }
 0x1a1   : > { %v9836_v17 = vmin.f32 %v9835_v4, %v2141_v15  ;;  %v9703_v20 = vmin.f32 %v9702_v6, %v1310_v16  ;;  %v2143_v21 = vpop.f32.mrb[55].mxu1  ;;  %12568 = vmatmul.mubr.msk.f32.gmra.mrb[160].mxu1 %vm503_vm0, %v455_v61  ;;  %12281 = vmatprep.mubr.msk.f32.mxu0 %vm503_vm0, %v456_v11 }
 0x1a2   : > { %v9969_v22 = vmin.f32 %v9968_v8, %v2143_v21  ;;  %12569 = vmatprep.mubr.msk.f32.mxu1 %vm503_vm0, %v456_v11  ;;  %v463_v8 = vld [vmem:[%s16015_s1 + $0x2c0] sm:$0xff] }
 0x1a3   : > { %v1314_v24 = vpop.f32.mrb[56].mxu0 }
 0x1a4   : > { %v9571_v25 = vmin.f32 %v9570_v13, %v1314_v24  ;;  %v2147_v26 = vpop.f32.mrb[56].mxu1  ;;  %v1316_v27 = vpop.f32.mrb[57].mxu0  ;;  %12282 = vmatmul.mubr.msk.f32.gmra.mrb[162].mxu0 %vm503_vm0, %v456_v11 }
 0x1a5   : > { %v9837_v32 = vmin.f32 %v9836_v17, %v2147_v26  ;;  %v9704_v33 = vmin.f32 %v9703_v20, %v1316_v27  ;;  %v2149_v34 = vpop.f32.mrb[57].mxu1  ;;  %12570 = vmatmul.mubr.msk.f32.gmra.mrb[162].mxu1 %vm503_vm0, %v456_v11  ;;  %12283 = vmatprep.mubr.msk.f32.mxu0 %vm503_vm0, %v457_v23 }
 0x1a6   : > { %v9970_v35 = vmin.f32 %v9969_v22, %v2149_v34  ;;  %12571 = vmatprep.mubr.msk.f32.mxu1 %vm503_vm0, %v457_v23  ;;  %v464_v22 = vld [vmem:[%s16015_s1 + $0x2c8] sm:$0xff] }
 0x1a7   : > { %v1320_v37 = vpop.f32.mrb[58].mxu0 }
 0x1a8   : > { %v9572_v38 = vmin.f32 %v9571_v25, %v1320_v37  ;;  %v2153_v39 = vpop.f32.mrb[58].mxu1  ;;  %v1322_v44 = vpop.f32.mrb[59].mxu0  ;;  %12284 = vmatmul.mubr.msk.f32.gmra.mrb[164].mxu0 %vm503_vm0, %v457_v23 }
 0x1a9   : > { %v9838_v45 = vmin.f32 %v9837_v32, %v2153_v39  ;;  %v9705_v46 = vmin.f32 %v9704_v33, %v1322_v44  ;;  %v2155_v47 = vpop.f32.mrb[59].mxu1  ;;  %12572 = vmatmul.mubr.msk.f32.gmra.mrb[164].mxu1 %vm503_vm0, %v457_v23  ;;  %12285 = vmatprep.mubr.msk.f32.mxu0 %vm503_vm0, %v458_v36 }
 0x1aa   : > { %v9971_v48 = vmin.f32 %v9970_v35, %v2155_v47  ;;  %12573 = vmatprep.mubr.msk.f32.mxu1 %vm503_vm0, %v458_v36  ;;  %v465_v35 = vld [vmem:[%s16015_s1 + $0x2d0] sm:$0xff] }
 0x1ab   : > { %v1326_v50 = vpop.f32.mrb[60].mxu0 }
 0x1ac   : > { %v9573_v5 = vmin.f32 %v9572_v38, %v1326_v50  ;;  %v2159_v0 = vpop.f32.mrb[60].mxu1  ;;  %v1328_v9 = vpop.f32.mrb[61].mxu0  ;;  %12286 = vmatmul.mubr.msk.f32.gmra.mrb[166].mxu0 %vm503_vm0, %v458_v36 }
 0x1ad   : > { %v9839_v10 = vmin.f32 %v9838_v45, %v2159_v0  ;;  %v9706_v14 = vmin.f32 %v9705_v46, %v1328_v9  ;;  %v2161_v18 = vpop.f32.mrb[61].mxu1  ;;  %12574 = vmatmul.mubr.msk.f32.gmra.mrb[166].mxu1 %vm503_vm0, %v458_v36  ;;  %12287 = vmatprep.mubr.msk.f32.mxu0 %vm503_vm0, %v459_v49 }
 0x1ae   : > { %v9972_v19 = vmin.f32 %v9971_v48, %v2161_v18  ;;  %12575 = vmatprep.mubr.msk.f32.mxu1 %vm503_vm0, %v459_v49  ;;  %v466_v48 = vld [vmem:[%s16015_s1 + $0x2d8] sm:$0xff] }
 0x1af   : > { %v1332_v29 = vpop.f32.mrb[62].mxu0 }
 0x1b0   : > { %v9574_v30 = vmin.f32 %v9573_v5, %v1332_v29  ;;  %v2165_v31 = vpop.f32.mrb[62].mxu1  ;;  %v1334_v40 = vpop.f32.mrb[63].mxu0  ;;  %12288 = vmatmul.mubr.msk.f32.gmra.mrb[168].mxu0 %vm503_vm0, %v459_v49 }
 0x1b1   : > { %v9840_v41 = vmin.f32 %v9839_v10, %v2165_v31  ;;  %v9707_v42 = vmin.f32 %v9706_v14, %v1334_v40  ;;  %v2167_v43 = vpop.f32.mrb[63].mxu1  ;;  %12576 = vmatmul.mubr.msk.f32.gmra.mrb[168].mxu1 %vm503_vm0, %v459_v49  ;;  %12289 = vmatprep.mubr.msk.f32.mxu0 %vm503_vm0, %v460_v28 }
 0x1b2   : > { %v9973_v51 = vmin.f32 %v9972_v19, %v2167_v43  ;;  %12577 = vmatprep.mubr.msk.f32.mxu1 %vm503_vm0, %v460_v28  ;;  %v467_v19 = vld [vmem:[%s16015_s1 + $0x2e0] sm:$0xff] }
 0x1b3   : > { %v1338_v52 = vpop.f32.mrb[64].mxu0 }
 0x1b4   : > { %v9575_v53 = vmin.f32 %v9574_v30, %v1338_v52  ;;  %v2171_v54 = vpop.f32.mrb[64].mxu1  ;;  %v1340_v55 = vpop.f32.mrb[65].mxu0  ;;  %12290 = vmatmul.mubr.msk.f32.gmra.mrb[170].mxu0 %vm503_vm0, %v460_v28 }
 0x1b5   : > { %v9841_v56 = vmin.f32 %v9840_v41, %v2171_v54  ;;  %v9708_v57 = vmin.f32 %v9707_v42, %v1340_v55  ;;  %v2173_v58 = vpop.f32.mrb[65].mxu1  ;;  %12578 = vmatmul.mubr.msk.f32.gmra.mrb[170].mxu1 %vm503_vm0, %v460_v28  ;;  %12291 = vmatprep.mubr.msk.f32.mxu0 %vm503_vm0, %v461_v1 }
 0x1b6   : > { %v9974_v59 = vmin.f32 %v9973_v51, %v2173_v58  ;;  %12579 = vmatprep.mubr.msk.f32.mxu1 %vm503_vm0, %v461_v1  ;;  %v468_v51 = vld [vmem:[%s16015_s1 + $0x2e8] sm:$0xff] }
 0x1b7   : > { %v1344_v61 = vpop.f32.mrb[66].mxu0 }
 0x1b8   : > { %v9576_v62 = vmin.f32 %v9575_v53, %v1344_v61  ;;  %v2177_v63 = vpop.f32.mrb[66].mxu1  ;;  %v1346_v2 = vpop.f32.mrb[67].mxu0  ;;  %12292 = vmatmul.mubr.msk.f32.gmra.mrb[172].mxu0 %vm503_vm0, %v461_v1 }
 0x1b9   : > { %v9842_v3 = vmin.f32 %v9841_v56, %v2177_v63  ;;  %v9709_v4 = vmin.f32 %v9708_v57, %v1346_v2  ;;  %v2179_v6 = vpop.f32.mrb[67].mxu1  ;;  %12580 = vmatmul.mubr.msk.f32.gmra.mrb[172].mxu1 %vm503_vm0, %v461_v1  ;;  %12293 = vmatprep.mubr.msk.f32.mxu0 %vm503_vm0, %v462_v60 }
 0x1ba   : > { %v9975_v7 = vmin.f32 %v9974_v59, %v2179_v6  ;;  %12581 = vmatprep.mubr.msk.f32.mxu1 %vm503_vm0, %v462_v60  ;;  %v469_v59 = vld [vmem:[%s16015_s1 + $0x2f0] sm:$0xff] }
 0x1bb   : > { %v1350_v11 = vpop.f32.mrb[68].mxu0 }
 0x1bc   : > { %v9577_v12 = vmin.f32 %v9576_v62, %v1350_v11  ;;  %v2183_v13 = vpop.f32.mrb[68].mxu1  ;;  %v1352_v15 = vpop.f32.mrb[69].mxu0  ;;  %12294 = vmatmul.mubr.msk.f32.gmra.mrb[174].mxu0 %vm503_vm0, %v462_v60 }
 0x1bd   : > { %v9843_v16 = vmin.f32 %v9842_v3, %v2183_v13  ;;  %v9710_v17 = vmin.f32 %v9709_v4, %v1352_v15  ;;  %v2185_v20 = vpop.f32.mrb[69].mxu1  ;;  %12582 = vmatmul.mubr.msk.f32.gmra.mrb[174].mxu1 %vm503_vm0, %v462_v60  ;;  %12295 = vmatprep.mubr.msk.f32.mxu0 %vm503_vm0, %v463_v8 }
 0x1be   : > { %v9976_v21 = vmin.f32 %v9975_v7, %v2185_v20  ;;  %12583 = vmatprep.mubr.msk.f32.mxu1 %vm503_vm0, %v463_v8  ;;  %v470_v7 = vld [vmem:[%s16015_s1 + $0x2f8] sm:$0xff] }
 0x1bf   : > { %v1356_v23 = vpop.f32.mrb[70].mxu0 }
 0x1c0   : > { %v9578_v24 = vmin.f32 %v9577_v12, %v1356_v23  ;;  %v2189_v25 = vpop.f32.mrb[70].mxu1  ;;  %v1358_v26 = vpop.f32.mrb[71].mxu0  ;;  %12296 = vmatmul.mubr.msk.f32.gmra.mrb[176].mxu0 %vm503_vm0, %v463_v8 }
 0x1c1   : > { %v9844_v27 = vmin.f32 %v9843_v16, %v2189_v25  ;;  %v9711_v32 = vmin.f32 %v9710_v17, %v1358_v26  ;;  %v2191_v33 = vpop.f32.mrb[71].mxu1  ;;  %12584 = vmatmul.mubr.msk.f32.gmra.mrb[176].mxu1 %vm503_vm0, %v463_v8  ;;  %12297 = vmatprep.mubr.msk.f32.mxu0 %vm503_vm0, %v464_v22 }
 0x1c2   : > { %v9977_v34 = vmin.f32 %v9976_v21, %v2191_v33  ;;  %12585 = vmatprep.mubr.msk.f32.mxu1 %vm503_vm0, %v464_v22  ;;  %v471_v21 = vld [vmem:[%s16015_s1 + $0x300] sm:$0xff] }
 0x1c3   : > { %v1362_v36 = vpop.f32.mrb[72].mxu0 }
 0x1c4   : > { %v9579_v37 = vmin.f32 %v9578_v24, %v1362_v36  ;;  %v2195_v38 = vpop.f32.mrb[72].mxu1  ;;  %v1364_v39 = vpop.f32.mrb[73].mxu0  ;;  %12298 = vmatmul.mubr.msk.f32.gmra.mrb[178].mxu0 %vm503_vm0, %v464_v22 }
 0x1c5   : > { %v9845_v44 = vmin.f32 %v9844_v27, %v2195_v38  ;;  %v9712_v45 = vmin.f32 %v9711_v32, %v1364_v39  ;;  %v2197_v46 = vpop.f32.mrb[73].mxu1  ;;  %12586 = vmatmul.mubr.msk.f32.gmra.mrb[178].mxu1 %vm503_vm0, %v464_v22  ;;  %12299 = vmatprep.mubr.msk.f32.mxu0 %vm503_vm0, %v465_v35 }
 0x1c6   : > { %v9978_v47 = vmin.f32 %v9977_v34, %v2197_v46  ;;  %12587 = vmatprep.mubr.msk.f32.mxu1 %vm503_vm0, %v465_v35  ;;  %v472_v34 = vld [vmem:[%s16015_s1 + $0x308] sm:$0xff] }
 0x1c7   : > { %v1368_v49 = vpop.f32.mrb[74].mxu0 }
 0x1c8   : > { %v9580_v50 = vmin.f32 %v9579_v37, %v1368_v49  ;;  %v2201_v5 = vpop.f32.mrb[74].mxu1  ;;  %v1370_v0 = vpop.f32.mrb[75].mxu0  ;;  %12300 = vmatmul.mubr.msk.f32.gmra.mrb[180].mxu0 %vm503_vm0, %v465_v35 }
 0x1c9   : > { %v9846_v9 = vmin.f32 %v9845_v44, %v2201_v5  ;;  %v9713_v10 = vmin.f32 %v9712_v45, %v1370_v0  ;;  %v2203_v14 = vpop.f32.mrb[75].mxu1  ;;  %12588 = vmatmul.mubr.msk.f32.gmra.mrb[180].mxu1 %vm503_vm0, %v465_v35  ;;  %12301 = vmatprep.mubr.msk.f32.mxu0 %vm503_vm0, %v466_v48 }
 0x1ca   : > { %v9979_v18 = vmin.f32 %v9978_v47, %v2203_v14  ;;  %12589 = vmatprep.mubr.msk.f32.mxu1 %vm503_vm0, %v466_v48  ;;  %v473_v47 = vld [vmem:[%s16015_s1 + $0x310] sm:$0xff] }
 0x1cb   : > { %v1374_v28 = vpop.f32.mrb[76].mxu0 }
 0x1cc   : > { %v9581_v29 = vmin.f32 %v9580_v50, %v1374_v28  ;;  %v2207_v30 = vpop.f32.mrb[76].mxu1  ;;  %v1376_v31 = vpop.f32.mrb[77].mxu0  ;;  %12302 = vmatmul.mubr.msk.f32.gmra.mrb[182].mxu0 %vm503_vm0, %v466_v48 }
 0x1cd   : > { %v9847_v40 = vmin.f32 %v9846_v9, %v2207_v30  ;;  %v9714_v41 = vmin.f32 %v9713_v10, %v1376_v31  ;;  %v2209_v42 = vpop.f32.mrb[77].mxu1  ;;  %12590 = vmatmul.mubr.msk.f32.gmra.mrb[182].mxu1 %vm503_vm0, %v466_v48  ;;  %12303 = vmatprep.mubr.msk.f32.mxu0 %vm503_vm0, %v467_v19 }
 0x1ce   : > { %v9980_v43 = vmin.f32 %v9979_v18, %v2209_v42  ;;  %12591 = vmatprep.mubr.msk.f32.mxu1 %vm503_vm0, %v467_v19  ;;  %v474_v18 = vld [vmem:[%s16015_s1 + $0x318] sm:$0xff] }
 0x1cf   : > { %v1380_v1 = vpop.f32.mrb[78].mxu0 }
 0x1d0   : > { %v9582_v52 = vmin.f32 %v9581_v29, %v1380_v1  ;;  %v2213_v53 = vpop.f32.mrb[78].mxu1  ;;  %v1382_v54 = vpop.f32.mrb[79].mxu0  ;;  %12304 = vmatmul.mubr.msk.f32.gmra.mrb[184].mxu0 %vm503_vm0, %v467_v19 }
 0x1d1   : > { %v9848_v55 = vmin.f32 %v9847_v40, %v2213_v53  ;;  %v9715_v56 = vmin.f32 %v9714_v41, %v1382_v54  ;;  %v2215_v57 = vpop.f32.mrb[79].mxu1  ;;  %12592 = vmatmul.mubr.msk.f32.gmra.mrb[184].mxu1 %vm503_vm0, %v467_v19  ;;  %12305 = vmatprep.mubr.msk.f32.mxu0 %vm503_vm0, %v468_v51 }
 0x1d2   : > { %v9981_v58 = vmin.f32 %v9980_v43, %v2215_v57  ;;  %12593 = vmatprep.mubr.msk.f32.mxu1 %vm503_vm0, %v468_v51  ;;  %v475_v43 = vld [vmem:[%s16015_s1 + $0x320] sm:$0xff] }
 0x1d3   : > { %v1386_v60 = vpop.f32.mrb[80].mxu0 }
 0x1d4   : > { %v9583_v61 = vmin.f32 %v9582_v52, %v1386_v60  ;;  %v2219_v62 = vpop.f32.mrb[80].mxu1  ;;  %v1388_v63 = vpop.f32.mrb[81].mxu0  ;;  %12306 = vmatmul.mubr.msk.f32.gmra.mrb[186].mxu0 %vm503_vm0, %v468_v51 }
 0x1d5   : > { %v9849_v2 = vmin.f32 %v9848_v55, %v2219_v62  ;;  %v9716_v3 = vmin.f32 %v9715_v56, %v1388_v63  ;;  %v2221_v4 = vpop.f32.mrb[81].mxu1  ;;  %12594 = vmatmul.mubr.msk.f32.gmra.mrb[186].mxu1 %vm503_vm0, %v468_v51  ;;  %12307 = vmatprep.mubr.msk.f32.mxu0 %vm503_vm0, %v469_v59 }
 0x1d6   : > { %v9982_v6 = vmin.f32 %v9981_v58, %v2221_v4  ;;  %12595 = vmatprep.mubr.msk.f32.mxu1 %vm503_vm0, %v469_v59  ;;  %v476_v58 = vld [vmem:[%s16015_s1 + $0x328] sm:$0xff] }
 0x1d7   : > { %v1392_v8 = vpop.f32.mrb[82].mxu0 }
 0x1d8   : > { %v9584_v11 = vmin.f32 %v9583_v61, %v1392_v8  ;;  %v2225_v12 = vpop.f32.mrb[82].mxu1  ;;  %v1394_v13 = vpop.f32.mrb[83].mxu0  ;;  %12308 = vmatmul.mubr.msk.f32.gmra.mrb[188].mxu0 %vm503_vm0, %v469_v59 }
 0x1d9   : > { %v9850_v15 = vmin.f32 %v9849_v2, %v2225_v12  ;;  %v9717_v16 = vmin.f32 %v9716_v3, %v1394_v13  ;;  %v2227_v17 = vpop.f32.mrb[83].mxu1  ;;  %12596 = vmatmul.mubr.msk.f32.gmra.mrb[188].mxu1 %vm503_vm0, %v469_v59  ;;  %12309 = vmatprep.mubr.msk.f32.mxu0 %vm503_vm0, %v470_v7 }
 0x1da   : > { %v9983_v20 = vmin.f32 %v9982_v6, %v2227_v17  ;;  %12597 = vmatprep.mubr.msk.f32.mxu1 %vm503_vm0, %v470_v7  ;;  %v477_v6 = vld [vmem:[%s16015_s1 + $0x330] sm:$0xff] }
 0x1db   : > { %v1398_v22 = vpop.f32.mrb[84].mxu0 }
 0x1dc   : > { %v9585_v23 = vmin.f32 %v9584_v11, %v1398_v22  ;;  %v2231_v24 = vpop.f32.mrb[84].mxu1  ;;  %v1400_v25 = vpop.f32.mrb[85].mxu0  ;;  %12310 = vmatmul.mubr.msk.f32.gmra.mrb[190].mxu0 %vm503_vm0, %v470_v7 }
 0x1dd   : > { %v9851_v26 = vmin.f32 %v9850_v15, %v2231_v24  ;;  %v9718_v27 = vmin.f32 %v9717_v16, %v1400_v25  ;;  %v2233_v32 = vpop.f32.mrb[85].mxu1  ;;  %12598 = vmatmul.mubr.msk.f32.gmra.mrb[190].mxu1 %vm503_vm0, %v470_v7  ;;  %12311 = vmatprep.mubr.msk.f32.mxu0 %vm503_vm0, %v471_v21 }
 0x1de   : > { %v9984_v33 = vmin.f32 %v9983_v20, %v2233_v32  ;;  %12599 = vmatprep.mubr.msk.f32.mxu1 %vm503_vm0, %v471_v21  ;;  %v478_v20 = vld [vmem:[%s16015_s1 + $0x338] sm:$0xff] }
 0x1df   : > { %v1404_v35 = vpop.f32.mrb[86].mxu0 }
 0x1e0   : > { %v9586_v36 = vmin.f32 %v9585_v23, %v1404_v35  ;;  %v2237_v37 = vpop.f32.mrb[86].mxu1  ;;  %v1406_v38 = vpop.f32.mrb[87].mxu0  ;;  %12312 = vmatmul.mubr.msk.f32.gmra.mrb[192].mxu0 %vm503_vm0, %v471_v21 }
 0x1e1   : > { %v9852_v39 = vmin.f32 %v9851_v26, %v2237_v37  ;;  %v9719_v44 = vmin.f32 %v9718_v27, %v1406_v38  ;;  %v2239_v45 = vpop.f32.mrb[87].mxu1  ;;  %12600 = vmatmul.mubr.msk.f32.gmra.mrb[192].mxu1 %vm503_vm0, %v471_v21  ;;  %12313 = vmatprep.mubr.msk.f32.mxu0 %vm503_vm0, %v472_v34 }
 0x1e2   : > { %v9985_v46 = vmin.f32 %v9984_v33, %v2239_v45  ;;  %12601 = vmatprep.mubr.msk.f32.mxu1 %vm503_vm0, %v472_v34  ;;  %v479_v33 = vld [vmem:[%s16015_s1 + $0x340] sm:$0xff] }
 0x1e3   : > { %v1410_v48 = vpop.f32.mrb[88].mxu0 }
 0x1e4   : > { %v9587_v49 = vmin.f32 %v9586_v36, %v1410_v48  ;;  %v2243_v50 = vpop.f32.mrb[88].mxu1  ;;  %v1412_v5 = vpop.f32.mrb[89].mxu0  ;;  %12314 = vmatmul.mubr.msk.f32.gmra.mrb[194].mxu0 %vm503_vm0, %v472_v34 }
 0x1e5   : > { %v9853_v0 = vmin.f32 %v9852_v39, %v2243_v50  ;;  %v9720_v9 = vmin.f32 %v9719_v44, %v1412_v5  ;;  %v2245_v10 = vpop.f32.mrb[89].mxu1  ;;  %12602 = vmatmul.mubr.msk.f32.gmra.mrb[194].mxu1 %vm503_vm0, %v472_v34  ;;  %12315 = vmatprep.mubr.msk.f32.mxu0 %vm503_vm0, %v473_v47 }
 0x1e6   : > { %v9986_v14 = vmin.f32 %v9985_v46, %v2245_v10  ;;  %12603 = vmatprep.mubr.msk.f32.mxu1 %vm503_vm0, %v473_v47  ;;  %v480_v46 = vld [vmem:[%s16015_s1 + $0x348] sm:$0xff] }
 0x1e7   : > { %v1416_v19 = vpop.f32.mrb[90].mxu0 }
 0x1e8   : > { %v9588_v28 = vmin.f32 %v9587_v49, %v1416_v19  ;;  %v2249_v29 = vpop.f32.mrb[90].mxu1  ;;  %v1418_v30 = vpop.f32.mrb[91].mxu0  ;;  %12316 = vmatmul.mubr.msk.f32.gmra.mrb[196].mxu0 %vm503_vm0, %v473_v47 }
 0x1e9   : > { %v9854_v31 = vmin.f32 %v9853_v0, %v2249_v29  ;;  %v9721_v40 = vmin.f32 %v9720_v9, %v1418_v30  ;;  %v2251_v41 = vpop.f32.mrb[91].mxu1  ;;  %12604 = vmatmul.mubr.msk.f32.gmra.mrb[196].mxu1 %vm503_vm0, %v473_v47  ;;  %12317 = vmatprep.mubr.msk.f32.mxu0 %vm503_vm0, %v474_v18 }
 0x1ea   : > { %v9987_v42 = vmin.f32 %v9986_v14, %v2251_v41  ;;  %12605 = vmatprep.mubr.msk.f32.mxu1 %vm503_vm0, %v474_v18  ;;  %v481_v14 = vld [vmem:[%s16015_s1 + $0x350] sm:$0xff] }
 0x1eb   : > { %v1422_v51 = vpop.f32.mrb[92].mxu0 }
 0x1ec   : > { %v9589_v1 = vmin.f32 %v9588_v28, %v1422_v51  ;;  %v2255_v52 = vpop.f32.mrb[92].mxu1  ;;  %v1424_v53 = vpop.f32.mrb[93].mxu0  ;;  %12318 = vmatmul.mubr.msk.f32.gmra.mrb[198].mxu0 %vm503_vm0, %v474_v18 }
 0x1ed   : > { %v9855_v54 = vmin.f32 %v9854_v31, %v2255_v52  ;;  %v9722_v55 = vmin.f32 %v9721_v40, %v1424_v53  ;;  %v2257_v56 = vpop.f32.mrb[93].mxu1  ;;  %12606 = vmatmul.mubr.msk.f32.gmra.mrb[198].mxu1 %vm503_vm0, %v474_v18  ;;  %12319 = vmatprep.mubr.msk.f32.mxu0 %vm503_vm0, %v475_v43 }
 0x1ee   : > { %v9988_v57 = vmin.f32 %v9987_v42, %v2257_v56  ;;  %12607 = vmatprep.mubr.msk.f32.mxu1 %vm503_vm0, %v475_v43  ;;  %v482_v42 = vld [vmem:[%s16015_s1 + $0x358] sm:$0xff] }
 0x1ef   : > { %v1428_v59 = vpop.f32.mrb[94].mxu0 }
 0x1f0   : > { %v9590_v60 = vmin.f32 %v9589_v1, %v1428_v59  ;;  %v2261_v61 = vpop.f32.mrb[94].mxu1  ;;  %v1430_v62 = vpop.f32.mrb[95].mxu0  ;;  %12320 = vmatmul.mubr.msk.f32.gmra.mrb[200].mxu0 %vm503_vm0, %v475_v43 }
 0x1f1   : > { %v9856_v63 = vmin.f32 %v9855_v54, %v2261_v61  ;;  %v9723_v2 = vmin.f32 %v9722_v55, %v1430_v62  ;;  %v2263_v3 = vpop.f32.mrb[95].mxu1  ;;  %12608 = vmatmul.mubr.msk.f32.gmra.mrb[200].mxu1 %vm503_vm0, %v475_v43  ;;  %12321 = vmatprep.mubr.msk.f32.mxu0 %vm503_vm0, %v476_v58 }
 0x1f2   : > { %v9989_v4 = vmin.f32 %v9988_v57, %v2263_v3  ;;  %12609 = vmatprep.mubr.msk.f32.mxu1 %vm503_vm0, %v476_v58  ;;  %v483_v57 = vld [vmem:[%s16015_s1 + $0x360] sm:$0xff] }
 0x1f3   : > { %v1434_v7 = vpop.f32.mrb[96].mxu0 }
 0x1f4   : > { %v9591_v8 = vmin.f32 %v9590_v60, %v1434_v7  ;;  %v2267_v11 = vpop.f32.mrb[96].mxu1  ;;  %v1436_v12 = vpop.f32.mrb[97].mxu0  ;;  %12322 = vmatmul.mubr.msk.f32.gmra.mrb[202].mxu0 %vm503_vm0, %v476_v58 }
 0x1f5   : > { %v9857_v13 = vmin.f32 %v9856_v63, %v2267_v11  ;;  %v9724_v15 = vmin.f32 %v9723_v2, %v1436_v12  ;;  %v2269_v16 = vpop.f32.mrb[97].mxu1  ;;  %12610 = vmatmul.mubr.msk.f32.gmra.mrb[202].mxu1 %vm503_vm0, %v476_v58  ;;  %12323 = vmatprep.mubr.msk.f32.mxu0 %vm503_vm0, %v477_v6 }
 0x1f6   : > { %v9990_v17 = vmin.f32 %v9989_v4, %v2269_v16  ;;  %12611 = vmatprep.mubr.msk.f32.mxu1 %vm503_vm0, %v477_v6  ;;  %v484_v4 = vld [vmem:[%s16015_s1 + $0x368] sm:$0xff] }
 0x1f7   : > { %v1440_v21 = vpop.f32.mrb[98].mxu0 }
 0x1f8   : > { %v9592_v22 = vmin.f32 %v9591_v8, %v1440_v21  ;;  %v2273_v23 = vpop.f32.mrb[98].mxu1  ;;  %v1442_v24 = vpop.f32.mrb[99].mxu0  ;;  %12324 = vmatmul.mubr.msk.f32.gmra.mrb[204].mxu0 %vm503_vm0, %v477_v6 }
 0x1f9   : > { %v9858_v25 = vmin.f32 %v9857_v13, %v2273_v23  ;;  %v9725_v26 = vmin.f32 %v9724_v15, %v1442_v24  ;;  %v2275_v27 = vpop.f32.mrb[99].mxu1  ;;  %12612 = vmatmul.mubr.msk.f32.gmra.mrb[204].mxu1 %vm503_vm0, %v477_v6  ;;  %12325 = vmatprep.mubr.msk.f32.mxu0 %vm503_vm0, %v478_v20 }
 0x1fa   : > { %v9991_v32 = vmin.f32 %v9990_v17, %v2275_v27  ;;  %12613 = vmatprep.mubr.msk.f32.mxu1 %vm503_vm0, %v478_v20  ;;  %v485_v17 = vld [vmem:[%s16015_s1 + $0x370] sm:$0xff] }
 0x1fb   : > { %v1446_v34 = vpop.f32.mrb[100].mxu0 }
 0x1fc   : > { %v9593_v35 = vmin.f32 %v9592_v22, %v1446_v34  ;;  %v2279_v36 = vpop.f32.mrb[100].mxu1  ;;  %v1448_v37 = vpop.f32.mrb[101].mxu0  ;;  %12326 = vmatmul.mubr.msk.f32.gmra.mrb[206].mxu0 %vm503_vm0, %v478_v20 }
 0x1fd   : > { %v9859_v38 = vmin.f32 %v9858_v25, %v2279_v36  ;;  %v9726_v39 = vmin.f32 %v9725_v26, %v1448_v37  ;;  %v2281_v44 = vpop.f32.mrb[101].mxu1  ;;  %12614 = vmatmul.mubr.msk.f32.gmra.mrb[206].mxu1 %vm503_vm0, %v478_v20  ;;  %12327 = vmatprep.mubr.msk.f32.mxu0 %vm503_vm0, %v479_v33 }
 0x1fe   : > { %v9992_v45 = vmin.f32 %v9991_v32, %v2281_v44  ;;  %12615 = vmatprep.mubr.msk.f32.mxu1 %vm503_vm0, %v479_v33  ;;  %v486_v32 = vld [vmem:[%s16015_s1 + $0x378] sm:$0xff] }
 0x1ff   : > { %v1452_v47 = vpop.f32.mrb[102].mxu0 }
 0x200   : > { %v9594_v48 = vmin.f32 %v9593_v35, %v1452_v47  ;;  %v2285_v49 = vpop.f32.mrb[102].mxu1  ;;  %v1454_v50 = vpop.f32.mrb[103].mxu0  ;;  %12328 = vmatmul.mubr.msk.f32.gmra.mrb[208].mxu0 %vm503_vm0, %v479_v33 }
 0x201   : > { %v9860_v5 = vmin.f32 %v9859_v38, %v2285_v49  ;;  %v9727_v0 = vmin.f32 %v9726_v39, %v1454_v50  ;;  %v2287_v9 = vpop.f32.mrb[103].mxu1  ;;  %12616 = vmatmul.mubr.msk.f32.gmra.mrb[208].mxu1 %vm503_vm0, %v479_v33  ;;  %12329 = vmatprep.mubr.msk.f32.mxu0 %vm503_vm0, %v480_v46 }
 0x202   : > { %v9993_v10 = vmin.f32 %v9992_v45, %v2287_v9  ;;  %12617 = vmatprep.mubr.msk.f32.mxu1 %vm503_vm0, %v480_v46  ;;  %v487_v45 = vld [vmem:[%s16015_s1 + $0x380] sm:$0xff] }
 0x203   : > { %v1458_v18 = vpop.f32.mrb[104].mxu0 }
 0x204   : > { %v9595_v19 = vmin.f32 %v9594_v48, %v1458_v18  ;;  %v2291_v28 = vpop.f32.mrb[104].mxu1  ;;  %v1460_v29 = vpop.f32.mrb[105].mxu0  ;;  %12330 = vmatmul.mubr.msk.f32.gmra.mrb[210].mxu0 %vm503_vm0, %v480_v46 }
 0x205   : > { %v9861_v30 = vmin.f32 %v9860_v5, %v2291_v28  ;;  %v9728_v31 = vmin.f32 %v9727_v0, %v1460_v29  ;;  %v2293_v40 = vpop.f32.mrb[105].mxu1  ;;  %12618 = vmatmul.mubr.msk.f32.gmra.mrb[210].mxu1 %vm503_vm0, %v480_v46  ;;  %12331 = vmatprep.mubr.msk.f32.mxu0 %vm503_vm0, %v481_v14 }
 0x206   : > { %v9994_v41 = vmin.f32 %v9993_v10, %v2293_v40  ;;  %12619 = vmatprep.mubr.msk.f32.mxu1 %vm503_vm0, %v481_v14  ;;  %v488_v10 = vld [vmem:[%s16015_s1 + $0x388] sm:$0xff] }
 0x207   : > { %v1464_v43 = vpop.f32.mrb[106].mxu0 }
 0x208   : > { %v9596_v51 = vmin.f32 %v9595_v19, %v1464_v43  ;;  %v2297_v1 = vpop.f32.mrb[106].mxu1  ;;  %v1466_v52 = vpop.f32.mrb[107].mxu0  ;;  %12332 = vmatmul.mubr.msk.f32.gmra.mrb[212].mxu0 %vm503_vm0, %v481_v14 }
 0x209   : > { %v9862_v53 = vmin.f32 %v9861_v30, %v2297_v1  ;;  %v9729_v54 = vmin.f32 %v9728_v31, %v1466_v52  ;;  %v2299_v55 = vpop.f32.mrb[107].mxu1  ;;  %12620 = vmatmul.mubr.msk.f32.gmra.mrb[212].mxu1 %vm503_vm0, %v481_v14  ;;  %12333 = vmatprep.mubr.msk.f32.mxu0 %vm503_vm0, %v482_v42 }
 0x20a   : > { %v9995_v56 = vmin.f32 %v9994_v41, %v2299_v55  ;;  %12621 = vmatprep.mubr.msk.f32.mxu1 %vm503_vm0, %v482_v42  ;;  %v489_v41 = vld [vmem:[%s16015_s1 + $0x390] sm:$0xff] }
 0x20b   : > { %v1470_v58 = vpop.f32.mrb[108].mxu0 }
 0x20c   : > { %v9597_v59 = vmin.f32 %v9596_v51, %v1470_v58  ;;  %v2303_v60 = vpop.f32.mrb[108].mxu1  ;;  %v1472_v61 = vpop.f32.mrb[109].mxu0  ;;  %12334 = vmatmul.mubr.msk.f32.gmra.mrb[214].mxu0 %vm503_vm0, %v482_v42 }
 0x20d   : > { %v9863_v62 = vmin.f32 %v9862_v53, %v2303_v60  ;;  %v9730_v63 = vmin.f32 %v9729_v54, %v1472_v61  ;;  %v2305_v2 = vpop.f32.mrb[109].mxu1  ;;  %12622 = vmatmul.mubr.msk.f32.gmra.mrb[214].mxu1 %vm503_vm0, %v482_v42  ;;  %12335 = vmatprep.mubr.msk.f32.mxu0 %vm503_vm0, %v483_v57 }
 0x20e   : > { %v9996_v3 = vmin.f32 %v9995_v56, %v2305_v2  ;;  %12623 = vmatprep.mubr.msk.f32.mxu1 %vm503_vm0, %v483_v57  ;;  %v490_v56 = vld [vmem:[%s16015_s1 + $0x398] sm:$0xff] }
 0x20f   : > { %v1476_v6 = vpop.f32.mrb[110].mxu0 }
 0x210   : > { %v9598_v7 = vmin.f32 %v9597_v59, %v1476_v6  ;;  %v2309_v8 = vpop.f32.mrb[110].mxu1  ;;  %v1478_v11 = vpop.f32.mrb[111].mxu0  ;;  %12336 = vmatmul.mubr.msk.f32.gmra.mrb[216].mxu0 %vm503_vm0, %v483_v57 }
 0x211   : > { %v9864_v12 = vmin.f32 %v9863_v62, %v2309_v8  ;;  %v9731_v13 = vmin.f32 %v9730_v63, %v1478_v11  ;;  %v2311_v15 = vpop.f32.mrb[111].mxu1  ;;  %12624 = vmatmul.mubr.msk.f32.gmra.mrb[216].mxu1 %vm503_vm0, %v483_v57  ;;  %12337 = vmatprep.mubr.msk.f32.mxu0 %vm503_vm0, %v484_v4 }
 0x212   : > { %v9997_v16 = vmin.f32 %v9996_v3, %v2311_v15  ;;  %12625 = vmatprep.mubr.msk.f32.mxu1 %vm503_vm0, %v484_v4  ;;  %v491_v3 = vld [vmem:[%s16015_s1 + $0x3a0] sm:$0xff] }
 0x213   : > { %v1482_v20 = vpop.f32.mrb[112].mxu0 }
 0x214   : > { %v9599_v21 = vmin.f32 %v9598_v7, %v1482_v20  ;;  %v2315_v22 = vpop.f32.mrb[112].mxu1  ;;  %v1484_v23 = vpop.f32.mrb[113].mxu0  ;;  %12338 = vmatmul.mubr.msk.f32.gmra.mrb[218].mxu0 %vm503_vm0, %v484_v4 }
 0x215   : > { %v9865_v24 = vmin.f32 %v9864_v12, %v2315_v22  ;;  %v9732_v25 = vmin.f32 %v9731_v13, %v1484_v23  ;;  %v2317_v26 = vpop.f32.mrb[113].mxu1  ;;  %12626 = vmatmul.mubr.msk.f32.gmra.mrb[218].mxu1 %vm503_vm0, %v484_v4  ;;  %12339 = vmatprep.mubr.msk.f32.mxu0 %vm503_vm0, %v485_v17 }
 0x216   : > { %v9998_v27 = vmin.f32 %v9997_v16, %v2317_v26  ;;  %12627 = vmatprep.mubr.msk.f32.mxu1 %vm503_vm0, %v485_v17  ;;  %v492_v16 = vld [vmem:[%s16015_s1 + $0x3a8] sm:$0xff] }
 0x217   : > { %v1488_v33 = vpop.f32.mrb[114].mxu0 }
 0x218   : > { %v9600_v34 = vmin.f32 %v9599_v21, %v1488_v33  ;;  %v2321_v35 = vpop.f32.mrb[114].mxu1  ;;  %v1490_v36 = vpop.f32.mrb[115].mxu0  ;;  %12340 = vmatmul.mubr.msk.f32.gmra.mrb[220].mxu0 %vm503_vm0, %v485_v17 }
 0x219   : > { %v9866_v37 = vmin.f32 %v9865_v24, %v2321_v35  ;;  %v9733_v38 = vmin.f32 %v9732_v25, %v1490_v36  ;;  %v2323_v39 = vpop.f32.mrb[115].mxu1  ;;  %12628 = vmatmul.mubr.msk.f32.gmra.mrb[220].mxu1 %vm503_vm0, %v485_v17  ;;  %12341 = vmatprep.mubr.msk.f32.mxu0 %vm503_vm0, %v486_v32 }
 0x21a   : > { %v9999_v44 = vmin.f32 %v9998_v27, %v2323_v39  ;;  %12629 = vmatprep.mubr.msk.f32.mxu1 %vm503_vm0, %v486_v32  ;;  %v493_v27 = vld [vmem:[%s16015_s1 + $0x3b0] sm:$0xff] }
 0x21b   : > { %v1494_v46 = vpop.f32.mrb[116].mxu0 }
 0x21c   : > { %v9601_v47 = vmin.f32 %v9600_v34, %v1494_v46  ;;  %v2327_v48 = vpop.f32.mrb[116].mxu1  ;;  %v1496_v49 = vpop.f32.mrb[117].mxu0  ;;  %12342 = vmatmul.mubr.msk.f32.gmra.mrb[222].mxu0 %vm503_vm0, %v486_v32 }
 0x21d   : > { %v9867_v50 = vmin.f32 %v9866_v37, %v2327_v48  ;;  %v9734_v5 = vmin.f32 %v9733_v38, %v1496_v49  ;;  %v2329_v0 = vpop.f32.mrb[117].mxu1  ;;  %12630 = vmatmul.mubr.msk.f32.gmra.mrb[222].mxu1 %vm503_vm0, %v486_v32  ;;  %12343 = vmatprep.mubr.msk.f32.mxu0 %vm503_vm0, %v487_v45 }
 0x21e   : > { %v10000_v9 = vmin.f32 %v9999_v44, %v2329_v0  ;;  %12631 = vmatprep.mubr.msk.f32.mxu1 %vm503_vm0, %v487_v45  ;;  %v494_v44 = vld [vmem:[%s16015_s1 + $0x3b8] sm:$0xff] }
 0x21f   : > { %v1500_v14 = vpop.f32.mrb[118].mxu0 }
 0x220   : > { %v9602_v18 = vmin.f32 %v9601_v47, %v1500_v14  ;;  %v2333_v19 = vpop.f32.mrb[118].mxu1  ;;  %v1502_v28 = vpop.f32.mrb[119].mxu0  ;;  %12344 = vmatmul.mubr.msk.f32.gmra.mrb[224].mxu0 %vm503_vm0, %v487_v45 }
 0x221   : > { %v9868_v29 = vmin.f32 %v9867_v50, %v2333_v19  ;;  %v9735_v30 = vmin.f32 %v9734_v5, %v1502_v28  ;;  %v2335_v31 = vpop.f32.mrb[119].mxu1  ;;  %12632 = vmatmul.mubr.msk.f32.gmra.mrb[224].mxu1 %vm503_vm0, %v487_v45  ;;  %12345 = vmatprep.mubr.msk.f32.mxu0 %vm503_vm0, %v488_v10 }
 0x222   : > { %v10001_v40 = vmin.f32 %v10000_v9, %v2335_v31  ;;  %12633 = vmatprep.mubr.msk.f32.mxu1 %vm503_vm0, %v488_v10  ;;  %v495_v9 = vld [vmem:[%s16015_s1 + $0x3c0] sm:$0xff] }
 0x223   : > { %v1506_v42 = vpop.f32.mrb[120].mxu0 }
 0x224   : > { %v9603_v43 = vmin.f32 %v9602_v18, %v1506_v42  ;;  %v2339_v51 = vpop.f32.mrb[120].mxu1  ;;  %v1508_v1 = vpop.f32.mrb[121].mxu0  ;;  %12346 = vmatmul.mubr.msk.f32.gmra.mrb[226].mxu0 %vm503_vm0, %v488_v10 }
 0x225   : > { %v9869_v52 = vmin.f32 %v9868_v29, %v2339_v51  ;;  %v9736_v53 = vmin.f32 %v9735_v30, %v1508_v1  ;;  %v2341_v54 = vpop.f32.mrb[121].mxu1  ;;  %12634 = vmatmul.mubr.msk.f32.gmra.mrb[226].mxu1 %vm503_vm0, %v488_v10  ;;  %12347 = vmatprep.mubr.msk.f32.mxu0 %vm503_vm0, %v489_v41 }
 0x226   : > { %v10002_v55 = vmin.f32 %v10001_v40, %v2341_v54  ;;  %12635 = vmatprep.mubr.msk.f32.mxu1 %vm503_vm0, %v489_v41  ;;  %v496_v40 = vld [vmem:[%s16015_s1 + $0x3c8] sm:$0xff] }
 0x227   : > { %v1512_v57 = vpop.f32.mrb[122].mxu0 }
 0x228   : > { %v9604_v58 = vmin.f32 %v9603_v43, %v1512_v57  ;;  %v2345_v59 = vpop.f32.mrb[122].mxu1  ;;  %v1514_v60 = vpop.f32.mrb[123].mxu0  ;;  %12348 = vmatmul.mubr.msk.f32.gmra.mrb[228].mxu0 %vm503_vm0, %v489_v41 }
 0x229   : > { %v9870_v61 = vmin.f32 %v9869_v52, %v2345_v59  ;;  %v9737_v62 = vmin.f32 %v9736_v53, %v1514_v60  ;;  %v2347_v63 = vpop.f32.mrb[123].mxu1  ;;  %12636 = vmatmul.mubr.msk.f32.gmra.mrb[228].mxu1 %vm503_vm0, %v489_v41  ;;  %12349 = vmatprep.mubr.msk.f32.mxu0 %vm503_vm0, %v490_v56 }
 0x22a   : > { %v10003_v2 = vmin.f32 %v10002_v55, %v2347_v63  ;;  %12637 = vmatprep.mubr.msk.f32.mxu1 %vm503_vm0, %v490_v56  ;;  %v497_v55 = vld [vmem:[%s16015_s1 + $0x3d0] sm:$0xff] }
 0x22b   : > { %v1518_v4 = vpop.f32.mrb[124].mxu0 }
 0x22c   : > { %v9605_v6 = vmin.f32 %v9604_v58, %v1518_v4  ;;  %v2351_v7 = vpop.f32.mrb[124].mxu1  ;;  %v1520_v8 = vpop.f32.mrb[125].mxu0  ;;  %12350 = vmatmul.mubr.msk.f32.gmra.mrb[230].mxu0 %vm503_vm0, %v490_v56 }
 0x22d   : > { %v9871_v11 = vmin.f32 %v9870_v61, %v2351_v7  ;;  %v9738_v12 = vmin.f32 %v9737_v62, %v1520_v8  ;;  %v2353_v13 = vpop.f32.mrb[125].mxu1  ;;  %12638 = vmatmul.mubr.msk.f32.gmra.mrb[230].mxu1 %vm503_vm0, %v490_v56  ;;  %12351 = vmatprep.mubr.msk.f32.mxu0 %vm503_vm0, %v491_v3 }
 0x22e   : > { %v10004_v15 = vmin.f32 %v10003_v2, %v2353_v13  ;;  %12639 = vmatprep.mubr.msk.f32.mxu1 %vm503_vm0, %v491_v3  ;;  %v498_v2 = vld [vmem:[%s16015_s1 + $0x3d8] sm:$0xff] }
 0x22f   : > { %v1524_v17 = vpop.f32.mrb[126].mxu0 }
 0x230   : > { %v9606_v20 = vmin.f32 %v9605_v6, %v1524_v17  ;;  %v2357_v21 = vpop.f32.mrb[126].mxu1  ;;  %v1526_v22 = vpop.f32.mrb[127].mxu0  ;;  %12352 = vmatmul.mubr.msk.f32.gmra.mrb[232].mxu0 %vm503_vm0, %v491_v3 }
 0x231   : > { %v9872_v23 = vmin.f32 %v9871_v11, %v2357_v21  ;;  %v9739_v24 = vmin.f32 %v9738_v12, %v1526_v22  ;;  %v2359_v25 = vpop.f32.mrb[127].mxu1  ;;  %12640 = vmatmul.mubr.msk.f32.gmra.mrb[232].mxu1 %vm503_vm0, %v491_v3  ;;  %12353 = vmatprep.mubr.msk.f32.mxu0 %vm503_vm0, %v492_v16 }
 0x232   : > { %v10005_v26 = vmin.f32 %v10004_v15, %v2359_v25  ;;  %12641 = vmatprep.mubr.msk.f32.mxu1 %vm503_vm0, %v492_v16  ;;  %v499_v15 = vld [vmem:[%s16015_s1 + $0x3e0] sm:$0xff] }
 0x233   : > { %v1530_v32 = vpop.f32.mrb[128].mxu0 }
 0x234   : > { %v9607_v33 = vmin.f32 %v9606_v20, %v1530_v32  ;;  %v2363_v34 = vpop.f32.mrb[128].mxu1  ;;  %v1532_v35 = vpop.f32.mrb[129].mxu0  ;;  %12354 = vmatmul.mubr.msk.f32.gmra.mrb[234].mxu0 %vm503_vm0, %v492_v16 }
 0x235   : > { %v9873_v36 = vmin.f32 %v9872_v23, %v2363_v34  ;;  %v9740_v37 = vmin.f32 %v9739_v24, %v1532_v35  ;;  %v2365_v38 = vpop.f32.mrb[129].mxu1  ;;  %12642 = vmatmul.mubr.msk.f32.gmra.mrb[234].mxu1 %vm503_vm0, %v492_v16  ;;  %12355 = vmatprep.mubr.msk.f32.mxu0 %vm503_vm0, %v493_v27 }
 0x236   : > { %v10006_v39 = vmin.f32 %v10005_v26, %v2365_v38  ;;  %12643 = vmatprep.mubr.msk.f32.mxu1 %vm503_vm0, %v493_v27  ;;  %v500_v26 = vld [vmem:[%s16015_s1 + $0x3e8] sm:$0xff] }
 0x237   : > { %v1536_v45 = vpop.f32.mrb[130].mxu0 }
 0x238   : > { %v9608_v46 = vmin.f32 %v9607_v33, %v1536_v45  ;;  %v2369_v47 = vpop.f32.mrb[130].mxu1  ;;  %v1538_v48 = vpop.f32.mrb[131].mxu0  ;;  %12356 = vmatmul.mubr.msk.f32.gmra.mrb[236].mxu0 %vm503_vm0, %v493_v27 }
 0x239   : > { %v9874_v49 = vmin.f32 %v9873_v36, %v2369_v47  ;;  %v9741_v50 = vmin.f32 %v9740_v37, %v1538_v48  ;;  %v2371_v5 = vpop.f32.mrb[131].mxu1  ;;  %12644 = vmatmul.mubr.msk.f32.gmra.mrb[236].mxu1 %vm503_vm0, %v493_v27  ;;  %12357 = vmatprep.mubr.msk.f32.mxu0 %vm503_vm0, %v494_v44 }
 0x23a   : > { %v10007_v0 = vmin.f32 %v10006_v39, %v2371_v5  ;;  %12645 = vmatprep.mubr.msk.f32.mxu1 %vm503_vm0, %v494_v44  ;;  %v501_v39 = vld [vmem:[%s16015_s1 + $0x3f0] sm:$0xff] }
 0x23b   : > { %v1542_v10 = vpop.f32.mrb[132].mxu0 }
 0x23c   : > { %v9609_v14 = vmin.f32 %v9608_v46, %v1542_v10  ;;  %v2375_v18 = vpop.f32.mrb[132].mxu1  ;;  %v1544_v19 = vpop.f32.mrb[133].mxu0  ;;  %12358 = vmatmul.mubr.msk.f32.gmra.mrb[238].mxu0 %vm503_vm0, %v494_v44 }
 0x23d   : > { %v9875_v28 = vmin.f32 %v9874_v49, %v2375_v18  ;;  %v9742_v29 = vmin.f32 %v9741_v50, %v1544_v19  ;;  %v2377_v30 = vpop.f32.mrb[133].mxu1  ;;  %12646 = vmatmul.mubr.msk.f32.gmra.mrb[238].mxu1 %vm503_vm0, %v494_v44  ;;  %12359 = vmatprep.mubr.msk.f32.mxu0 %vm503_vm0, %v495_v9 }
 0x23e   : > { %v10008_v31 = vmin.f32 %v10007_v0, %v2377_v30  ;;  %12647 = vmatprep.mubr.msk.f32.mxu1 %vm503_vm0, %v495_v9  ;;  %v502_v0 = vld [vmem:[%s16015_s1 + $0x3f8] sm:$0xff] }
 0x23f   : > { %v1548_v41 = vpop.f32.mrb[134].mxu0 }
 0x240   : > { %v9610_v42 = vmin.f32 %v9609_v14, %v1548_v41  ;;  %v2381_v43 = vpop.f32.mrb[134].mxu1  ;;  %v1550_v51 = vpop.f32.mrb[135].mxu0  ;;  %12360 = vmatmul.mubr.msk.f32.gmra.mrb[240].mxu0 %vm503_vm0, %v495_v9 }
 0x241   : > { %v9876_v1 = vmin.f32 %v9875_v28, %v2381_v43  ;;  %v9743_v52 = vmin.f32 %v9742_v29, %v1550_v51  ;;  %v2383_v53 = vpop.f32.mrb[135].mxu1  ;;  %12648 = vmatmul.mubr.msk.f32.gmra.mrb[240].mxu1 %vm503_vm0, %v495_v9  ;;  %12361 = vmatprep.mubr.msk.f32.mxu0 %vm503_vm0, %v496_v40 }
 0x242   : > { %v10009_v54 = vmin.f32 %v10008_v31, %v2383_v53  ;;  %12649 = vmatprep.mubr.msk.f32.mxu1 %vm503_vm0, %v496_v40  ;;  %v2746_v31 = vld [vmem:[%s16016_s2] sm:$0xff] }
 0x243   : > { %v1554_v56 = vpop.f32.mrb[136].mxu0 }
 0x244   : > { %v9611_v57 = vmin.f32 %v9610_v42, %v1554_v56  ;;  %v2387_v58 = vpop.f32.mrb[136].mxu1  ;;  %v1556_v59 = vpop.f32.mrb[137].mxu0  ;;  %12362 = vmatmul.mubr.msk.f32.gmra.mrb[242].mxu0 %vm503_vm0, %v496_v40 }
 0x245   : > { %v9877_v60 = vmin.f32 %v9876_v1, %v2387_v58  ;;  %v9744_v61 = vmin.f32 %v9743_v52, %v1556_v59  ;;  %v2389_v62 = vpop.f32.mrb[137].mxu1  ;;  %12650 = vmatmul.mubr.msk.f32.gmra.mrb[242].mxu1 %vm503_vm0, %v496_v40  ;;  %12363 = vmatprep.mubr.msk.f32.mxu0 %vm503_vm0, %v497_v55 }
 0x246   : > { %v10010_v63 = vmin.f32 %v10009_v54, %v2389_v62  ;;  %12651 = vmatprep.mubr.msk.f32.mxu1 %vm503_vm0, %v497_v55  ;;  %v2747_v54 = vld [vmem:[%s16016_s2 + $0x8] sm:$0xff] }
 0x247   : > { %v1560_v3 = vpop.f32.mrb[138].mxu0 }
 0x248   : > { %v9612_v4 = vmin.f32 %v9611_v57, %v1560_v3  ;;  %v2393_v6 = vpop.f32.mrb[138].mxu1  ;;  %v1562_v7 = vpop.f32.mrb[139].mxu0  ;;  %12364 = vmatmul.mubr.msk.f32.gmra.mrb[244].mxu0 %vm503_vm0, %v497_v55 }
 0x249   : > { %v9878_v8 = vmin.f32 %v9877_v60, %v2393_v6  ;;  %v9745_v11 = vmin.f32 %v9744_v61, %v1562_v7  ;;  %v2395_v12 = vpop.f32.mrb[139].mxu1  ;;  %12652 = vmatmul.mubr.msk.f32.gmra.mrb[244].mxu1 %vm503_vm0, %v497_v55  ;;  %12365 = vmatprep.mubr.msk.f32.mxu0 %vm503_vm0, %v498_v2 }
 0x24a   : > { %v10011_v13 = vmin.f32 %v10010_v63, %v2395_v12  ;;  %12653 = vmatprep.mubr.msk.f32.mxu1 %vm503_vm0, %v498_v2  ;;  %v2748_v63 = vld [vmem:[%s16016_s2 + $0x10] sm:$0xff] }
 0x24b   : > { %v1566_v16 = vpop.f32.mrb[140].mxu0 }
 0x24c   : > { %v9613_v17 = vmin.f32 %v9612_v4, %v1566_v16  ;;  %v2399_v20 = vpop.f32.mrb[140].mxu1  ;;  %v1568_v21 = vpop.f32.mrb[141].mxu0  ;;  %12366 = vmatmul.mubr.msk.f32.gmra.mrb[246].mxu0 %vm503_vm0, %v498_v2 }
 0x24d   : > { %v9879_v22 = vmin.f32 %v9878_v8, %v2399_v20  ;;  %v9746_v23 = vmin.f32 %v9745_v11, %v1568_v21  ;;  %v2401_v24 = vpop.f32.mrb[141].mxu1  ;;  %12654 = vmatmul.mubr.msk.f32.gmra.mrb[246].mxu1 %vm503_vm0, %v498_v2  ;;  %12367 = vmatprep.mubr.msk.f32.mxu0 %vm503_vm0, %v499_v15 }
 0x24e   : > { %v10012_v25 = vmin.f32 %v10011_v13, %v2401_v24  ;;  %12655 = vmatprep.mubr.msk.f32.mxu1 %vm503_vm0, %v499_v15  ;;  %v2749_v13 = vld [vmem:[%s16016_s2 + $0x18] sm:$0xff] }
 0x24f   : > { %v1572_v27 = vpop.f32.mrb[142].mxu0 }
 0x250   : > { %v9614_v32 = vmin.f32 %v9613_v17, %v1572_v27  ;;  %v2405_v33 = vpop.f32.mrb[142].mxu1  ;;  %v1574_v34 = vpop.f32.mrb[143].mxu0  ;;  %12368 = vmatmul.mubr.msk.f32.gmra.mrb[248].mxu0 %vm503_vm0, %v499_v15 }
 0x251   : > { %v9880_v35 = vmin.f32 %v9879_v22, %v2405_v33  ;;  %v9747_v36 = vmin.f32 %v9746_v23, %v1574_v34  ;;  %v2407_v37 = vpop.f32.mrb[143].mxu1  ;;  %12656 = vmatmul.mubr.msk.f32.gmra.mrb[248].mxu1 %vm503_vm0, %v499_v15  ;;  %12369 = vmatprep.mubr.msk.f32.mxu0 %vm503_vm0, %v500_v26 }
 0x252   : > { %v10013_v38 = vmin.f32 %v10012_v25, %v2407_v37  ;;  %12657 = vmatprep.mubr.msk.f32.mxu1 %vm503_vm0, %v500_v26  ;;  %v2750_v25 = vld [vmem:[%s16016_s2 + $0x20] sm:$0xff] }
 0x253   : > { %v1578_v44 = vpop.f32.mrb[144].mxu0 }
 0x254   : > { %v9615_v45 = vmin.f32 %v9614_v32, %v1578_v44  ;;  %v2411_v46 = vpop.f32.mrb[144].mxu1  ;;  %v1580_v47 = vpop.f32.mrb[145].mxu0  ;;  %12370 = vmatmul.mubr.msk.f32.gmra.mrb[250].mxu0 %vm503_vm0, %v500_v26 }
 0x255   : > { %v9881_v48 = vmin.f32 %v9880_v35, %v2411_v46  ;;  %v9748_v49 = vmin.f32 %v9747_v36, %v1580_v47  ;;  %v2413_v50 = vpop.f32.mrb[145].mxu1  ;;  %12658 = vmatmul.mubr.msk.f32.gmra.mrb[250].mxu1 %vm503_vm0, %v500_v26  ;;  %12371 = vmatprep.mubr.msk.f32.mxu0 %vm503_vm0, %v501_v39 }
 0x256   : > { %v10014_v5 = vmin.f32 %v10013_v38, %v2413_v50  ;;  %12659 = vmatprep.mubr.msk.f32.mxu1 %vm503_vm0, %v501_v39  ;;  %v2751_v38 = vld [vmem:[%s16016_s2 + $0x28] sm:$0xff] }
 0x257   : > { %v1584_v9 = vpop.f32.mrb[146].mxu0 }
 0x258   : > { %v9616_v10 = vmin.f32 %v9615_v45, %v1584_v9  ;;  %v2417_v14 = vpop.f32.mrb[146].mxu1  ;;  %v1586_v18 = vpop.f32.mrb[147].mxu0  ;;  %12372 = vmatmul.mubr.msk.f32.gmra.mrb[252].mxu0 %vm503_vm0, %v501_v39 }
 0x259   : > { %v9882_v19 = vmin.f32 %v9881_v48, %v2417_v14  ;;  %v9749_v28 = vmin.f32 %v9748_v49, %v1586_v18  ;;  %v2419_v29 = vpop.f32.mrb[147].mxu1  ;;  %12660 = vmatmul.mubr.msk.f32.gmra.mrb[252].mxu1 %vm503_vm0, %v501_v39  ;;  %12373 = vmatprep.mubr.msk.f32.mxu0 %vm503_vm0, %v502_v0 }
 0x25a   : > { %v10015_v30 = vmin.f32 %v10014_v5, %v2419_v29  ;;  %12661 = vmatprep.mubr.msk.f32.mxu1 %vm503_vm0, %v502_v0  ;;  %v2752_v5 = vld [vmem:[%s16016_s2 + $0x30] sm:$0xff] }
 0x25b   : > { %v1590_v40 = vpop.f32.mrb[148].mxu0 }
 0x25c   : > { %v9617_v41 = vmin.f32 %v9616_v10, %v1590_v40  ;;  %v2423_v42 = vpop.f32.mrb[148].mxu1  ;;  %v1592_v43 = vpop.f32.mrb[149].mxu0  ;;  %12374 = vmatmul.mubr.msk.f32.gmra.mrb[254].mxu0 %vm503_vm0, %v502_v0 }
 0x25d   : > { %v9883_v51 = vmin.f32 %v9882_v19, %v2423_v42  ;;  %v9750_v1 = vmin.f32 %v9749_v28, %v1592_v43  ;;  %v2425_v52 = vpop.f32.mrb[149].mxu1  ;;  %12662 = vmatmul.mubr.msk.f32.gmra.mrb[254].mxu1 %vm503_vm0, %v502_v0  ;;  %12695 = vmatprep.mubr.msk.f32.mxu0 %vm503_vm0, %v2746_v31 }
 0x25e   : > { %v10016_v53 = vmin.f32 %v10015_v30, %v2425_v52  ;;  %12983 = vmatprep.mubr.msk.f32.mxu1 %vm503_vm0, %v2746_v31  ;;  %v2753_v30 = vld [vmem:[%s16016_s2 + $0x38] sm:$0xff] }
 0x25f   : > { %v1596_v55 = vpop.f32.mrb[150].mxu0 }
 0x260   : > { %v9618_v56 = vmin.f32 %v9617_v41, %v1596_v55  ;;  %v2429_v57 = vpop.f32.mrb[150].mxu1  ;;  %v1598_v58 = vpop.f32.mrb[151].mxu0  ;;  %12696 = vmatmul.mubr.msk.f32.vlgmr.msra.gmra.mrb[0].mxu0 %vm503_vm0, %v2746_v31 }
 0x261   : > { %v9884_v59 = vmin.f32 %v9883_v51, %v2429_v57  ;;  %v9751_v60 = vmin.f32 %v9750_v1, %v1598_v58  ;;  %v2431_v61 = vpop.f32.mrb[151].mxu1  ;;  %12984 = vmatmul.mubr.msk.f32.vlgmr.msra.gmra.mrb[0].mxu1 %vm503_vm0, %v2746_v31  ;;  %12697 = vmatprep.mubr.msk.f32.mxu0 %vm503_vm0, %v2747_v54 }
 0x262   : > { %v10017_v62 = vmin.f32 %v10016_v53, %v2431_v61  ;;  %12985 = vmatprep.mubr.msk.f32.mxu1 %vm503_vm0, %v2747_v54  ;;  %v2754_v53 = vld [vmem:[%s16016_s2 + $0x40] sm:$0xff] }
 0x263   : > { %v1602_v2 = vpop.f32.mrb[152].mxu0 }
 0x264   : > { %v9619_v3 = vmin.f32 %v9618_v56, %v1602_v2  ;;  %v2435_v4 = vpop.f32.mrb[152].mxu1  ;;  %v1604_v6 = vpop.f32.mrb[153].mxu0  ;;  %12698 = vmatmul.mubr.msk.f32.gmra.mrb[2].mxu0 %vm503_vm0, %v2747_v54 }
 0x265   : > { %v9885_v7 = vmin.f32 %v9884_v59, %v2435_v4  ;;  %v9752_v8 = vmin.f32 %v9751_v60, %v1604_v6  ;;  %v2437_v11 = vpop.f32.mrb[153].mxu1  ;;  %12986 = vmatmul.mubr.msk.f32.gmra.mrb[2].mxu1 %vm503_vm0, %v2747_v54  ;;  %12699 = vmatprep.mubr.msk.f32.mxu0 %vm503_vm0, %v2748_v63 }
 0x266   : > { %v10018_v12 = vmin.f32 %v10017_v62, %v2437_v11  ;;  %12987 = vmatprep.mubr.msk.f32.mxu1 %vm503_vm0, %v2748_v63  ;;  %v2755_v62 = vld [vmem:[%s16016_s2 + $0x48] sm:$0xff] }
 0x267   : > { %v1608_v15 = vpop.f32.mrb[154].mxu0 }
 0x268   : > { %v9620_v16 = vmin.f32 %v9619_v3, %v1608_v15  ;;  %v2441_v17 = vpop.f32.mrb[154].mxu1  ;;  %v1610_v20 = vpop.f32.mrb[155].mxu0  ;;  %12700 = vmatmul.mubr.msk.f32.gmra.mrb[4].mxu0 %vm503_vm0, %v2748_v63 }
 0x269   : > { %v9886_v21 = vmin.f32 %v9885_v7, %v2441_v17  ;;  %v9753_v22 = vmin.f32 %v9752_v8, %v1610_v20  ;;  %v2443_v23 = vpop.f32.mrb[155].mxu1  ;;  %12988 = vmatmul.mubr.msk.f32.gmra.mrb[4].mxu1 %vm503_vm0, %v2748_v63  ;;  %12701 = vmatprep.mubr.msk.f32.mxu0 %vm503_vm0, %v2749_v13 }
 0x26a   : > { %v10019_v24 = vmin.f32 %v10018_v12, %v2443_v23  ;;  %12989 = vmatprep.mubr.msk.f32.mxu1 %vm503_vm0, %v2749_v13  ;;  %v2756_v12 = vld [vmem:[%s16016_s2 + $0x50] sm:$0xff] }
 0x26b   : > { %v1614_v26 = vpop.f32.mrb[156].mxu0 }
 0x26c   : > { %v9621_v27 = vmin.f32 %v9620_v16, %v1614_v26  ;;  %v2447_v32 = vpop.f32.mrb[156].mxu1  ;;  %v1616_v33 = vpop.f32.mrb[157].mxu0  ;;  %12702 = vmatmul.mubr.msk.f32.gmra.mrb[6].mxu0 %vm503_vm0, %v2749_v13 }
 0x26d   : > { %v9887_v34 = vmin.f32 %v9886_v21, %v2447_v32  ;;  %v9754_v35 = vmin.f32 %v9753_v22, %v1616_v33  ;;  %v2449_v36 = vpop.f32.mrb[157].mxu1  ;;  %12990 = vmatmul.mubr.msk.f32.gmra.mrb[6].mxu1 %vm503_vm0, %v2749_v13  ;;  %12703 = vmatprep.mubr.msk.f32.mxu0 %vm503_vm0, %v2750_v25 }
 0x26e   : > { %v10020_v37 = vmin.f32 %v10019_v24, %v2449_v36  ;;  %12991 = vmatprep.mubr.msk.f32.mxu1 %vm503_vm0, %v2750_v25  ;;  %v2757_v24 = vld [vmem:[%s16016_s2 + $0x58] sm:$0xff] }
 0x26f   : > { %v1620_v39 = vpop.f32.mrb[158].mxu0 }
 0x270   : > { %v9622_v44 = vmin.f32 %v9621_v27, %v1620_v39  ;;  %v2453_v45 = vpop.f32.mrb[158].mxu1  ;;  %v1622_v46 = vpop.f32.mrb[159].mxu0  ;;  %12704 = vmatmul.mubr.msk.f32.gmra.mrb[8].mxu0 %vm503_vm0, %v2750_v25 }
 0x271   : > { %v9888_v47 = vmin.f32 %v9887_v34, %v2453_v45  ;;  %v9755_v48 = vmin.f32 %v9754_v35, %v1622_v46  ;;  %v2455_v49 = vpop.f32.mrb[159].mxu1  ;;  %12992 = vmatmul.mubr.msk.f32.gmra.mrb[8].mxu1 %vm503_vm0, %v2750_v25  ;;  %12705 = vmatprep.mubr.msk.f32.mxu0 %vm503_vm0, %v2751_v38 }
 0x272   : > { %v10021_v50 = vmin.f32 %v10020_v37, %v2455_v49  ;;  %12993 = vmatprep.mubr.msk.f32.mxu1 %vm503_vm0, %v2751_v38  ;;  %v2758_v37 = vld [vmem:[%s16016_s2 + $0x60] sm:$0xff] }
 0x273   : > { %v1626_v0 = vpop.f32.mrb[160].mxu0 }
 0x274   : > { %v9623_v9 = vmin.f32 %v9622_v44, %v1626_v0  ;;  %v2459_v10 = vpop.f32.mrb[160].mxu1  ;;  %v1628_v14 = vpop.f32.mrb[161].mxu0  ;;  %12706 = vmatmul.mubr.msk.f32.gmra.mrb[10].mxu0 %vm503_vm0, %v2751_v38 }
 0x275   : > { %v9889_v18 = vmin.f32 %v9888_v47, %v2459_v10  ;;  %v9756_v19 = vmin.f32 %v9755_v48, %v1628_v14  ;;  %v2461_v28 = vpop.f32.mrb[161].mxu1  ;;  %12994 = vmatmul.mubr.msk.f32.gmra.mrb[10].mxu1 %vm503_vm0, %v2751_v38  ;;  %12707 = vmatprep.mubr.msk.f32.mxu0 %vm503_vm0, %v2752_v5 }
 0x276   : > { %v10022_v29 = vmin.f32 %v10021_v50, %v2461_v28  ;;  %12995 = vmatprep.mubr.msk.f32.mxu1 %vm503_vm0, %v2752_v5  ;;  %v2759_v50 = vld [vmem:[%s16016_s2 + $0x68] sm:$0xff] }
 0x277   : > { %v1632_v31 = vpop.f32.mrb[162].mxu0 }
 0x278   : > { %v9624_v40 = vmin.f32 %v9623_v9, %v1632_v31  ;;  %v2465_v41 = vpop.f32.mrb[162].mxu1  ;;  %v1634_v42 = vpop.f32.mrb[163].mxu0  ;;  %12708 = vmatmul.mubr.msk.f32.gmra.mrb[12].mxu0 %vm503_vm0, %v2752_v5 }
 0x279   : > { %v9890_v43 = vmin.f32 %v9889_v18, %v2465_v41  ;;  %v9757_v51 = vmin.f32 %v9756_v19, %v1634_v42  ;;  %v2467_v1 = vpop.f32.mrb[163].mxu1  ;;  %12996 = vmatmul.mubr.msk.f32.gmra.mrb[12].mxu1 %vm503_vm0, %v2752_v5  ;;  %12709 = vmatprep.mubr.msk.f32.mxu0 %vm503_vm0, %v2753_v30 }
 0x27a   : > { %v10023_v52 = vmin.f32 %v10022_v29, %v2467_v1  ;;  %12997 = vmatprep.mubr.msk.f32.mxu1 %vm503_vm0, %v2753_v30  ;;  %v2760_v29 = vld [vmem:[%s16016_s2 + $0x70] sm:$0xff] }
 0x27b   : > { %v1638_v54 = vpop.f32.mrb[164].mxu0 }
 0x27c   : > { %v9625_v55 = vmin.f32 %v9624_v40, %v1638_v54  ;;  %v2471_v56 = vpop.f32.mrb[164].mxu1  ;;  %v1640_v57 = vpop.f32.mrb[165].mxu0  ;;  %12710 = vmatmul.mubr.msk.f32.gmra.mrb[14].mxu0 %vm503_vm0, %v2753_v30 }
 0x27d   : > { %v9891_v58 = vmin.f32 %v9890_v43, %v2471_v56  ;;  %v9758_v59 = vmin.f32 %v9757_v51, %v1640_v57  ;;  %v2473_v60 = vpop.f32.mrb[165].mxu1  ;;  %12998 = vmatmul.mubr.msk.f32.gmra.mrb[14].mxu1 %vm503_vm0, %v2753_v30  ;;  %12711 = vmatprep.mubr.msk.f32.mxu0 %vm503_vm0, %v2754_v53 }
 0x27e   : > { %v10024_v61 = vmin.f32 %v10023_v52, %v2473_v60  ;;  %12999 = vmatprep.mubr.msk.f32.mxu1 %vm503_vm0, %v2754_v53  ;;  %v2761_v52 = vld [vmem:[%s16016_s2 + $0x78] sm:$0xff] }
 0x27f   : > { %v1644_v63 = vpop.f32.mrb[166].mxu0 }
 0x280   : > { %v9626_v2 = vmin.f32 %v9625_v55, %v1644_v63  ;;  %v2477_v3 = vpop.f32.mrb[166].mxu1  ;;  %v1646_v4 = vpop.f32.mrb[167].mxu0  ;;  %12712 = vmatmul.mubr.msk.f32.gmra.mrb[16].mxu0 %vm503_vm0, %v2754_v53 }
 0x281   : > { %v9892_v6 = vmin.f32 %v9891_v58, %v2477_v3  ;;  %v9759_v7 = vmin.f32 %v9758_v59, %v1646_v4  ;;  %v2479_v8 = vpop.f32.mrb[167].mxu1  ;;  %13000 = vmatmul.mubr.msk.f32.gmra.mrb[16].mxu1 %vm503_vm0, %v2754_v53  ;;  %12713 = vmatprep.mubr.msk.f32.mxu0 %vm503_vm0, %v2755_v62 }
 0x282   : > { %v10025_v11 = vmin.f32 %v10024_v61, %v2479_v8  ;;  %13001 = vmatprep.mubr.msk.f32.mxu1 %vm503_vm0, %v2755_v62  ;;  %v2762_v61 = vld [vmem:[%s16016_s2 + $0x80] sm:$0xff] }
 0x283   : > { %v1650_v13 = vpop.f32.mrb[168].mxu0 }
 0x284   : > { %v9627_v15 = vmin.f32 %v9626_v2, %v1650_v13  ;;  %v2483_v16 = vpop.f32.mrb[168].mxu1  ;;  %v1652_v17 = vpop.f32.mrb[169].mxu0  ;;  %12714 = vmatmul.mubr.msk.f32.gmra.mrb[18].mxu0 %vm503_vm0, %v2755_v62 }
 0x285   : > { %v9893_v20 = vmin.f32 %v9892_v6, %v2483_v16  ;;  %v9760_v21 = vmin.f32 %v9759_v7, %v1652_v17  ;;  %v2485_v22 = vpop.f32.mrb[169].mxu1  ;;  %13002 = vmatmul.mubr.msk.f32.gmra.mrb[18].mxu1 %vm503_vm0, %v2755_v62  ;;  %12715 = vmatprep.mubr.msk.f32.mxu0 %vm503_vm0, %v2756_v12 }
 0x286   : > { %v10026_v23 = vmin.f32 %v10025_v11, %v2485_v22  ;;  %13003 = vmatprep.mubr.msk.f32.mxu1 %vm503_vm0, %v2756_v12  ;;  %v2763_v11 = vld [vmem:[%s16016_s2 + $0x88] sm:$0xff] }
 0x287   : > { %v1656_v25 = vpop.f32.mrb[170].mxu0 }
 0x288   : > { %v9628_v26 = vmin.f32 %v9627_v15, %v1656_v25  ;;  %v2489_v27 = vpop.f32.mrb[170].mxu1  ;;  %v1658_v32 = vpop.f32.mrb[171].mxu0  ;;  %12716 = vmatmul.mubr.msk.f32.gmra.mrb[20].mxu0 %vm503_vm0, %v2756_v12 }
 0x289   : > { %v9894_v33 = vmin.f32 %v9893_v20, %v2489_v27  ;;  %v9761_v34 = vmin.f32 %v9760_v21, %v1658_v32  ;;  %v2491_v35 = vpop.f32.mrb[171].mxu1  ;;  %13004 = vmatmul.mubr.msk.f32.gmra.mrb[20].mxu1 %vm503_vm0, %v2756_v12  ;;  %12717 = vmatprep.mubr.msk.f32.mxu0 %vm503_vm0, %v2757_v24 }
 0x28a   : > { %v10027_v36 = vmin.f32 %v10026_v23, %v2491_v35  ;;  %13005 = vmatprep.mubr.msk.f32.mxu1 %vm503_vm0, %v2757_v24  ;;  %v2764_v23 = vld [vmem:[%s16016_s2 + $0x90] sm:$0xff] }
 0x28b   : > { %v1662_v38 = vpop.f32.mrb[172].mxu0 }
 0x28c   : > { %v9629_v39 = vmin.f32 %v9628_v26, %v1662_v38  ;;  %v2495_v44 = vpop.f32.mrb[172].mxu1  ;;  %v1664_v45 = vpop.f32.mrb[173].mxu0  ;;  %12718 = vmatmul.mubr.msk.f32.gmra.mrb[22].mxu0 %vm503_vm0, %v2757_v24 }
 0x28d   : > { %v9895_v46 = vmin.f32 %v9894_v33, %v2495_v44  ;;  %v9762_v47 = vmin.f32 %v9761_v34, %v1664_v45  ;;  %v2497_v48 = vpop.f32.mrb[173].mxu1  ;;  %13006 = vmatmul.mubr.msk.f32.gmra.mrb[22].mxu1 %vm503_vm0, %v2757_v24  ;;  %12719 = vmatprep.mubr.msk.f32.mxu0 %vm503_vm0, %v2758_v37 }
 0x28e   : > { %v10028_v49 = vmin.f32 %v10027_v36, %v2497_v48  ;;  %13007 = vmatprep.mubr.msk.f32.mxu1 %vm503_vm0, %v2758_v37  ;;  %v2765_v36 = vld [vmem:[%s16016_s2 + $0x98] sm:$0xff] }
 0x28f   : > { %v1668_v5 = vpop.f32.mrb[174].mxu0 }
 0x290   : > { %v9630_v0 = vmin.f32 %v9629_v39, %v1668_v5  ;;  %v2501_v9 = vpop.f32.mrb[174].mxu1  ;;  %v1670_v10 = vpop.f32.mrb[175].mxu0  ;;  %12720 = vmatmul.mubr.msk.f32.gmra.mrb[24].mxu0 %vm503_vm0, %v2758_v37 }
 0x291   : > { %v9896_v14 = vmin.f32 %v9895_v46, %v2501_v9  ;;  %v9763_v18 = vmin.f32 %v9762_v47, %v1670_v10  ;;  %v2503_v19 = vpop.f32.mrb[175].mxu1  ;;  %13008 = vmatmul.mubr.msk.f32.gmra.mrb[24].mxu1 %vm503_vm0, %v2758_v37  ;;  %12721 = vmatprep.mubr.msk.f32.mxu0 %vm503_vm0, %v2759_v50 }
 0x292   : > { %v10029_v28 = vmin.f32 %v10028_v49, %v2503_v19  ;;  %13009 = vmatprep.mubr.msk.f32.mxu1 %vm503_vm0, %v2759_v50  ;;  %v2766_v49 = vld [vmem:[%s16016_s2 + $0xa0] sm:$0xff] }
 0x293   : > { %v1674_v30 = vpop.f32.mrb[176].mxu0 }
 0x294   : > { %v9631_v31 = vmin.f32 %v9630_v0, %v1674_v30  ;;  %v2507_v40 = vpop.f32.mrb[176].mxu1  ;;  %v1676_v41 = vpop.f32.mrb[177].mxu0  ;;  %12722 = vmatmul.mubr.msk.f32.gmra.mrb[26].mxu0 %vm503_vm0, %v2759_v50 }
 0x295   : > { %v9897_v42 = vmin.f32 %v9896_v14, %v2507_v40  ;;  %v9764_v43 = vmin.f32 %v9763_v18, %v1676_v41  ;;  %v2509_v51 = vpop.f32.mrb[177].mxu1  ;;  %13010 = vmatmul.mubr.msk.f32.gmra.mrb[26].mxu1 %vm503_vm0, %v2759_v50  ;;  %12723 = vmatprep.mubr.msk.f32.mxu0 %vm503_vm0, %v2760_v29 }
 0x296   : > { %v10030_v1 = vmin.f32 %v10029_v28, %v2509_v51  ;;  %13011 = vmatprep.mubr.msk.f32.mxu1 %vm503_vm0, %v2760_v29  ;;  %v2767_v28 = vld [vmem:[%s16016_s2 + $0xa8] sm:$0xff] }
 0x297   : > { %v1680_v53 = vpop.f32.mrb[178].mxu0 }
 0x298   : > { %v9632_v54 = vmin.f32 %v9631_v31, %v1680_v53  ;;  %v2513_v55 = vpop.f32.mrb[178].mxu1  ;;  %v1682_v56 = vpop.f32.mrb[179].mxu0  ;;  %12724 = vmatmul.mubr.msk.f32.gmra.mrb[28].mxu0 %vm503_vm0, %v2760_v29 }
 0x299   : > { %v9898_v57 = vmin.f32 %v9897_v42, %v2513_v55  ;;  %v9765_v58 = vmin.f32 %v9764_v43, %v1682_v56  ;;  %v2515_v59 = vpop.f32.mrb[179].mxu1  ;;  %13012 = vmatmul.mubr.msk.f32.gmra.mrb[28].mxu1 %vm503_vm0, %v2760_v29  ;;  %12725 = vmatprep.mubr.msk.f32.mxu0 %vm503_vm0, %v2761_v52 }
 0x29a   : > { %v10031_v60 = vmin.f32 %v10030_v1, %v2515_v59  ;;  %13013 = vmatprep.mubr.msk.f32.mxu1 %vm503_vm0, %v2761_v52  ;;  %v2768_v1 = vld [vmem:[%s16016_s2 + $0xb0] sm:$0xff] }
 0x29b   : > { %v1686_v62 = vpop.f32.mrb[180].mxu0 }
 0x29c   : > { %v9633_v63 = vmin.f32 %v9632_v54, %v1686_v62  ;;  %v2519_v2 = vpop.f32.mrb[180].mxu1  ;;  %v1688_v3 = vpop.f32.mrb[181].mxu0  ;;  %12726 = vmatmul.mubr.msk.f32.gmra.mrb[30].mxu0 %vm503_vm0, %v2761_v52 }
 0x29d   : > { %v9899_v4 = vmin.f32 %v9898_v57, %v2519_v2  ;;  %v9766_v6 = vmin.f32 %v9765_v58, %v1688_v3  ;;  %v2521_v7 = vpop.f32.mrb[181].mxu1  ;;  %13014 = vmatmul.mubr.msk.f32.gmra.mrb[30].mxu1 %vm503_vm0, %v2761_v52  ;;  %12727 = vmatprep.mubr.msk.f32.mxu0 %vm503_vm0, %v2762_v61 }
 0x29e   : > { %v10032_v8 = vmin.f32 %v10031_v60, %v2521_v7  ;;  %13015 = vmatprep.mubr.msk.f32.mxu1 %vm503_vm0, %v2762_v61  ;;  %v2769_v60 = vld [vmem:[%s16016_s2 + $0xb8] sm:$0xff] }
 0x29f   : > { %v1692_v12 = vpop.f32.mrb[182].mxu0 }
 0x2a0   : > { %v9634_v13 = vmin.f32 %v9633_v63, %v1692_v12  ;;  %v2525_v15 = vpop.f32.mrb[182].mxu1  ;;  %v1694_v16 = vpop.f32.mrb[183].mxu0  ;;  %12728 = vmatmul.mubr.msk.f32.gmra.mrb[32].mxu0 %vm503_vm0, %v2762_v61 }
 0x2a1   : > { %v9900_v17 = vmin.f32 %v9899_v4, %v2525_v15  ;;  %v9767_v20 = vmin.f32 %v9766_v6, %v1694_v16  ;;  %v2527_v21 = vpop.f32.mrb[183].mxu1  ;;  %13016 = vmatmul.mubr.msk.f32.gmra.mrb[32].mxu1 %vm503_vm0, %v2762_v61  ;;  %12729 = vmatprep.mubr.msk.f32.mxu0 %vm503_vm0, %v2763_v11 }
 0x2a2   : > { %v10033_v22 = vmin.f32 %v10032_v8, %v2527_v21  ;;  %13017 = vmatprep.mubr.msk.f32.mxu1 %vm503_vm0, %v2763_v11  ;;  %v2770_v8 = vld [vmem:[%s16016_s2 + $0xc0] sm:$0xff] }
 0x2a3   : > { %v1698_v24 = vpop.f32.mrb[184].mxu0 }
 0x2a4   : > { %v9635_v25 = vmin.f32 %v9634_v13, %v1698_v24  ;;  %v2531_v26 = vpop.f32.mrb[184].mxu1  ;;  %v1700_v27 = vpop.f32.mrb[185].mxu0  ;;  %12730 = vmatmul.mubr.msk.f32.gmra.mrb[34].mxu0 %vm503_vm0, %v2763_v11 }
 0x2a5   : > { %v9901_v32 = vmin.f32 %v9900_v17, %v2531_v26  ;;  %v9768_v33 = vmin.f32 %v9767_v20, %v1700_v27  ;;  %v2533_v34 = vpop.f32.mrb[185].mxu1  ;;  %13018 = vmatmul.mubr.msk.f32.gmra.mrb[34].mxu1 %vm503_vm0, %v2763_v11  ;;  %12731 = vmatprep.mubr.msk.f32.mxu0 %vm503_vm0, %v2764_v23 }
 0x2a6   : > { %v10034_v35 = vmin.f32 %v10033_v22, %v2533_v34  ;;  %13019 = vmatprep.mubr.msk.f32.mxu1 %vm503_vm0, %v2764_v23  ;;  %v2771_v22 = vld [vmem:[%s16016_s2 + $0xc8] sm:$0xff] }
 0x2a7   : > { %v1704_v37 = vpop.f32.mrb[186].mxu0 }
 0x2a8   : > { %v9636_v38 = vmin.f32 %v9635_v25, %v1704_v37  ;;  %v2537_v39 = vpop.f32.mrb[186].mxu1  ;;  %v1706_v44 = vpop.f32.mrb[187].mxu0  ;;  %12732 = vmatmul.mubr.msk.f32.gmra.mrb[36].mxu0 %vm503_vm0, %v2764_v23 }
 0x2a9   : > { %v9902_v45 = vmin.f32 %v9901_v32, %v2537_v39  ;;  %v9769_v46 = vmin.f32 %v9768_v33, %v1706_v44  ;;  %v2539_v47 = vpop.f32.mrb[187].mxu1  ;;  %13020 = vmatmul.mubr.msk.f32.gmra.mrb[36].mxu1 %vm503_vm0, %v2764_v23  ;;  %12733 = vmatprep.mubr.msk.f32.mxu0 %vm503_vm0, %v2765_v36 }
 0x2aa   : > { %v10035_v48 = vmin.f32 %v10034_v35, %v2539_v47  ;;  %13021 = vmatprep.mubr.msk.f32.mxu1 %vm503_vm0, %v2765_v36  ;;  %v2772_v35 = vld [vmem:[%s16016_s2 + $0xd0] sm:$0xff] }
 0x2ab   : > { %v1710_v50 = vpop.f32.mrb[188].mxu0 }
 0x2ac   : > { %v9637_v5 = vmin.f32 %v9636_v38, %v1710_v50  ;;  %v2543_v0 = vpop.f32.mrb[188].mxu1  ;;  %v1712_v9 = vpop.f32.mrb[189].mxu0  ;;  %12734 = vmatmul.mubr.msk.f32.gmra.mrb[38].mxu0 %vm503_vm0, %v2765_v36 }
 0x2ad   : > { %v9903_v10 = vmin.f32 %v9902_v45, %v2543_v0  ;;  %v9770_v14 = vmin.f32 %v9769_v46, %v1712_v9  ;;  %v2545_v18 = vpop.f32.mrb[189].mxu1  ;;  %13022 = vmatmul.mubr.msk.f32.gmra.mrb[38].mxu1 %vm503_vm0, %v2765_v36  ;;  %12735 = vmatprep.mubr.msk.f32.mxu0 %vm503_vm0, %v2766_v49 }
 0x2ae   : > { %v10036_v19 = vmin.f32 %v10035_v48, %v2545_v18  ;;  %13023 = vmatprep.mubr.msk.f32.mxu1 %vm503_vm0, %v2766_v49  ;;  %v2773_v48 = vld [vmem:[%s16016_s2 + $0xd8] sm:$0xff] }
 0x2af   : > { %v1716_v29 = vpop.f32.mrb[190].mxu0 }
 0x2b0   : > { %v9638_v30 = vmin.f32 %v9637_v5, %v1716_v29  ;;  %v2549_v31 = vpop.f32.mrb[190].mxu1  ;;  %v1718_v40 = vpop.f32.mrb[191].mxu0  ;;  %12736 = vmatmul.mubr.msk.f32.gmra.mrb[40].mxu0 %vm503_vm0, %v2766_v49 }
 0x2b1   : > { %v9904_v41 = vmin.f32 %v9903_v10, %v2549_v31  ;;  %v9771_v42 = vmin.f32 %v9770_v14, %v1718_v40  ;;  %v2551_v43 = vpop.f32.mrb[191].mxu1  ;;  %13024 = vmatmul.mubr.msk.f32.gmra.mrb[40].mxu1 %vm503_vm0, %v2766_v49  ;;  %12737 = vmatprep.mubr.msk.f32.mxu0 %vm503_vm0, %v2767_v28 }
 0x2b2   : > { %v10037_v51 = vmin.f32 %v10036_v19, %v2551_v43  ;;  %13025 = vmatprep.mubr.msk.f32.mxu1 %vm503_vm0, %v2767_v28  ;;  %v2774_v19 = vld [vmem:[%s16016_s2 + $0xe0] sm:$0xff] }
 0x2b3   : > { %v1722_v52 = vpop.f32.mrb[192].mxu0 }
 0x2b4   : > { %v9639_v53 = vmin.f32 %v9638_v30, %v1722_v52  ;;  %v2555_v54 = vpop.f32.mrb[192].mxu1  ;;  %v1724_v55 = vpop.f32.mrb[193].mxu0  ;;  %12738 = vmatmul.mubr.msk.f32.gmra.mrb[42].mxu0 %vm503_vm0, %v2767_v28 }
 0x2b5   : > { %v9905_v56 = vmin.f32 %v9904_v41, %v2555_v54  ;;  %v9772_v57 = vmin.f32 %v9771_v42, %v1724_v55  ;;  %v2557_v58 = vpop.f32.mrb[193].mxu1  ;;  %13026 = vmatmul.mubr.msk.f32.gmra.mrb[42].mxu1 %vm503_vm0, %v2767_v28  ;;  %12739 = vmatprep.mubr.msk.f32.mxu0 %vm503_vm0, %v2768_v1 }
 0x2b6   : > { %v10038_v59 = vmin.f32 %v10037_v51, %v2557_v58  ;;  %13027 = vmatprep.mubr.msk.f32.mxu1 %vm503_vm0, %v2768_v1  ;;  %v2775_v51 = vld [vmem:[%s16016_s2 + $0xe8] sm:$0xff] }
 0x2b7   : > { %v1728_v61 = vpop.f32.mrb[194].mxu0 }
 0x2b8   : > { %v9640_v62 = vmin.f32 %v9639_v53, %v1728_v61  ;;  %v2561_v63 = vpop.f32.mrb[194].mxu1  ;;  %v1730_v2 = vpop.f32.mrb[195].mxu0  ;;  %12740 = vmatmul.mubr.msk.f32.gmra.mrb[44].mxu0 %vm503_vm0, %v2768_v1 }
 0x2b9   : > { %v9906_v3 = vmin.f32 %v9905_v56, %v2561_v63  ;;  %v9773_v4 = vmin.f32 %v9772_v57, %v1730_v2  ;;  %v2563_v6 = vpop.f32.mrb[195].mxu1  ;;  %13028 = vmatmul.mubr.msk.f32.gmra.mrb[44].mxu1 %vm503_vm0, %v2768_v1  ;;  %12741 = vmatprep.mubr.msk.f32.mxu0 %vm503_vm0, %v2769_v60 }
 0x2ba   : > { %v10039_v7 = vmin.f32 %v10038_v59, %v2563_v6  ;;  %13029 = vmatprep.mubr.msk.f32.mxu1 %vm503_vm0, %v2769_v60  ;;  %v2776_v59 = vld [vmem:[%s16016_s2 + $0xf0] sm:$0xff] }
 0x2bb   : > { %v1734_v11 = vpop.f32.mrb[196].mxu0 }
 0x2bc   : > { %v9641_v12 = vmin.f32 %v9640_v62, %v1734_v11  ;;  %v2567_v13 = vpop.f32.mrb[196].mxu1  ;;  %v1736_v15 = vpop.f32.mrb[197].mxu0  ;;  %12742 = vmatmul.mubr.msk.f32.gmra.mrb[46].mxu0 %vm503_vm0, %v2769_v60 }
 0x2bd   : > { %v9907_v16 = vmin.f32 %v9906_v3, %v2567_v13  ;;  %v9774_v17 = vmin.f32 %v9773_v4, %v1736_v15  ;;  %v2569_v20 = vpop.f32.mrb[197].mxu1  ;;  %13030 = vmatmul.mubr.msk.f32.gmra.mrb[46].mxu1 %vm503_vm0, %v2769_v60  ;;  %12743 = vmatprep.mubr.msk.f32.mxu0 %vm503_vm0, %v2770_v8 }
 0x2be   : > { %v10040_v21 = vmin.f32 %v10039_v7, %v2569_v20  ;;  %13031 = vmatprep.mubr.msk.f32.mxu1 %vm503_vm0, %v2770_v8  ;;  %v2777_v7 = vld [vmem:[%s16016_s2 + $0xf8] sm:$0xff] }
 0x2bf   : > { %v1740_v23 = vpop.f32.mrb[198].mxu0 }
 0x2c0   : > { %v9642_v24 = vmin.f32 %v9641_v12, %v1740_v23  ;;  %v2573_v25 = vpop.f32.mrb[198].mxu1  ;;  %v1742_v26 = vpop.f32.mrb[199].mxu0  ;;  %12744 = vmatmul.mubr.msk.f32.gmra.mrb[48].mxu0 %vm503_vm0, %v2770_v8 }
 0x2c1   : > { %v9908_v27 = vmin.f32 %v9907_v16, %v2573_v25  ;;  %v9775_v32 = vmin.f32 %v9774_v17, %v1742_v26  ;;  %v2575_v33 = vpop.f32.mrb[199].mxu1  ;;  %13032 = vmatmul.mubr.msk.f32.gmra.mrb[48].mxu1 %vm503_vm0, %v2770_v8  ;;  %12745 = vmatprep.mubr.msk.f32.mxu0 %vm503_vm0, %v2771_v22 }
 0x2c2   : > { %v10041_v34 = vmin.f32 %v10040_v21, %v2575_v33  ;;  %13033 = vmatprep.mubr.msk.f32.mxu1 %vm503_vm0, %v2771_v22  ;;  %v2778_v21 = vld [vmem:[%s16016_s2 + $0x100] sm:$0xff] }
 0x2c3   : > { %v1746_v36 = vpop.f32.mrb[200].mxu0 }
 0x2c4   : > { %v9643_v37 = vmin.f32 %v9642_v24, %v1746_v36  ;;  %v2579_v38 = vpop.f32.mrb[200].mxu1  ;;  %v1748_v39 = vpop.f32.mrb[201].mxu0  ;;  %12746 = vmatmul.mubr.msk.f32.gmra.mrb[50].mxu0 %vm503_vm0, %v2771_v22 }
 0x2c5   : > { %v9909_v44 = vmin.f32 %v9908_v27, %v2579_v38  ;;  %v9776_v45 = vmin.f32 %v9775_v32, %v1748_v39  ;;  %v2581_v46 = vpop.f32.mrb[201].mxu1  ;;  %13034 = vmatmul.mubr.msk.f32.gmra.mrb[50].mxu1 %vm503_vm0, %v2771_v22  ;;  %12747 = vmatprep.mubr.msk.f32.mxu0 %vm503_vm0, %v2772_v35 }
 0x2c6   : > { %v10042_v47 = vmin.f32 %v10041_v34, %v2581_v46  ;;  %13035 = vmatprep.mubr.msk.f32.mxu1 %vm503_vm0, %v2772_v35  ;;  %v2779_v34 = vld [vmem:[%s16016_s2 + $0x108] sm:$0xff] }
 0x2c7   : > { %v1752_v49 = vpop.f32.mrb[202].mxu0 }
 0x2c8   : > { %v9644_v50 = vmin.f32 %v9643_v37, %v1752_v49  ;;  %v2585_v5 = vpop.f32.mrb[202].mxu1  ;;  %v1754_v0 = vpop.f32.mrb[203].mxu0  ;;  %12748 = vmatmul.mubr.msk.f32.gmra.mrb[52].mxu0 %vm503_vm0, %v2772_v35 }
 0x2c9   : > { %v9910_v9 = vmin.f32 %v9909_v44, %v2585_v5  ;;  %v9777_v10 = vmin.f32 %v9776_v45, %v1754_v0  ;;  %v2587_v14 = vpop.f32.mrb[203].mxu1  ;;  %13036 = vmatmul.mubr.msk.f32.gmra.mrb[52].mxu1 %vm503_vm0, %v2772_v35  ;;  %12749 = vmatprep.mubr.msk.f32.mxu0 %vm503_vm0, %v2773_v48 }
 0x2ca   : > { %v10043_v18 = vmin.f32 %v10042_v47, %v2587_v14  ;;  %13037 = vmatprep.mubr.msk.f32.mxu1 %vm503_vm0, %v2773_v48  ;;  %v2780_v47 = vld [vmem:[%s16016_s2 + $0x110] sm:$0xff] }
 0x2cb   : > { %v1758_v28 = vpop.f32.mrb[204].mxu0 }
 0x2cc   : > { %v9645_v29 = vmin.f32 %v9644_v50, %v1758_v28  ;;  %v2591_v30 = vpop.f32.mrb[204].mxu1  ;;  %v1760_v31 = vpop.f32.mrb[205].mxu0  ;;  %12750 = vmatmul.mubr.msk.f32.gmra.mrb[54].mxu0 %vm503_vm0, %v2773_v48 }
 0x2cd   : > { %v9911_v40 = vmin.f32 %v9910_v9, %v2591_v30  ;;  %v9778_v41 = vmin.f32 %v9777_v10, %v1760_v31  ;;  %v2593_v42 = vpop.f32.mrb[205].mxu1  ;;  %13038 = vmatmul.mubr.msk.f32.gmra.mrb[54].mxu1 %vm503_vm0, %v2773_v48  ;;  %12751 = vmatprep.mubr.msk.f32.mxu0 %vm503_vm0, %v2774_v19 }
 0x2ce   : > { %v10044_v43 = vmin.f32 %v10043_v18, %v2593_v42  ;;  %13039 = vmatprep.mubr.msk.f32.mxu1 %vm503_vm0, %v2774_v19  ;;  %v2781_v18 = vld [vmem:[%s16016_s2 + $0x118] sm:$0xff] }
 0x2cf   : > { %v1764_v1 = vpop.f32.mrb[206].mxu0 }
 0x2d0   : > { %v9646_v52 = vmin.f32 %v9645_v29, %v1764_v1  ;;  %v2597_v53 = vpop.f32.mrb[206].mxu1  ;;  %v1766_v54 = vpop.f32.mrb[207].mxu0  ;;  %12752 = vmatmul.mubr.msk.f32.gmra.mrb[56].mxu0 %vm503_vm0, %v2774_v19 }
 0x2d1   : > { %v9912_v55 = vmin.f32 %v9911_v40, %v2597_v53  ;;  %v9779_v56 = vmin.f32 %v9778_v41, %v1766_v54  ;;  %v2599_v57 = vpop.f32.mrb[207].mxu1  ;;  %13040 = vmatmul.mubr.msk.f32.gmra.mrb[56].mxu1 %vm503_vm0, %v2774_v19  ;;  %12753 = vmatprep.mubr.msk.f32.mxu0 %vm503_vm0, %v2775_v51 }
 0x2d2   : > { %v10045_v58 = vmin.f32 %v10044_v43, %v2599_v57  ;;  %13041 = vmatprep.mubr.msk.f32.mxu1 %vm503_vm0, %v2775_v51  ;;  %v2782_v43 = vld [vmem:[%s16016_s2 + $0x120] sm:$0xff] }
 0x2d3   : > { %v1770_v60 = vpop.f32.mrb[208].mxu0 }
 0x2d4   : > { %v9647_v61 = vmin.f32 %v9646_v52, %v1770_v60  ;;  %v2603_v62 = vpop.f32.mrb[208].mxu1  ;;  %v1772_v63 = vpop.f32.mrb[209].mxu0  ;;  %12754 = vmatmul.mubr.msk.f32.gmra.mrb[58].mxu0 %vm503_vm0, %v2775_v51 }
 0x2d5   : > { %v9913_v2 = vmin.f32 %v9912_v55, %v2603_v62  ;;  %v9780_v3 = vmin.f32 %v9779_v56, %v1772_v63  ;;  %v2605_v4 = vpop.f32.mrb[209].mxu1  ;;  %13042 = vmatmul.mubr.msk.f32.gmra.mrb[58].mxu1 %vm503_vm0, %v2775_v51  ;;  %12755 = vmatprep.mubr.msk.f32.mxu0 %vm503_vm0, %v2776_v59 }
 0x2d6   : > { %v10046_v6 = vmin.f32 %v10045_v58, %v2605_v4  ;;  %13043 = vmatprep.mubr.msk.f32.mxu1 %vm503_vm0, %v2776_v59  ;;  %v2783_v58 = vld [vmem:[%s16016_s2 + $0x128] sm:$0xff] }
 0x2d7   : > { %v1776_v8 = vpop.f32.mrb[210].mxu0 }
 0x2d8   : > { %v9648_v11 = vmin.f32 %v9647_v61, %v1776_v8  ;;  %v2609_v12 = vpop.f32.mrb[210].mxu1  ;;  %v1778_v13 = vpop.f32.mrb[211].mxu0  ;;  %12756 = vmatmul.mubr.msk.f32.gmra.mrb[60].mxu0 %vm503_vm0, %v2776_v59 }
 0x2d9   : > { %v9914_v15 = vmin.f32 %v9913_v2, %v2609_v12  ;;  %v9781_v16 = vmin.f32 %v9780_v3, %v1778_v13  ;;  %v2611_v17 = vpop.f32.mrb[211].mxu1  ;;  %13044 = vmatmul.mubr.msk.f32.gmra.mrb[60].mxu1 %vm503_vm0, %v2776_v59  ;;  %12757 = vmatprep.mubr.msk.f32.mxu0 %vm503_vm0, %v2777_v7 }
 0x2da   : > { %v10047_v20 = vmin.f32 %v10046_v6, %v2611_v17  ;;  %13045 = vmatprep.mubr.msk.f32.mxu1 %vm503_vm0, %v2777_v7  ;;  %v2784_v6 = vld [vmem:[%s16016_s2 + $0x130] sm:$0xff] }
 0x2db   : > { %v1782_v22 = vpop.f32.mrb[212].mxu0 }
 0x2dc   : > { %v9649_v23 = vmin.f32 %v9648_v11, %v1782_v22  ;;  %v2615_v24 = vpop.f32.mrb[212].mxu1  ;;  %v1784_v25 = vpop.f32.mrb[213].mxu0  ;;  %12758 = vmatmul.mubr.msk.f32.gmra.mrb[62].mxu0 %vm503_vm0, %v2777_v7 }
 0x2dd   : > { %v9915_v26 = vmin.f32 %v9914_v15, %v2615_v24  ;;  %v9782_v27 = vmin.f32 %v9781_v16, %v1784_v25  ;;  %v2617_v32 = vpop.f32.mrb[213].mxu1  ;;  %13046 = vmatmul.mubr.msk.f32.gmra.mrb[62].mxu1 %vm503_vm0, %v2777_v7  ;;  %12759 = vmatprep.mubr.msk.f32.mxu0 %vm503_vm0, %v2778_v21 }
 0x2de   : > { %v10048_v33 = vmin.f32 %v10047_v20, %v2617_v32  ;;  %13047 = vmatprep.mubr.msk.f32.mxu1 %vm503_vm0, %v2778_v21  ;;  %v2785_v20 = vld [vmem:[%s16016_s2 + $0x138] sm:$0xff] }
 0x2df   : > { %v1788_v35 = vpop.f32.mrb[214].mxu0 }
 0x2e0   : > { %v9650_v36 = vmin.f32 %v9649_v23, %v1788_v35  ;;  %v2621_v37 = vpop.f32.mrb[214].mxu1  ;;  %v1790_v38 = vpop.f32.mrb[215].mxu0  ;;  %12760 = vmatmul.mubr.msk.f32.gmra.mrb[64].mxu0 %vm503_vm0, %v2778_v21 }
 0x2e1   : > { %v9916_v39 = vmin.f32 %v9915_v26, %v2621_v37  ;;  %v9783_v44 = vmin.f32 %v9782_v27, %v1790_v38  ;;  %v2623_v45 = vpop.f32.mrb[215].mxu1  ;;  %13048 = vmatmul.mubr.msk.f32.gmra.mrb[64].mxu1 %vm503_vm0, %v2778_v21  ;;  %12761 = vmatprep.mubr.msk.f32.mxu0 %vm503_vm0, %v2779_v34 }
 0x2e2   : > { %v10049_v46 = vmin.f32 %v10048_v33, %v2623_v45  ;;  %13049 = vmatprep.mubr.msk.f32.mxu1 %vm503_vm0, %v2779_v34  ;;  %v2786_v33 = vld [vmem:[%s16016_s2 + $0x140] sm:$0xff] }
 0x2e3   : > { %v1794_v48 = vpop.f32.mrb[216].mxu0 }
 0x2e4   : > { %v9651_v49 = vmin.f32 %v9650_v36, %v1794_v48  ;;  %v2627_v50 = vpop.f32.mrb[216].mxu1  ;;  %v1796_v5 = vpop.f32.mrb[217].mxu0  ;;  %12762 = vmatmul.mubr.msk.f32.gmra.mrb[66].mxu0 %vm503_vm0, %v2779_v34 }
 0x2e5   : > { %v9917_v0 = vmin.f32 %v9916_v39, %v2627_v50  ;;  %v9784_v9 = vmin.f32 %v9783_v44, %v1796_v5  ;;  %v2629_v10 = vpop.f32.mrb[217].mxu1  ;;  %13050 = vmatmul.mubr.msk.f32.gmra.mrb[66].mxu1 %vm503_vm0, %v2779_v34  ;;  %12763 = vmatprep.mubr.msk.f32.mxu0 %vm503_vm0, %v2780_v47 }
 0x2e6   : > { %v10050_v14 = vmin.f32 %v10049_v46, %v2629_v10  ;;  %13051 = vmatprep.mubr.msk.f32.mxu1 %vm503_vm0, %v2780_v47  ;;  %v2787_v46 = vld [vmem:[%s16016_s2 + $0x148] sm:$0xff] }
 0x2e7   : > { %v1800_v19 = vpop.f32.mrb[218].mxu0 }
 0x2e8   : > { %v9652_v28 = vmin.f32 %v9651_v49, %v1800_v19  ;;  %v2633_v29 = vpop.f32.mrb[218].mxu1  ;;  %v1802_v30 = vpop.f32.mrb[219].mxu0  ;;  %12764 = vmatmul.mubr.msk.f32.gmra.mrb[68].mxu0 %vm503_vm0, %v2780_v47 }
 0x2e9   : > { %v9918_v31 = vmin.f32 %v9917_v0, %v2633_v29  ;;  %v9785_v40 = vmin.f32 %v9784_v9, %v1802_v30  ;;  %v2635_v41 = vpop.f32.mrb[219].mxu1  ;;  %13052 = vmatmul.mubr.msk.f32.gmra.mrb[68].mxu1 %vm503_vm0, %v2780_v47  ;;  %12765 = vmatprep.mubr.msk.f32.mxu0 %vm503_vm0, %v2781_v18 }
 0x2ea   : > { %v10051_v42 = vmin.f32 %v10050_v14, %v2635_v41  ;;  %13053 = vmatprep.mubr.msk.f32.mxu1 %vm503_vm0, %v2781_v18  ;;  %v2788_v14 = vld [vmem:[%s16016_s2 + $0x150] sm:$0xff] }
 0x2eb   : > { %v1806_v51 = vpop.f32.mrb[220].mxu0 }
 0x2ec   : > { %v9653_v1 = vmin.f32 %v9652_v28, %v1806_v51  ;;  %v2639_v52 = vpop.f32.mrb[220].mxu1  ;;  %v1808_v53 = vpop.f32.mrb[221].mxu0  ;;  %12766 = vmatmul.mubr.msk.f32.gmra.mrb[70].mxu0 %vm503_vm0, %v2781_v18 }
 0x2ed   : > { %v9919_v54 = vmin.f32 %v9918_v31, %v2639_v52  ;;  %v9786_v55 = vmin.f32 %v9785_v40, %v1808_v53  ;;  %v2641_v56 = vpop.f32.mrb[221].mxu1  ;;  %13054 = vmatmul.mubr.msk.f32.gmra.mrb[70].mxu1 %vm503_vm0, %v2781_v18  ;;  %12767 = vmatprep.mubr.msk.f32.mxu0 %vm503_vm0, %v2782_v43 }
 0x2ee   : > { %v10052_v57 = vmin.f32 %v10051_v42, %v2641_v56  ;;  %13055 = vmatprep.mubr.msk.f32.mxu1 %vm503_vm0, %v2782_v43  ;;  %v2789_v42 = vld [vmem:[%s16016_s2 + $0x158] sm:$0xff] }
 0x2ef   : > { %v1812_v59 = vpop.f32.mrb[222].mxu0 }
 0x2f0   : > { %v9654_v60 = vmin.f32 %v9653_v1, %v1812_v59  ;;  %v2645_v61 = vpop.f32.mrb[222].mxu1  ;;  %v1814_v62 = vpop.f32.mrb[223].mxu0  ;;  %12768 = vmatmul.mubr.msk.f32.gmra.mrb[72].mxu0 %vm503_vm0, %v2782_v43 }
 0x2f1   : > { %v9920_v63 = vmin.f32 %v9919_v54, %v2645_v61  ;;  %v9787_v2 = vmin.f32 %v9786_v55, %v1814_v62  ;;  %v2647_v3 = vpop.f32.mrb[223].mxu1  ;;  %13056 = vmatmul.mubr.msk.f32.gmra.mrb[72].mxu1 %vm503_vm0, %v2782_v43  ;;  %12769 = vmatprep.mubr.msk.f32.mxu0 %vm503_vm0, %v2783_v58 }
 0x2f2   : > { %v10053_v4 = vmin.f32 %v10052_v57, %v2647_v3  ;;  %13057 = vmatprep.mubr.msk.f32.mxu1 %vm503_vm0, %v2783_v58  ;;  %v2790_v57 = vld [vmem:[%s16016_s2 + $0x160] sm:$0xff] }
 0x2f3   : > { %v1818_v7 = vpop.f32.mrb[224].mxu0 }
 0x2f4   : > { %v9655_v8 = vmin.f32 %v9654_v60, %v1818_v7  ;;  %v2651_v11 = vpop.f32.mrb[224].mxu1  ;;  %v1820_v12 = vpop.f32.mrb[225].mxu0  ;;  %12770 = vmatmul.mubr.msk.f32.gmra.mrb[74].mxu0 %vm503_vm0, %v2783_v58 }
 0x2f5   : > { %v9921_v13 = vmin.f32 %v9920_v63, %v2651_v11  ;;  %v9788_v15 = vmin.f32 %v9787_v2, %v1820_v12  ;;  %v2653_v16 = vpop.f32.mrb[225].mxu1  ;;  %13058 = vmatmul.mubr.msk.f32.gmra.mrb[74].mxu1 %vm503_vm0, %v2783_v58  ;;  %12771 = vmatprep.mubr.msk.f32.mxu0 %vm503_vm0, %v2784_v6 }
 0x2f6   : > { %v10054_v17 = vmin.f32 %v10053_v4, %v2653_v16  ;;  %13059 = vmatprep.mubr.msk.f32.mxu1 %vm503_vm0, %v2784_v6  ;;  %v2791_v4 = vld [vmem:[%s16016_s2 + $0x168] sm:$0xff] }
 0x2f7   : > { %v1824_v21 = vpop.f32.mrb[226].mxu0 }
 0x2f8   : > { %v9656_v22 = vmin.f32 %v9655_v8, %v1824_v21  ;;  %v2657_v23 = vpop.f32.mrb[226].mxu1  ;;  %v1826_v24 = vpop.f32.mrb[227].mxu0  ;;  %12772 = vmatmul.mubr.msk.f32.gmra.mrb[76].mxu0 %vm503_vm0, %v2784_v6 }
 0x2f9   : > { %v9922_v25 = vmin.f32 %v9921_v13, %v2657_v23  ;;  %v9789_v26 = vmin.f32 %v9788_v15, %v1826_v24  ;;  %v2659_v27 = vpop.f32.mrb[227].mxu1  ;;  %13060 = vmatmul.mubr.msk.f32.gmra.mrb[76].mxu1 %vm503_vm0, %v2784_v6  ;;  %12773 = vmatprep.mubr.msk.f32.mxu0 %vm503_vm0, %v2785_v20 }
 0x2fa   : > { %v10055_v32 = vmin.f32 %v10054_v17, %v2659_v27  ;;  %13061 = vmatprep.mubr.msk.f32.mxu1 %vm503_vm0, %v2785_v20  ;;  %v2792_v17 = vld [vmem:[%s16016_s2 + $0x170] sm:$0xff] }
 0x2fb   : > { %v1830_v34 = vpop.f32.mrb[228].mxu0 }
 0x2fc   : > { %v9657_v35 = vmin.f32 %v9656_v22, %v1830_v34  ;;  %v2663_v36 = vpop.f32.mrb[228].mxu1  ;;  %v1832_v37 = vpop.f32.mrb[229].mxu0  ;;  %12774 = vmatmul.mubr.msk.f32.gmra.mrb[78].mxu0 %vm503_vm0, %v2785_v20 }
 0x2fd   : > { %v9923_v38 = vmin.f32 %v9922_v25, %v2663_v36  ;;  %v9790_v39 = vmin.f32 %v9789_v26, %v1832_v37  ;;  %v2665_v44 = vpop.f32.mrb[229].mxu1  ;;  %13062 = vmatmul.mubr.msk.f32.gmra.mrb[78].mxu1 %vm503_vm0, %v2785_v20  ;;  %12775 = vmatprep.mubr.msk.f32.mxu0 %vm503_vm0, %v2786_v33 }
 0x2fe   : > { %v10056_v45 = vmin.f32 %v10055_v32, %v2665_v44  ;;  %13063 = vmatprep.mubr.msk.f32.mxu1 %vm503_vm0, %v2786_v33  ;;  %v2793_v32 = vld [vmem:[%s16016_s2 + $0x178] sm:$0xff] }
 0x2ff   : > { %v1836_v47 = vpop.f32.mrb[230].mxu0 }
 0x300   : > { %v9658_v48 = vmin.f32 %v9657_v35, %v1836_v47  ;;  %v2669_v49 = vpop.f32.mrb[230].mxu1  ;;  %v1838_v50 = vpop.f32.mrb[231].mxu0  ;;  %12776 = vmatmul.mubr.msk.f32.gmra.mrb[80].mxu0 %vm503_vm0, %v2786_v33 }
 0x301   : > { %v9924_v5 = vmin.f32 %v9923_v38, %v2669_v49  ;;  %v9791_v0 = vmin.f32 %v9790_v39, %v1838_v50  ;;  %v2671_v9 = vpop.f32.mrb[231].mxu1  ;;  %13064 = vmatmul.mubr.msk.f32.gmra.mrb[80].mxu1 %vm503_vm0, %v2786_v33  ;;  %12777 = vmatprep.mubr.msk.f32.mxu0 %vm503_vm0, %v2787_v46 }
 0x302   : > { %v10057_v10 = vmin.f32 %v10056_v45, %v2671_v9  ;;  %13065 = vmatprep.mubr.msk.f32.mxu1 %vm503_vm0, %v2787_v46  ;;  %v2794_v45 = vld [vmem:[%s16016_s2 + $0x180] sm:$0xff] }
 0x303   : > { %v1842_v18 = vpop.f32.mrb[232].mxu0 }
 0x304   : > { %v9659_v19 = vmin.f32 %v9658_v48, %v1842_v18  ;;  %v2675_v28 = vpop.f32.mrb[232].mxu1  ;;  %v1844_v29 = vpop.f32.mrb[233].mxu0  ;;  %12778 = vmatmul.mubr.msk.f32.gmra.mrb[82].mxu0 %vm503_vm0, %v2787_v46 }
 0x305   : > { %v9925_v30 = vmin.f32 %v9924_v5, %v2675_v28  ;;  %v9792_v31 = vmin.f32 %v9791_v0, %v1844_v29  ;;  %v2677_v40 = vpop.f32.mrb[233].mxu1  ;;  %13066 = vmatmul.mubr.msk.f32.gmra.mrb[82].mxu1 %vm503_vm0, %v2787_v46  ;;  %12779 = vmatprep.mubr.msk.f32.mxu0 %vm503_vm0, %v2788_v14 }
 0x306   : > { %v10058_v41 = vmin.f32 %v10057_v10, %v2677_v40  ;;  %13067 = vmatprep.mubr.msk.f32.mxu1 %vm503_vm0, %v2788_v14  ;;  %v2795_v10 = vld [vmem:[%s16016_s2 + $0x188] sm:$0xff] }
 0x307   : > { %v1848_v43 = vpop.f32.mrb[234].mxu0 }
 0x308   : > { %v9660_v51 = vmin.f32 %v9659_v19, %v1848_v43  ;;  %v2681_v1 = vpop.f32.mrb[234].mxu1  ;;  %v1850_v52 = vpop.f32.mrb[235].mxu0  ;;  %12780 = vmatmul.mubr.msk.f32.gmra.mrb[84].mxu0 %vm503_vm0, %v2788_v14 }
 0x309   : > { %v9926_v53 = vmin.f32 %v9925_v30, %v2681_v1  ;;  %v9793_v54 = vmin.f32 %v9792_v31, %v1850_v52  ;;  %v2683_v55 = vpop.f32.mrb[235].mxu1  ;;  %13068 = vmatmul.mubr.msk.f32.gmra.mrb[84].mxu1 %vm503_vm0, %v2788_v14  ;;  %12781 = vmatprep.mubr.msk.f32.mxu0 %vm503_vm0, %v2789_v42 }
 0x30a   : > { %v10059_v56 = vmin.f32 %v10058_v41, %v2683_v55  ;;  %13069 = vmatprep.mubr.msk.f32.mxu1 %vm503_vm0, %v2789_v42  ;;  %v2796_v41 = vld [vmem:[%s16016_s2 + $0x190] sm:$0xff] }
 0x30b   : > { %v1854_v58 = vpop.f32.mrb[236].mxu0 }
 0x30c   : > { %v9661_v59 = vmin.f32 %v9660_v51, %v1854_v58  ;;  %v2687_v60 = vpop.f32.mrb[236].mxu1  ;;  %v1856_v61 = vpop.f32.mrb[237].mxu0  ;;  %12782 = vmatmul.mubr.msk.f32.gmra.mrb[86].mxu0 %vm503_vm0, %v2789_v42 }
 0x30d   : > { %v9927_v62 = vmin.f32 %v9926_v53, %v2687_v60  ;;  %v9794_v63 = vmin.f32 %v9793_v54, %v1856_v61  ;;  %v2689_v2 = vpop.f32.mrb[237].mxu1  ;;  %13070 = vmatmul.mubr.msk.f32.gmra.mrb[86].mxu1 %vm503_vm0, %v2789_v42  ;;  %12783 = vmatprep.mubr.msk.f32.mxu0 %vm503_vm0, %v2790_v57 }
 0x30e   : > { %v10060_v3 = vmin.f32 %v10059_v56, %v2689_v2  ;;  %13071 = vmatprep.mubr.msk.f32.mxu1 %vm503_vm0, %v2790_v57  ;;  %v2797_v56 = vld [vmem:[%s16016_s2 + $0x198] sm:$0xff] }
 0x30f   : > { %v1860_v6 = vpop.f32.mrb[238].mxu0 }
 0x310   : > { %v9662_v7 = vmin.f32 %v9661_v59, %v1860_v6  ;;  %v2693_v8 = vpop.f32.mrb[238].mxu1  ;;  %v1862_v11 = vpop.f32.mrb[239].mxu0  ;;  %12784 = vmatmul.mubr.msk.f32.gmra.mrb[88].mxu0 %vm503_vm0, %v2790_v57 }
 0x311   : > { %v9928_v12 = vmin.f32 %v9927_v62, %v2693_v8  ;;  %v9795_v13 = vmin.f32 %v9794_v63, %v1862_v11  ;;  %v2695_v15 = vpop.f32.mrb[239].mxu1  ;;  %13072 = vmatmul.mubr.msk.f32.gmra.mrb[88].mxu1 %vm503_vm0, %v2790_v57  ;;  %12785 = vmatprep.mubr.msk.f32.mxu0 %vm503_vm0, %v2791_v4 }
 0x312   : > { %v10061_v16 = vmin.f32 %v10060_v3, %v2695_v15  ;;  %13073 = vmatprep.mubr.msk.f32.mxu1 %vm503_vm0, %v2791_v4  ;;  %v2798_v3 = vld [vmem:[%s16016_s2 + $0x1a0] sm:$0xff] }
 0x313   : > { %v1866_v20 = vpop.f32.mrb[240].mxu0 }
 0x314   : > { %v9663_v21 = vmin.f32 %v9662_v7, %v1866_v20  ;;  %v2699_v22 = vpop.f32.mrb[240].mxu1  ;;  %v1868_v23 = vpop.f32.mrb[241].mxu0  ;;  %12786 = vmatmul.mubr.msk.f32.gmra.mrb[90].mxu0 %vm503_vm0, %v2791_v4 }
 0x315   : > { %v9929_v24 = vmin.f32 %v9928_v12, %v2699_v22  ;;  %v9796_v25 = vmin.f32 %v9795_v13, %v1868_v23  ;;  %v2701_v26 = vpop.f32.mrb[241].mxu1  ;;  %13074 = vmatmul.mubr.msk.f32.gmra.mrb[90].mxu1 %vm503_vm0, %v2791_v4  ;;  %12787 = vmatprep.mubr.msk.f32.mxu0 %vm503_vm0, %v2792_v17 }
 0x316   : > { %v10062_v27 = vmin.f32 %v10061_v16, %v2701_v26  ;;  %13075 = vmatprep.mubr.msk.f32.mxu1 %vm503_vm0, %v2792_v17  ;;  %v2799_v16 = vld [vmem:[%s16016_s2 + $0x1a8] sm:$0xff] }
 0x317   : > { %v1872_v33 = vpop.f32.mrb[242].mxu0 }
 0x318   : > { %v9664_v34 = vmin.f32 %v9663_v21, %v1872_v33  ;;  %v2705_v35 = vpop.f32.mrb[242].mxu1  ;;  %v1874_v36 = vpop.f32.mrb[243].mxu0  ;;  %12788 = vmatmul.mubr.msk.f32.gmra.mrb[92].mxu0 %vm503_vm0, %v2792_v17 }
 0x319   : > { %v9930_v37 = vmin.f32 %v9929_v24, %v2705_v35  ;;  %v9797_v38 = vmin.f32 %v9796_v25, %v1874_v36  ;;  %v2707_v39 = vpop.f32.mrb[243].mxu1  ;;  %13076 = vmatmul.mubr.msk.f32.gmra.mrb[92].mxu1 %vm503_vm0, %v2792_v17  ;;  %12789 = vmatprep.mubr.msk.f32.mxu0 %vm503_vm0, %v2793_v32 }
 0x31a   : > { %v10063_v44 = vmin.f32 %v10062_v27, %v2707_v39  ;;  %13077 = vmatprep.mubr.msk.f32.mxu1 %vm503_vm0, %v2793_v32 }
 0x31b   : > { %v1878_v46 = vpop.f32.mrb[244].mxu0 }
 0x31c   : > { %v9665_v47 = vmin.f32 %v9664_v34, %v1878_v46  ;;  %v2711_v48 = vpop.f32.mrb[244].mxu1  ;;  %v1880_v49 = vpop.f32.mrb[245].mxu0  ;;  %12790 = vmatmul.mubr.msk.f32.gmra.mrb[94].mxu0 %vm503_vm0, %v2793_v32 }
 0x31d   : > { %v9931_v50 = vmin.f32 %v9930_v37, %v2711_v48  ;;  %v9798_v5 = vmin.f32 %v9797_v38, %v1880_v49  ;;  %v2713_v0 = vpop.f32.mrb[245].mxu1  ;;  %13078 = vmatmul.mubr.msk.f32.gmra.mrb[94].mxu1 %vm503_vm0, %v2793_v32  ;;  %12791 = vmatprep.mubr.msk.f32.mxu0 %vm503_vm0, %v2794_v45  ;;  %v2800_v32 = vld [vmem:[%s16016_s2 + $0x1b0] sm:$0xff] }
 0x31e   : > { %v10064_v9 = vmin.f32 %v10063_v44, %v2713_v0  ;;  %13079 = vmatprep.mubr.msk.f32.mxu1 %vm503_vm0, %v2794_v45  ;;  %v2801_v0 = vld [vmem:[%s16016_s2 + $0x1b8] sm:$0xff] }
 0x31f   : > { %v1884_v14 = vpop.f32.mrb[246].mxu0 }
 0x320   : > { %v9666_v18 = vmin.f32 %v9665_v47, %v1884_v14  ;;  %v2717_v19 = vpop.f32.mrb[246].mxu1  ;;  %v1886_v28 = vpop.f32.mrb[247].mxu0  ;;  %12792 = vmatmul.mubr.msk.f32.gmra.mrb[96].mxu0 %vm503_vm0, %v2794_v45 }
 0x321   : > { %v9932_v29 = vmin.f32 %v9931_v50, %v2717_v19  ;;  %v9799_v30 = vmin.f32 %v9798_v5, %v1886_v28  ;;  %v2719_v31 = vpop.f32.mrb[247].mxu1  ;;  %13080 = vmatmul.mubr.msk.f32.gmra.mrb[96].mxu1 %vm503_vm0, %v2794_v45  ;;  %12793 = vmatprep.mubr.msk.f32.mxu0 %vm503_vm0, %v2795_v10 }
 0x322   : > { %v10065_v40 = vmin.f32 %v10064_v9, %v2719_v31  ;;  %13081 = vmatprep.mubr.msk.f32.mxu1 %vm503_vm0, %v2795_v10 }
 0x323   : > { %v1890_v42 = vpop.f32.mrb[248].mxu0 }
 0x324   : > { %v9667_v43 = vmin.f32 %v9666_v18, %v1890_v42  ;;  %v2723_v51 = vpop.f32.mrb[248].mxu1  ;;  %v1892_v1 = vpop.f32.mrb[249].mxu0  ;;  %12794 = vmatmul.mubr.msk.f32.gmra.mrb[98].mxu0 %vm503_vm0, %v2795_v10 }
 0x325   : > { %v9933_v52 = vmin.f32 %v9932_v29, %v2723_v51  ;;  %v9800_v53 = vmin.f32 %v9799_v30, %v1892_v1  ;;  %v2725_v54 = vpop.f32.mrb[249].mxu1  ;;  %13082 = vmatmul.mubr.msk.f32.gmra.mrb[98].mxu1 %vm503_vm0, %v2795_v10  ;;  %12795 = vmatprep.mubr.msk.f32.mxu0 %vm503_vm0, %v2796_v41 }
 0x326   : > { %v10066_v55 = vmin.f32 %v10065_v40, %v2725_v54  ;;  %13083 = vmatprep.mubr.msk.f32.mxu1 %vm503_vm0, %v2796_v41 }
 0x327   : > { %v1896_v57 = vpop.f32.mrb[250].mxu0 }
 0x328   : > { %v9668_v58 = vmin.f32 %v9667_v43, %v1896_v57  ;;  %v2729_v59 = vpop.f32.mrb[250].mxu1  ;;  %v1898_v60 = vpop.f32.mrb[251].mxu0  ;;  %12796 = vmatmul.mubr.msk.f32.gmra.mrb[100].mxu0 %vm503_vm0, %v2796_v41 }
 0x329   : > { %v9934_v61 = vmin.f32 %v9933_v52, %v2729_v59  ;;  %v9801_v62 = vmin.f32 %v9800_v53, %v1898_v60  ;;  %v2731_v63 = vpop.f32.mrb[251].mxu1  ;;  %13084 = vmatmul.mubr.msk.f32.gmra.mrb[100].mxu1 %vm503_vm0, %v2796_v41  ;;  %12797 = vmatprep.mubr.msk.f32.mxu0 %vm503_vm0, %v2797_v56  ;;  %v2802_v53 = vld [vmem:[%s16016_s2 + $0x1c0] sm:$0xff] }
 0x32a   : > { %v10067_v2 = vmin.f32 %v10066_v55, %v2731_v63  ;;  %13085 = vmatprep.mubr.msk.f32.mxu1 %vm503_vm0, %v2797_v56 }
 0x32b   : > { %v1902_v4 = vpop.f32.mrb[252].mxu0 }
 0x32c   : > { %v9669_v6 = vmin.f32 %v9668_v58, %v1902_v4  ;;  %v2735_v7 = vpop.f32.mrb[252].mxu1  ;;  %v1904_v8 = vpop.f32.mrb[253].mxu0  ;;  %12798 = vmatmul.mubr.msk.f32.gmra.mrb[102].mxu0 %vm503_vm0, %v2797_v56 }
 0x32d   : > { %v9935_v11 = vmin.f32 %v9934_v61, %v2735_v7  ;;  %v9802_v12 = vmin.f32 %v9801_v62, %v1904_v8  ;;  %v2737_v13 = vpop.f32.mrb[253].mxu1  ;;  %13086 = vmatmul.mubr.msk.f32.gmra.mrb[102].mxu1 %vm503_vm0, %v2797_v56  ;;  %12799 = vmatprep.mubr.msk.f32.mxu0 %vm503_vm0, %v2798_v3 }
 0x32e   : > { %v10068_v15 = vmin.f32 %v10067_v2, %v2737_v13  ;;  %13087 = vmatprep.mubr.msk.f32.mxu1 %vm503_vm0, %v2798_v3 }
 0x32f   : > { %v1908_v17 = vpop.f32.mrb[254].mxu0 }
 0x330   : > { %v9670_v20 = vmin.f32 %v9669_v6, %v1908_v17  ;;  %v2741_v21 = vpop.f32.mrb[254].mxu1  ;;  %v1910_v22 = vpop.f32.mrb[255].mxu0  ;;  %12800 = vmatmul.mubr.msk.f32.gmra.mrb[104].mxu0 %vm503_vm0, %v2798_v3  ;;  %v2803_v6 = vld [vmem:[%s16016_s2 + $0x1c8] sm:$0xff] }
 0x331   : > { %v9936_v23 = vmin.f32 %v9935_v11, %v2741_v21  ;;  %v9803_v24 = vmin.f32 %v9802_v12, %v1910_v22  ;;  %v2743_v25 = vpop.f32.mrb[255].mxu1  ;;  %13088 = vmatmul.mubr.msk.f32.gmra.mrb[104].mxu1 %vm503_vm0, %v2798_v3  ;;  %12801 = vmatprep.mubr.msk.f32.mxu0 %vm503_vm0, %v2799_v16 }
 0x332   : > { %v9671_v26 = vrot.slane %v9670_v20, 4  ;;  %v10069_v27 = vmin.f32 %v10068_v15, %v2743_v25  ;;  %13089 = vmatprep.mubr.msk.f32.mxu1 %vm503_vm0, %v2799_v16 }
 0x333   : > { %v9937_v33 = vrot.slane %v9936_v23, 4  ;;  %v9804_v34 = vrot.slane %v9803_v24, 4  ;;  %v3324_v35 = vpop.f32.mrb[0].mxu0 }
 0x334   : > { %v9672_v36 = vmin.f32 %v9670_v20, %v9671_v26  ;;  %v10070_v37 = vrot.slane %v10069_v27, 4  ;;  %v4157_v38 = vpop.f32.mrb[0].mxu1  ;;  %v3326_v39 = vpop.f32.mrb[1].mxu0  ;;  %12802 = vmatmul.mubr.msk.f32.gmra.mrb[106].mxu0 %vm503_vm0, %v2799_v16  ;;  %v11194_v26 = vlaneseq }
 0x335   : > { %v9938_v44 = vmin.f32 %v9936_v23, %v9937_v33  ;;  %v9805_v45 = vmin.f32 %v9803_v24, %v9804_v34  ;;  %v4159_v46 = vpop.f32.mrb[1].mxu1  ;;  %13090 = vmatmul.mubr.msk.f32.gmra.mrb[106].mxu1 %vm503_vm0, %v2799_v16  ;;  %12803 = vmatprep.mubr.msk.f32.mxu0 %vm503_vm0, %v2800_v32  ;;  %v2804_v23 = vld [vmem:[%s16016_s2 + $0x1d0] sm:$0xff]  ;;  %v13621_v24 = vmov 1966171168  }
 0x336   : > { %v9673_v47 = vrot.slane %v9672_v36, 2  ;;  %v10071_v48 = vmin.f32 %v10069_v27, %v10070_v37  ;;  %13091 = vmatprep.mubr.msk.f32.mxu1 %vm503_vm0, %v2800_v32  ;;  %v11192_v25 = vunpack.c.l.s4 %v13621_v24  ;;  %vm15464_vm11 = vcmp.lt.s32.totalorder %v11194_v26, 512 }
 0x337   : > { %v9939_v49 = vrot.slane %v9938_v44, 2  ;;  %v9806_v50 = vrot.slane %v9805_v45, 2  ;;  %v3330_v5 = vpop.f32.mrb[2].mxu0 }
 0x338   : > { %v9674_v9 = vmin.f32 %v9672_v36, %v9673_v47  ;;  %v10072_v10 = vrot.slane %v10071_v48, 2  ;;  %v10620_v14 = vmin.f32 %v3324_v35, %v3330_v5  ;;  %v4163_v18 = vpop.f32.mrb[2].mxu1  ;;  %v3332_v19 = vpop.f32.mrb[3].mxu0  ;;  %12804 = vmatmul.mubr.msk.f32.gmra.mrb[108].mxu0 %vm503_vm0, %v2800_v32 }
 0x339   : > { %v9940_v28 = vmin.f32 %v9938_v44, %v9939_v49  ;;  %v9807_v29 = vmin.f32 %v9805_v45, %v9806_v50  ;;  %v10886_v30 = vmin.f32 %v4157_v38, %v4163_v18  ;;  %v10753_v31 = vmin.f32 %v3326_v39, %v3332_v19  ;;  %v4165_v40 = vpop.f32.mrb[3].mxu1  ;;  %13092 = vmatmul.mubr.msk.f32.gmra.mrb[108].mxu1 %vm503_vm0, %v2800_v32  ;;  %v2805_v39 = vld [vmem:[%s16016_s2 + $0x1d8] sm:$0xff] }
 0x33a   : > { %v9675_v41 = vrot.slane %v9674_v9, 1  ;;  %v10073_v42 = vmin.f32 %v10071_v48, %v10072_v10  ;;  %v11019_v43 = vmin.f32 %v4159_v46, %v4165_v40  ;;  %12805 = vmatprep.mubr.msk.f32.mxu0 %vm503_vm0, %v2801_v0  ;;  %13093 = vmatprep.mubr.msk.f32.mxu1 %vm503_vm0, %v2801_v0  ;;  %v11193_v44 = vunpack.c.0.s8 %v11192_v25 }
 0x33b   : > { %v9941_v51 = vrot.slane %v9940_v28, 1  ;;  %v9808_v1 = vrot.slane %v9807_v29, 1  ;;  %v3336_v52 = vpop.f32.mrb[4].mxu0  ;;  %v11195_v45 = vshrl.u32 %v11194_v26, 7 }
 0x33c   : > { %v9676_v54 = vmin.f32 %v9674_v9, %v9675_v41  ;;  %v10074_v55 = vrot.slane %v10073_v42, 1  ;;  %v10621_v56 = vmin.f32 %v10620_v14, %v3336_v52  ;;  %v4169_v57 = vpop.f32.mrb[4].mxu1  ;;  %v3338_v58 = vpop.f32.mrb[5].mxu0  ;;  %12806 = vmatmul.mubr.msk.f32.gmra.mrb[110].mxu0 %vm503_vm0, %v2801_v0  ;;  %v2806_v14 = vld [vmem:[%s16016_s2 + $0x1e0] sm:$0xff] }
 0x33d   : > { %v9942_v59 = vmin.f32 %v9940_v28, %v9941_v51  ;;  %v9809_v60 = vmin.f32 %v9807_v29, %v9808_v1  ;;  %v10887_v61 = vmin.f32 %v10886_v30, %v4169_v57  ;;  %v10754_v62 = vmin.f32 %v10753_v31, %v3338_v58  ;;  %v4171_v63 = vpop.f32.mrb[5].mxu1  ;;  %13094 = vmatmul.mubr.msk.f32.gmra.mrb[110].mxu1 %vm503_vm0, %v2801_v0 }
 0x33e   : > { %v15342_v2 = vmax.f32 %v9676_v54, 0.0  ;;  %v10075_v3 = vmin.f32 %v10073_v42, %v10074_v55  ;;  %v11020_v4 = vmin.f32 %v11019_v43, %v4171_v63  ;;  %12807 = vmatprep.mubr.msk.f32.mxu0 %vm503_vm0, %v2802_v53  ;;  %13095 = vmatprep.mubr.msk.f32.mxu1 %vm503_vm0, %v2802_v53  ;;  %v15382_v18 = vsub.s32 %v11193_v44, %v11195_v45 }
 0x33f   : > { %v15349_v7 = vmax.f32 %v9942_v59, 0.0  ;;  %v15351_v8 = vmax.f32 %v9809_v60, 0.0  ;;  %v3342_v11 = vpop.f32.mrb[6].mxu0 }
 0x340   : > { %13492 = vrsqrt.f32 %v15342_v2  ;;  %v15354_v12 = vmax.f32 %v10075_v3, 0.0  ;;  %v10622_v13 = vmin.f32 %v10621_v56, %v3342_v11  ;;  %v4175_v15 = vpop.f32.mrb[6].mxu1  ;;  %v3344_v16 = vpop.f32.mrb[7].mxu0  ;;  %12808 = vmatmul.mubr.msk.f32.gmra.mrb[112].mxu0 %vm503_vm0, %v2802_v53  ;;  %vm10082_vm2 = vcmp.eq.f32.partialorder %v15342_v2, inf  ;;  %v2807_v56 = vld [vmem:[%s16016_s2 + $0x1e8] sm:$0xff] }
 0x341   : > { %13494 = vrsqrt.f32 %v15349_v7  ;;  %v10888_v17 = vmin.f32 %v10887_v61, %v4175_v15  ;;  %v10755_v20 = vmin.f32 %v10754_v62, %v3344_v16  ;;  %v4177_v21 = vpop.f32.mrb[7].mxu1  ;;  %13096 = vmatmul.mubr.msk.f32.gmra.mrb[112].mxu1 %vm503_vm0, %v2802_v53  ;;  %12809 = vmatprep.mubr.msk.f32.mxu0 %vm503_vm0, %v2803_v6  ;;  %vm10084_vm3 = vcmp.eq.f32.partialorder %v15342_v2, 0.0 }
 0x342   : > { %13496 = vrsqrt.f32 %v15351_v8  ;;  %v11021_v22 = vmin.f32 %v11020_v4, %v4177_v21  ;;  %13097 = vmatprep.mubr.msk.f32.mxu1 %vm503_vm0, %v2803_v6  ;;  %v10085_v30 = vand.u32 2147483648, %v15342_v2  ;;  %vm10089_vm4 = vcmp.eq.f32.partialorder %v15351_v8, inf  ;;  %v2808_v21 = vld [vmem:[%s16016_s2 + $0x1f0] sm:$0xff] }
 0x343   : > { %13498 = vrsqrt.f32 %v15354_v12  ;;  %v3348_v27 = vpop.f32.mrb[8].mxu0  ;;  %vm10091_vm5 = vcmp.eq.f32.partialorder %v15351_v8, 0.0  ;;  %vm10096_vm6 = vcmp.eq.f32.partialorder %v15349_v7, inf  ;;  %v10099_v59 = vand.u32 2147483648, %v15349_v7 }
 0x344   : > { %v10623_v32 = vmin.f32 %v10622_v13, %v3348_v27  ;;  %v4181_v33 = vpop.f32.mrb[8].mxu1  ;;  %v3350_v34 = vpop.f32.mrb[9].mxu0  ;;  %12810 = vmatmul.mubr.msk.f32.gmra.mrb[114].mxu0 %vm503_vm0, %v2803_v6  ;;  %v10092_v62 = vand.u32 2147483648, %v15351_v8  ;;  %vm10098_vm7 = vcmp.eq.f32.partialorder %v15349_v7, 0.0  ;;  %vm10103_vm8 = vcmp.eq.f32.partialorder %v15354_v12, inf }
 0x345   : > { %v10889_v35 = vmin.f32 %v10888_v17, %v4181_v33  ;;  %v10756_v36 = vmin.f32 %v10755_v20, %v3350_v34  ;;  %v4183_v37 = vpop.f32.mrb[9].mxu1  ;;  %13098 = vmatmul.mubr.msk.f32.gmra.mrb[114].mxu1 %vm503_vm0, %v2803_v6  ;;  %12811 = vmatprep.mubr.msk.f32.mxu0 %vm503_vm0, %v2804_v23  ;;  %v10106_v17 = vand.u32 2147483648, %v15354_v12  ;;  %vm10105_vm9 = vcmp.eq.f32.partialorder %v15354_v12, 0.0 }
 0x346   : > { %v11022_v38 = vmin.f32 %v11021_v22, %v4183_v37  ;;  %13099 = vmatprep.mubr.msk.f32.mxu1 %vm503_vm0, %v2804_v23 }
 0x347   : > { %v3354_v46 = vpop.f32.mrb[10].mxu0 }
 0x348   : > { %v10624_v47 = vmin.f32 %v10623_v32, %v3354_v46  ;;  %v4187_v48 = vpop.f32.mrb[10].mxu1  ;;  %v3356_v49 = vpop.f32.mrb[11].mxu0  ;;  %12812 = vmatmul.mubr.msk.f32.gmra.mrb[116].mxu0 %vm503_vm0, %v2804_v23 }
 0x349   : > { %v10890_v50 = vmin.f32 %v10889_v35, %v4187_v48  ;;  %v10757_v5 = vmin.f32 %v10756_v36, %v3356_v49  ;;  %v4189_v0 = vpop.f32.mrb[11].mxu1  ;;  %13100 = vmatmul.mubr.msk.f32.gmra.mrb[116].mxu1 %vm503_vm0, %v2804_v23  ;;  %12813 = vmatprep.mubr.msk.f32.mxu0 %vm503_vm0, %v2805_v39 }
 0x34a   : > { %v13493_v9 = vpop.eup %13492  ;;  %v11023_v10 = vmin.f32 %v11022_v38, %v4189_v0  ;;  %13101 = vmatprep.mubr.msk.f32.mxu1 %vm503_vm0, %v2805_v39  ;;  %v2809_v38 = vld [vmem:[%s16016_s2 + $0x1f8] sm:$0xff] }
 0x34b   : > { %v13495_v19 = vpop.eup %13494  ;;  %v3360_v28 = vpop.f32.mrb[12].mxu0  ;;  %v10081_v29 = vmul.f32 %v13493_v9, %v15342_v2 }
 0x34c   : > { %v13497_v31 = vpop.eup %13496  ;;  %v10625_v40 = vmin.f32 %v10624_v47, %v3360_v28  ;;  %v4193_v41 = vpop.f32.mrb[12].mxu1  ;;  %12814 = vmatmul.mubr.msk.f32.gmra.mrb[118].mxu0 %vm503_vm0, %v2805_v39  ;;  %v10095_v43 = vmul.f32 %v13495_v19, %v15349_v7 }
 0x34d   : > { %v3362_v42 = vpop.f32.mrb[13].mxu0  ;;  %v13499_v51 = vpop.eup %13498  ;;  %v10891_v1 = vmin.f32 %v10890_v50, %v4193_v41  ;;  %13102 = vmatmul.mubr.msk.f32.gmra.mrb[118].mxu1 %vm503_vm0, %v2805_v39  ;;  %12815 = vmatprep.mubr.msk.f32.mxu0 %vm503_vm0, %v2806_v14  ;;  %v10083_v54 = vsel %vm10082_vm2, %v15342_v2, %v10081_v29  ;;  %v10088_v57 = vmul.f32 %v13497_v31, %v15351_v8  ;;  %v9031_v39 = vld [vmem:[%s15439_s27] sm:$0xf] }
 0x34e   : > { %v10758_v52 = vmin.f32 %v10757_v5, %v3362_v42  ;;  %v4195_v53 = vpop.f32.mrb[13].mxu1  ;;  %13103 = vmatprep.mubr.msk.f32.mxu1 %vm503_vm0, %v2806_v14  ;;  %v10097_v58 = vsel %vm10096_vm6, %v15349_v7, %v10095_v43  ;;  %v10086_v61 = vsel %vm10084_vm3, %v10085_v30, %v10083_v54  ;;  %v10102_v63 = vmul.f32 %v13499_v51, %v15354_v12  ;;  %v2811_v51 = vld [vmem:[%s16016_s2 + $0x208] sm:$0xff] }
 0x34f   : > { %v11024_v55 = vmin.f32 %v11023_v10, %v4195_v53  ;;  %v3366_v60 = vpop.f32.mrb[14].mxu0  ;;  %v10090_v11 = vsel %vm10089_vm4, %v15351_v8, %v10088_v57  ;;  %v10100_v13 = vsel %vm10098_vm7, %v10099_v59, %v10097_v58  ;;  %vm11184_vm10 = vcmp.gt.f32.partialorder %v9031_v39, 0.5  ;;  %v2810_v10 = vld [vmem:[%s16016_s2 + $0x200] sm:$0xff]  ;;  %v2812_v59 = vld [vmem:[%s16016_s2 + $0x210] sm:$0xff] }
 0x350   : > { %v10626_v3 = vmin.f32 %v10625_v40, %v3366_v60  ;;  %v4199_v4 = vpop.f32.mrb[14].mxu1  ;;  %v3368_v6 = vpop.f32.mrb[15].mxu0  ;;  %12816 = vmatmul.mubr.msk.f32.gmra.mrb[120].mxu0 %vm503_vm0, %v2806_v14  ;;  %v10093_v7 = vsel %vm10091_vm5, %v10092_v62, %v10090_v11  ;;  %v10104_v22 = vsel %vm10103_vm8, %v15354_v12, %v10102_v63 }
 0x351   : > { %v10892_v2 = vmin.f32 %v10891_v1, %v4199_v4  ;;  %v10759_v15 = vmin.f32 %v10758_v52, %v3368_v6  ;;  %v4201_v16 = vpop.f32.mrb[15].mxu1  ;;  %13104 = vmatmul.mubr.msk.f32.gmra.mrb[120].mxu1 %vm503_vm0, %v2806_v14  ;;  %12817 = vmatprep.mubr.msk.f32.mxu0 %vm503_vm0, %v2807_v56  ;;  %v11189_v23 = vcombine.low %v10086_v61, %v10093_v7 }
 0x352   : > { %v11025_v20 = vmin.f32 %v11024_v55, %v4201_v16  ;;  %13105 = vmatprep.mubr.msk.f32.mxu1 %vm503_vm0, %v2807_v56  ;;  %v10107_v8 = vsel %vm10105_vm9, %v10106_v17, %v10104_v22 }
 0x353   : > { %v3372_v24 = vpop.f32.mrb[16].mxu0  ;;  %v11190_v33 = vcombine.low %v10100_v13, %v10107_v8  ;;  %v11197_v12 = vrot.slane %v11189_v23, %v15382_v18  ;;  %v2813_v13 = vld [vmem:[%s16016_s2 + $0x218] sm:$0xff]  ;;  %v2814_v23 = vld [vmem:[%s16016_s2 + $0x220] sm:$0xff] }
 0x354   : > { %v10627_v25 = vmin.f32 %v10626_v3, %v3372_v24  ;;  %v4205_v27 = vpop.f32.mrb[16].mxu1  ;;  %v3374_v32 = vpop.f32.mrb[17].mxu0  ;;  %12818 = vmatmul.mubr.msk.f32.gmra.mrb[122].mxu0 %vm503_vm0, %v2807_v56 }
 0x355   : > { %v10893_v34 = vmin.f32 %v10892_v2, %v4205_v27  ;;  %v10760_v35 = vmin.f32 %v10759_v15, %v3374_v32  ;;  %v4207_v36 = vpop.f32.mrb[17].mxu1  ;;  %13106 = vmatmul.mubr.msk.f32.gmra.mrb[122].mxu1 %vm503_vm0, %v2807_v56  ;;  %12819 = vmatprep.mubr.msk.f32.mxu0 %vm503_vm0, %v2808_v21  ;;  %v11204_v44 = vrot.slane %v11190_v33, %v15382_v18 }
 0x356   : > { %v11026_v37 = vmin.f32 %v11025_v20, %v4207_v36  ;;  %13107 = vmatprep.mubr.msk.f32.mxu1 %vm503_vm0, %v2808_v21 }
 0x357   : > { %v3378_v45 = vpop.f32.mrb[18].mxu0  ;;  %v11205_v49 = vcombine.low %v11197_v12, %v11204_v44 }
 0x358   : > { %v10628_v46 = vmin.f32 %v10627_v25, %v3378_v45  ;;  %v4211_v47 = vpop.f32.mrb[18].mxu1  ;;  %v3380_v48 = vpop.f32.mrb[19].mxu0  ;;  %12820 = vmatmul.mubr.msk.f32.gmra.mrb[124].mxu0 %vm503_vm0, %v2808_v21 }
 0x359   : > { %v10894_v50 = vmin.f32 %v10893_v34, %v4211_v47  ;;  %v10761_v5 = vmin.f32 %v10760_v35, %v3380_v48  ;;  %v4213_v0 = vpop.f32.mrb[19].mxu1  ;;  %13108 = vmatmul.mubr.msk.f32.gmra.mrb[124].mxu1 %vm503_vm0, %v2808_v21  ;;  %12821 = vmatprep.mubr.msk.f32.mxu0 %vm503_vm0, %v2809_v38  ;;  %v11212_v14 = vrot.slane %v11205_v49, %v15382_v18  ;;  %v2815_v35 = vld [vmem:[%s16016_s2 + $0x228] sm:$0xff]  ;;  %v2816_v48 = vld [vmem:[%s16016_s2 + $0x230] sm:$0xff] }
 0x35a   : > { %v11027_v9 = vmin.f32 %v11026_v37, %v4213_v0  ;;  %13109 = vmatprep.mubr.msk.f32.mxu1 %vm503_vm0, %v2809_v38 }
 0x35b   : > { %v3384_v28 = vpop.f32.mrb[20].mxu0  ;;  %v11214_v40 = vsel %vm11184_vm10, %v11212_v14, 0.0 }
 0x35c   : > { %v10629_v29 = vmin.f32 %v10628_v46, %v3384_v28  ;;  %v4217_v30 = vpop.f32.mrb[20].mxu1  ;;  %v3386_v31 = vpop.f32.mrb[21].mxu0  ;;  %12822 = vmatmul.mubr.msk.f32.gmra.mrb[126].mxu0 %vm503_vm0, %v2809_v38  ;;  %11219 = vst.msk [vmem:[%s15473_s13] sm:$0xf] %vm15464_vm11, %v11214_v40 }
 0x35d   : > { %v10895_v41 = vmin.f32 %v10894_v50, %v4217_v30  ;;  %v10762_v42 = vmin.f32 %v10761_v5, %v3386_v31  ;;  %v4219_v43 = vpop.f32.mrb[21].mxu1  ;;  %13110 = vmatmul.mubr.msk.f32.gmra.mrb[126].mxu1 %vm503_vm0, %v2809_v38  ;;  %12823 = vmatprep.mubr.msk.f32.mxu0 %vm503_vm0, %v2810_v10 }
 0x35e   : > { %v11028_v26 = vmin.f32 %v11027_v9, %v4219_v43  ;;  %13111 = vmatprep.mubr.msk.f32.mxu1 %vm503_vm0, %v2810_v10 }
 0x35f   : > { %v3390_v1 = vpop.f32.mrb[22].mxu0 }
 0x360   : > { %v10630_v52 = vmin.f32 %v10629_v29, %v3390_v1  ;;  %v4223_v53 = vpop.f32.mrb[22].mxu1  ;;  %v3392_v54 = vpop.f32.mrb[23].mxu0  ;;  %12824 = vmatmul.mubr.msk.f32.gmra.mrb[128].mxu0 %vm503_vm0, %v2810_v10  ;;  %v2817_v29 = vld [vmem:[%s16016_s2 + $0x238] sm:$0xff]  ;;  %v2818_v1 = vld [vmem:[%s16016_s2 + $0x240] sm:$0xff] }
 0x361   : > { %v10896_v55 = vmin.f32 %v10895_v41, %v4223_v53  ;;  %v10763_v56 = vmin.f32 %v10762_v42, %v3392_v54  ;;  %v4225_v57 = vpop.f32.mrb[23].mxu1  ;;  %13112 = vmatmul.mubr.msk.f32.gmra.mrb[128].mxu1 %vm503_vm0, %v2810_v10  ;;  %12825 = vmatprep.mubr.msk.f32.mxu0 %vm503_vm0, %v2811_v51 }
 0x362   : > { %v11029_v58 = vmin.f32 %v11028_v26, %v4225_v57  ;;  %13113 = vmatprep.mubr.msk.f32.mxu1 %vm503_vm0, %v2811_v51 }
 0x363   : > { %v3396_v60 = vpop.f32.mrb[24].mxu0 }
 0x364   : > { %v10631_v61 = vmin.f32 %v10630_v52, %v3396_v60  ;;  %v4229_v62 = vpop.f32.mrb[24].mxu1  ;;  %v3398_v63 = vpop.f32.mrb[25].mxu0  ;;  %12826 = vmatmul.mubr.msk.f32.gmra.mrb[130].mxu0 %vm503_vm0, %v2811_v51  ;;  %v2819_v60 = vld [vmem:[%s16016_s2 + $0x248] sm:$0xff] }
 0x365   : > { %v10897_v3 = vmin.f32 %v10896_v55, %v4229_v62  ;;  %v10764_v4 = vmin.f32 %v10763_v56, %v3398_v63  ;;  %v4231_v6 = vpop.f32.mrb[25].mxu1  ;;  %13114 = vmatmul.mubr.msk.f32.gmra.mrb[130].mxu1 %vm503_vm0, %v2811_v51  ;;  %12827 = vmatprep.mubr.msk.f32.mxu0 %vm503_vm0, %v2812_v59 }
 0x366   : > { %v11030_v11 = vmin.f32 %v11029_v58, %v4231_v6  ;;  %13115 = vmatprep.mubr.msk.f32.mxu1 %vm503_vm0, %v2812_v59 }
 0x367   : > { %v3402_v2 = vpop.f32.mrb[26].mxu0 }
 0x368   : > { %v10632_v15 = vmin.f32 %v10631_v61, %v3402_v2  ;;  %v4235_v16 = vpop.f32.mrb[26].mxu1  ;;  %v3404_v7 = vpop.f32.mrb[27].mxu0  ;;  %12828 = vmatmul.mubr.msk.f32.gmra.mrb[132].mxu0 %vm503_vm0, %v2812_v59  ;;  %v2820_v2 = vld [vmem:[%s16016_s2 + $0x250] sm:$0xff] }
 0x369   : > { %v10898_v17 = vmin.f32 %v10897_v3, %v4235_v16  ;;  %v10765_v20 = vmin.f32 %v10764_v4, %v3404_v7  ;;  %v4237_v21 = vpop.f32.mrb[27].mxu1  ;;  %13116 = vmatmul.mubr.msk.f32.gmra.mrb[132].mxu1 %vm503_vm0, %v2812_v59  ;;  %12829 = vmatprep.mubr.msk.f32.mxu0 %vm503_vm0, %v2813_v13 }
 0x36a   : > { %v11031_v22 = vmin.f32 %v11030_v11, %v4237_v21  ;;  %13117 = vmatprep.mubr.msk.f32.mxu1 %vm503_vm0, %v2813_v13 }
 0x36b   : > { %v3408_v24 = vpop.f32.mrb[28].mxu0 }
 0x36c   : > { %v10633_v8 = vmin.f32 %v10632_v15, %v3408_v24  ;;  %v4241_v25 = vpop.f32.mrb[28].mxu1  ;;  %v3410_v27 = vpop.f32.mrb[29].mxu0  ;;  %12830 = vmatmul.mubr.msk.f32.gmra.mrb[134].mxu0 %vm503_vm0, %v2813_v13  ;;  %v2821_v24 = vld [vmem:[%s16016_s2 + $0x258] sm:$0xff] }
 0x36d   : > { %v10899_v32 = vmin.f32 %v10898_v17, %v4241_v25  ;;  %v10766_v33 = vmin.f32 %v10765_v20, %v3410_v27  ;;  %v4243_v12 = vpop.f32.mrb[29].mxu1  ;;  %13118 = vmatmul.mubr.msk.f32.gmra.mrb[134].mxu1 %vm503_vm0, %v2813_v13  ;;  %12831 = vmatprep.mubr.msk.f32.mxu0 %vm503_vm0, %v2814_v23 }
 0x36e   : > { %v11032_v34 = vmin.f32 %v11031_v22, %v4243_v12  ;;  %13119 = vmatprep.mubr.msk.f32.mxu1 %vm503_vm0, %v2814_v23 }
 0x36f   : > { %v3414_v36 = vpop.f32.mrb[30].mxu0 }
 0x370   : > { %v10634_v37 = vmin.f32 %v10633_v8, %v3414_v36  ;;  %v4247_v38 = vpop.f32.mrb[30].mxu1  ;;  %v3416_v39 = vpop.f32.mrb[31].mxu0  ;;  %12832 = vmatmul.mubr.msk.f32.gmra.mrb[136].mxu0 %vm503_vm0, %v2814_v23  ;;  %v2822_v36 = vld [vmem:[%s16016_s2 + $0x260] sm:$0xff] }
 0x371   : > { %v10900_v44 = vmin.f32 %v10899_v32, %v4247_v38  ;;  %v10767_v45 = vmin.f32 %v10766_v33, %v3416_v39  ;;  %v4249_v46 = vpop.f32.mrb[31].mxu1  ;;  %13120 = vmatmul.mubr.msk.f32.gmra.mrb[136].mxu1 %vm503_vm0, %v2814_v23  ;;  %12833 = vmatprep.mubr.msk.f32.mxu0 %vm503_vm0, %v2815_v35 }
 0x372   : > { %v11033_v47 = vmin.f32 %v11032_v34, %v4249_v46  ;;  %13121 = vmatprep.mubr.msk.f32.mxu1 %vm503_vm0, %v2815_v35 }
 0x373   : > { %v3420_v49 = vpop.f32.mrb[32].mxu0 }
 0x374   : > { %v10635_v50 = vmin.f32 %v10634_v37, %v3420_v49  ;;  %v4253_v5 = vpop.f32.mrb[32].mxu1  ;;  %v3422_v0 = vpop.f32.mrb[33].mxu0  ;;  %12834 = vmatmul.mubr.msk.f32.gmra.mrb[138].mxu0 %vm503_vm0, %v2815_v35  ;;  %v2823_v49 = vld [vmem:[%s16016_s2 + $0x268] sm:$0xff] }
 0x375   : > { %v10901_v9 = vmin.f32 %v10900_v44, %v4253_v5  ;;  %v10768_v10 = vmin.f32 %v10767_v45, %v3422_v0  ;;  %v4255_v14 = vpop.f32.mrb[33].mxu1  ;;  %13122 = vmatmul.mubr.msk.f32.gmra.mrb[138].mxu1 %vm503_vm0, %v2815_v35  ;;  %12835 = vmatprep.mubr.msk.f32.mxu0 %vm503_vm0, %v2816_v48 }
 0x376   : > { %v11034_v28 = vmin.f32 %v11033_v47, %v4255_v14  ;;  %13123 = vmatprep.mubr.msk.f32.mxu1 %vm503_vm0, %v2816_v48 }
 0x377   : > { %v3426_v30 = vpop.f32.mrb[34].mxu0 }
 0x378   : > { %v10636_v31 = vmin.f32 %v10635_v50, %v3426_v30  ;;  %v4259_v40 = vpop.f32.mrb[34].mxu1  ;;  %v3428_v41 = vpop.f32.mrb[35].mxu0  ;;  %12836 = vmatmul.mubr.msk.f32.gmra.mrb[140].mxu0 %vm503_vm0, %v2816_v48  ;;  %v2824_v30 = vld [vmem:[%s16016_s2 + $0x270] sm:$0xff] }
 0x379   : > { %v10902_v42 = vmin.f32 %v10901_v9, %v4259_v40  ;;  %v10769_v43 = vmin.f32 %v10768_v10, %v3428_v41  ;;  %v4261_v26 = vpop.f32.mrb[35].mxu1  ;;  %13124 = vmatmul.mubr.msk.f32.gmra.mrb[140].mxu1 %vm503_vm0, %v2816_v48  ;;  %12837 = vmatprep.mubr.msk.f32.mxu0 %vm503_vm0, %v2817_v29 }
 0x37a   : > { %v11035_v51 = vmin.f32 %v11034_v28, %v4261_v26  ;;  %13125 = vmatprep.mubr.msk.f32.mxu1 %vm503_vm0, %v2817_v29 }
 0x37b   : > { %v3432_v52 = vpop.f32.mrb[36].mxu0 }
 0x37c   : > { %v10637_v53 = vmin.f32 %v10636_v31, %v3432_v52  ;;  %v4265_v54 = vpop.f32.mrb[36].mxu1  ;;  %v3434_v55 = vpop.f32.mrb[37].mxu0  ;;  %12838 = vmatmul.mubr.msk.f32.gmra.mrb[142].mxu0 %vm503_vm0, %v2817_v29  ;;  %v2825_v52 = vld [vmem:[%s16016_s2 + $0x278] sm:$0xff] }
 0x37d   : > { %v10903_v56 = vmin.f32 %v10902_v42, %v4265_v54  ;;  %v10770_v57 = vmin.f32 %v10769_v43, %v3434_v55  ;;  %v4267_v58 = vpop.f32.mrb[37].mxu1  ;;  %13126 = vmatmul.mubr.msk.f32.gmra.mrb[142].mxu1 %vm503_vm0, %v2817_v29  ;;  %12839 = vmatprep.mubr.msk.f32.mxu0 %vm503_vm0, %v2818_v1 }
 0x37e   : > { %v11036_v59 = vmin.f32 %v11035_v51, %v4267_v58  ;;  %13127 = vmatprep.mubr.msk.f32.mxu1 %vm503_vm0, %v2818_v1 }
 0x37f   : > { %v3438_v61 = vpop.f32.mrb[38].mxu0 }
 0x380   : > { %v10638_v62 = vmin.f32 %v10637_v53, %v3438_v61  ;;  %v4271_v63 = vpop.f32.mrb[38].mxu1  ;;  %v3440_v3 = vpop.f32.mrb[39].mxu0  ;;  %12840 = vmatmul.mubr.msk.f32.gmra.mrb[144].mxu0 %vm503_vm0, %v2818_v1  ;;  %v2826_v61 = vld [vmem:[%s16016_s2 + $0x280] sm:$0xff] }
 0x381   : > { %v10904_v4 = vmin.f32 %v10903_v56, %v4271_v63  ;;  %v10771_v6 = vmin.f32 %v10770_v57, %v3440_v3  ;;  %v4273_v11 = vpop.f32.mrb[39].mxu1  ;;  %13128 = vmatmul.mubr.msk.f32.gmra.mrb[144].mxu1 %vm503_vm0, %v2818_v1  ;;  %12841 = vmatprep.mubr.msk.f32.mxu0 %vm503_vm0, %v2819_v60 }
 0x382   : > { %v11037_v13 = vmin.f32 %v11036_v59, %v4273_v11  ;;  %13129 = vmatprep.mubr.msk.f32.mxu1 %vm503_vm0, %v2819_v60 }
 0x383   : > { %v3444_v15 = vpop.f32.mrb[40].mxu0 }
 0x384   : > { %v10639_v16 = vmin.f32 %v10638_v62, %v3444_v15  ;;  %v4277_v7 = vpop.f32.mrb[40].mxu1  ;;  %v3446_v17 = vpop.f32.mrb[41].mxu0  ;;  %12842 = vmatmul.mubr.msk.f32.gmra.mrb[146].mxu0 %vm503_vm0, %v2819_v60  ;;  %v2827_v15 = vld [vmem:[%s16016_s2 + $0x288] sm:$0xff] }
 0x385   : > { %v10905_v20 = vmin.f32 %v10904_v4, %v4277_v7  ;;  %v10772_v21 = vmin.f32 %v10771_v6, %v3446_v17  ;;  %v4279_v22 = vpop.f32.mrb[41].mxu1  ;;  %13130 = vmatmul.mubr.msk.f32.gmra.mrb[146].mxu1 %vm503_vm0, %v2819_v60  ;;  %12843 = vmatprep.mubr.msk.f32.mxu0 %vm503_vm0, %v2820_v2 }
 0x386   : > { %v11038_v23 = vmin.f32 %v11037_v13, %v4279_v22  ;;  %13131 = vmatprep.mubr.msk.f32.mxu1 %vm503_vm0, %v2820_v2 }
 0x387   : > { %v3450_v8 = vpop.f32.mrb[42].mxu0 }
 0x388   : > { %v10640_v25 = vmin.f32 %v10639_v16, %v3450_v8  ;;  %v4283_v27 = vpop.f32.mrb[42].mxu1  ;;  %v3452_v32 = vpop.f32.mrb[43].mxu0  ;;  %12844 = vmatmul.mubr.msk.f32.gmra.mrb[148].mxu0 %vm503_vm0, %v2820_v2  ;;  %v2828_v8 = vld [vmem:[%s16016_s2 + $0x290] sm:$0xff] }
 0x389   : > { %v10906_v33 = vmin.f32 %v10905_v20, %v4283_v27  ;;  %v10773_v12 = vmin.f32 %v10772_v21, %v3452_v32  ;;  %v4285_v34 = vpop.f32.mrb[43].mxu1  ;;  %13132 = vmatmul.mubr.msk.f32.gmra.mrb[148].mxu1 %vm503_vm0, %v2820_v2  ;;  %12845 = vmatprep.mubr.msk.f32.mxu0 %vm503_vm0, %v2821_v24 }
 0x38a   : > { %v11039_v35 = vmin.f32 %v11038_v23, %v4285_v34  ;;  %13133 = vmatprep.mubr.msk.f32.mxu1 %vm503_vm0, %v2821_v24 }
 0x38b   : > { %v3456_v37 = vpop.f32.mrb[44].mxu0 }
 0x38c   : > { %v10641_v38 = vmin.f32 %v10640_v25, %v3456_v37  ;;  %v4289_v39 = vpop.f32.mrb[44].mxu1  ;;  %v3458_v44 = vpop.f32.mrb[45].mxu0  ;;  %12846 = vmatmul.mubr.msk.f32.gmra.mrb[150].mxu0 %vm503_vm0, %v2821_v24  ;;  %v2829_v37 = vld [vmem:[%s16016_s2 + $0x298] sm:$0xff] }
 0x38d   : > { %v10907_v45 = vmin.f32 %v10906_v33, %v4289_v39  ;;  %v10774_v46 = vmin.f32 %v10773_v12, %v3458_v44  ;;  %v4291_v47 = vpop.f32.mrb[45].mxu1  ;;  %13134 = vmatmul.mubr.msk.f32.gmra.mrb[150].mxu1 %vm503_vm0, %v2821_v24  ;;  %12847 = vmatprep.mubr.msk.f32.mxu0 %vm503_vm0, %v2822_v36 }
 0x38e   : > { %v11040_v48 = vmin.f32 %v11039_v35, %v4291_v47  ;;  %13135 = vmatprep.mubr.msk.f32.mxu1 %vm503_vm0, %v2822_v36 }
 0x38f   : > { %v3462_v50 = vpop.f32.mrb[46].mxu0 }
 0x390   : > { %v10642_v5 = vmin.f32 %v10641_v38, %v3462_v50  ;;  %v4295_v0 = vpop.f32.mrb[46].mxu1  ;;  %v3464_v9 = vpop.f32.mrb[47].mxu0  ;;  %12848 = vmatmul.mubr.msk.f32.gmra.mrb[152].mxu0 %vm503_vm0, %v2822_v36  ;;  %v2830_v50 = vld [vmem:[%s16016_s2 + $0x2a0] sm:$0xff] }
 0x391   : > { %v10908_v10 = vmin.f32 %v10907_v45, %v4295_v0  ;;  %v10775_v14 = vmin.f32 %v10774_v46, %v3464_v9  ;;  %v4297_v28 = vpop.f32.mrb[47].mxu1  ;;  %13136 = vmatmul.mubr.msk.f32.gmra.mrb[152].mxu1 %vm503_vm0, %v2822_v36  ;;  %12849 = vmatprep.mubr.msk.f32.mxu0 %vm503_vm0, %v2823_v49 }
 0x392   : > { %v11041_v29 = vmin.f32 %v11040_v48, %v4297_v28  ;;  %13137 = vmatprep.mubr.msk.f32.mxu1 %vm503_vm0, %v2823_v49 }
 0x393   : > { %v3468_v31 = vpop.f32.mrb[48].mxu0 }
 0x394   : > { %v10643_v40 = vmin.f32 %v10642_v5, %v3468_v31  ;;  %v4301_v41 = vpop.f32.mrb[48].mxu1  ;;  %v3470_v42 = vpop.f32.mrb[49].mxu0  ;;  %12850 = vmatmul.mubr.msk.f32.gmra.mrb[154].mxu0 %vm503_vm0, %v2823_v49  ;;  %v2831_v31 = vld [vmem:[%s16016_s2 + $0x2a8] sm:$0xff] }
 0x395   : > { %v10909_v43 = vmin.f32 %v10908_v10, %v4301_v41  ;;  %v10776_v26 = vmin.f32 %v10775_v14, %v3470_v42  ;;  %v4303_v51 = vpop.f32.mrb[49].mxu1  ;;  %13138 = vmatmul.mubr.msk.f32.gmra.mrb[154].mxu1 %vm503_vm0, %v2823_v49  ;;  %12851 = vmatprep.mubr.msk.f32.mxu0 %vm503_vm0, %v2824_v30 }
 0x396   : > { %v11042_v1 = vmin.f32 %v11041_v29, %v4303_v51  ;;  %13139 = vmatprep.mubr.msk.f32.mxu1 %vm503_vm0, %v2824_v30 }
 0x397   : > { %v3474_v53 = vpop.f32.mrb[50].mxu0 }
 0x398   : > { %v10644_v54 = vmin.f32 %v10643_v40, %v3474_v53  ;;  %v4307_v55 = vpop.f32.mrb[50].mxu1  ;;  %v3476_v56 = vpop.f32.mrb[51].mxu0  ;;  %12852 = vmatmul.mubr.msk.f32.gmra.mrb[156].mxu0 %vm503_vm0, %v2824_v30  ;;  %v2832_v53 = vld [vmem:[%s16016_s2 + $0x2b0] sm:$0xff] }
 0x399   : > { %v10910_v57 = vmin.f32 %v10909_v43, %v4307_v55  ;;  %v10777_v58 = vmin.f32 %v10776_v26, %v3476_v56  ;;  %v4309_v59 = vpop.f32.mrb[51].mxu1  ;;  %13140 = vmatmul.mubr.msk.f32.gmra.mrb[156].mxu1 %vm503_vm0, %v2824_v30  ;;  %12853 = vmatprep.mubr.msk.f32.mxu0 %vm503_vm0, %v2825_v52 }
 0x39a   : > { %v11043_v60 = vmin.f32 %v11042_v1, %v4309_v59  ;;  %13141 = vmatprep.mubr.msk.f32.mxu1 %vm503_vm0, %v2825_v52 }
 0x39b   : > { %v3480_v62 = vpop.f32.mrb[52].mxu0 }
 0x39c   : > { %v10645_v63 = vmin.f32 %v10644_v54, %v3480_v62  ;;  %v4313_v3 = vpop.f32.mrb[52].mxu1  ;;  %v3482_v4 = vpop.f32.mrb[53].mxu0  ;;  %12854 = vmatmul.mubr.msk.f32.gmra.mrb[158].mxu0 %vm503_vm0, %v2825_v52  ;;  %v2833_v62 = vld [vmem:[%s16016_s2 + $0x2b8] sm:$0xff] }
 0x39d   : > { %v10911_v6 = vmin.f32 %v10910_v57, %v4313_v3  ;;  %v10778_v11 = vmin.f32 %v10777_v58, %v3482_v4  ;;  %v4315_v13 = vpop.f32.mrb[53].mxu1  ;;  %13142 = vmatmul.mubr.msk.f32.gmra.mrb[158].mxu1 %vm503_vm0, %v2825_v52  ;;  %12855 = vmatprep.mubr.msk.f32.mxu0 %vm503_vm0, %v2826_v61 }
 0x39e   : > { %v11044_v2 = vmin.f32 %v11043_v60, %v4315_v13  ;;  %13143 = vmatprep.mubr.msk.f32.mxu1 %vm503_vm0, %v2826_v61 }
 0x39f   : > { %v3486_v16 = vpop.f32.mrb[54].mxu0 }
 0x3a0   : > { %v10646_v7 = vmin.f32 %v10645_v63, %v3486_v16  ;;  %v4319_v17 = vpop.f32.mrb[54].mxu1  ;;  %v3488_v20 = vpop.f32.mrb[55].mxu0  ;;  %12856 = vmatmul.mubr.msk.f32.gmra.mrb[160].mxu0 %vm503_vm0, %v2826_v61  ;;  %v2834_v16 = vld [vmem:[%s16016_s2 + $0x2c0] sm:$0xff] }
 0x3a1   : > { %v10912_v21 = vmin.f32 %v10911_v6, %v4319_v17  ;;  %v10779_v22 = vmin.f32 %v10778_v11, %v3488_v20  ;;  %v4321_v23 = vpop.f32.mrb[55].mxu1  ;;  %13144 = vmatmul.mubr.msk.f32.gmra.mrb[160].mxu1 %vm503_vm0, %v2826_v61  ;;  %12857 = vmatprep.mubr.msk.f32.mxu0 %vm503_vm0, %v2827_v15 }
 0x3a2   : > { %v11045_v24 = vmin.f32 %v11044_v2, %v4321_v23  ;;  %13145 = vmatprep.mubr.msk.f32.mxu1 %vm503_vm0, %v2827_v15 }
 0x3a3   : > { %v3492_v25 = vpop.f32.mrb[56].mxu0 }
 0x3a4   : > { %v10647_v27 = vmin.f32 %v10646_v7, %v3492_v25  ;;  %v4325_v32 = vpop.f32.mrb[56].mxu1  ;;  %v3494_v33 = vpop.f32.mrb[57].mxu0  ;;  %12858 = vmatmul.mubr.msk.f32.gmra.mrb[162].mxu0 %vm503_vm0, %v2827_v15  ;;  %v2835_v25 = vld [vmem:[%s16016_s2 + $0x2c8] sm:$0xff] }
 0x3a5   : > { %v10913_v12 = vmin.f32 %v10912_v21, %v4325_v32  ;;  %v10780_v34 = vmin.f32 %v10779_v22, %v3494_v33  ;;  %v4327_v35 = vpop.f32.mrb[57].mxu1  ;;  %13146 = vmatmul.mubr.msk.f32.gmra.mrb[162].mxu1 %vm503_vm0, %v2827_v15  ;;  %12859 = vmatprep.mubr.msk.f32.mxu0 %vm503_vm0, %v2828_v8 }
 0x3a6   : > { %v11046_v36 = vmin.f32 %v11045_v24, %v4327_v35  ;;  %13147 = vmatprep.mubr.msk.f32.mxu1 %vm503_vm0, %v2828_v8 }
 0x3a7   : > { %v3498_v38 = vpop.f32.mrb[58].mxu0 }
 0x3a8   : > { %v10648_v39 = vmin.f32 %v10647_v27, %v3498_v38  ;;  %v4331_v44 = vpop.f32.mrb[58].mxu1  ;;  %v3500_v45 = vpop.f32.mrb[59].mxu0  ;;  %12860 = vmatmul.mubr.msk.f32.gmra.mrb[164].mxu0 %vm503_vm0, %v2828_v8  ;;  %v2836_v38 = vld [vmem:[%s16016_s2 + $0x2d0] sm:$0xff] }
 0x3a9   : > { %v10914_v46 = vmin.f32 %v10913_v12, %v4331_v44  ;;  %v10781_v47 = vmin.f32 %v10780_v34, %v3500_v45  ;;  %v4333_v48 = vpop.f32.mrb[59].mxu1  ;;  %13148 = vmatmul.mubr.msk.f32.gmra.mrb[164].mxu1 %vm503_vm0, %v2828_v8  ;;  %12861 = vmatprep.mubr.msk.f32.mxu0 %vm503_vm0, %v2829_v37 }
 0x3aa   : > { %v11047_v49 = vmin.f32 %v11046_v36, %v4333_v48  ;;  %13149 = vmatprep.mubr.msk.f32.mxu1 %vm503_vm0, %v2829_v37 }
 0x3ab   : > { %v3504_v5 = vpop.f32.mrb[60].mxu0 }
 0x3ac   : > { %v10649_v0 = vmin.f32 %v10648_v39, %v3504_v5  ;;  %v4337_v9 = vpop.f32.mrb[60].mxu1  ;;  %v3506_v10 = vpop.f32.mrb[61].mxu0  ;;  %12862 = vmatmul.mubr.msk.f32.gmra.mrb[166].mxu0 %vm503_vm0, %v2829_v37  ;;  %v2837_v5 = vld [vmem:[%s16016_s2 + $0x2d8] sm:$0xff] }
 0x3ad   : > { %v10915_v14 = vmin.f32 %v10914_v46, %v4337_v9  ;;  %v10782_v28 = vmin.f32 %v10781_v47, %v3506_v10  ;;  %v4339_v29 = vpop.f32.mrb[61].mxu1  ;;  %13150 = vmatmul.mubr.msk.f32.gmra.mrb[166].mxu1 %vm503_vm0, %v2829_v37  ;;  %12863 = vmatprep.mubr.msk.f32.mxu0 %vm503_vm0, %v2830_v50 }
 0x3ae   : > { %v11048_v30 = vmin.f32 %v11047_v49, %v4339_v29  ;;  %13151 = vmatprep.mubr.msk.f32.mxu1 %vm503_vm0, %v2830_v50 }
 0x3af   : > { %v3510_v40 = vpop.f32.mrb[62].mxu0 }
 0x3b0   : > { %v10650_v41 = vmin.f32 %v10649_v0, %v3510_v40  ;;  %v4343_v42 = vpop.f32.mrb[62].mxu1  ;;  %v3512_v43 = vpop.f32.mrb[63].mxu0  ;;  %12864 = vmatmul.mubr.msk.f32.gmra.mrb[168].mxu0 %vm503_vm0, %v2830_v50  ;;  %v2838_v40 = vld [vmem:[%s16016_s2 + $0x2e0] sm:$0xff] }
 0x3b1   : > { %v10916_v26 = vmin.f32 %v10915_v14, %v4343_v42  ;;  %v10783_v51 = vmin.f32 %v10782_v28, %v3512_v43  ;;  %v4345_v1 = vpop.f32.mrb[63].mxu1  ;;  %13152 = vmatmul.mubr.msk.f32.gmra.mrb[168].mxu1 %vm503_vm0, %v2830_v50  ;;  %12865 = vmatprep.mubr.msk.f32.mxu0 %vm503_vm0, %v2831_v31 }
 0x3b2   : > { %v11049_v52 = vmin.f32 %v11048_v30, %v4345_v1  ;;  %13153 = vmatprep.mubr.msk.f32.mxu1 %vm503_vm0, %v2831_v31 }
 0x3b3   : > { %v3516_v54 = vpop.f32.mrb[64].mxu0 }
 0x3b4   : > { %v10651_v55 = vmin.f32 %v10650_v41, %v3516_v54  ;;  %v4349_v56 = vpop.f32.mrb[64].mxu1  ;;  %v3518_v57 = vpop.f32.mrb[65].mxu0  ;;  %12866 = vmatmul.mubr.msk.f32.gmra.mrb[170].mxu0 %vm503_vm0, %v2831_v31  ;;  %v2839_v54 = vld [vmem:[%s16016_s2 + $0x2e8] sm:$0xff] }
 0x3b5   : > { %v10917_v58 = vmin.f32 %v10916_v26, %v4349_v56  ;;  %v10784_v59 = vmin.f32 %v10783_v51, %v3518_v57  ;;  %v4351_v60 = vpop.f32.mrb[65].mxu1  ;;  %13154 = vmatmul.mubr.msk.f32.gmra.mrb[170].mxu1 %vm503_vm0, %v2831_v31  ;;  %12867 = vmatprep.mubr.msk.f32.mxu0 %vm503_vm0, %v2832_v53 }
 0x3b6   : > { %v11050_v61 = vmin.f32 %v11049_v52, %v4351_v60  ;;  %13155 = vmatprep.mubr.msk.f32.mxu1 %vm503_vm0, %v2832_v53 }
 0x3b7   : > { %v3522_v63 = vpop.f32.mrb[66].mxu0 }
 0x3b8   : > { %v10652_v3 = vmin.f32 %v10651_v55, %v3522_v63  ;;  %v4355_v4 = vpop.f32.mrb[66].mxu1  ;;  %v3524_v6 = vpop.f32.mrb[67].mxu0  ;;  %12868 = vmatmul.mubr.msk.f32.gmra.mrb[172].mxu0 %vm503_vm0, %v2832_v53  ;;  %v2840_v63 = vld [vmem:[%s16016_s2 + $0x2f0] sm:$0xff] }
 0x3b9   : > { %v10918_v11 = vmin.f32 %v10917_v58, %v4355_v4  ;;  %v10785_v13 = vmin.f32 %v10784_v59, %v3524_v6  ;;  %v4357_v2 = vpop.f32.mrb[67].mxu1  ;;  %13156 = vmatmul.mubr.msk.f32.gmra.mrb[172].mxu1 %vm503_vm0, %v2832_v53  ;;  %12869 = vmatprep.mubr.msk.f32.mxu0 %vm503_vm0, %v2833_v62 }
 0x3ba   : > { %v11051_v15 = vmin.f32 %v11050_v61, %v4357_v2  ;;  %13157 = vmatprep.mubr.msk.f32.mxu1 %vm503_vm0, %v2833_v62 }
 0x3bb   : > { %v3528_v7 = vpop.f32.mrb[68].mxu0 }
 0x3bc   : > { %v10653_v17 = vmin.f32 %v10652_v3, %v3528_v7  ;;  %v4361_v20 = vpop.f32.mrb[68].mxu1  ;;  %v3530_v21 = vpop.f32.mrb[69].mxu0  ;;  %12870 = vmatmul.mubr.msk.f32.gmra.mrb[174].mxu0 %vm503_vm0, %v2833_v62  ;;  %v2841_v7 = vld [vmem:[%s16016_s2 + $0x2f8] sm:$0xff] }
 0x3bd   : > { %v10919_v22 = vmin.f32 %v10918_v11, %v4361_v20  ;;  %v10786_v23 = vmin.f32 %v10785_v13, %v3530_v21  ;;  %v4363_v24 = vpop.f32.mrb[69].mxu1  ;;  %13158 = vmatmul.mubr.msk.f32.gmra.mrb[174].mxu1 %vm503_vm0, %v2833_v62  ;;  %12871 = vmatprep.mubr.msk.f32.mxu0 %vm503_vm0, %v2834_v16 }
 0x3be   : > { %v11052_v8 = vmin.f32 %v11051_v15, %v4363_v24  ;;  %13159 = vmatprep.mubr.msk.f32.mxu1 %vm503_vm0, %v2834_v16 }
 0x3bf   : > { %v3534_v27 = vpop.f32.mrb[70].mxu0 }
 0x3c0   : > { %v10654_v32 = vmin.f32 %v10653_v17, %v3534_v27  ;;  %v4367_v33 = vpop.f32.mrb[70].mxu1  ;;  %v3536_v12 = vpop.f32.mrb[71].mxu0  ;;  %12872 = vmatmul.mubr.msk.f32.gmra.mrb[176].mxu0 %vm503_vm0, %v2834_v16  ;;  %v2842_v27 = vld [vmem:[%s16016_s2 + $0x300] sm:$0xff] }
 0x3c1   : > { %v10920_v34 = vmin.f32 %v10919_v22, %v4367_v33  ;;  %v10787_v35 = vmin.f32 %v10786_v23, %v3536_v12  ;;  %v4369_v36 = vpop.f32.mrb[71].mxu1  ;;  %13160 = vmatmul.mubr.msk.f32.gmra.mrb[176].mxu1 %vm503_vm0, %v2834_v16  ;;  %12873 = vmatprep.mubr.msk.f32.mxu0 %vm503_vm0, %v2835_v25 }
 0x3c2   : > { %v11053_v37 = vmin.f32 %v11052_v8, %v4369_v36  ;;  %13161 = vmatprep.mubr.msk.f32.mxu1 %vm503_vm0, %v2835_v25 }
 0x3c3   : > { %v3540_v39 = vpop.f32.mrb[72].mxu0 }
 0x3c4   : > { %v10655_v44 = vmin.f32 %v10654_v32, %v3540_v39  ;;  %v4373_v45 = vpop.f32.mrb[72].mxu1  ;;  %v3542_v46 = vpop.f32.mrb[73].mxu0  ;;  %12874 = vmatmul.mubr.msk.f32.gmra.mrb[178].mxu0 %vm503_vm0, %v2835_v25  ;;  %v2843_v39 = vld [vmem:[%s16016_s2 + $0x308] sm:$0xff] }
 0x3c5   : > { %v10921_v47 = vmin.f32 %v10920_v34, %v4373_v45  ;;  %v10788_v48 = vmin.f32 %v10787_v35, %v3542_v46  ;;  %v4375_v49 = vpop.f32.mrb[73].mxu1  ;;  %13162 = vmatmul.mubr.msk.f32.gmra.mrb[178].mxu1 %vm503_vm0, %v2835_v25  ;;  %12875 = vmatprep.mubr.msk.f32.mxu0 %vm503_vm0, %v2836_v38 }
 0x3c6   : > { %v11054_v50 = vmin.f32 %v11053_v37, %v4375_v49  ;;  %13163 = vmatprep.mubr.msk.f32.mxu1 %vm503_vm0, %v2836_v38 }
 0x3c7   : > { %v3546_v0 = vpop.f32.mrb[74].mxu0 }
 0x3c8   : > { %v10656_v9 = vmin.f32 %v10655_v44, %v3546_v0  ;;  %v4379_v10 = vpop.f32.mrb[74].mxu1  ;;  %v3548_v14 = vpop.f32.mrb[75].mxu0  ;;  %12876 = vmatmul.mubr.msk.f32.gmra.mrb[180].mxu0 %vm503_vm0, %v2836_v38  ;;  %v2844_v0 = vld [vmem:[%s16016_s2 + $0x310] sm:$0xff] }
 0x3c9   : > { %v10922_v28 = vmin.f32 %v10921_v47, %v4379_v10  ;;  %v10789_v29 = vmin.f32 %v10788_v48, %v3548_v14  ;;  %v4381_v30 = vpop.f32.mrb[75].mxu1  ;;  %13164 = vmatmul.mubr.msk.f32.gmra.mrb[180].mxu1 %vm503_vm0, %v2836_v38  ;;  %12877 = vmatprep.mubr.msk.f32.mxu0 %vm503_vm0, %v2837_v5 }
 0x3ca   : > { %v11055_v31 = vmin.f32 %v11054_v50, %v4381_v30  ;;  %13165 = vmatprep.mubr.msk.f32.mxu1 %vm503_vm0, %v2837_v5 }
 0x3cb   : > { %v3552_v41 = vpop.f32.mrb[76].mxu0 }
 0x3cc   : > { %v10657_v42 = vmin.f32 %v10656_v9, %v3552_v41  ;;  %v4385_v43 = vpop.f32.mrb[76].mxu1  ;;  %v3554_v26 = vpop.f32.mrb[77].mxu0  ;;  %12878 = vmatmul.mubr.msk.f32.gmra.mrb[182].mxu0 %vm503_vm0, %v2837_v5  ;;  %v2845_v41 = vld [vmem:[%s16016_s2 + $0x318] sm:$0xff] }
 0x3cd   : > { %v10923_v51 = vmin.f32 %v10922_v28, %v4385_v43  ;;  %v10790_v1 = vmin.f32 %v10789_v29, %v3554_v26  ;;  %v4387_v52 = vpop.f32.mrb[77].mxu1  ;;  %13166 = vmatmul.mubr.msk.f32.gmra.mrb[182].mxu1 %vm503_vm0, %v2837_v5  ;;  %12879 = vmatprep.mubr.msk.f32.mxu0 %vm503_vm0, %v2838_v40 }
 0x3ce   : > { %v11056_v53 = vmin.f32 %v11055_v31, %v4387_v52  ;;  %13167 = vmatprep.mubr.msk.f32.mxu1 %vm503_vm0, %v2838_v40 }
 0x3cf   : > { %v3558_v55 = vpop.f32.mrb[78].mxu0 }
 0x3d0   : > { %v10658_v56 = vmin.f32 %v10657_v42, %v3558_v55  ;;  %v4391_v57 = vpop.f32.mrb[78].mxu1  ;;  %v3560_v58 = vpop.f32.mrb[79].mxu0  ;;  %12880 = vmatmul.mubr.msk.f32.gmra.mrb[184].mxu0 %vm503_vm0, %v2838_v40  ;;  %v2846_v55 = vld [vmem:[%s16016_s2 + $0x320] sm:$0xff] }
 0x3d1   : > { %v10924_v59 = vmin.f32 %v10923_v51, %v4391_v57  ;;  %v10791_v60 = vmin.f32 %v10790_v1, %v3560_v58  ;;  %v4393_v61 = vpop.f32.mrb[79].mxu1  ;;  %13168 = vmatmul.mubr.msk.f32.gmra.mrb[184].mxu1 %vm503_vm0, %v2838_v40  ;;  %12881 = vmatprep.mubr.msk.f32.mxu0 %vm503_vm0, %v2839_v54 }
 0x3d2   : > { %v11057_v62 = vmin.f32 %v11056_v53, %v4393_v61  ;;  %13169 = vmatprep.mubr.msk.f32.mxu1 %vm503_vm0, %v2839_v54 }
 0x3d3   : > { %v3564_v3 = vpop.f32.mrb[80].mxu0 }
 0x3d4   : > { %v10659_v4 = vmin.f32 %v10658_v56, %v3564_v3  ;;  %v4397_v6 = vpop.f32.mrb[80].mxu1  ;;  %v3566_v11 = vpop.f32.mrb[81].mxu0  ;;  %12882 = vmatmul.mubr.msk.f32.gmra.mrb[186].mxu0 %vm503_vm0, %v2839_v54  ;;  %v2847_v3 = vld [vmem:[%s16016_s2 + $0x328] sm:$0xff] }
 0x3d5   : > { %v10925_v13 = vmin.f32 %v10924_v59, %v4397_v6  ;;  %v10792_v2 = vmin.f32 %v10791_v60, %v3566_v11  ;;  %v4399_v15 = vpop.f32.mrb[81].mxu1  ;;  %13170 = vmatmul.mubr.msk.f32.gmra.mrb[186].mxu1 %vm503_vm0, %v2839_v54  ;;  %12883 = vmatprep.mubr.msk.f32.mxu0 %vm503_vm0, %v2840_v63 }
 0x3d6   : > { %v11058_v16 = vmin.f32 %v11057_v62, %v4399_v15  ;;  %13171 = vmatprep.mubr.msk.f32.mxu1 %vm503_vm0, %v2840_v63 }
 0x3d7   : > { %v3570_v17 = vpop.f32.mrb[82].mxu0 }
 0x3d8   : > { %v10660_v20 = vmin.f32 %v10659_v4, %v3570_v17  ;;  %v4403_v21 = vpop.f32.mrb[82].mxu1  ;;  %v3572_v22 = vpop.f32.mrb[83].mxu0  ;;  %12884 = vmatmul.mubr.msk.f32.gmra.mrb[188].mxu0 %vm503_vm0, %v2840_v63  ;;  %v2848_v17 = vld [vmem:[%s16016_s2 + $0x330] sm:$0xff] }
 0x3d9   : > { %v10926_v23 = vmin.f32 %v10925_v13, %v4403_v21  ;;  %v10793_v24 = vmin.f32 %v10792_v2, %v3572_v22  ;;  %v4405_v8 = vpop.f32.mrb[83].mxu1  ;;  %13172 = vmatmul.mubr.msk.f32.gmra.mrb[188].mxu1 %vm503_vm0, %v2840_v63  ;;  %12885 = vmatprep.mubr.msk.f32.mxu0 %vm503_vm0, %v2841_v7 }
 0x3da   : > { %v11059_v25 = vmin.f32 %v11058_v16, %v4405_v8  ;;  %13173 = vmatprep.mubr.msk.f32.mxu1 %vm503_vm0, %v2841_v7 }
 0x3db   : > { %v3576_v32 = vpop.f32.mrb[84].mxu0 }
 0x3dc   : > { %v10661_v33 = vmin.f32 %v10660_v20, %v3576_v32  ;;  %v4409_v12 = vpop.f32.mrb[84].mxu1  ;;  %v3578_v34 = vpop.f32.mrb[85].mxu0  ;;  %12886 = vmatmul.mubr.msk.f32.gmra.mrb[190].mxu0 %vm503_vm0, %v2841_v7  ;;  %v2849_v32 = vld [vmem:[%s16016_s2 + $0x338] sm:$0xff] }
 0x3dd   : > { %v10927_v35 = vmin.f32 %v10926_v23, %v4409_v12  ;;  %v10794_v36 = vmin.f32 %v10793_v24, %v3578_v34  ;;  %v4411_v37 = vpop.f32.mrb[85].mxu1  ;;  %13174 = vmatmul.mubr.msk.f32.gmra.mrb[190].mxu1 %vm503_vm0, %v2841_v7  ;;  %12887 = vmatprep.mubr.msk.f32.mxu0 %vm503_vm0, %v2842_v27 }
 0x3de   : > { %v11060_v38 = vmin.f32 %v11059_v25, %v4411_v37  ;;  %13175 = vmatprep.mubr.msk.f32.mxu1 %vm503_vm0, %v2842_v27 }
 0x3df   : > { %v3582_v44 = vpop.f32.mrb[86].mxu0 }
 0x3e0   : > { %v10662_v45 = vmin.f32 %v10661_v33, %v3582_v44  ;;  %v4415_v46 = vpop.f32.mrb[86].mxu1  ;;  %v3584_v47 = vpop.f32.mrb[87].mxu0  ;;  %12888 = vmatmul.mubr.msk.f32.gmra.mrb[192].mxu0 %vm503_vm0, %v2842_v27  ;;  %v2850_v44 = vld [vmem:[%s16016_s2 + $0x340] sm:$0xff] }
 0x3e1   : > { %v10928_v48 = vmin.f32 %v10927_v35, %v4415_v46  ;;  %v10795_v49 = vmin.f32 %v10794_v36, %v3584_v47  ;;  %v4417_v50 = vpop.f32.mrb[87].mxu1  ;;  %13176 = vmatmul.mubr.msk.f32.gmra.mrb[192].mxu1 %vm503_vm0, %v2842_v27  ;;  %12889 = vmatprep.mubr.msk.f32.mxu0 %vm503_vm0, %v2843_v39 }
 0x3e2   : > { %v11061_v5 = vmin.f32 %v11060_v38, %v4417_v50  ;;  %13177 = vmatprep.mubr.msk.f32.mxu1 %vm503_vm0, %v2843_v39 }
 0x3e3   : > { %v3588_v9 = vpop.f32.mrb[88].mxu0 }
 0x3e4   : > { %v10663_v10 = vmin.f32 %v10662_v45, %v3588_v9  ;;  %v4421_v14 = vpop.f32.mrb[88].mxu1  ;;  %v3590_v28 = vpop.f32.mrb[89].mxu0  ;;  %12890 = vmatmul.mubr.msk.f32.gmra.mrb[194].mxu0 %vm503_vm0, %v2843_v39  ;;  %v2851_v9 = vld [vmem:[%s16016_s2 + $0x348] sm:$0xff] }
 0x3e5   : > { %v10929_v29 = vmin.f32 %v10928_v48, %v4421_v14  ;;  %v10796_v30 = vmin.f32 %v10795_v49, %v3590_v28  ;;  %v4423_v31 = vpop.f32.mrb[89].mxu1  ;;  %13178 = vmatmul.mubr.msk.f32.gmra.mrb[194].mxu1 %vm503_vm0, %v2843_v39  ;;  %12891 = vmatprep.mubr.msk.f32.mxu0 %vm503_vm0, %v2844_v0 }
 0x3e6   : > { %v11062_v40 = vmin.f32 %v11061_v5, %v4423_v31  ;;  %13179 = vmatprep.mubr.msk.f32.mxu1 %vm503_vm0, %v2844_v0 }
 0x3e7   : > { %v3594_v42 = vpop.f32.mrb[90].mxu0 }
 0x3e8   : > { %v10664_v43 = vmin.f32 %v10663_v10, %v3594_v42  ;;  %v4427_v26 = vpop.f32.mrb[90].mxu1  ;;  %v3596_v51 = vpop.f32.mrb[91].mxu0  ;;  %12892 = vmatmul.mubr.msk.f32.gmra.mrb[196].mxu0 %vm503_vm0, %v2844_v0  ;;  %v2852_v42 = vld [vmem:[%s16016_s2 + $0x350] sm:$0xff] }
 0x3e9   : > { %v10930_v1 = vmin.f32 %v10929_v29, %v4427_v26  ;;  %v10797_v52 = vmin.f32 %v10796_v30, %v3596_v51  ;;  %v4429_v53 = vpop.f32.mrb[91].mxu1  ;;  %13180 = vmatmul.mubr.msk.f32.gmra.mrb[196].mxu1 %vm503_vm0, %v2844_v0  ;;  %12893 = vmatprep.mubr.msk.f32.mxu0 %vm503_vm0, %v2845_v41 }
 0x3ea   : > { %v11063_v54 = vmin.f32 %v11062_v40, %v4429_v53  ;;  %13181 = vmatprep.mubr.msk.f32.mxu1 %vm503_vm0, %v2845_v41 }
 0x3eb   : > { %v3600_v56 = vpop.f32.mrb[92].mxu0 }
 0x3ec   : > { %v10665_v57 = vmin.f32 %v10664_v43, %v3600_v56  ;;  %v4433_v58 = vpop.f32.mrb[92].mxu1  ;;  %v3602_v59 = vpop.f32.mrb[93].mxu0  ;;  %12894 = vmatmul.mubr.msk.f32.gmra.mrb[198].mxu0 %vm503_vm0, %v2845_v41  ;;  %v2853_v56 = vld [vmem:[%s16016_s2 + $0x358] sm:$0xff] }
 0x3ed   : > { %v10931_v60 = vmin.f32 %v10930_v1, %v4433_v58  ;;  %v10798_v61 = vmin.f32 %v10797_v52, %v3602_v59  ;;  %v4435_v62 = vpop.f32.mrb[93].mxu1  ;;  %13182 = vmatmul.mubr.msk.f32.gmra.mrb[198].mxu1 %vm503_vm0, %v2845_v41  ;;  %12895 = vmatprep.mubr.msk.f32.mxu0 %vm503_vm0, %v2846_v55 }
 0x3ee   : > { %v11064_v63 = vmin.f32 %v11063_v54, %v4435_v62  ;;  %13183 = vmatprep.mubr.msk.f32.mxu1 %vm503_vm0, %v2846_v55 }
 0x3ef   : > { %v3606_v4 = vpop.f32.mrb[94].mxu0 }
 0x3f0   : > { %v10666_v6 = vmin.f32 %v10665_v57, %v3606_v4  ;;  %v4439_v11 = vpop.f32.mrb[94].mxu1  ;;  %v3608_v13 = vpop.f32.mrb[95].mxu0  ;;  %12896 = vmatmul.mubr.msk.f32.gmra.mrb[200].mxu0 %vm503_vm0, %v2846_v55  ;;  %v2854_v4 = vld [vmem:[%s16016_s2 + $0x360] sm:$0xff] }
 0x3f1   : > { %v10932_v2 = vmin.f32 %v10931_v60, %v4439_v11  ;;  %v10799_v15 = vmin.f32 %v10798_v61, %v3608_v13  ;;  %v4441_v16 = vpop.f32.mrb[95].mxu1  ;;  %13184 = vmatmul.mubr.msk.f32.gmra.mrb[200].mxu1 %vm503_vm0, %v2846_v55  ;;  %12897 = vmatprep.mubr.msk.f32.mxu0 %vm503_vm0, %v2847_v3 }
 0x3f2   : > { %v11065_v7 = vmin.f32 %v11064_v63, %v4441_v16  ;;  %13185 = vmatprep.mubr.msk.f32.mxu1 %vm503_vm0, %v2847_v3 }
 0x3f3   : > { %v3612_v20 = vpop.f32.mrb[96].mxu0 }
 0x3f4   : > { %v10667_v21 = vmin.f32 %v10666_v6, %v3612_v20  ;;  %v4445_v22 = vpop.f32.mrb[96].mxu1  ;;  %v3614_v23 = vpop.f32.mrb[97].mxu0  ;;  %12898 = vmatmul.mubr.msk.f32.gmra.mrb[202].mxu0 %vm503_vm0, %v2847_v3  ;;  %v2855_v20 = vld [vmem:[%s16016_s2 + $0x368] sm:$0xff] }
 0x3f5   : > { %v10933_v24 = vmin.f32 %v10932_v2, %v4445_v22  ;;  %v10800_v8 = vmin.f32 %v10799_v15, %v3614_v23  ;;  %v4447_v25 = vpop.f32.mrb[97].mxu1  ;;  %13186 = vmatmul.mubr.msk.f32.gmra.mrb[202].mxu1 %vm503_vm0, %v2847_v3  ;;  %12899 = vmatprep.mubr.msk.f32.mxu0 %vm503_vm0, %v2848_v17 }
 0x3f6   : > { %v11066_v27 = vmin.f32 %v11065_v7, %v4447_v25  ;;  %13187 = vmatprep.mubr.msk.f32.mxu1 %vm503_vm0, %v2848_v17 }
 0x3f7   : > { %v3618_v33 = vpop.f32.mrb[98].mxu0 }
 0x3f8   : > { %v10668_v12 = vmin.f32 %v10667_v21, %v3618_v33  ;;  %v4451_v34 = vpop.f32.mrb[98].mxu1  ;;  %v3620_v35 = vpop.f32.mrb[99].mxu0  ;;  %12900 = vmatmul.mubr.msk.f32.gmra.mrb[204].mxu0 %vm503_vm0, %v2848_v17  ;;  %v2856_v33 = vld [vmem:[%s16016_s2 + $0x370] sm:$0xff] }
 0x3f9   : > { %v10934_v36 = vmin.f32 %v10933_v24, %v4451_v34  ;;  %v10801_v37 = vmin.f32 %v10800_v8, %v3620_v35  ;;  %v4453_v38 = vpop.f32.mrb[99].mxu1  ;;  %13188 = vmatmul.mubr.msk.f32.gmra.mrb[204].mxu1 %vm503_vm0, %v2848_v17  ;;  %12901 = vmatprep.mubr.msk.f32.mxu0 %vm503_vm0, %v2849_v32 }
 0x3fa   : > { %v11067_v39 = vmin.f32 %v11066_v27, %v4453_v38  ;;  %13189 = vmatprep.mubr.msk.f32.mxu1 %vm503_vm0, %v2849_v32 }
 0x3fb   : > { %v3624_v45 = vpop.f32.mrb[100].mxu0 }
 0x3fc   : > { %v10669_v46 = vmin.f32 %v10668_v12, %v3624_v45  ;;  %v4457_v47 = vpop.f32.mrb[100].mxu1  ;;  %v3626_v48 = vpop.f32.mrb[101].mxu0  ;;  %12902 = vmatmul.mubr.msk.f32.gmra.mrb[206].mxu0 %vm503_vm0, %v2849_v32  ;;  %v2857_v45 = vld [vmem:[%s16016_s2 + $0x378] sm:$0xff] }
 0x3fd   : > { %v10935_v49 = vmin.f32 %v10934_v36, %v4457_v47  ;;  %v10802_v50 = vmin.f32 %v10801_v37, %v3626_v48  ;;  %v4459_v5 = vpop.f32.mrb[101].mxu1  ;;  %13190 = vmatmul.mubr.msk.f32.gmra.mrb[206].mxu1 %vm503_vm0, %v2849_v32  ;;  %12903 = vmatprep.mubr.msk.f32.mxu0 %vm503_vm0, %v2850_v44 }
 0x3fe   : > { %v11068_v0 = vmin.f32 %v11067_v39, %v4459_v5  ;;  %13191 = vmatprep.mubr.msk.f32.mxu1 %vm503_vm0, %v2850_v44 }
 0x3ff   : > { %v3630_v10 = vpop.f32.mrb[102].mxu0 }
 0x400   : > { %v10670_v14 = vmin.f32 %v10669_v46, %v3630_v10  ;;  %v4463_v28 = vpop.f32.mrb[102].mxu1  ;;  %v3632_v29 = vpop.f32.mrb[103].mxu0  ;;  %12904 = vmatmul.mubr.msk.f32.gmra.mrb[208].mxu0 %vm503_vm0, %v2850_v44  ;;  %v2858_v10 = vld [vmem:[%s16016_s2 + $0x380] sm:$0xff] }
 0x401   : > { %v10936_v30 = vmin.f32 %v10935_v49, %v4463_v28  ;;  %v10803_v31 = vmin.f32 %v10802_v50, %v3632_v29  ;;  %v4465_v40 = vpop.f32.mrb[103].mxu1  ;;  %13192 = vmatmul.mubr.msk.f32.gmra.mrb[208].mxu1 %vm503_vm0, %v2850_v44  ;;  %12905 = vmatprep.mubr.msk.f32.mxu0 %vm503_vm0, %v2851_v9 }
 0x402   : > { %v11069_v41 = vmin.f32 %v11068_v0, %v4465_v40  ;;  %13193 = vmatprep.mubr.msk.f32.mxu1 %vm503_vm0, %v2851_v9 }
 0x403   : > { %v3636_v43 = vpop.f32.mrb[104].mxu0 }
 0x404   : > { %v10671_v26 = vmin.f32 %v10670_v14, %v3636_v43  ;;  %v4469_v51 = vpop.f32.mrb[104].mxu1  ;;  %v3638_v1 = vpop.f32.mrb[105].mxu0  ;;  %12906 = vmatmul.mubr.msk.f32.gmra.mrb[210].mxu0 %vm503_vm0, %v2851_v9  ;;  %v2859_v43 = vld [vmem:[%s16016_s2 + $0x388] sm:$0xff] }
 0x405   : > { %v10937_v52 = vmin.f32 %v10936_v30, %v4469_v51  ;;  %v10804_v53 = vmin.f32 %v10803_v31, %v3638_v1  ;;  %v4471_v54 = vpop.f32.mrb[105].mxu1  ;;  %13194 = vmatmul.mubr.msk.f32.gmra.mrb[210].mxu1 %vm503_vm0, %v2851_v9  ;;  %12907 = vmatprep.mubr.msk.f32.mxu0 %vm503_vm0, %v2852_v42 }
 0x406   : > { %v11070_v55 = vmin.f32 %v11069_v41, %v4471_v54  ;;  %13195 = vmatprep.mubr.msk.f32.mxu1 %vm503_vm0, %v2852_v42 }
 0x407   : > { %v3642_v57 = vpop.f32.mrb[106].mxu0 }
 0x408   : > { %v10672_v58 = vmin.f32 %v10671_v26, %v3642_v57  ;;  %v4475_v59 = vpop.f32.mrb[106].mxu1  ;;  %v3644_v60 = vpop.f32.mrb[107].mxu0  ;;  %12908 = vmatmul.mubr.msk.f32.gmra.mrb[212].mxu0 %vm503_vm0, %v2852_v42  ;;  %v2860_v57 = vld [vmem:[%s16016_s2 + $0x390] sm:$0xff] }
 0x409   : > { %v10938_v61 = vmin.f32 %v10937_v52, %v4475_v59  ;;  %v10805_v62 = vmin.f32 %v10804_v53, %v3644_v60  ;;  %v4477_v63 = vpop.f32.mrb[107].mxu1  ;;  %13196 = vmatmul.mubr.msk.f32.gmra.mrb[212].mxu1 %vm503_vm0, %v2852_v42  ;;  %12909 = vmatprep.mubr.msk.f32.mxu0 %vm503_vm0, %v2853_v56 }
 0x40a   : > { %v11071_v3 = vmin.f32 %v11070_v55, %v4477_v63  ;;  %13197 = vmatprep.mubr.msk.f32.mxu1 %vm503_vm0, %v2853_v56 }
 0x40b   : > { %v3648_v6 = vpop.f32.mrb[108].mxu0 }
 0x40c   : > { %v10673_v11 = vmin.f32 %v10672_v58, %v3648_v6  ;;  %v4481_v13 = vpop.f32.mrb[108].mxu1  ;;  %v3650_v2 = vpop.f32.mrb[109].mxu0  ;;  %12910 = vmatmul.mubr.msk.f32.gmra.mrb[214].mxu0 %vm503_vm0, %v2853_v56  ;;  %v2861_v6 = vld [vmem:[%s16016_s2 + $0x398] sm:$0xff] }
 0x40d   : > { %v10939_v15 = vmin.f32 %v10938_v61, %v4481_v13  ;;  %v10806_v16 = vmin.f32 %v10805_v62, %v3650_v2  ;;  %v4483_v7 = vpop.f32.mrb[109].mxu1  ;;  %13198 = vmatmul.mubr.msk.f32.gmra.mrb[214].mxu1 %vm503_vm0, %v2853_v56  ;;  %12911 = vmatprep.mubr.msk.f32.mxu0 %vm503_vm0, %v2854_v4 }
 0x40e   : > { %v11072_v17 = vmin.f32 %v11071_v3, %v4483_v7  ;;  %13199 = vmatprep.mubr.msk.f32.mxu1 %vm503_vm0, %v2854_v4 }
 0x40f   : > { %v3654_v21 = vpop.f32.mrb[110].mxu0 }
 0x410   : > { %v10674_v22 = vmin.f32 %v10673_v11, %v3654_v21  ;;  %v4487_v23 = vpop.f32.mrb[110].mxu1  ;;  %v3656_v24 = vpop.f32.mrb[111].mxu0  ;;  %12912 = vmatmul.mubr.msk.f32.gmra.mrb[216].mxu0 %vm503_vm0, %v2854_v4  ;;  %v2862_v21 = vld [vmem:[%s16016_s2 + $0x3a0] sm:$0xff] }
 0x411   : > { %v10940_v8 = vmin.f32 %v10939_v15, %v4487_v23  ;;  %v10807_v25 = vmin.f32 %v10806_v16, %v3656_v24  ;;  %v4489_v27 = vpop.f32.mrb[111].mxu1  ;;  %13200 = vmatmul.mubr.msk.f32.gmra.mrb[216].mxu1 %vm503_vm0, %v2854_v4  ;;  %12913 = vmatprep.mubr.msk.f32.mxu0 %vm503_vm0, %v2855_v20 }
 0x412   : > { %v11073_v32 = vmin.f32 %v11072_v17, %v4489_v27  ;;  %13201 = vmatprep.mubr.msk.f32.mxu1 %vm503_vm0, %v2855_v20 }
 0x413   : > { %v3660_v12 = vpop.f32.mrb[112].mxu0 }
 0x414   : > { %v10675_v34 = vmin.f32 %v10674_v22, %v3660_v12  ;;  %v4493_v35 = vpop.f32.mrb[112].mxu1  ;;  %v3662_v36 = vpop.f32.mrb[113].mxu0  ;;  %12914 = vmatmul.mubr.msk.f32.gmra.mrb[218].mxu0 %vm503_vm0, %v2855_v20  ;;  %v2863_v12 = vld [vmem:[%s16016_s2 + $0x3a8] sm:$0xff] }
 0x415   : > { %v10941_v37 = vmin.f32 %v10940_v8, %v4493_v35  ;;  %v10808_v38 = vmin.f32 %v10807_v25, %v3662_v36  ;;  %v4495_v39 = vpop.f32.mrb[113].mxu1  ;;  %13202 = vmatmul.mubr.msk.f32.gmra.mrb[218].mxu1 %vm503_vm0, %v2855_v20  ;;  %12915 = vmatprep.mubr.msk.f32.mxu0 %vm503_vm0, %v2856_v33 }
 0x416   : > { %v11074_v44 = vmin.f32 %v11073_v32, %v4495_v39  ;;  %13203 = vmatprep.mubr.msk.f32.mxu1 %vm503_vm0, %v2856_v33 }
 0x417   : > { %v3666_v46 = vpop.f32.mrb[114].mxu0 }
 0x418   : > { %v10676_v47 = vmin.f32 %v10675_v34, %v3666_v46  ;;  %v4499_v48 = vpop.f32.mrb[114].mxu1  ;;  %v3668_v49 = vpop.f32.mrb[115].mxu0  ;;  %12916 = vmatmul.mubr.msk.f32.gmra.mrb[220].mxu0 %vm503_vm0, %v2856_v33  ;;  %v2864_v46 = vld [vmem:[%s16016_s2 + $0x3b0] sm:$0xff] }
 0x419   : > { %v10942_v50 = vmin.f32 %v10941_v37, %v4499_v48  ;;  %v10809_v5 = vmin.f32 %v10808_v38, %v3668_v49  ;;  %v4501_v0 = vpop.f32.mrb[115].mxu1  ;;  %13204 = vmatmul.mubr.msk.f32.gmra.mrb[220].mxu1 %vm503_vm0, %v2856_v33  ;;  %12917 = vmatprep.mubr.msk.f32.mxu0 %vm503_vm0, %v2857_v45 }
 0x41a   : > { %v11075_v9 = vmin.f32 %v11074_v44, %v4501_v0  ;;  %13205 = vmatprep.mubr.msk.f32.mxu1 %vm503_vm0, %v2857_v45 }
 0x41b   : > { %v3672_v14 = vpop.f32.mrb[116].mxu0 }
 0x41c   : > { %v10677_v28 = vmin.f32 %v10676_v47, %v3672_v14  ;;  %v4505_v29 = vpop.f32.mrb[116].mxu1  ;;  %v3674_v30 = vpop.f32.mrb[117].mxu0  ;;  %12918 = vmatmul.mubr.msk.f32.gmra.mrb[222].mxu0 %vm503_vm0, %v2857_v45  ;;  %v2865_v14 = vld [vmem:[%s16016_s2 + $0x3b8] sm:$0xff] }
 0x41d   : > { %v10943_v31 = vmin.f32 %v10942_v50, %v4505_v29  ;;  %v10810_v40 = vmin.f32 %v10809_v5, %v3674_v30  ;;  %v4507_v41 = vpop.f32.mrb[117].mxu1  ;;  %13206 = vmatmul.mubr.msk.f32.gmra.mrb[222].mxu1 %vm503_vm0, %v2857_v45  ;;  %12919 = vmatprep.mubr.msk.f32.mxu0 %vm503_vm0, %v2858_v10 }
 0x41e   : > { %v11076_v42 = vmin.f32 %v11075_v9, %v4507_v41  ;;  %13207 = vmatprep.mubr.msk.f32.mxu1 %vm503_vm0, %v2858_v10 }
 0x41f   : > { %v3678_v26 = vpop.f32.mrb[118].mxu0 }
 0x420   : > { %v10678_v51 = vmin.f32 %v10677_v28, %v3678_v26  ;;  %v4511_v1 = vpop.f32.mrb[118].mxu1  ;;  %v3680_v52 = vpop.f32.mrb[119].mxu0  ;;  %12920 = vmatmul.mubr.msk.f32.gmra.mrb[224].mxu0 %vm503_vm0, %v2858_v10  ;;  %v2866_v26 = vld [vmem:[%s16016_s2 + $0x3c0] sm:$0xff] }
 0x421   : > { %v10944_v53 = vmin.f32 %v10943_v31, %v4511_v1  ;;  %v10811_v54 = vmin.f32 %v10810_v40, %v3680_v52  ;;  %v4513_v55 = vpop.f32.mrb[119].mxu1  ;;  %13208 = vmatmul.mubr.msk.f32.gmra.mrb[224].mxu1 %vm503_vm0, %v2858_v10  ;;  %12921 = vmatprep.mubr.msk.f32.mxu0 %vm503_vm0, %v2859_v43 }
 0x422   : > { %v11077_v56 = vmin.f32 %v11076_v42, %v4513_v55  ;;  %13209 = vmatprep.mubr.msk.f32.mxu1 %vm503_vm0, %v2859_v43 }
 0x423   : > { %v3684_v58 = vpop.f32.mrb[120].mxu0 }
 0x424   : > { %v10679_v59 = vmin.f32 %v10678_v51, %v3684_v58  ;;  %v4517_v60 = vpop.f32.mrb[120].mxu1  ;;  %v3686_v61 = vpop.f32.mrb[121].mxu0  ;;  %12922 = vmatmul.mubr.msk.f32.gmra.mrb[226].mxu0 %vm503_vm0, %v2859_v43  ;;  %v2867_v58 = vld [vmem:[%s16016_s2 + $0x3c8] sm:$0xff] }
 0x425   : > { %v10945_v62 = vmin.f32 %v10944_v53, %v4517_v60  ;;  %v10812_v63 = vmin.f32 %v10811_v54, %v3686_v61  ;;  %v4519_v3 = vpop.f32.mrb[121].mxu1  ;;  %13210 = vmatmul.mubr.msk.f32.gmra.mrb[226].mxu1 %vm503_vm0, %v2859_v43  ;;  %12923 = vmatprep.mubr.msk.f32.mxu0 %vm503_vm0, %v2860_v57 }
 0x426   : > { %v11078_v4 = vmin.f32 %v11077_v56, %v4519_v3  ;;  %13211 = vmatprep.mubr.msk.f32.mxu1 %vm503_vm0, %v2860_v57 }
 0x427   : > { %v3690_v11 = vpop.f32.mrb[122].mxu0 }
 0x428   : > { %v10680_v13 = vmin.f32 %v10679_v59, %v3690_v11  ;;  %v4523_v2 = vpop.f32.mrb[122].mxu1  ;;  %v3692_v15 = vpop.f32.mrb[123].mxu0  ;;  %12924 = vmatmul.mubr.msk.f32.gmra.mrb[228].mxu0 %vm503_vm0, %v2860_v57  ;;  %v2868_v11 = vld [vmem:[%s16016_s2 + $0x3d0] sm:$0xff] }
 0x429   : > { %v10946_v16 = vmin.f32 %v10945_v62, %v4523_v2  ;;  %v10813_v7 = vmin.f32 %v10812_v63, %v3692_v15  ;;  %v4525_v17 = vpop.f32.mrb[123].mxu1  ;;  %13212 = vmatmul.mubr.msk.f32.gmra.mrb[228].mxu1 %vm503_vm0, %v2860_v57  ;;  %12925 = vmatprep.mubr.msk.f32.mxu0 %vm503_vm0, %v2861_v6 }
 0x42a   : > { %v11079_v20 = vmin.f32 %v11078_v4, %v4525_v17  ;;  %13213 = vmatprep.mubr.msk.f32.mxu1 %vm503_vm0, %v2861_v6 }
 0x42b   : > { %v3696_v22 = vpop.f32.mrb[124].mxu0 }
 0x42c   : > { %v10681_v23 = vmin.f32 %v10680_v13, %v3696_v22  ;;  %v4529_v24 = vpop.f32.mrb[124].mxu1  ;;  %v3698_v8 = vpop.f32.mrb[125].mxu0  ;;  %12926 = vmatmul.mubr.msk.f32.gmra.mrb[230].mxu0 %vm503_vm0, %v2861_v6  ;;  %v2869_v22 = vld [vmem:[%s16016_s2 + $0x3d8] sm:$0xff] }
 0x42d   : > { %v10947_v25 = vmin.f32 %v10946_v16, %v4529_v24  ;;  %v10814_v27 = vmin.f32 %v10813_v7, %v3698_v8  ;;  %v4531_v32 = vpop.f32.mrb[125].mxu1  ;;  %13214 = vmatmul.mubr.msk.f32.gmra.mrb[230].mxu1 %vm503_vm0, %v2861_v6  ;;  %12927 = vmatprep.mubr.msk.f32.mxu0 %vm503_vm0, %v2862_v21 }
 0x42e   : > { %v11080_v33 = vmin.f32 %v11079_v20, %v4531_v32  ;;  %13215 = vmatprep.mubr.msk.f32.mxu1 %vm503_vm0, %v2862_v21 }
 0x42f   : > { %v3702_v34 = vpop.f32.mrb[126].mxu0 }
 0x430   : > { %v10682_v35 = vmin.f32 %v10681_v23, %v3702_v34  ;;  %v4535_v36 = vpop.f32.mrb[126].mxu1  ;;  %v3704_v37 = vpop.f32.mrb[127].mxu0  ;;  %12928 = vmatmul.mubr.msk.f32.gmra.mrb[232].mxu0 %vm503_vm0, %v2862_v21  ;;  %v2870_v34 = vld [vmem:[%s16016_s2 + $0x3e0] sm:$0xff] }
 0x431   : > { %v10948_v38 = vmin.f32 %v10947_v25, %v4535_v36  ;;  %v10815_v39 = vmin.f32 %v10814_v27, %v3704_v37  ;;  %v4537_v44 = vpop.f32.mrb[127].mxu1  ;;  %13216 = vmatmul.mubr.msk.f32.gmra.mrb[232].mxu1 %vm503_vm0, %v2862_v21  ;;  %12929 = vmatprep.mubr.msk.f32.mxu0 %vm503_vm0, %v2863_v12 }
 0x432   : > { %v11081_v45 = vmin.f32 %v11080_v33, %v4537_v44  ;;  %13217 = vmatprep.mubr.msk.f32.mxu1 %vm503_vm0, %v2863_v12 }
 0x433   : > { %v3708_v47 = vpop.f32.mrb[128].mxu0 }
 0x434   : > { %v10683_v48 = vmin.f32 %v10682_v35, %v3708_v47  ;;  %v4541_v49 = vpop.f32.mrb[128].mxu1  ;;  %v3710_v50 = vpop.f32.mrb[129].mxu0  ;;  %12930 = vmatmul.mubr.msk.f32.gmra.mrb[234].mxu0 %vm503_vm0, %v2863_v12  ;;  %v2871_v47 = vld [vmem:[%s16016_s2 + $0x3e8] sm:$0xff] }
 0x435   : > { %v10949_v5 = vmin.f32 %v10948_v38, %v4541_v49  ;;  %v10816_v0 = vmin.f32 %v10815_v39, %v3710_v50  ;;  %v4543_v9 = vpop.f32.mrb[129].mxu1  ;;  %13218 = vmatmul.mubr.msk.f32.gmra.mrb[234].mxu1 %vm503_vm0, %v2863_v12  ;;  %12931 = vmatprep.mubr.msk.f32.mxu0 %vm503_vm0, %v2864_v46 }
 0x436   : > { %v11082_v10 = vmin.f32 %v11081_v45, %v4543_v9  ;;  %13219 = vmatprep.mubr.msk.f32.mxu1 %vm503_vm0, %v2864_v46 }
 0x437   : > { %v3714_v28 = vpop.f32.mrb[130].mxu0 }
 0x438   : > { %v10684_v29 = vmin.f32 %v10683_v48, %v3714_v28  ;;  %v4547_v30 = vpop.f32.mrb[130].mxu1  ;;  %v3716_v31 = vpop.f32.mrb[131].mxu0  ;;  %12932 = vmatmul.mubr.msk.f32.gmra.mrb[236].mxu0 %vm503_vm0, %v2864_v46  ;;  %v2872_v28 = vld [vmem:[%s16016_s2 + $0x3f0] sm:$0xff] }
 0x439   : > { %v10950_v40 = vmin.f32 %v10949_v5, %v4547_v30  ;;  %v10817_v41 = vmin.f32 %v10816_v0, %v3716_v31  ;;  %v4549_v42 = vpop.f32.mrb[131].mxu1  ;;  %13220 = vmatmul.mubr.msk.f32.gmra.mrb[236].mxu1 %vm503_vm0, %v2864_v46  ;;  %12933 = vmatprep.mubr.msk.f32.mxu0 %vm503_vm0, %v2865_v14 }
 0x43a   : > { %v11083_v43 = vmin.f32 %v11082_v10, %v4549_v42  ;;  %13221 = vmatprep.mubr.msk.f32.mxu1 %vm503_vm0, %v2865_v14 }
 0x43b   : > { %v3720_v51 = vpop.f32.mrb[132].mxu0 }
 0x43c   : > { %v10685_v1 = vmin.f32 %v10684_v29, %v3720_v51  ;;  %v4553_v52 = vpop.f32.mrb[132].mxu1  ;;  %v3722_v53 = vpop.f32.mrb[133].mxu0  ;;  %12934 = vmatmul.mubr.msk.f32.gmra.mrb[238].mxu0 %vm503_vm0, %v2865_v14  ;;  %v2873_v51 = vld [vmem:[%s16016_s2 + $0x3f8] sm:$0xff] }
 0x43d   : > { %v10951_v54 = vmin.f32 %v10950_v40, %v4553_v52  ;;  %v10818_v55 = vmin.f32 %v10817_v41, %v3722_v53  ;;  %v4555_v56 = vpop.f32.mrb[133].mxu1  ;;  %13222 = vmatmul.mubr.msk.f32.gmra.mrb[238].mxu1 %vm503_vm0, %v2865_v14  ;;  %12935 = vmatprep.mubr.msk.f32.mxu0 %vm503_vm0, %v2866_v26 }
 0x43e   : > { %v11084_v57 = vmin.f32 %v11083_v43, %v4555_v56  ;;  %13223 = vmatprep.mubr.msk.f32.mxu1 %vm503_vm0, %v2866_v26 }
 0x43f   : > { %v3726_v59 = vpop.f32.mrb[134].mxu0 }
 0x440   : > { %v10686_v60 = vmin.f32 %v10685_v1, %v3726_v59  ;;  %v4559_v61 = vpop.f32.mrb[134].mxu1  ;;  %v3728_v62 = vpop.f32.mrb[135].mxu0  ;;  %12936 = vmatmul.mubr.msk.f32.gmra.mrb[240].mxu0 %vm503_vm0, %v2866_v26 }
 0x441   : > { %v10952_v63 = vmin.f32 %v10951_v54, %v4559_v61  ;;  %v10819_v3 = vmin.f32 %v10818_v55, %v3728_v62  ;;  %v4561_v4 = vpop.f32.mrb[135].mxu1  ;;  %13224 = vmatmul.mubr.msk.f32.gmra.mrb[240].mxu1 %vm503_vm0, %v2866_v26  ;;  %12937 = vmatprep.mubr.msk.f32.mxu0 %vm503_vm0, %v2867_v58 }
 0x442   : > { %v11085_v6 = vmin.f32 %v11084_v57, %v4561_v4  ;;  %13225 = vmatprep.mubr.msk.f32.mxu1 %vm503_vm0, %v2867_v58 }
 0x443   : > { %v3732_v13 = vpop.f32.mrb[136].mxu0 }
 0x444   : > { %v10687_v2 = vmin.f32 %v10686_v60, %v3732_v13  ;;  %v4565_v15 = vpop.f32.mrb[136].mxu1  ;;  %v3734_v16 = vpop.f32.mrb[137].mxu0  ;;  %12938 = vmatmul.mubr.msk.f32.gmra.mrb[242].mxu0 %vm503_vm0, %v2867_v58 }
 0x445   : > { %v10953_v7 = vmin.f32 %v10952_v63, %v4565_v15  ;;  %v10820_v17 = vmin.f32 %v10819_v3, %v3734_v16  ;;  %v4567_v20 = vpop.f32.mrb[137].mxu1  ;;  %13226 = vmatmul.mubr.msk.f32.gmra.mrb[242].mxu1 %vm503_vm0, %v2867_v58  ;;  %12939 = vmatprep.mubr.msk.f32.mxu0 %vm503_vm0, %v2868_v11 }
 0x446   : > { %v11086_v21 = vmin.f32 %v11085_v6, %v4567_v20  ;;  %13227 = vmatprep.mubr.msk.f32.mxu1 %vm503_vm0, %v2868_v11 }
 0x447   : > { %v3738_v23 = vpop.f32.mrb[138].mxu0 }
 0x448   : > { %v10688_v24 = vmin.f32 %v10687_v2, %v3738_v23  ;;  %v4571_v8 = vpop.f32.mrb[138].mxu1  ;;  %v3740_v25 = vpop.f32.mrb[139].mxu0  ;;  %12940 = vmatmul.mubr.msk.f32.gmra.mrb[244].mxu0 %vm503_vm0, %v2868_v11 }
 0x449   : > { %v10954_v27 = vmin.f32 %v10953_v7, %v4571_v8  ;;  %v10821_v32 = vmin.f32 %v10820_v17, %v3740_v25  ;;  %v4573_v33 = vpop.f32.mrb[139].mxu1  ;;  %13228 = vmatmul.mubr.msk.f32.gmra.mrb[244].mxu1 %vm503_vm0, %v2868_v11  ;;  %12941 = vmatprep.mubr.msk.f32.mxu0 %vm503_vm0, %v2869_v22 }
 0x44a   : > { %v11087_v12 = vmin.f32 %v11086_v21, %v4573_v33  ;;  %13229 = vmatprep.mubr.msk.f32.mxu1 %vm503_vm0, %v2869_v22 }
 0x44b   : > { %v3744_v35 = vpop.f32.mrb[140].mxu0 }
 0x44c   : > { %v10689_v36 = vmin.f32 %v10688_v24, %v3744_v35  ;;  %v4577_v37 = vpop.f32.mrb[140].mxu1  ;;  %v3746_v38 = vpop.f32.mrb[141].mxu0  ;;  %12942 = vmatmul.mubr.msk.f32.gmra.mrb[246].mxu0 %vm503_vm0, %v2869_v22 }
 0x44d   : > { %v10955_v39 = vmin.f32 %v10954_v27, %v4577_v37  ;;  %v10822_v44 = vmin.f32 %v10821_v32, %v3746_v38  ;;  %v4579_v45 = vpop.f32.mrb[141].mxu1  ;;  %13230 = vmatmul.mubr.msk.f32.gmra.mrb[246].mxu1 %vm503_vm0, %v2869_v22  ;;  %12943 = vmatprep.mubr.msk.f32.mxu0 %vm503_vm0, %v2870_v34 }
 0x44e   : > { %v11088_v46 = vmin.f32 %v11087_v12, %v4579_v45  ;;  %13231 = vmatprep.mubr.msk.f32.mxu1 %vm503_vm0, %v2870_v34 }
 0x44f   : > { %v3750_v48 = vpop.f32.mrb[142].mxu0 }
 0x450   : > { %v10690_v49 = vmin.f32 %v10689_v36, %v3750_v48  ;;  %v4583_v50 = vpop.f32.mrb[142].mxu1  ;;  %v3752_v5 = vpop.f32.mrb[143].mxu0  ;;  %12944 = vmatmul.mubr.msk.f32.gmra.mrb[248].mxu0 %vm503_vm0, %v2870_v34 }
 0x451   : > { %v10956_v0 = vmin.f32 %v10955_v39, %v4583_v50  ;;  %v10823_v9 = vmin.f32 %v10822_v44, %v3752_v5  ;;  %v4585_v10 = vpop.f32.mrb[143].mxu1  ;;  %13232 = vmatmul.mubr.msk.f32.gmra.mrb[248].mxu1 %vm503_vm0, %v2870_v34  ;;  %12945 = vmatprep.mubr.msk.f32.mxu0 %vm503_vm0, %v2871_v47 }
 0x452   : > { %v11089_v14 = vmin.f32 %v11088_v46, %v4585_v10  ;;  %13233 = vmatprep.mubr.msk.f32.mxu1 %vm503_vm0, %v2871_v47 }
 0x453   : > { %v3756_v29 = vpop.f32.mrb[144].mxu0 }
 0x454   : > { %v10691_v30 = vmin.f32 %v10690_v49, %v3756_v29  ;;  %v4589_v31 = vpop.f32.mrb[144].mxu1  ;;  %v3758_v40 = vpop.f32.mrb[145].mxu0  ;;  %12946 = vmatmul.mubr.msk.f32.gmra.mrb[250].mxu0 %vm503_vm0, %v2871_v47 }
 0x455   : > { %v10957_v41 = vmin.f32 %v10956_v0, %v4589_v31  ;;  %v10824_v42 = vmin.f32 %v10823_v9, %v3758_v40  ;;  %v4591_v43 = vpop.f32.mrb[145].mxu1  ;;  %13234 = vmatmul.mubr.msk.f32.gmra.mrb[250].mxu1 %vm503_vm0, %v2871_v47  ;;  %12947 = vmatprep.mubr.msk.f32.mxu0 %vm503_vm0, %v2872_v28 }
 0x456   : > { %v11090_v26 = vmin.f32 %v11089_v14, %v4591_v43  ;;  %13235 = vmatprep.mubr.msk.f32.mxu1 %vm503_vm0, %v2872_v28 }
 0x457   : > { %v3762_v1 = vpop.f32.mrb[146].mxu0 }
 0x458   : > { %v10692_v52 = vmin.f32 %v10691_v30, %v3762_v1  ;;  %v4595_v53 = vpop.f32.mrb[146].mxu1  ;;  %v3764_v54 = vpop.f32.mrb[147].mxu0  ;;  %12948 = vmatmul.mubr.msk.f32.gmra.mrb[252].mxu0 %vm503_vm0, %v2872_v28 }
 0x459   : > { %v10958_v55 = vmin.f32 %v10957_v41, %v4595_v53  ;;  %v10825_v56 = vmin.f32 %v10824_v42, %v3764_v54  ;;  %v4597_v57 = vpop.f32.mrb[147].mxu1  ;;  %13236 = vmatmul.mubr.msk.f32.gmra.mrb[252].mxu1 %vm503_vm0, %v2872_v28  ;;  %12949 = vmatprep.mubr.msk.f32.mxu0 %vm503_vm0, %v2873_v51 }
 0x45a   : > { %v11091_v58 = vmin.f32 %v11090_v26, %v4597_v57  ;;  %13237 = vmatprep.mubr.msk.f32.mxu1 %vm503_vm0, %v2873_v51 }
 0x45b   : > { %v3768_v59 = vpop.f32.mrb[148].mxu0 }
 0x45c   : > { %v10693_v60 = vmin.f32 %v10692_v52, %v3768_v59  ;;  %v4601_v61 = vpop.f32.mrb[148].mxu1  ;;  %v3770_v62 = vpop.f32.mrb[149].mxu0  ;;  %12950 = vmatmul.mubr.msk.f32.gmra.mrb[254].mxu0 %vm503_vm0, %v2873_v51 }
 0x45d   : > { %v10959_v63 = vmin.f32 %v10958_v55, %v4601_v61  ;;  %v10826_v3 = vmin.f32 %v10825_v56, %v3770_v62  ;;  %v4603_v4 = vpop.f32.mrb[149].mxu1  ;;  %13238 = vmatmul.mubr.msk.f32.gmra.mrb[254].mxu1 %vm503_vm0, %v2873_v51 }
 0x45e   : > { %v11092_v6 = vmin.f32 %v11091_v58, %v4603_v4 }
 0x45f   : > { %v3774_v11 = vpop.f32.mrb[150].mxu0 }
 0x460   : > { %v10694_v13 = vmin.f32 %v10693_v60, %v3774_v11  ;;  %v4607_v2 = vpop.f32.mrb[150].mxu1  ;;  %v3776_v15 = vpop.f32.mrb[151].mxu0 }
 0x461   : > { %v10960_v16 = vmin.f32 %v10959_v63, %v4607_v2  ;;  %v10827_v7 = vmin.f32 %v10826_v3, %v3776_v15  ;;  %v4609_v17 = vpop.f32.mrb[151].mxu1 }
 0x462   : > { %v11093_v20 = vmin.f32 %v11092_v6, %v4609_v17 }
 0x463   : > { %v3780_v21 = vpop.f32.mrb[152].mxu0 }
 0x464   : > { %v10695_v22 = vmin.f32 %v10694_v13, %v3780_v21  ;;  %v4613_v23 = vpop.f32.mrb[152].mxu1  ;;  %v3782_v24 = vpop.f32.mrb[153].mxu0 }
 0x465   : > { %v10961_v8 = vmin.f32 %v10960_v16, %v4613_v23  ;;  %v10828_v25 = vmin.f32 %v10827_v7, %v3782_v24  ;;  %v4615_v27 = vpop.f32.mrb[153].mxu1 }
 0x466   : > { %v11094_v32 = vmin.f32 %v11093_v20, %v4615_v27 }
 0x467   : > { %v3786_v33 = vpop.f32.mrb[154].mxu0 }
 0x468   : > { %v10696_v12 = vmin.f32 %v10695_v22, %v3786_v33  ;;  %v4619_v34 = vpop.f32.mrb[154].mxu1  ;;  %v3788_v35 = vpop.f32.mrb[155].mxu0 }
 0x469   : > { %v10962_v36 = vmin.f32 %v10961_v8, %v4619_v34  ;;  %v10829_v37 = vmin.f32 %v10828_v25, %v3788_v35  ;;  %v4621_v38 = vpop.f32.mrb[155].mxu1 }
 0x46a   : > { %v11095_v39 = vmin.f32 %v11094_v32, %v4621_v38 }
 0x46b   : > { %v3792_v44 = vpop.f32.mrb[156].mxu0 }
 0x46c   : > { %v10697_v45 = vmin.f32 %v10696_v12, %v3792_v44  ;;  %v4625_v46 = vpop.f32.mrb[156].mxu1  ;;  %v3794_v47 = vpop.f32.mrb[157].mxu0 }
 0x46d   : > { %v10963_v48 = vmin.f32 %v10962_v36, %v4625_v46  ;;  %v10830_v49 = vmin.f32 %v10829_v37, %v3794_v47  ;;  %v4627_v50 = vpop.f32.mrb[157].mxu1 }
 0x46e   : > { %v11096_v5 = vmin.f32 %v11095_v39, %v4627_v50 }
 0x46f   : > { %v3798_v0 = vpop.f32.mrb[158].mxu0 }
 0x470   : > { %v10698_v9 = vmin.f32 %v10697_v45, %v3798_v0  ;;  %v4631_v10 = vpop.f32.mrb[158].mxu1  ;;  %v3800_v14 = vpop.f32.mrb[159].mxu0 }
 0x471   : > { %v10964_v28 = vmin.f32 %v10963_v48, %v4631_v10  ;;  %v10831_v29 = vmin.f32 %v10830_v49, %v3800_v14  ;;  %v4633_v30 = vpop.f32.mrb[159].mxu1 }
 0x472   : > { %v11097_v31 = vmin.f32 %v11096_v5, %v4633_v30 }
 0x473   : > { %v3804_v40 = vpop.f32.mrb[160].mxu0 }
 0x474   : > { %v10699_v41 = vmin.f32 %v10698_v9, %v3804_v40  ;;  %v4637_v42 = vpop.f32.mrb[160].mxu1  ;;  %v3806_v43 = vpop.f32.mrb[161].mxu0 }
 0x475   : > { %v10965_v26 = vmin.f32 %v10964_v28, %v4637_v42  ;;  %v10832_v51 = vmin.f32 %v10831_v29, %v3806_v43  ;;  %v4639_v1 = vpop.f32.mrb[161].mxu1 }
 0x476   : > { %v11098_v52 = vmin.f32 %v11097_v31, %v4639_v1 }
 0x477   : > { %v3810_v53 = vpop.f32.mrb[162].mxu0 }
 0x478   : > { %v10700_v54 = vmin.f32 %v10699_v41, %v3810_v53  ;;  %v4643_v55 = vpop.f32.mrb[162].mxu1  ;;  %v3812_v56 = vpop.f32.mrb[163].mxu0 }
 0x479   : > { %v10966_v57 = vmin.f32 %v10965_v26, %v4643_v55  ;;  %v10833_v58 = vmin.f32 %v10832_v51, %v3812_v56  ;;  %v4645_v59 = vpop.f32.mrb[163].mxu1 }
 0x47a   : > { %v11099_v60 = vmin.f32 %v11098_v52, %v4645_v59 }
 0x47b   : > { %v3816_v61 = vpop.f32.mrb[164].mxu0 }
 0x47c   : > { %v10701_v62 = vmin.f32 %v10700_v54, %v3816_v61  ;;  %v4649_v63 = vpop.f32.mrb[164].mxu1  ;;  %v3818_v3 = vpop.f32.mrb[165].mxu0 }
 0x47d   : > { %v10967_v4 = vmin.f32 %v10966_v57, %v4649_v63  ;;  %v10834_v6 = vmin.f32 %v10833_v58, %v3818_v3  ;;  %v4651_v11 = vpop.f32.mrb[165].mxu1 }
 0x47e   : > { %v11100_v13 = vmin.f32 %v11099_v60, %v4651_v11 }
 0x47f   : > { %v3822_v2 = vpop.f32.mrb[166].mxu0 }
 0x480   : > { %v10702_v15 = vmin.f32 %v10701_v62, %v3822_v2  ;;  %v4655_v16 = vpop.f32.mrb[166].mxu1  ;;  %v3824_v7 = vpop.f32.mrb[167].mxu0 }
 0x481   : > { %v10968_v17 = vmin.f32 %v10967_v4, %v4655_v16  ;;  %v10835_v20 = vmin.f32 %v10834_v6, %v3824_v7  ;;  %v4657_v21 = vpop.f32.mrb[167].mxu1 }
 0x482   : > { %v11101_v22 = vmin.f32 %v11100_v13, %v4657_v21 }
 0x483   : > { %v3828_v23 = vpop.f32.mrb[168].mxu0 }
 0x484   : > { %v10703_v24 = vmin.f32 %v10702_v15, %v3828_v23  ;;  %v4661_v8 = vpop.f32.mrb[168].mxu1  ;;  %v3830_v25 = vpop.f32.mrb[169].mxu0 }
 0x485   : > { %v10969_v27 = vmin.f32 %v10968_v17, %v4661_v8  ;;  %v10836_v32 = vmin.f32 %v10835_v20, %v3830_v25  ;;  %v4663_v33 = vpop.f32.mrb[169].mxu1 }
 0x486   : > { %v11102_v12 = vmin.f32 %v11101_v22, %v4663_v33 }
 0x487   : > { %v3834_v34 = vpop.f32.mrb[170].mxu0 }
 0x488   : > { %v10704_v35 = vmin.f32 %v10703_v24, %v3834_v34  ;;  %v4667_v36 = vpop.f32.mrb[170].mxu1  ;;  %v3836_v37 = vpop.f32.mrb[171].mxu0 }
 0x489   : > { %v10970_v38 = vmin.f32 %v10969_v27, %v4667_v36  ;;  %v10837_v39 = vmin.f32 %v10836_v32, %v3836_v37  ;;  %v4669_v44 = vpop.f32.mrb[171].mxu1 }
 0x48a   : > { %v11103_v45 = vmin.f32 %v11102_v12, %v4669_v44 }
 0x48b   : > { %v3840_v46 = vpop.f32.mrb[172].mxu0 }
 0x48c   : > { %v10705_v47 = vmin.f32 %v10704_v35, %v3840_v46  ;;  %v4673_v48 = vpop.f32.mrb[172].mxu1  ;;  %v3842_v49 = vpop.f32.mrb[173].mxu0 }
 0x48d   : > { %v10971_v50 = vmin.f32 %v10970_v38, %v4673_v48  ;;  %v10838_v5 = vmin.f32 %v10837_v39, %v3842_v49  ;;  %v4675_v0 = vpop.f32.mrb[173].mxu1 }
 0x48e   : > { %v11104_v9 = vmin.f32 %v11103_v45, %v4675_v0 }
 0x48f   : > { %v3846_v10 = vpop.f32.mrb[174].mxu0 }
 0x490   : > { %v10706_v14 = vmin.f32 %v10705_v47, %v3846_v10  ;;  %v4679_v28 = vpop.f32.mrb[174].mxu1  ;;  %v3848_v29 = vpop.f32.mrb[175].mxu0 }
 0x491   : > { %v10972_v30 = vmin.f32 %v10971_v50, %v4679_v28  ;;  %v10839_v31 = vmin.f32 %v10838_v5, %v3848_v29  ;;  %v4681_v40 = vpop.f32.mrb[175].mxu1 }
 0x492   : > { %v11105_v41 = vmin.f32 %v11104_v9, %v4681_v40 }
 0x493   : > { %v3852_v42 = vpop.f32.mrb[176].mxu0 }
 0x494   : > { %v10707_v43 = vmin.f32 %v10706_v14, %v3852_v42  ;;  %v4685_v26 = vpop.f32.mrb[176].mxu1  ;;  %v3854_v51 = vpop.f32.mrb[177].mxu0 }
 0x495   : > { %v10973_v1 = vmin.f32 %v10972_v30, %v4685_v26  ;;  %v10840_v52 = vmin.f32 %v10839_v31, %v3854_v51  ;;  %v4687_v53 = vpop.f32.mrb[177].mxu1 }
 0x496   : > { %v11106_v54 = vmin.f32 %v11105_v41, %v4687_v53 }
 0x497   : > { %v3858_v55 = vpop.f32.mrb[178].mxu0 }
 0x498   : > { %v10708_v56 = vmin.f32 %v10707_v43, %v3858_v55  ;;  %v4691_v57 = vpop.f32.mrb[178].mxu1  ;;  %v3860_v58 = vpop.f32.mrb[179].mxu0 }
 0x499   : > { %v10974_v59 = vmin.f32 %v10973_v1, %v4691_v57  ;;  %v10841_v60 = vmin.f32 %v10840_v52, %v3860_v58  ;;  %v4693_v61 = vpop.f32.mrb[179].mxu1 }
 0x49a   : > { %v11107_v62 = vmin.f32 %v11106_v54, %v4693_v61 }
 0x49b   : > { %v3864_v63 = vpop.f32.mrb[180].mxu0 }
 0x49c   : > { %v10709_v3 = vmin.f32 %v10708_v56, %v3864_v63  ;;  %v4697_v4 = vpop.f32.mrb[180].mxu1  ;;  %v3866_v6 = vpop.f32.mrb[181].mxu0 }
 0x49d   : > { %v10975_v11 = vmin.f32 %v10974_v59, %v4697_v4  ;;  %v10842_v13 = vmin.f32 %v10841_v60, %v3866_v6  ;;  %v4699_v2 = vpop.f32.mrb[181].mxu1 }
 0x49e   : > { %v11108_v15 = vmin.f32 %v11107_v62, %v4699_v2 }
 0x49f   : > { %v3870_v16 = vpop.f32.mrb[182].mxu0 }
 0x4a0   : > { %v10710_v7 = vmin.f32 %v10709_v3, %v3870_v16  ;;  %v4703_v17 = vpop.f32.mrb[182].mxu1  ;;  %v3872_v20 = vpop.f32.mrb[183].mxu0 }
 0x4a1   : > { %v10976_v21 = vmin.f32 %v10975_v11, %v4703_v17  ;;  %v10843_v22 = vmin.f32 %v10842_v13, %v3872_v20  ;;  %v4705_v23 = vpop.f32.mrb[183].mxu1 }
 0x4a2   : > { %v11109_v24 = vmin.f32 %v11108_v15, %v4705_v23 }
 0x4a3   : > { %v3876_v8 = vpop.f32.mrb[184].mxu0 }
 0x4a4   : > { %v10711_v25 = vmin.f32 %v10710_v7, %v3876_v8  ;;  %v4709_v27 = vpop.f32.mrb[184].mxu1  ;;  %v3878_v32 = vpop.f32.mrb[185].mxu0 }
 0x4a5   : > { %v10977_v33 = vmin.f32 %v10976_v21, %v4709_v27  ;;  %v10844_v12 = vmin.f32 %v10843_v22, %v3878_v32  ;;  %v4711_v34 = vpop.f32.mrb[185].mxu1 }
 0x4a6   : > { %v11110_v35 = vmin.f32 %v11109_v24, %v4711_v34 }
 0x4a7   : > { %v3882_v36 = vpop.f32.mrb[186].mxu0 }
 0x4a8   : > { %v10712_v37 = vmin.f32 %v10711_v25, %v3882_v36  ;;  %v4715_v38 = vpop.f32.mrb[186].mxu1  ;;  %v3884_v39 = vpop.f32.mrb[187].mxu0 }
 0x4a9   : > { %v10978_v44 = vmin.f32 %v10977_v33, %v4715_v38  ;;  %v10845_v45 = vmin.f32 %v10844_v12, %v3884_v39  ;;  %v4717_v46 = vpop.f32.mrb[187].mxu1 }
 0x4aa   : > { %v11111_v47 = vmin.f32 %v11110_v35, %v4717_v46 }
 0x4ab   : > { %v3888_v48 = vpop.f32.mrb[188].mxu0 }
 0x4ac   : > { %v10713_v49 = vmin.f32 %v10712_v37, %v3888_v48  ;;  %v4721_v50 = vpop.f32.mrb[188].mxu1  ;;  %v3890_v5 = vpop.f32.mrb[189].mxu0 }
 0x4ad   : > { %v10979_v0 = vmin.f32 %v10978_v44, %v4721_v50  ;;  %v10846_v9 = vmin.f32 %v10845_v45, %v3890_v5  ;;  %v4723_v10 = vpop.f32.mrb[189].mxu1 }
 0x4ae   : > { %v11112_v14 = vmin.f32 %v11111_v47, %v4723_v10 }
 0x4af   : > { %v3894_v28 = vpop.f32.mrb[190].mxu0 }
 0x4b0   : > { %v10714_v29 = vmin.f32 %v10713_v49, %v3894_v28  ;;  %v4727_v30 = vpop.f32.mrb[190].mxu1  ;;  %v3896_v31 = vpop.f32.mrb[191].mxu0 }
 0x4b1   : > { %v10980_v40 = vmin.f32 %v10979_v0, %v4727_v30  ;;  %v10847_v41 = vmin.f32 %v10846_v9, %v3896_v31  ;;  %v4729_v42 = vpop.f32.mrb[191].mxu1 }
 0x4b2   : > { %v11113_v43 = vmin.f32 %v11112_v14, %v4729_v42 }
 0x4b3   : > { %v3900_v26 = vpop.f32.mrb[192].mxu0 }
 0x4b4   : > { %v10715_v51 = vmin.f32 %v10714_v29, %v3900_v26  ;;  %v4733_v1 = vpop.f32.mrb[192].mxu1  ;;  %v3902_v52 = vpop.f32.mrb[193].mxu0 }
 0x4b5   : > { %v10981_v53 = vmin.f32 %v10980_v40, %v4733_v1  ;;  %v10848_v54 = vmin.f32 %v10847_v41, %v3902_v52  ;;  %v4735_v55 = vpop.f32.mrb[193].mxu1 }
 0x4b6   : > { %v11114_v56 = vmin.f32 %v11113_v43, %v4735_v55 }
 0x4b7   : > { %v3906_v57 = vpop.f32.mrb[194].mxu0 }
 0x4b8   : > { %v10716_v58 = vmin.f32 %v10715_v51, %v3906_v57  ;;  %v4739_v59 = vpop.f32.mrb[194].mxu1  ;;  %v3908_v60 = vpop.f32.mrb[195].mxu0 }
 0x4b9   : > { %v10982_v61 = vmin.f32 %v10981_v53, %v4739_v59  ;;  %v10849_v62 = vmin.f32 %v10848_v54, %v3908_v60  ;;  %v4741_v63 = vpop.f32.mrb[195].mxu1 }
 0x4ba   : > { %v11115_v3 = vmin.f32 %v11114_v56, %v4741_v63 }
 0x4bb   : > { %v3912_v4 = vpop.f32.mrb[196].mxu0 }
 0x4bc   : > { %v10717_v6 = vmin.f32 %v10716_v58, %v3912_v4  ;;  %v4745_v11 = vpop.f32.mrb[196].mxu1  ;;  %v3914_v13 = vpop.f32.mrb[197].mxu0 }
 0x4bd   : > { %v10983_v2 = vmin.f32 %v10982_v61, %v4745_v11  ;;  %v10850_v15 = vmin.f32 %v10849_v62, %v3914_v13  ;;  %v4747_v16 = vpop.f32.mrb[197].mxu1 }
 0x4be   : > { %v11116_v7 = vmin.f32 %v11115_v3, %v4747_v16 }
 0x4bf   : > { %v3918_v17 = vpop.f32.mrb[198].mxu0 }
 0x4c0   : > { %v10718_v20 = vmin.f32 %v10717_v6, %v3918_v17  ;;  %v4751_v21 = vpop.f32.mrb[198].mxu1  ;;  %v3920_v22 = vpop.f32.mrb[199].mxu0 }
 0x4c1   : > { %v10984_v23 = vmin.f32 %v10983_v2, %v4751_v21  ;;  %v10851_v24 = vmin.f32 %v10850_v15, %v3920_v22  ;;  %v4753_v8 = vpop.f32.mrb[199].mxu1 }
 0x4c2   : > { %v11117_v25 = vmin.f32 %v11116_v7, %v4753_v8 }
 0x4c3   : > { %v3924_v27 = vpop.f32.mrb[200].mxu0 }
 0x4c4   : > { %v10719_v32 = vmin.f32 %v10718_v20, %v3924_v27  ;;  %v4757_v33 = vpop.f32.mrb[200].mxu1  ;;  %v3926_v12 = vpop.f32.mrb[201].mxu0 }
 0x4c5   : > { %v10985_v34 = vmin.f32 %v10984_v23, %v4757_v33  ;;  %v10852_v35 = vmin.f32 %v10851_v24, %v3926_v12  ;;  %v4759_v36 = vpop.f32.mrb[201].mxu1 }
 0x4c6   : > { %v11118_v37 = vmin.f32 %v11117_v25, %v4759_v36 }
 0x4c7   : > { %13522 = shalt.err (!%p13519_p6)
}
 0x4c8   : > { %s13523_s13 = scalar_lea.hbm %s15926_s8, 64  ;;  %s13527_s24 = scalar_lea.hbm %s16018_s4, 128 }
 0x4c9   : > { %p13524_p7 = scmp.ne.s32.totalorder %s15926_s8, %s13523_s13  ;;  %p13528_p11 = scmp.lt.u32.totalorder %s15926_s8, %s16018_s4 }
 0x4ca   : > { %p13529_p12 = scmp.lt.u32.totalorder %s13527_s24, %s13523_s13  ;;  %p13531_p0 = scmp.lt.u32.totalorder %s13523_s13, %s15926_s8 }
 0x4cb   : > { %p13525_p9 = pnand %p13524_p7, %p13694_p4 }
 0x4cc   : > { %p13530_p13 = por %p13529_p12, %p13528_p11 }
 0x4cd   : > { %p13526_p10 = pneg %p13525_p9 }
 0x4ce   : > { %p13532_p1 = por %p13531_p0, %p13530_p13 }
 0x4d0   : > { %p13533_p2 = pnand %p13532_p1, %p13526_p10 }
 0x4d2   : > { %13536 = shalt.err (!%p13533_p2)
}
 0x4d3   : > { %13431 = dma.vmem_to_hbm [thread:$0]  (%p13694_p4), %s15929_s9, 64, %s15926_s8, %s11254_s11   ;;  %v3930_v38 = vpop.f32.mrb[202].mxu0  ;;  %v4763_v44 = vpop.f32.mrb[202].mxu1 }
 0x4d4   : > { %v10720_v39 = vmin.f32 %v10719_v32, %v3930_v38  ;;  %v3932_v45 = vpop.f32.mrb[203].mxu0  ;;  %v10986_v46 = vmin.f32 %v10985_v34, %v4763_v44  ;;  %v4765_v48 = vpop.f32.mrb[203].mxu1  ;;  %s287_s8 = scalar_lea.vmem [#allocation6], %s11432_s10  ;;  %s15964_s15 = scalar_lea.hbm %s16019_s5, %s13710_s7 }
 0x4d5   : > { %v10853_v47 = vmin.f32 %v10852_v35, %v3932_v45  ;;  %v11119_v49 = vmin.f32 %v11118_v37, %v4765_v48  ;;  %v3936_v50 = vpop.f32.mrb[204].mxu0  ;;  %v4769_v0 = vpop.f32.mrb[204].mxu1  ;;  %s11287_s9 = sshll.u32 %s287_s8, 4  ;;  %s13623_s16 = smov [#allocation6]   ;;  %s15966_s9 = int_to_ptr.vmem [resolvable:$true] %s11287_s9 }
 0x4d6   : > { %v10721_v5 = vmin.f32 %v10720_v39, %v3936_v50  ;;  %v3938_v9 = vpop.f32.mrb[205].mxu0  ;;  %v10987_v10 = vmin.f32 %v10986_v46, %v4769_v0  ;;  %v4771_v28 = vpop.f32.mrb[205].mxu1  ;;  %s13537_s10 = scalar_lea.vmem %s15966_s9, 64  ;;  %s13541_s13 = sshll.u32 %s13623_s16, 4  ;;  %s13542_s13 = int_to_ptr.vmem [resolvable:$false] %s13541_s13 }
 0x4d7   : > { %v10854_v14 = vmin.f32 %v10853_v47, %v3938_v9  ;;  %v11120_v29 = vmin.f32 %v11119_v49, %v4771_v28  ;;  %v3942_v30 = vpop.f32.mrb[206].mxu0  ;;  %v4775_v40 = vpop.f32.mrb[206].mxu1  ;;  %p13538_p3 = scmp.ne.s32.totalorder %s15966_s9, %s13537_s10  ;;  %s13543_s7 = scalar_lea.vmem %s13542_s13, 128 }
 0x4d8   : > { %v10722_v31 = vmin.f32 %v10721_v5, %v3942_v30  ;;  %v3944_v41 = vpop.f32.mrb[207].mxu0  ;;  %v10988_v42 = vmin.f32 %v10987_v10, %v4775_v40  ;;  %v4777_v26 = vpop.f32.mrb[207].mxu1  ;;  %p13544_p7 = scmp.lt.s32.totalorder %s15966_s9, %s13542_s13  ;;  %p13545_p9 = scmp.lt.s32.totalorder %s13543_s7, %s13537_s10 }
 0x4d9   : > { %v10855_v43 = vmin.f32 %v10854_v14, %v3944_v41  ;;  %v11121_v51 = vmin.f32 %v11120_v29, %v4777_v26  ;;  %v3948_v1 = vpop.f32.mrb[208].mxu0  ;;  %v4781_v53 = vpop.f32.mrb[208].mxu1  ;;  %p13539_p5 = pnand %p13538_p3, %p13694_p4 }
 0x4da   : > { %v10723_v52 = vmin.f32 %v10722_v31, %v3948_v1  ;;  %v3950_v54 = vpop.f32.mrb[209].mxu0  ;;  %v10989_v55 = vmin.f32 %v10988_v42, %v4781_v53  ;;  %v4783_v57 = vpop.f32.mrb[209].mxu1  ;;  %p13546_p10 = por %p13545_p9, %p13544_p7 }
 0x4db   : > { %v10856_v56 = vmin.f32 %v10855_v43, %v3950_v54  ;;  %v11122_v58 = vmin.f32 %v11121_v51, %v4783_v57  ;;  %v3954_v59 = vpop.f32.mrb[210].mxu0  ;;  %v4787_v61 = vpop.f32.mrb[210].mxu1  ;;  %p13540_p6 = pneg %p13539_p5 }
 0x4dc   : > { %v10724_v60 = vmin.f32 %v10723_v52, %v3954_v59  ;;  %v3956_v62 = vpop.f32.mrb[211].mxu0  ;;  %v10990_v63 = vmin.f32 %v10989_v55, %v4787_v61  ;;  %v4789_v4 = vpop.f32.mrb[211].mxu1 }
 0x4dd   : > { %v10857_v3 = vmin.f32 %v10856_v56, %v3956_v62  ;;  %v11123_v6 = vmin.f32 %v11122_v58, %v4789_v4  ;;  %v3960_v11 = vpop.f32.mrb[212].mxu0  ;;  %v4793_v2 = vpop.f32.mrb[212].mxu1  ;;  %p13547_p11 = pnand %p13546_p10, %p13540_p6 }
 0x4de   : > { %v10725_v13 = vmin.f32 %v10724_v60, %v3960_v11  ;;  %v3962_v15 = vpop.f32.mrb[213].mxu0  ;;  %v10991_v16 = vmin.f32 %v10990_v63, %v4793_v2  ;;  %v4795_v17 = vpop.f32.mrb[213].mxu1 }
 0x4df   : > { %v10858_v7 = vmin.f32 %v10857_v3, %v3962_v15  ;;  %v11124_v20 = vmin.f32 %v11123_v6, %v4795_v17  ;;  %v3966_v21 = vpop.f32.mrb[214].mxu0 }
 0x4e0   : > { %v10726_v22 = vmin.f32 %v10725_v13, %v3966_v21  ;;  %v4799_v23 = vpop.f32.mrb[214].mxu1  ;;  %v3968_v24 = vpop.f32.mrb[215].mxu0 }
 0x4e1   : > { %v10992_v8 = vmin.f32 %v10991_v16, %v4799_v23  ;;  %v10859_v25 = vmin.f32 %v10858_v7, %v3968_v24  ;;  %v4801_v27 = vpop.f32.mrb[215].mxu1 }
 0x4e2   : > { %v11125_v32 = vmin.f32 %v11124_v20, %v4801_v27 }
 0x4e3   : > { %v3972_v33 = vpop.f32.mrb[216].mxu0 }
 0x4e4   : > { %v10727_v12 = vmin.f32 %v10726_v22, %v3972_v33  ;;  %v4805_v34 = vpop.f32.mrb[216].mxu1  ;;  %v3974_v35 = vpop.f32.mrb[217].mxu0 }
 0x4e5   : > { %v10993_v36 = vmin.f32 %v10992_v8, %v4805_v34  ;;  %v10860_v37 = vmin.f32 %v10859_v25, %v3974_v35  ;;  %v4807_v38 = vpop.f32.mrb[217].mxu1 }
 0x4e6   : > { %v11126_v39 = vmin.f32 %v11125_v32, %v4807_v38 }
 0x4e7   : > { %v3978_v44 = vpop.f32.mrb[218].mxu0 }
 0x4e8   : > { %v10728_v45 = vmin.f32 %v10727_v12, %v3978_v44  ;;  %v4811_v46 = vpop.f32.mrb[218].mxu1  ;;  %v3980_v47 = vpop.f32.mrb[219].mxu0 }
 0x4e9   : > { %v10994_v48 = vmin.f32 %v10993_v36, %v4811_v46  ;;  %v10861_v49 = vmin.f32 %v10860_v37, %v3980_v47  ;;  %v4813_v50 = vpop.f32.mrb[219].mxu1 }
 0x4ea   : > { %v11127_v5 = vmin.f32 %v11126_v39, %v4813_v50 }
 0x4eb   : > { %v3984_v0 = vpop.f32.mrb[220].mxu0 }
 0x4ec   : > { %v10729_v9 = vmin.f32 %v10728_v45, %v3984_v0  ;;  %v4817_v10 = vpop.f32.mrb[220].mxu1  ;;  %v3986_v14 = vpop.f32.mrb[221].mxu0 }
 0x4ed   : > { %v10995_v28 = vmin.f32 %v10994_v48, %v4817_v10  ;;  %v10862_v29 = vmin.f32 %v10861_v49, %v3986_v14  ;;  %v4819_v30 = vpop.f32.mrb[221].mxu1 }
 0x4ee   : > { %v11128_v31 = vmin.f32 %v11127_v5, %v4819_v30 }
 0x4ef   : > { %v3990_v40 = vpop.f32.mrb[222].mxu0 }
 0x4f0   : > { %v10730_v41 = vmin.f32 %v10729_v9, %v3990_v40  ;;  %v4823_v42 = vpop.f32.mrb[222].mxu1  ;;  %v3992_v43 = vpop.f32.mrb[223].mxu0 }
 0x4f1   : > { %v10996_v26 = vmin.f32 %v10995_v28, %v4823_v42  ;;  %v10863_v51 = vmin.f32 %v10862_v29, %v3992_v43  ;;  %v4825_v1 = vpop.f32.mrb[223].mxu1 }
 0x4f2   : > { %v11129_v52 = vmin.f32 %v11128_v31, %v4825_v1 }
 0x4f3   : > { %v3996_v53 = vpop.f32.mrb[224].mxu0 }
 0x4f4   : > { %v10731_v54 = vmin.f32 %v10730_v41, %v3996_v53  ;;  %v4829_v55 = vpop.f32.mrb[224].mxu1  ;;  %v3998_v56 = vpop.f32.mrb[225].mxu0 }
 0x4f5   : > { %v10997_v57 = vmin.f32 %v10996_v26, %v4829_v55  ;;  %v10864_v58 = vmin.f32 %v10863_v51, %v3998_v56  ;;  %v4831_v59 = vpop.f32.mrb[225].mxu1 }
 0x4f6   : > { %v11130_v60 = vmin.f32 %v11129_v52, %v4831_v59 }
 0x4f7   : > { %v4002_v61 = vpop.f32.mrb[226].mxu0 }
 0x4f8   : > { %v10732_v62 = vmin.f32 %v10731_v54, %v4002_v61  ;;  %v4835_v63 = vpop.f32.mrb[226].mxu1  ;;  %v4004_v3 = vpop.f32.mrb[227].mxu0 }
 0x4f9   : > { %v10998_v4 = vmin.f32 %v10997_v57, %v4835_v63  ;;  %v10865_v6 = vmin.f32 %v10864_v58, %v4004_v3  ;;  %v4837_v11 = vpop.f32.mrb[227].mxu1 }
 0x4fa   : > { %v11131_v13 = vmin.f32 %v11130_v60, %v4837_v11 }
 0x4fb   : > { %v4008_v2 = vpop.f32.mrb[228].mxu0 }
 0x4fc   : > { %v10733_v15 = vmin.f32 %v10732_v62, %v4008_v2  ;;  %v4841_v16 = vpop.f32.mrb[228].mxu1  ;;  %v4010_v7 = vpop.f32.mrb[229].mxu0 }
 0x4fd   : > { %v10999_v17 = vmin.f32 %v10998_v4, %v4841_v16  ;;  %v10866_v20 = vmin.f32 %v10865_v6, %v4010_v7  ;;  %v4843_v21 = vpop.f32.mrb[229].mxu1 }
 0x4fe   : > { %v11132_v22 = vmin.f32 %v11131_v13, %v4843_v21 }
 0x4ff   : > { %v4014_v23 = vpop.f32.mrb[230].mxu0 }
 0x500   : > { %v10734_v24 = vmin.f32 %v10733_v15, %v4014_v23  ;;  %v4847_v8 = vpop.f32.mrb[230].mxu1  ;;  %v4016_v25 = vpop.f32.mrb[231].mxu0 }
 0x501   : > { %v11000_v27 = vmin.f32 %v10999_v17, %v4847_v8  ;;  %v10867_v32 = vmin.f32 %v10866_v20, %v4016_v25  ;;  %v4849_v33 = vpop.f32.mrb[231].mxu1 }
 0x502   : > { %v11133_v12 = vmin.f32 %v11132_v22, %v4849_v33 }
 0x503   : > { %v4020_v34 = vpop.f32.mrb[232].mxu0 }
 0x504   : > { %v10735_v35 = vmin.f32 %v10734_v24, %v4020_v34  ;;  %v4853_v36 = vpop.f32.mrb[232].mxu1  ;;  %v4022_v37 = vpop.f32.mrb[233].mxu0 }
 0x505   : > { %v11001_v38 = vmin.f32 %v11000_v27, %v4853_v36  ;;  %v10868_v39 = vmin.f32 %v10867_v32, %v4022_v37  ;;  %v4855_v44 = vpop.f32.mrb[233].mxu1 }
 0x506   : > { %v11134_v45 = vmin.f32 %v11133_v12, %v4855_v44 }
 0x507   : > { %v4026_v46 = vpop.f32.mrb[234].mxu0 }
 0x508   : > { %v10736_v47 = vmin.f32 %v10735_v35, %v4026_v46  ;;  %v4859_v48 = vpop.f32.mrb[234].mxu1  ;;  %v4028_v49 = vpop.f32.mrb[235].mxu0 }
 0x509   : > { %v11002_v50 = vmin.f32 %v11001_v38, %v4859_v48  ;;  %v10869_v5 = vmin.f32 %v10868_v39, %v4028_v49  ;;  %v4861_v0 = vpop.f32.mrb[235].mxu1 }
 0x50a   : > { %v11135_v9 = vmin.f32 %v11134_v45, %v4861_v0 }
 0x50b   : > { %v4032_v10 = vpop.f32.mrb[236].mxu0 }
 0x50c   : > { %v10737_v14 = vmin.f32 %v10736_v47, %v4032_v10  ;;  %v4865_v28 = vpop.f32.mrb[236].mxu1  ;;  %v4034_v29 = vpop.f32.mrb[237].mxu0 }
 0x50d   : > { %v11003_v30 = vmin.f32 %v11002_v50, %v4865_v28  ;;  %v10870_v31 = vmin.f32 %v10869_v5, %v4034_v29  ;;  %v4867_v40 = vpop.f32.mrb[237].mxu1 }
 0x50e   : > { %v11136_v41 = vmin.f32 %v11135_v9, %v4867_v40 }
 0x50f   : > { %v4038_v42 = vpop.f32.mrb[238].mxu0 }
 0x510   : > { %v10738_v43 = vmin.f32 %v10737_v14, %v4038_v42  ;;  %v4871_v26 = vpop.f32.mrb[238].mxu1  ;;  %v4040_v51 = vpop.f32.mrb[239].mxu0 }
 0x511   : > { %v11004_v1 = vmin.f32 %v11003_v30, %v4871_v26  ;;  %v10871_v52 = vmin.f32 %v10870_v31, %v4040_v51  ;;  %v4873_v53 = vpop.f32.mrb[239].mxu1 }
 0x512   : > { %v11137_v54 = vmin.f32 %v11136_v41, %v4873_v53 }
 0x513   : > { %v4044_v55 = vpop.f32.mrb[240].mxu0 }
 0x514   : > { %v10739_v56 = vmin.f32 %v10738_v43, %v4044_v55  ;;  %v4877_v57 = vpop.f32.mrb[240].mxu1  ;;  %v4046_v58 = vpop.f32.mrb[241].mxu0 }
 0x515   : > { %v11005_v59 = vmin.f32 %v11004_v1, %v4877_v57  ;;  %v10872_v60 = vmin.f32 %v10871_v52, %v4046_v58  ;;  %v4879_v61 = vpop.f32.mrb[241].mxu1 }
 0x516   : > { %v11138_v62 = vmin.f32 %v11137_v54, %v4879_v61 }
 0x517   : > { %v4050_v63 = vpop.f32.mrb[242].mxu0 }
 0x518   : > { %v10740_v3 = vmin.f32 %v10739_v56, %v4050_v63  ;;  %v4883_v4 = vpop.f32.mrb[242].mxu1  ;;  %v4052_v6 = vpop.f32.mrb[243].mxu0 }
 0x519   : > { %v11006_v11 = vmin.f32 %v11005_v59, %v4883_v4  ;;  %v10873_v13 = vmin.f32 %v10872_v60, %v4052_v6  ;;  %v4885_v2 = vpop.f32.mrb[243].mxu1 }
 0x51a   : > { %v11139_v15 = vmin.f32 %v11138_v62, %v4885_v2 }
 0x51b   : > { %v4056_v16 = vpop.f32.mrb[244].mxu0 }
 0x51c   : > { %v10741_v7 = vmin.f32 %v10740_v3, %v4056_v16  ;;  %v4889_v17 = vpop.f32.mrb[244].mxu1  ;;  %v4058_v20 = vpop.f32.mrb[245].mxu0 }
 0x51d   : > { %v11007_v21 = vmin.f32 %v11006_v11, %v4889_v17  ;;  %v10874_v22 = vmin.f32 %v10873_v13, %v4058_v20  ;;  %v4891_v23 = vpop.f32.mrb[245].mxu1 }
 0x51e   : > { %v11140_v24 = vmin.f32 %v11139_v15, %v4891_v23 }
 0x51f   : > { %v4062_v8 = vpop.f32.mrb[246].mxu0 }
 0x520   : > { %v10742_v25 = vmin.f32 %v10741_v7, %v4062_v8  ;;  %v4895_v27 = vpop.f32.mrb[246].mxu1  ;;  %v4064_v32 = vpop.f32.mrb[247].mxu0 }
 0x521   : > { %v11008_v33 = vmin.f32 %v11007_v21, %v4895_v27  ;;  %v10875_v12 = vmin.f32 %v10874_v22, %v4064_v32  ;;  %v4897_v34 = vpop.f32.mrb[247].mxu1 }
 0x522   : > { %v11141_v35 = vmin.f32 %v11140_v24, %v4897_v34 }
 0x523   : > { %v4068_v36 = vpop.f32.mrb[248].mxu0 }
 0x524   : > { %v10743_v37 = vmin.f32 %v10742_v25, %v4068_v36  ;;  %v4901_v38 = vpop.f32.mrb[248].mxu1  ;;  %v4070_v39 = vpop.f32.mrb[249].mxu0 }
 0x525   : > { %v11009_v44 = vmin.f32 %v11008_v33, %v4901_v38  ;;  %v10876_v45 = vmin.f32 %v10875_v12, %v4070_v39  ;;  %v4903_v46 = vpop.f32.mrb[249].mxu1 }
 0x526   : > { %v11142_v47 = vmin.f32 %v11141_v35, %v4903_v46 }
 0x527   : > { %v4074_v48 = vpop.f32.mrb[250].mxu0 }
 0x528   : > { %v10744_v49 = vmin.f32 %v10743_v37, %v4074_v48  ;;  %v4907_v50 = vpop.f32.mrb[250].mxu1  ;;  %v4076_v5 = vpop.f32.mrb[251].mxu0 }
 0x529   : > { %v11010_v0 = vmin.f32 %v11009_v44, %v4907_v50  ;;  %v10877_v9 = vmin.f32 %v10876_v45, %v4076_v5  ;;  %v4909_v10 = vpop.f32.mrb[251].mxu1 }
 0x52a   : > { %v11143_v14 = vmin.f32 %v11142_v47, %v4909_v10 }
 0x52b   : > { %v4080_v28 = vpop.f32.mrb[252].mxu0 }
 0x52c   : > { %v10745_v29 = vmin.f32 %v10744_v49, %v4080_v28  ;;  %v4913_v30 = vpop.f32.mrb[252].mxu1  ;;  %v4082_v31 = vpop.f32.mrb[253].mxu0 }
 0x52d   : > { %v11011_v40 = vmin.f32 %v11010_v0, %v4913_v30  ;;  %v10878_v41 = vmin.f32 %v10877_v9, %v4082_v31  ;;  %v4915_v42 = vpop.f32.mrb[253].mxu1 }
 0x52e   : > { %v11144_v43 = vmin.f32 %v11143_v14, %v4915_v42 }
 0x52f   : > { %v4086_v26 = vpop.f32.mrb[254].mxu0 }
 0x530   : > { %v10746_v51 = vmin.f32 %v10745_v29, %v4086_v26  ;;  %v4919_v1 = vpop.f32.mrb[254].mxu1  ;;  %v4088_v52 = vpop.f32.mrb[255].mxu0 }
 0x531   : > { %v11012_v53 = vmin.f32 %v11011_v40, %v4919_v1  ;;  %v10879_v54 = vmin.f32 %v10878_v41, %v4088_v52  ;;  %v4921_v55 = vpop.f32.mrb[255].mxu1  ;;  %v13508_v40 = vld [vmem:[%s15439_s27] sm:$0xf]  ;;  %s11259_s27 = scalar_lea.sflag [#allocation7], %s15443_s29 }
 0x532   : > { %v10747_v56 = vrot.slane %v10746_v51, 4  ;;  %v11145_v57 = vmin.f32 %v11144_v43, %v4921_v55  ;;  %v11220_v41 = vand.u32 2147483647, %v13508_v40 }
 0x533   : > { %v11013_v58 = vrot.slane %v11012_v53, 4  ;;  %v10880_v59 = vrot.slane %v10879_v54, 4 }
 0x534   : > { %v10748_v60 = vmin.f32 %v10746_v51, %v10747_v56  ;;  %v11146_v61 = vrot.slane %v11145_v57, 4  ;;  %vm11221_vm4 = vcmp.gt.f32.partialorder %v11220_v41, 0.5 }
 0x535   : > { %v11014_v62 = vmin.f32 %v11012_v53, %v11013_v58  ;;  %v10881_v63 = vmin.f32 %v10879_v54, %v10880_v59 }
 0x536   : > { %v10749_v3 = vrot.slane %v10748_v60, 2  ;;  %v11147_v4 = vmin.f32 %v11145_v57, %v11146_v61 }
 0x537   : > { %v11015_v6 = vrot.slane %v11014_v62, 2  ;;  %v10882_v11 = vrot.slane %v10881_v63, 2 }
 0x538   : > { %v10750_v13 = vmin.f32 %v10748_v60, %v10749_v3  ;;  %v11148_v2 = vrot.slane %v11147_v4, 2 }
 0x539   : > { %v11016_v15 = vmin.f32 %v11014_v62, %v11015_v6  ;;  %v10883_v16 = vmin.f32 %v10881_v63, %v10882_v11 }
 0x53a   : > { %v10751_v7 = vrot.slane %v10750_v13, 1  ;;  %v11149_v17 = vmin.f32 %v11147_v4, %v11148_v2 }
 0x53b   : > { %v11017_v20 = vrot.slane %v11016_v15, 1  ;;  %v10884_v21 = vrot.slane %v10883_v16, 1 }
 0x53c   : > { %v10752_v22 = vmin.f32 %v10750_v13, %v10751_v7  ;;  %v11150_v23 = vrot.slane %v11149_v17, 1 }
 0x53d   : > { %v11018_v24 = vmin.f32 %v11016_v15, %v11017_v20  ;;  %v10885_v8 = vmin.f32 %v10883_v16, %v10884_v21 }
 0x53e   : > { %v11152_v25 = vmax.f32 %v10752_v22, 0.0  ;;  %v11151_v27 = vmin.f32 %v11149_v17, %v11150_v23 }
 0x53f   : > { %v11154_v32 = vmax.f32 %v11018_v24, 0.0  ;;  %v11153_v33 = vmax.f32 %v10885_v8, 0.0 }
 0x540   : > { %13500 = vrsqrt.f32 %v11152_v25  ;;  %v11155_v12 = vmax.f32 %v11151_v27, 0.0  ;;  %vm11158_vm12 = vcmp.eq.f32.partialorder %v11152_v25, inf  ;;  %vm11160_vm13 = vcmp.eq.f32.partialorder %v11152_v25, 0.0 }
 0x541   : > { %13502 = vrsqrt.f32 %v11154_v32  ;;  %v11161_v37 = vand.u32 2147483648, %v11152_v25  ;;  %vm11165_vm14 = vcmp.eq.f32.partialorder %v11153_v33, inf  ;;  %vm11167_vm15 = vcmp.eq.f32.partialorder %v11153_v33, 0.0 }
 0x542   : > { %13504 = vrsqrt.f32 %v11153_v33  ;;  %v11168_v39 = vand.u32 2147483648, %v11153_v33  ;;  %vm11172_vm0 = vcmp.eq.f32.partialorder %v11154_v32, inf  ;;  %v11175_v48 = vand.u32 2147483648, %v11154_v32 }
 0x543   : > { %13506 = vrsqrt.f32 %v11155_v12  ;;  %vm11174_vm1 = vcmp.eq.f32.partialorder %v11154_v32, 0.0  ;;  %vm11179_vm2 = vcmp.eq.f32.partialorder %v11155_v12, inf  ;;  %v11182_v10 = vand.u32 2147483648, %v11155_v12 }
 0x544   : > { %vm11181_vm3 = vcmp.eq.f32.partialorder %v11155_v12, 0.0 }
 0x54a   : > { %v13501_v34 = vpop.eup %13500 }
 0x54b   : > { %v13503_v35 = vpop.eup %13502  ;;  %v11157_v36 = vmul.f32 %v13501_v34, %v11152_v25 }
 0x54c   : > { %v13505_v38 = vpop.eup %13504  ;;  %v11171_v44 = vmul.f32 %v13503_v35, %v11154_v32 }
 0x54d   : > { %v13507_v45 = vpop.eup %13506  ;;  %v11159_v46 = vsel %vm11158_vm12, %v11152_v25, %v11157_v36  ;;  %v11164_v47 = vmul.f32 %v13505_v38, %v11153_v33 }
 0x54e   : > { %v11162_v49 = vsel %vm11160_vm13, %v11161_v37, %v11159_v46  ;;  %v11173_v50 = vsel %vm11172_vm0, %v11154_v32, %v11171_v44  ;;  %v11178_v5 = vmul.f32 %v13507_v45, %v11155_v12 }
 0x54f   : > { %v11166_v0 = vsel %vm11165_vm14, %v11153_v33, %v11164_v47  ;;  %v11176_v9 = vsel %vm11174_vm1, %v11175_v48, %v11173_v50 }
 0x550   : > { %v11169_v14 = vsel %vm11167_vm15, %v11168_v39, %v11166_v0  ;;  %v11180_v28 = vsel %vm11179_vm2, %v11155_v12, %v11178_v5 }
 0x551   : > { %v11183_v29 = vsel %vm11181_vm3, %v11182_v10, %v11180_v28  ;;  %v11226_v30 = vcombine.low %v11162_v49, %v11169_v14 }
 0x552   : > { %v11227_v31 = vcombine.low %v11176_v9, %v11183_v29 }
 0x553   : > { %v11234_v42 = vrot.slane %v11226_v30, %v15382_v18 }
 0x554   : > { %v11241_v43 = vrot.slane %v11227_v31, %v15382_v18 }
 0x556   : > { %v11242_v26 = vcombine.low %v11234_v42, %v11241_v43 }
 0x558   : > { %v11249_v51 = vrot.slane %v11242_v26, %v15382_v18 }
 0x55a   : > { %v11251_v1 = vsel %vm11221_vm4, 0.0, %v11249_v51 }
 0x55b   : > { %11252 = vst.msk [vmem:[%s287_s8] sm:$0xf] %vm15464_vm11, %v11251_v1 }
 0x55c   : > { %13550 = shalt.err (!%p13547_p11)
}
 0x55d   : > { %s13551_s29 = scalar_lea.hbm %s15964_s15, 64  ;;  %s13555_s24 = scalar_lea.hbm %s16019_s5, 128 }
 0x55e   : > { %p13552_p12 = scmp.ne.s32.totalorder %s15964_s15, %s13551_s29  ;;  %p13556_p1 = scmp.lt.u32.totalorder %s15964_s15, %s16019_s5 }
 0x55f   : > { %p13557_p2 = scmp.lt.u32.totalorder %s13555_s24, %s13551_s29  ;;  %p13559_p5 = scmp.lt.u32.totalorder %s13551_s29, %s15964_s15 }
 0x560   : > { %p13553_p13 = pnand %p13552_p12, %p13694_p4 }
 0x561   : > { %p13558_p3 = por %p13557_p2, %p13556_p1 }
 0x562   : > { %p13554_p0 = pneg %p13553_p13 }
 0x563   : > { %p13560_p6 = por %p13559_p5, %p13558_p3 }
 0x565   : > { %p13561_p7 = pnand %p13560_p6, %p13554_p0 }
 0x567   : > { %13564 = shalt.err (!%p13561_p7)
}
 0x568   : > { %13432 = dma.vmem_to_hbm [thread:$0]  (%p13694_p4), %s15966_s9, 64, %s15964_s15, %s11259_s27  }
 0x569 PF: > { %p13442_p9 = scmp.ge.s32.totalorder %s13619_s23, 2  ;;  %s11299_s8 = sand.u32 1, %s13599_s18  }
 0x56a   : > { %s11300_s11 = scalar_lea.sflag [#allocation5], %s11299_s8 }
 0x56b   : > { %p13436_p10 = pnand %p13442_p9, %p13701_p8 }
 0x56d   : > { %13590 = dma.done.wait (!%p13436_p10), %s11300_s11, 64  }
 0x56e   : > { %13592 = vsyncadd (!%p13436_p10), %s11300_s11, 4294967232  ;;  %s11309_s12 = scalar_lea.sflag [#allocation7], %s11299_s8 }
 0x56f   : > { %13594 = dma.done.wait (!%p13436_p10), %s11309_s12, 64  }
 0x570   : > { %13596 = vsyncadd (!%p13436_p10), %s11309_s12, 4294967232  ;;  %s22_s23 = sadd.s32 1, %s13619_s23   ;;  %s16027_s18 = smov %s13603_s19 }
 0x571   : > { %p19_p11 = scmp.ge.s32.totalorder %s22_s23, 4   ;;  %s16028_s19 = smov %s13607_s20 }
 0x572   : > { %s16029_s20 = smov %s13707_s6  ;;  %s16030_s21 = smov %s13615_s22 }
 0x573   : > { %s16031_s22 = smov %s16033_s26  ;;  %21 = sbr.rel (!%p19_p11) target bundleno = 6 (0x6), region = 109 }
 0x57a   :  { %11314 = vsyncpa [#allocation5], 1 }
 0x57b   :  { %11316 = vsyncpa [#allocation5 + $0x1], 1 }
 0x57c   :  { %11317 = vsyncpa [#allocation7], 1 }
 0x57d   :  { %11319 = vsyncpa [#allocation7 + $0x1], 1 }

</bundles_post_ra>
